<compile_context>
chip_gen: v5e
topology: v5e:2x2
jax: 0.10.0
libtpu: 0.0.40
codegen_flags: <defaults>
</compile_context>

<pallas_src>
import functools

import jax
import jax.numpy as jnp
from jax import lax
from jax.experimental import pallas as pl
from jax.experimental.pallas import tpu as pltpu
from jax.scipy.linalg import block_diag


# ------------------------------ fused kernel --------------------------------

def tood_head_kernel(
    x_ref,        # (1, C, HW) f32      one batch element, channel-major
    wt_ref,       # (N, 9, C, C) bf16   THead 3x3 taps, (out, in) per tap
    bt_ref,       # (N, C, 1) f32
    w1_ref,       # (NC, C) f32         SE linear 1 (in -> out)
    b1_ref,       # (1, C) f32
    w2e_ref,      # (NC, C) f32         SE linear 2, tap->channel expansion folded in
    b2e_ref,      # (NC, 1) f32
    wa_ref,       # (3C, NC) bf16       merged 1x1 on x_inter: [offset|obj|mask] hiddens
    ba_ref,       # (3C, 1) f32
    wb_ref,       # (2C, NC) bf16       merged 1x1 on task-scaled feats: [zcls|zreg]
    bb_ref,       # (2C, 1) f32
    w3_ref,       # (9, nc+14, 5C) bf16 merged block-diagonal 3x3 heads, per tap
    b3_ref,       # (nc+14, 1) f32
    masks_ref,    # (9, HW) f32         3x3 border-validity masks
    gxy_ref,      # (2, HW) f32         [gx ; gy]
    srow_ref,     # (H, HW) f32         flat->2D row-selector
    scol_ref,     # (HW, W) f32         flat->2D col-selector
    o_ref,        # (1, nc+5, HW) f32   output
    *, H, W, C, N, nc,
):
    f32 = jnp.float32
    bf16 = jnp.bfloat16
    HW = H * W

    offs = [(dy, dx) for dy in (-1, 0, 1) for dx in (-1, 0, 1)]
    mask_rows = [masks_ref[k:k + 1, :] for k in range(9)]

    def conv3x3(x, w9, b_col):
        # x: (Cin, HW) f32; w9: (9, Cout, Cin) bf16; b_col: (Cout, 1) f32.
        # 9 lane-rolls + border masks + accumulating MXU matmuls (bf16 in, f32 acc).
        acc = None
        for k, (dy, dx) in enumerate(offs):
            off = dy * W + dx
            if off == 0:
                tap = x
            else:
                tap = pltpu.roll(x, shift=(-off) % HW, axis=1) * mask_rows[k]
            c = jnp.dot(w9[k], tap.astype(bf16), preferred_element_type=f32)
            acc = c if acc is None else acc + c
        return acc + b_col

    # ---------------- THead: N sequential 3x3 conv + ReLU --------------------
    h = x_ref[0]                                                   # (C, HW)
    taps = []
    for n in range(N):
        h = jnp.maximum(conv3x3(h, wt_ref[n], bt_ref[n]), 0.0)     # (C, HW)
        taps.append(h)
    x_inter = jnp.concatenate(taps, axis=0)                        # (NC, HW)

    # -------- layer attention (SE): pool + MLP, broadcast/reduce only --------
    pooled = jnp.mean(x_inter, axis=1, keepdims=True)              # (NC, 1)
    hmlp = jnp.maximum(
        jnp.sum(w1_ref[...] * pooled, axis=0, keepdims=True) + b1_ref[...], 0.0)   # (1, C)
    wexp = jax.nn.sigmoid(
        jnp.sum(w2e_ref[...] * hmlp, axis=1, keepdims=True) + b2e_ref[...])        # (NC, 1)

    # ---------------- merged 1x1 branches + ReLU ------------------------------
    hid_a = jnp.maximum(
        jnp.dot(wa_ref[...], x_inter.astype(bf16), preferred_element_type=f32)
        + ba_ref[...], 0.0)                                        # (3C, HW)
    # task scale applied as a rank-1 channel broadcast (== folding into Wb cols)
    hid_b = jnp.maximum(
        jnp.dot(wb_ref[...], (x_inter * wexp).astype(bf16), preferred_element_type=f32)
        + bb_ref[...], 0.0)                                        # (2C, HW)
    hidden = jnp.concatenate([hid_a, hid_b], axis=0)               # (5C, HW)

    # ---------------- merged block-diagonal 3x3 heads -------------------------
    heads = conv3x3(hidden, w3_ref[...], b3_ref[...])              # (nc+14, HW)
    o_align = heads[0:8]                                           # (8, HW)
    obj_raw = heads[8:9]
    m_raw = heads[9:10]
    z_cls = heads[10:10 + nc]
    z_reg = heads[10 + nc:14 + nc]                                 # (4, HW): l,t,r,b

    # ---------------- epilogues ------------------------------------------------
    m_align = jax.nn.sigmoid(m_raw)
    p_align = jnp.sqrt(jax.nn.sigmoid(z_cls) * m_align)            # (nc, HW)
    obj = jax.nn.sigmoid(obj_raw)                                  # (1, HW)

    gx = gxy_ref[0:1, :]
    gy = gxy_ref[1:2, :]
    # distances -> bboxes (training path: stride buffer == 1.0)
    # TODO(synk): eval-path per-level stride rescale / grid decode omitted.
    bbox_rows = (gx - z_reg[0:1], gy - z_reg[1:2],
                 gx + z_reg[2:3], gy + z_reg[3:4])                 # 4 x (1, HW)

    # align_b: bilinear grid_sample(align_corners=True, zeros padding), factored:
    #   img2d = (srow * bbox_flat) @ scol          (flat -> (H, W) via MXU)
    #   tx    = img2d @ wcol                       (column gather, (H, HW))
    #   g     = sum_r(wrow * tx)                   (row pick, sublane reduce)
    srow = srow_ref[...]
    scol = scol_ref[...]
    row_iota = lax.broadcasted_iota(jnp.int32, (H, HW), 0).astype(f32)
    col_iota = lax.broadcasted_iota(jnp.int32, (W, HW), 0).astype(f32)

    aligned = []
    for i in range(4):
        sx = gx + o_align[2 * i:2 * i + 1]
        sy = gy + o_align[2 * i + 1:2 * i + 2]
        cx0 = jnp.floor(sx)
        cy0 = jnp.floor(sy)
        fx = sx - cx0
        fy = sy - cy0
        # out-of-range corners never match the iota -> zero contribution (zeros pad)
        wcol = ((col_iota == cx0).astype(f32) * (1.0 - fx)
                + (col_iota == cx0 + 1.0).astype(f32) * fx)        # (W, HW)
        wrow = ((row_iota == cy0).astype(f32) * (1.0 - fy)
                + (row_iota == cy0 + 1.0).astype(f32) * fy)        # (H, HW)
        img2d = jnp.dot(srow * bbox_rows[i], scol,
                        preferred_element_type=f32)                # (H, W)
        tx = jnp.dot(img2d, wcol, preferred_element_type=f32)      # (H, HW)
        aligned.append(jnp.sum(wrow * tx, axis=0, keepdims=True))  # (1, HW)

    # ---------------- assemble YOLO output [box(4), obj(1), cls(nc)] ----------
    yolo = jnp.concatenate(aligned + [obj, p_align], axis=0)       # (nc+5, HW)
    o_ref[0] = yolo


# ------------------------------ weight packing --------------------------------

def pack_params(params, *, nc, N, C, H, W):
    """One-time (outside-jit) packing into kernel-friendly layouts."""
    f32 = jnp.float32
    bf16 = jnp.bfloat16
    HW = H * W

    def tap_mats(w):  # (3,3,Cin,Cout) -> (9, Cout, Cin)
        return jnp.transpose(w, (0, 1, 3, 2)).reshape(9, w.shape[3], w.shape[2])

    # THead
    wt = jnp.stack([tap_mats(p["w"]) for p in params["thead"]]).astype(bf16)     # (N,9,C,C)
    bt = jnp.stack([p["b"].reshape(C, 1) for p in params["thead"]]).astype(f32)  # (N,C,1)

    # SE MLP; fold the per-tap -> per-channel expansion into W2 / b2.
    w1 = params["w_mlp"]["w1"].astype(f32)                                       # (NC, C)
    b1 = params["w_mlp"]["b1"].reshape(1, C).astype(f32)
    rep = jnp.repeat(jnp.eye(N, dtype=f32), C, axis=0)                           # (NC, N)
    w2e = (rep @ params["w_mlp"]["w2"].T).astype(f32)                            # (NC, C)
    b2e = (rep @ params["w_mlp"]["b2"].reshape(N, 1)).astype(f32)                # (NC, 1)

    # Merged 1x1s; hidden channel group order: [offset, obj, mask, zcls, zreg]
    wa = jnp.concatenate([params["reg"]["o1w"].T, params["obj"]["w1"].T,
                          params["cls"]["m1w"].T], axis=0).astype(bf16)          # (3C, NC)
    ba = jnp.concatenate([params["reg"]["o1b"], params["obj"]["b1"],
                          params["cls"]["m1b"]]).reshape(3 * C, 1).astype(f32)
    wb = jnp.concatenate([params["cls"]["z1w"].T, params["reg"]["z1w"].T],
                         axis=0).astype(bf16)                                    # (2C, NC)
    bb = jnp.concatenate([params["cls"]["z1b"], params["reg"]["z1b"]]
                         ).reshape(2 * C, 1).astype(f32)

    # Merged block-diagonal 3x3 heads, per tap.
    # Output rows: [o_align(8), obj(1), m(1), z_cls(nc), z_reg(4)].
    o3 = tap_mats(params["reg"]["o3w"])
    j3 = tap_mats(params["obj"]["w3"])
    m3 = tap_mats(params["cls"]["m3w"])
    zc3 = tap_mats(params["cls"]["z3w"])
    zr3 = tap_mats(params["reg"]["z3w"])
    w3 = jnp.stack([block_diag(o3[k], j3[k], m3[k], zc3[k], zr3[k])
                    for k in range(9)]).astype(bf16)                             # (9, nc+14, 5C)
    b3 = jnp.concatenate([params["reg"]["o3b"], params["obj"]["b3"],
                          params["cls"]["m3b"], params["cls"]["z3b"],
                          params["reg"]["z3b"]]).reshape(nc + 14, 1).astype(f32)

    # Constants: grid coords, conv border masks, flat->2D selector matrices.
    ys, xs = jnp.meshgrid(jnp.arange(H, dtype=f32), jnp.arange(W, dtype=f32),
                          indexing="ij")
    gxy = jnp.stack([xs.reshape(HW), ys.reshape(HW)], axis=0)                    # (2, HW)
    mrows = []
    for dy in (-1, 0, 1):
        for dx in (-1, 0, 1):
            m = ((xs + dx >= 0) & (xs + dx <= W - 1) &
                 (ys + dy >= 0) & (ys + dy <= H - 1))
            mrows.append(m.reshape(1, HW).astype(f32))
    masks = jnp.concatenate(mrows, axis=0)                                       # (9, HW)
    q = jnp.arange(HW)
    srow = (q[None, :] // W == jnp.arange(H)[:, None]).astype(f32)               # (H, HW)
    scol = (q[:, None] % W == jnp.arange(W)[None, :]).astype(f32)                # (HW, W)

    return (wt, bt, w1, b1, w2e, b2e, wa, ba, wb, bb, w3, b3, masks, gxy, srow, scol)


# ------------------------------ wrapper ----------------------------------------

def tood_forward(packed, x_nchw, *, na, nc, N):
    """Training-mode TOODHead.process_level for a single pyramid level."""
    B, C, H, W = x_nchw.shape
    HW = H * W
    no = nc + 5
    x = x_nchw.astype(jnp.float32).reshape(B, C, HW)   # channel-major, no transpose

    kern = functools.partial(tood_head_kernel, H=H, W=W, C=C, N=N, nc=nc)

    def _full_spec(a):
        nd = a.ndim
        return pl.BlockSpec(a.shape, lambda b, _nd=nd: (0,) * _nd)

    out = pl.pallas_call(
        kern,
        out_shape=jax.ShapeDtypeStruct((B, no, HW), jnp.float32),
        grid=(B,),
        in_specs=[pl.BlockSpec((1, C, HW), lambda b: (b, 0, 0))]
                 + [_full_spec(a) for a in packed],
        out_specs=pl.BlockSpec((1, no, HW), lambda b: (b, 0, 0)),
        compiler_params=pltpu.CompilerParams(
            dimension_semantics=("parallel",)),
    )(x, *packed)

    # (B, no, HW) -> (B, H, W, no) -> expand anchors: (B, na, H, W, no)
    out = jnp.transpose(out.reshape(B, no, H, W), (0, 2, 3, 1))
    return jnp.broadcast_to(out[:, None], (B, na, H, W, no))


# ------------------------------ parameters -------------------------------------

def init_params(key, C, N, nc):
    keys = iter(jax.random.split(key, 32))

    def w(shape, std):
        return jax.random.normal(next(keys), shape, jnp.float32) * std

    kaiming_std = (2.0 / (C * 9)) ** 0.5
    zc = lambda n: jnp.zeros((n,), jnp.float32)
    NC = N * C
    return {
        "thead": [{"w": w((3, 3, C, C), kaiming_std), "b": zc(C)} for _ in range(N)],
        "w_mlp": {"w1": w((NC, C), 0.01), "b1": zc(C),
                  "w2": w((C, N), 0.01), "b2": zc(N)},
        "cls": {"m1w": w((NC, C), 0.01), "m1b": zc(C),
                "m3w": w((3, 3, C, 1), 0.01), "m3b": zc(1),
                "z1w": w((NC, C), 0.01), "z1b": zc(C),
                "z3w": w((3, 3, C, nc), 0.01), "z3b": zc(nc)},
        "reg": {"o1w": w((NC, C), 0.01), "o1b": zc(C),
                "o3w": w((3, 3, C, 8), 0.01), "o3b": zc(8),
                "z1w": w((NC, C), 0.01), "z1b": zc(C),
                "z3w": w((3, 3, C, 4), 0.01), "z3b": zc(4)},
        "obj": {"w1": w((NC, C), 0.01), "b1": zc(C),
                "w3": w((3, 3, C, 1), 0.01), "b3": zc(1)},
    }


# --------------------------------- main -----------------------------------------

if __name__ == "__main__":
    C, N, nc, na = 8, 6, 8, 3      # ch=(8,), N=6 taps, 8 classes, 3 anchors/level
    B, H, W = 2, 16, 16

    key = jax.random.PRNGKey(0)
    k_params, k_x = jax.random.split(key)
    params = init_params(k_params, C, N, nc)
    packed = pack_params(params, nc=nc, N=N, C=C, H=H, W=W)   # one-time, outside jit
    x = jax.random.normal(k_x, (B, C, H, W), dtype=jnp.float32)   # NCHW like PyTorch

    fwd = jax.jit(functools.partial(tood_forward, na=na, nc=nc, N=N))
    out = jax.block_until_ready(fwd(packed, x))

    assert out.shape == (B, na, H, W, nc + 5), out.shape
    assert bool(jnp.all(jnp.isfinite(out)))
    print("KERNEL_OK")
</pallas_src>

<mosaic_0001>
module attributes {stable_mosaic.version = 11 : i64} {
  func.func @tood_head_kernel(%arg0: i32, %arg1: memref<1x8x256xf32, #tpu.memory_space<vmem>>, %arg2: memref<6x9x8x8xbf16, #tpu.memory_space<vmem>>, %arg3: memref<6x8x1xf32, #tpu.memory_space<vmem>>, %arg4: memref<48x8xf32, #tpu.memory_space<vmem>>, %arg5: memref<1x8xf32, #tpu.memory_space<vmem>>, %arg6: memref<48x8xf32, #tpu.memory_space<vmem>>, %arg7: memref<48x1xf32, #tpu.memory_space<vmem>>, %arg8: memref<24x48xbf16, #tpu.memory_space<vmem>>, %arg9: memref<24x1xf32, #tpu.memory_space<vmem>>, %arg10: memref<16x48xbf16, #tpu.memory_space<vmem>>, %arg11: memref<16x1xf32, #tpu.memory_space<vmem>>, %arg12: memref<9x22x40xbf16, #tpu.memory_space<vmem>>, %arg13: memref<22x1xf32, #tpu.memory_space<vmem>>, %arg14: memref<9x256xf32, #tpu.memory_space<vmem>>, %arg15: memref<2x256xf32, #tpu.memory_space<vmem>>, %arg16: memref<16x256xf32, #tpu.memory_space<vmem>>, %arg17: memref<256x16xf32, #tpu.memory_space<vmem>>, %arg18: memref<1x13x256xf32, #tpu.memory_space<vmem>>) attributes {dimension_semantics = [#tpu.dimension_semantics<parallel>], iteration_bounds = array<i64: 2>, scalar_prefetch = 0 : i64, scratch_operands = 0 : i64, tpu.core_type = #tpu.core_type<tc>, window_params = [{transform_indices = @transform_0, window_bounds = array<i64: 1, 8, 256>}, {pipeline_mode = #tpu.pipeline_mode<synchronous>, transform_indices = @transform_1, window_bounds = array<i64: 6, 9, 8, 8>}, {pipeline_mode = #tpu.pipeline_mode<synchronous>, transform_indices = @transform_2, window_bounds = array<i64: 6, 8, 1>}, {pipeline_mode = #tpu.pipeline_mode<synchronous>, transform_indices = @transform_3, window_bounds = array<i64: 48, 8>}, {pipeline_mode = #tpu.pipeline_mode<synchronous>, transform_indices = @transform_4, window_bounds = array<i64: 1, 8>}, {pipeline_mode = #tpu.pipeline_mode<synchronous>, transform_indices = @transform_5, window_bounds = array<i64: 48, 8>}, {pipeline_mode = #tpu.pipeline_mode<synchronous>, transform_indices = @transform_6, window_bounds = array<i64: 48, 1>}, {pipeline_mode = #tpu.pipeline_mode<synchronous>, transform_indices = @transform_7, window_bounds = array<i64: 24, 48>}, {pipeline_mode = #tpu.pipeline_mode<synchronous>, transform_indices = @transform_8, window_bounds = array<i64: 24, 1>}, {pipeline_mode = #tpu.pipeline_mode<synchronous>, transform_indices = @transform_9, window_bounds = array<i64: 16, 48>}, {pipeline_mode = #tpu.pipeline_mode<synchronous>, transform_indices = @transform_10, window_bounds = array<i64: 16, 1>}, {pipeline_mode = #tpu.pipeline_mode<synchronous>, transform_indices = @transform_11, window_bounds = array<i64: 9, 22, 40>}, {pipeline_mode = #tpu.pipeline_mode<synchronous>, transform_indices = @transform_12, window_bounds = array<i64: 22, 1>}, {pipeline_mode = #tpu.pipeline_mode<synchronous>, transform_indices = @transform_13, window_bounds = array<i64: 9, 256>}, {pipeline_mode = #tpu.pipeline_mode<synchronous>, transform_indices = @transform_14, window_bounds = array<i64: 2, 256>}, {pipeline_mode = #tpu.pipeline_mode<synchronous>, transform_indices = @transform_15, window_bounds = array<i64: 16, 256>}, {pipeline_mode = #tpu.pipeline_mode<synchronous>, transform_indices = @transform_16, window_bounds = array<i64: 256, 16>}, {transform_indices = @transform_17, window_bounds = array<i64: 1, 13, 256>}]} {
    %c0 = arith.constant 0 : index
    %c0_0 = arith.constant 0 : index
    %0 = vector.load %arg14[%c0, %c0_0] : memref<9x256xf32, #tpu.memory_space<vmem>>, vector<1x256xf32>
    %c1 = arith.constant 1 : index
    %c0_1 = arith.constant 0 : index
    %1 = vector.load %arg14[%c1, %c0_1] : memref<9x256xf32, #tpu.memory_space<vmem>>, vector<1x256xf32>
    %c2 = arith.constant 2 : index
    %c0_2 = arith.constant 0 : index
    %2 = vector.load %arg14[%c2, %c0_2] : memref<9x256xf32, #tpu.memory_space<vmem>>, vector<1x256xf32>
    %c3 = arith.constant 3 : index
    %c0_3 = arith.constant 0 : index
    %3 = vector.load %arg14[%c3, %c0_3] : memref<9x256xf32, #tpu.memory_space<vmem>>, vector<1x256xf32>
    %c5 = arith.constant 5 : index
    %c0_4 = arith.constant 0 : index
    %4 = vector.load %arg14[%c5, %c0_4] : memref<9x256xf32, #tpu.memory_space<vmem>>, vector<1x256xf32>
    %c6 = arith.constant 6 : index
    %c0_5 = arith.constant 0 : index
    %5 = vector.load %arg14[%c6, %c0_5] : memref<9x256xf32, #tpu.memory_space<vmem>>, vector<1x256xf32>
    %c7 = arith.constant 7 : index
    %c0_6 = arith.constant 0 : index
    %6 = vector.load %arg14[%c7, %c0_6] : memref<9x256xf32, #tpu.memory_space<vmem>>, vector<1x256xf32>
    %c8 = arith.constant 8 : index
    %c0_7 = arith.constant 0 : index
    %7 = vector.load %arg14[%c8, %c0_7] : memref<9x256xf32, #tpu.memory_space<vmem>>, vector<1x256xf32>
    %c0_8 = arith.constant 0 : index
    %c0_9 = arith.constant 0 : index
    %c0_10 = arith.constant 0 : index
    %8 = vector.load %arg1[%c0_8, %c0_9, %c0_10] : memref<1x8x256xf32, #tpu.memory_space<vmem>>, vector<1x8x256xf32>
    %9 = vector.shape_cast %8 : vector<1x8x256xf32> to vector<8x256xf32>
    %c0_11 = arith.constant 0 : index
    %c0_12 = arith.constant 0 : index
    %c0_13 = arith.constant 0 : index
    %c0_14 = arith.constant 0 : index
    %10 = vector.load %arg2[%c0_11, %c0_12, %c0_13, %c0_14] : memref<6x9x8x8xbf16, #tpu.memory_space<vmem>>, vector<1x9x8x8xbf16>
    %11 = vector.shape_cast %10 : vector<1x9x8x8xbf16> to vector<9x8x8xbf16>
    %c0_15 = arith.constant 0 : index
    %c0_16 = arith.constant 0 : index
    %c0_17 = arith.constant 0 : index
    %12 = vector.load %arg3[%c0_15, %c0_16, %c0_17] : memref<6x8x1xf32, #tpu.memory_space<vmem>>, vector<1x8x1xf32>
    %13 = vector.shape_cast %12 : vector<1x8x1xf32> to vector<8x1xf32>
    %c17_i32 = arith.constant 17 : i32
    %14 = tpu.dynamic_rotate %9 by %c17_i32 dim 1 : vector<8x256xf32>, i32 -> vector<8x256xf32>
    %15 = vector.broadcast %0 : vector<1x256xf32> to vector<8x256xf32>
    %16 = arith.mulf %14, %15 : vector<8x256xf32>
    %17 = vector.extract_strided_slice %11 {offsets = [0, 0, 0], sizes = [1, 8, 8], strides = [1, 1, 1]} : vector<9x8x8xbf16> to vector<1x8x8xbf16>
    %18 = vector.shape_cast %17 : vector<1x8x8xbf16> to vector<8x8xbf16>
    %19 = arith.truncf %16 : vector<8x256xf32> to vector<8x256xbf16>
    %cst = arith.constant dense<0.000000e+00> : vector<8x256xf32>
    %20 = tpu.matmul %18, %19, %cst {dimension_numbers = #tpu.dot_dimension_numbers<[1], [0], [0], [1], [0, 0, 1, 1], [], []>} : vector<8x8xbf16>, vector<8x256xbf16>, vector<8x256xf32> -> vector<8x256xf32>
    %c16_i32 = arith.constant 16 : i32
    %21 = tpu.dynamic_rotate %9 by %c16_i32 dim 1 : vector<8x256xf32>, i32 -> vector<8x256xf32>
    %22 = vector.broadcast %1 : vector<1x256xf32> to vector<8x256xf32>
    %23 = arith.mulf %21, %22 : vector<8x256xf32>
    %24 = vector.extract_strided_slice %11 {offsets = [1, 0, 0], sizes = [1, 8, 8], strides = [1, 1, 1]} : vector<9x8x8xbf16> to vector<1x8x8xbf16>
    %25 = vector.shape_cast %24 : vector<1x8x8xbf16> to vector<8x8xbf16>
    %26 = arith.truncf %23 : vector<8x256xf32> to vector<8x256xbf16>
    %cst_18 = arith.constant dense<0.000000e+00> : vector<8x256xf32>
    %27 = tpu.matmul %25, %26, %cst_18 {dimension_numbers = #tpu.dot_dimension_numbers<[1], [0], [0], [1], [0, 0, 1, 1], [], []>} : vector<8x8xbf16>, vector<8x256xbf16>, vector<8x256xf32> -> vector<8x256xf32>
    %28 = arith.addf %20, %27 : vector<8x256xf32>
    %c15_i32 = arith.constant 15 : i32
    %29 = tpu.dynamic_rotate %9 by %c15_i32 dim 1 : vector<8x256xf32>, i32 -> vector<8x256xf32>
    %30 = vector.broadcast %2 : vector<1x256xf32> to vector<8x256xf32>
    %31 = arith.mulf %29, %30 : vector<8x256xf32>
    %32 = vector.extract_strided_slice %11 {offsets = [2, 0, 0], sizes = [1, 8, 8], strides = [1, 1, 1]} : vector<9x8x8xbf16> to vector<1x8x8xbf16>
    %33 = vector.shape_cast %32 : vector<1x8x8xbf16> to vector<8x8xbf16>
    %34 = arith.truncf %31 : vector<8x256xf32> to vector<8x256xbf16>
    %cst_19 = arith.constant dense<0.000000e+00> : vector<8x256xf32>
    %35 = tpu.matmul %33, %34, %cst_19 {dimension_numbers = #tpu.dot_dimension_numbers<[1], [0], [0], [1], [0, 0, 1, 1], [], []>} : vector<8x8xbf16>, vector<8x256xbf16>, vector<8x256xf32> -> vector<8x256xf32>
    %36 = arith.addf %28, %35 : vector<8x256xf32>
    %c1_i32 = arith.constant 1 : i32
    %37 = tpu.dynamic_rotate %9 by %c1_i32 dim 1 : vector<8x256xf32>, i32 -> vector<8x256xf32>
    %38 = vector.broadcast %3 : vector<1x256xf32> to vector<8x256xf32>
    %39 = arith.mulf %37, %38 : vector<8x256xf32>
    %40 = vector.extract_strided_slice %11 {offsets = [3, 0, 0], sizes = [1, 8, 8], strides = [1, 1, 1]} : vector<9x8x8xbf16> to vector<1x8x8xbf16>
    %41 = vector.shape_cast %40 : vector<1x8x8xbf16> to vector<8x8xbf16>
    %42 = arith.truncf %39 : vector<8x256xf32> to vector<8x256xbf16>
    %cst_20 = arith.constant dense<0.000000e+00> : vector<8x256xf32>
    %43 = tpu.matmul %41, %42, %cst_20 {dimension_numbers = #tpu.dot_dimension_numbers<[1], [0], [0], [1], [0, 0, 1, 1], [], []>} : vector<8x8xbf16>, vector<8x256xbf16>, vector<8x256xf32> -> vector<8x256xf32>
    %44 = arith.addf %36, %43 : vector<8x256xf32>
    %45 = vector.extract_strided_slice %11 {offsets = [4, 0, 0], sizes = [1, 8, 8], strides = [1, 1, 1]} : vector<9x8x8xbf16> to vector<1x8x8xbf16>
    %46 = vector.shape_cast %45 : vector<1x8x8xbf16> to vector<8x8xbf16>
    %47 = arith.truncf %9 : vector<8x256xf32> to vector<8x256xbf16>
    %cst_21 = arith.constant dense<0.000000e+00> : vector<8x256xf32>
    %48 = tpu.matmul %46, %47, %cst_21 {dimension_numbers = #tpu.dot_dimension_numbers<[1], [0], [0], [1], [0, 0, 1, 1], [], []>} : vector<8x8xbf16>, vector<8x256xbf16>, vector<8x256xf32> -> vector<8x256xf32>
    %49 = arith.addf %44, %48 : vector<8x256xf32>
    %c255_i32 = arith.constant 255 : i32
    %50 = tpu.dynamic_rotate %9 by %c255_i32 dim 1 : vector<8x256xf32>, i32 -> vector<8x256xf32>
    %51 = vector.broadcast %4 : vector<1x256xf32> to vector<8x256xf32>
    %52 = arith.mulf %50, %51 : vector<8x256xf32>
    %53 = vector.extract_strided_slice %11 {offsets = [5, 0, 0], sizes = [1, 8, 8], strides = [1, 1, 1]} : vector<9x8x8xbf16> to vector<1x8x8xbf16>
    %54 = vector.shape_cast %53 : vector<1x8x8xbf16> to vector<8x8xbf16>
    %55 = arith.truncf %52 : vector<8x256xf32> to vector<8x256xbf16>
    %cst_22 = arith.constant dense<0.000000e+00> : vector<8x256xf32>
    %56 = tpu.matmul %54, %55, %cst_22 {dimension_numbers = #tpu.dot_dimension_numbers<[1], [0], [0], [1], [0, 0, 1, 1], [], []>} : vector<8x8xbf16>, vector<8x256xbf16>, vector<8x256xf32> -> vector<8x256xf32>
    %57 = arith.addf %49, %56 : vector<8x256xf32>
    %c241_i32 = arith.constant 241 : i32
    %58 = tpu.dynamic_rotate %9 by %c241_i32 dim 1 : vector<8x256xf32>, i32 -> vector<8x256xf32>
    %59 = vector.broadcast %5 : vector<1x256xf32> to vector<8x256xf32>
    %60 = arith.mulf %58, %59 : vector<8x256xf32>
    %61 = vector.extract_strided_slice %11 {offsets = [6, 0, 0], sizes = [1, 8, 8], strides = [1, 1, 1]} : vector<9x8x8xbf16> to vector<1x8x8xbf16>
    %62 = vector.shape_cast %61 : vector<1x8x8xbf16> to vector<8x8xbf16>
    %63 = arith.truncf %60 : vector<8x256xf32> to vector<8x256xbf16>
    %cst_23 = arith.constant dense<0.000000e+00> : vector<8x256xf32>
    %64 = tpu.matmul %62, %63, %cst_23 {dimension_numbers = #tpu.dot_dimension_numbers<[1], [0], [0], [1], [0, 0, 1, 1], [], []>} : vector<8x8xbf16>, vector<8x256xbf16>, vector<8x256xf32> -> vector<8x256xf32>
    %65 = arith.addf %57, %64 : vector<8x256xf32>
    %c240_i32 = arith.constant 240 : i32
    %66 = tpu.dynamic_rotate %9 by %c240_i32 dim 1 : vector<8x256xf32>, i32 -> vector<8x256xf32>
    %67 = vector.broadcast %6 : vector<1x256xf32> to vector<8x256xf32>
    %68 = arith.mulf %66, %67 : vector<8x256xf32>
    %69 = vector.extract_strided_slice %11 {offsets = [7, 0, 0], sizes = [1, 8, 8], strides = [1, 1, 1]} : vector<9x8x8xbf16> to vector<1x8x8xbf16>
    %70 = vector.shape_cast %69 : vector<1x8x8xbf16> to vector<8x8xbf16>
    %71 = arith.truncf %68 : vector<8x256xf32> to vector<8x256xbf16>
    %cst_24 = arith.constant dense<0.000000e+00> : vector<8x256xf32>
    %72 = tpu.matmul %70, %71, %cst_24 {dimension_numbers = #tpu.dot_dimension_numbers<[1], [0], [0], [1], [0, 0, 1, 1], [], []>} : vector<8x8xbf16>, vector<8x256xbf16>, vector<8x256xf32> -> vector<8x256xf32>
    %73 = arith.addf %65, %72 : vector<8x256xf32>
    %c239_i32 = arith.constant 239 : i32
    %74 = tpu.dynamic_rotate %9 by %c239_i32 dim 1 : vector<8x256xf32>, i32 -> vector<8x256xf32>
    %75 = vector.broadcast %7 : vector<1x256xf32> to vector<8x256xf32>
    %76 = arith.mulf %74, %75 : vector<8x256xf32>
    %77 = vector.extract_strided_slice %11 {offsets = [8, 0, 0], sizes = [1, 8, 8], strides = [1, 1, 1]} : vector<9x8x8xbf16> to vector<1x8x8xbf16>
    %78 = vector.shape_cast %77 : vector<1x8x8xbf16> to vector<8x8xbf16>
    %79 = arith.truncf %76 : vector<8x256xf32> to vector<8x256xbf16>
    %cst_25 = arith.constant dense<0.000000e+00> : vector<8x256xf32>
    %80 = tpu.matmul %78, %79, %cst_25 {dimension_numbers = #tpu.dot_dimension_numbers<[1], [0], [0], [1], [0, 0, 1, 1], [], []>} : vector<8x8xbf16>, vector<8x256xbf16>, vector<8x256xf32> -> vector<8x256xf32>
    %81 = arith.addf %73, %80 : vector<8x256xf32>
    %82 = vector.broadcast %13 : vector<8x1xf32> to vector<8x256xf32>
    %83 = arith.addf %81, %82 : vector<8x256xf32>
    %cst_26 = arith.constant 0.000000e+00 : f32
    %84 = vector.broadcast %cst_26 : f32 to vector<8x256xf32>
    %85 = arith.maximumf %83, %84 : vector<8x256xf32>
    %c1_27 = arith.constant 1 : index
    %c0_28 = arith.constant 0 : index
    %c0_29 = arith.constant 0 : index
    %c0_30 = arith.constant 0 : index
    %86 = vector.load %arg2[%c1_27, %c0_28, %c0_29, %c0_30] : memref<6x9x8x8xbf16, #tpu.memory_space<vmem>>, vector<1x9x8x8xbf16>
    %87 = vector.shape_cast %86 : vector<1x9x8x8xbf16> to vector<9x8x8xbf16>
    %c1_31 = arith.constant 1 : index
    %c0_32 = arith.constant 0 : index
    %c0_33 = arith.constant 0 : index
    %88 = vector.load %arg3[%c1_31, %c0_32, %c0_33] : memref<6x8x1xf32, #tpu.memory_space<vmem>>, vector<1x8x1xf32>
    %89 = vector.shape_cast %88 : vector<1x8x1xf32> to vector<8x1xf32>
    %c17_i32_34 = arith.constant 17 : i32
    %90 = tpu.dynamic_rotate %85 by %c17_i32_34 dim 1 : vector<8x256xf32>, i32 -> vector<8x256xf32>
    %91 = vector.broadcast %0 : vector<1x256xf32> to vector<8x256xf32>
    %92 = arith.mulf %90, %91 : vector<8x256xf32>
    %93 = vector.extract_strided_slice %87 {offsets = [0, 0, 0], sizes = [1, 8, 8], strides = [1, 1, 1]} : vector<9x8x8xbf16> to vector<1x8x8xbf16>
    %94 = vector.shape_cast %93 : vector<1x8x8xbf16> to vector<8x8xbf16>
    %95 = arith.truncf %92 : vector<8x256xf32> to vector<8x256xbf16>
    %cst_35 = arith.constant dense<0.000000e+00> : vector<8x256xf32>
    %96 = tpu.matmul %94, %95, %cst_35 {dimension_numbers = #tpu.dot_dimension_numbers<[1], [0], [0], [1], [0, 0, 1, 1], [], []>} : vector<8x8xbf16>, vector<8x256xbf16>, vector<8x256xf32> -> vector<8x256xf32>
    %c16_i32_36 = arith.constant 16 : i32
    %97 = tpu.dynamic_rotate %85 by %c16_i32_36 dim 1 : vector<8x256xf32>, i32 -> vector<8x256xf32>
    %98 = vector.broadcast %1 : vector<1x256xf32> to vector<8x256xf32>
    %99 = arith.mulf %97, %98 : vector<8x256xf32>
    %100 = vector.extract_strided_slice %87 {offsets = [1, 0, 0], sizes = [1, 8, 8], strides = [1, 1, 1]} : vector<9x8x8xbf16> to vector<1x8x8xbf16>
    %101 = vector.shape_cast %100 : vector<1x8x8xbf16> to vector<8x8xbf16>
    %102 = arith.truncf %99 : vector<8x256xf32> to vector<8x256xbf16>
    %cst_37 = arith.constant dense<0.000000e+00> : vector<8x256xf32>
    %103 = tpu.matmul %101, %102, %cst_37 {dimension_numbers = #tpu.dot_dimension_numbers<[1], [0], [0], [1], [0, 0, 1, 1], [], []>} : vector<8x8xbf16>, vector<8x256xbf16>, vector<8x256xf32> -> vector<8x256xf32>
    %104 = arith.addf %96, %103 : vector<8x256xf32>
    %c15_i32_38 = arith.constant 15 : i32
    %105 = tpu.dynamic_rotate %85 by %c15_i32_38 dim 1 : vector<8x256xf32>, i32 -> vector<8x256xf32>
    %106 = vector.broadcast %2 : vector<1x256xf32> to vector<8x256xf32>
    %107 = arith.mulf %105, %106 : vector<8x256xf32>
    %108 = vector.extract_strided_slice %87 {offsets = [2, 0, 0], sizes = [1, 8, 8], strides = [1, 1, 1]} : vector<9x8x8xbf16> to vector<1x8x8xbf16>
    %109 = vector.shape_cast %108 : vector<1x8x8xbf16> to vector<8x8xbf16>
    %110 = arith.truncf %107 : vector<8x256xf32> to vector<8x256xbf16>
    %cst_39 = arith.constant dense<0.000000e+00> : vector<8x256xf32>
    %111 = tpu.matmul %109, %110, %cst_39 {dimension_numbers = #tpu.dot_dimension_numbers<[1], [0], [0], [1], [0, 0, 1, 1], [], []>} : vector<8x8xbf16>, vector<8x256xbf16>, vector<8x256xf32> -> vector<8x256xf32>
    %112 = arith.addf %104, %111 : vector<8x256xf32>
    %c1_i32_40 = arith.constant 1 : i32
    %113 = tpu.dynamic_rotate %85 by %c1_i32_40 dim 1 : vector<8x256xf32>, i32 -> vector<8x256xf32>
    %114 = vector.broadcast %3 : vector<1x256xf32> to vector<8x256xf32>
    %115 = arith.mulf %113, %114 : vector<8x256xf32>
    %116 = vector.extract_strided_slice %87 {offsets = [3, 0, 0], sizes = [1, 8, 8], strides = [1, 1, 1]} : vector<9x8x8xbf16> to vector<1x8x8xbf16>
    %117 = vector.shape_cast %116 : vector<1x8x8xbf16> to vector<8x8xbf16>
    %118 = arith.truncf %115 : vector<8x256xf32> to vector<8x256xbf16>
    %cst_41 = arith.constant dense<0.000000e+00> : vector<8x256xf32>
    %119 = tpu.matmul %117, %118, %cst_41 {dimension_numbers = #tpu.dot_dimension_numbers<[1], [0], [0], [1], [0, 0, 1, 1], [], []>} : vector<8x8xbf16>, vector<8x256xbf16>, vector<8x256xf32> -> vector<8x256xf32>
    %120 = arith.addf %112, %119 : vector<8x256xf32>
    %121 = vector.extract_strided_slice %87 {offsets = [4, 0, 0], sizes = [1, 8, 8], strides = [1, 1, 1]} : vector<9x8x8xbf16> to vector<1x8x8xbf16>
    %122 = vector.shape_cast %121 : vector<1x8x8xbf16> to vector<8x8xbf16>
    %123 = arith.truncf %85 : vector<8x256xf32> to vector<8x256xbf16>
    %cst_42 = arith.constant dense<0.000000e+00> : vector<8x256xf32>
    %124 = tpu.matmul %122, %123, %cst_42 {dimension_numbers = #tpu.dot_dimension_numbers<[1], [0], [0], [1], [0, 0, 1, 1], [], []>} : vector<8x8xbf16>, vector<8x256xbf16>, vector<8x256xf32> -> vector<8x256xf32>
    %125 = arith.addf %120, %124 : vector<8x256xf32>
    %c255_i32_43 = arith.constant 255 : i32
    %126 = tpu.dynamic_rotate %85 by %c255_i32_43 dim 1 : vector<8x256xf32>, i32 -> vector<8x256xf32>
    %127 = vector.broadcast %4 : vector<1x256xf32> to vector<8x256xf32>
    %128 = arith.mulf %126, %127 : vector<8x256xf32>
    %129 = vector.extract_strided_slice %87 {offsets = [5, 0, 0], sizes = [1, 8, 8], strides = [1, 1, 1]} : vector<9x8x8xbf16> to vector<1x8x8xbf16>
    %130 = vector.shape_cast %129 : vector<1x8x8xbf16> to vector<8x8xbf16>
    %131 = arith.truncf %128 : vector<8x256xf32> to vector<8x256xbf16>
    %cst_44 = arith.constant dense<0.000000e+00> : vector<8x256xf32>
    %132 = tpu.matmul %130, %131, %cst_44 {dimension_numbers = #tpu.dot_dimension_numbers<[1], [0], [0], [1], [0, 0, 1, 1], [], []>} : vector<8x8xbf16>, vector<8x256xbf16>, vector<8x256xf32> -> vector<8x256xf32>
    %133 = arith.addf %125, %132 : vector<8x256xf32>
    %c241_i32_45 = arith.constant 241 : i32
    %134 = tpu.dynamic_rotate %85 by %c241_i32_45 dim 1 : vector<8x256xf32>, i32 -> vector<8x256xf32>
    %135 = vector.broadcast %5 : vector<1x256xf32> to vector<8x256xf32>
    %136 = arith.mulf %134, %135 : vector<8x256xf32>
    %137 = vector.extract_strided_slice %87 {offsets = [6, 0, 0], sizes = [1, 8, 8], strides = [1, 1, 1]} : vector<9x8x8xbf16> to vector<1x8x8xbf16>
    %138 = vector.shape_cast %137 : vector<1x8x8xbf16> to vector<8x8xbf16>
    %139 = arith.truncf %136 : vector<8x256xf32> to vector<8x256xbf16>
    %cst_46 = arith.constant dense<0.000000e+00> : vector<8x256xf32>
    %140 = tpu.matmul %138, %139, %cst_46 {dimension_numbers = #tpu.dot_dimension_numbers<[1], [0], [0], [1], [0, 0, 1, 1], [], []>} : vector<8x8xbf16>, vector<8x256xbf16>, vector<8x256xf32> -> vector<8x256xf32>
    %141 = arith.addf %133, %140 : vector<8x256xf32>
    %c240_i32_47 = arith.constant 240 : i32
    %142 = tpu.dynamic_rotate %85 by %c240_i32_47 dim 1 : vector<8x256xf32>, i32 -> vector<8x256xf32>
    %143 = vector.broadcast %6 : vector<1x256xf32> to vector<8x256xf32>
    %144 = arith.mulf %142, %143 : vector<8x256xf32>
    %145 = vector.extract_strided_slice %87 {offsets = [7, 0, 0], sizes = [1, 8, 8], strides = [1, 1, 1]} : vector<9x8x8xbf16> to vector<1x8x8xbf16>
    %146 = vector.shape_cast %145 : vector<1x8x8xbf16> to vector<8x8xbf16>
    %147 = arith.truncf %144 : vector<8x256xf32> to vector<8x256xbf16>
    %cst_48 = arith.constant dense<0.000000e+00> : vector<8x256xf32>
    %148 = tpu.matmul %146, %147, %cst_48 {dimension_numbers = #tpu.dot_dimension_numbers<[1], [0], [0], [1], [0, 0, 1, 1], [], []>} : vector<8x8xbf16>, vector<8x256xbf16>, vector<8x256xf32> -> vector<8x256xf32>
    %149 = arith.addf %141, %148 : vector<8x256xf32>
    %c239_i32_49 = arith.constant 239 : i32
    %150 = tpu.dynamic_rotate %85 by %c239_i32_49 dim 1 : vector<8x256xf32>, i32 -> vector<8x256xf32>
    %151 = vector.broadcast %7 : vector<1x256xf32> to vector<8x256xf32>
    %152 = arith.mulf %150, %151 : vector<8x256xf32>
    %153 = vector.extract_strided_slice %87 {offsets = [8, 0, 0], sizes = [1, 8, 8], strides = [1, 1, 1]} : vector<9x8x8xbf16> to vector<1x8x8xbf16>
    %154 = vector.shape_cast %153 : vector<1x8x8xbf16> to vector<8x8xbf16>
    %155 = arith.truncf %152 : vector<8x256xf32> to vector<8x256xbf16>
    %cst_50 = arith.constant dense<0.000000e+00> : vector<8x256xf32>
    %156 = tpu.matmul %154, %155, %cst_50 {dimension_numbers = #tpu.dot_dimension_numbers<[1], [0], [0], [1], [0, 0, 1, 1], [], []>} : vector<8x8xbf16>, vector<8x256xbf16>, vector<8x256xf32> -> vector<8x256xf32>
    %157 = arith.addf %149, %156 : vector<8x256xf32>
    %158 = vector.broadcast %89 : vector<8x1xf32> to vector<8x256xf32>
    %159 = arith.addf %157, %158 : vector<8x256xf32>
    %cst_51 = arith.constant 0.000000e+00 : f32
    %160 = vector.broadcast %cst_51 : f32 to vector<8x256xf32>
    %161 = arith.maximumf %159, %160 : vector<8x256xf32>
    %c2_52 = arith.constant 2 : index
    %c0_53 = arith.constant 0 : index
    %c0_54 = arith.constant 0 : index
    %c0_55 = arith.constant 0 : index
    %162 = vector.load %arg2[%c2_52, %c0_53, %c0_54, %c0_55] : memref<6x9x8x8xbf16, #tpu.memory_space<vmem>>, vector<1x9x8x8xbf16>
    %163 = vector.shape_cast %162 : vector<1x9x8x8xbf16> to vector<9x8x8xbf16>
    %c2_56 = arith.constant 2 : index
    %c0_57 = arith.constant 0 : index
    %c0_58 = arith.constant 0 : index
    %164 = vector.load %arg3[%c2_56, %c0_57, %c0_58] : memref<6x8x1xf32, #tpu.memory_space<vmem>>, vector<1x8x1xf32>
    %165 = vector.shape_cast %164 : vector<1x8x1xf32> to vector<8x1xf32>
    %c17_i32_59 = arith.constant 17 : i32
    %166 = tpu.dynamic_rotate %161 by %c17_i32_59 dim 1 : vector<8x256xf32>, i32 -> vector<8x256xf32>
    %167 = vector.broadcast %0 : vector<1x256xf32> to vector<8x256xf32>
    %168 = arith.mulf %166, %167 : vector<8x256xf32>
    %169 = vector.extract_strided_slice %163 {offsets = [0, 0, 0], sizes = [1, 8, 8], strides = [1, 1, 1]} : vector<9x8x8xbf16> to vector<1x8x8xbf16>
    %170 = vector.shape_cast %169 : vector<1x8x8xbf16> to vector<8x8xbf16>
    %171 = arith.truncf %168 : vector<8x256xf32> to vector<8x256xbf16>
    %cst_60 = arith.constant dense<0.000000e+00> : vector<8x256xf32>
    %172 = tpu.matmul %170, %171, %cst_60 {dimension_numbers = #tpu.dot_dimension_numbers<[1], [0], [0], [1], [0, 0, 1, 1], [], []>} : vector<8x8xbf16>, vector<8x256xbf16>, vector<8x256xf32> -> vector<8x256xf32>
    %c16_i32_61 = arith.constant 16 : i32
    %173 = tpu.dynamic_rotate %161 by %c16_i32_61 dim 1 : vector<8x256xf32>, i32 -> vector<8x256xf32>
    %174 = vector.broadcast %1 : vector<1x256xf32> to vector<8x256xf32>
    %175 = arith.mulf %173, %174 : vector<8x256xf32>
    %176 = vector.extract_strided_slice %163 {offsets = [1, 0, 0], sizes = [1, 8, 8], strides = [1, 1, 1]} : vector<9x8x8xbf16> to vector<1x8x8xbf16>
    %177 = vector.shape_cast %176 : vector<1x8x8xbf16> to vector<8x8xbf16>
    %178 = arith.truncf %175 : vector<8x256xf32> to vector<8x256xbf16>
    %cst_62 = arith.constant dense<0.000000e+00> : vector<8x256xf32>
    %179 = tpu.matmul %177, %178, %cst_62 {dimension_numbers = #tpu.dot_dimension_numbers<[1], [0], [0], [1], [0, 0, 1, 1], [], []>} : vector<8x8xbf16>, vector<8x256xbf16>, vector<8x256xf32> -> vector<8x256xf32>
    %180 = arith.addf %172, %179 : vector<8x256xf32>
    %c15_i32_63 = arith.constant 15 : i32
    %181 = tpu.dynamic_rotate %161 by %c15_i32_63 dim 1 : vector<8x256xf32>, i32 -> vector<8x256xf32>
    %182 = vector.broadcast %2 : vector<1x256xf32> to vector<8x256xf32>
    %183 = arith.mulf %181, %182 : vector<8x256xf32>
    %184 = vector.extract_strided_slice %163 {offsets = [2, 0, 0], sizes = [1, 8, 8], strides = [1, 1, 1]} : vector<9x8x8xbf16> to vector<1x8x8xbf16>
    %185 = vector.shape_cast %184 : vector<1x8x8xbf16> to vector<8x8xbf16>
    %186 = arith.truncf %183 : vector<8x256xf32> to vector<8x256xbf16>
    %cst_64 = arith.constant dense<0.000000e+00> : vector<8x256xf32>
    %187 = tpu.matmul %185, %186, %cst_64 {dimension_numbers = #tpu.dot_dimension_numbers<[1], [0], [0], [1], [0, 0, 1, 1], [], []>} : vector<8x8xbf16>, vector<8x256xbf16>, vector<8x256xf32> -> vector<8x256xf32>
    %188 = arith.addf %180, %187 : vector<8x256xf32>
    %c1_i32_65 = arith.constant 1 : i32
    %189 = tpu.dynamic_rotate %161 by %c1_i32_65 dim 1 : vector<8x256xf32>, i32 -> vector<8x256xf32>
    %190 = vector.broadcast %3 : vector<1x256xf32> to vector<8x256xf32>
    %191 = arith.mulf %189, %190 : vector<8x256xf32>
    %192 = vector.extract_strided_slice %163 {offsets = [3, 0, 0], sizes = [1, 8, 8], strides = [1, 1, 1]} : vector<9x8x8xbf16> to vector<1x8x8xbf16>
    %193 = vector.shape_cast %192 : vector<1x8x8xbf16> to vector<8x8xbf16>
    %194 = arith.truncf %191 : vector<8x256xf32> to vector<8x256xbf16>
    %cst_66 = arith.constant dense<0.000000e+00> : vector<8x256xf32>
    %195 = tpu.matmul %193, %194, %cst_66 {dimension_numbers = #tpu.dot_dimension_numbers<[1], [0], [0], [1], [0, 0, 1, 1], [], []>} : vector<8x8xbf16>, vector<8x256xbf16>, vector<8x256xf32> -> vector<8x256xf32>
    %196 = arith.addf %188, %195 : vector<8x256xf32>
    %197 = vector.extract_strided_slice %163 {offsets = [4, 0, 0], sizes = [1, 8, 8], strides = [1, 1, 1]} : vector<9x8x8xbf16> to vector<1x8x8xbf16>
    %198 = vector.shape_cast %197 : vector<1x8x8xbf16> to vector<8x8xbf16>
    %199 = arith.truncf %161 : vector<8x256xf32> to vector<8x256xbf16>
    %cst_67 = arith.constant dense<0.000000e+00> : vector<8x256xf32>
    %200 = tpu.matmul %198, %199, %cst_67 {dimension_numbers = #tpu.dot_dimension_numbers<[1], [0], [0], [1], [0, 0, 1, 1], [], []>} : vector<8x8xbf16>, vector<8x256xbf16>, vector<8x256xf32> -> vector<8x256xf32>
    %201 = arith.addf %196, %200 : vector<8x256xf32>
    %c255_i32_68 = arith.constant 255 : i32
    %202 = tpu.dynamic_rotate %161 by %c255_i32_68 dim 1 : vector<8x256xf32>, i32 -> vector<8x256xf32>
    %203 = vector.broadcast %4 : vector<1x256xf32> to vector<8x256xf32>
    %204 = arith.mulf %202, %203 : vector<8x256xf32>
    %205 = vector.extract_strided_slice %163 {offsets = [5, 0, 0], sizes = [1, 8, 8], strides = [1, 1, 1]} : vector<9x8x8xbf16> to vector<1x8x8xbf16>
    %206 = vector.shape_cast %205 : vector<1x8x8xbf16> to vector<8x8xbf16>
    %207 = arith.truncf %204 : vector<8x256xf32> to vector<8x256xbf16>
    %cst_69 = arith.constant dense<0.000000e+00> : vector<8x256xf32>
    %208 = tpu.matmul %206, %207, %cst_69 {dimension_numbers = #tpu.dot_dimension_numbers<[1], [0], [0], [1], [0, 0, 1, 1], [], []>} : vector<8x8xbf16>, vector<8x256xbf16>, vector<8x256xf32> -> vector<8x256xf32>
    %209 = arith.addf %201, %208 : vector<8x256xf32>
    %c241_i32_70 = arith.constant 241 : i32
    %210 = tpu.dynamic_rotate %161 by %c241_i32_70 dim 1 : vector<8x256xf32>, i32 -> vector<8x256xf32>
    %211 = vector.broadcast %5 : vector<1x256xf32> to vector<8x256xf32>
    %212 = arith.mulf %210, %211 : vector<8x256xf32>
    %213 = vector.extract_strided_slice %163 {offsets = [6, 0, 0], sizes = [1, 8, 8], strides = [1, 1, 1]} : vector<9x8x8xbf16> to vector<1x8x8xbf16>
    %214 = vector.shape_cast %213 : vector<1x8x8xbf16> to vector<8x8xbf16>
    %215 = arith.truncf %212 : vector<8x256xf32> to vector<8x256xbf16>
    %cst_71 = arith.constant dense<0.000000e+00> : vector<8x256xf32>
    %216 = tpu.matmul %214, %215, %cst_71 {dimension_numbers = #tpu.dot_dimension_numbers<[1], [0], [0], [1], [0, 0, 1, 1], [], []>} : vector<8x8xbf16>, vector<8x256xbf16>, vector<8x256xf32> -> vector<8x256xf32>
    %217 = arith.addf %209, %216 : vector<8x256xf32>
    %c240_i32_72 = arith.constant 240 : i32
    %218 = tpu.dynamic_rotate %161 by %c240_i32_72 dim 1 : vector<8x256xf32>, i32 -> vector<8x256xf32>
    %219 = vector.broadcast %6 : vector<1x256xf32> to vector<8x256xf32>
    %220 = arith.mulf %218, %219 : vector<8x256xf32>
    %221 = vector.extract_strided_slice %163 {offsets = [7, 0, 0], sizes = [1, 8, 8], strides = [1, 1, 1]} : vector<9x8x8xbf16> to vector<1x8x8xbf16>
    %222 = vector.shape_cast %221 : vector<1x8x8xbf16> to vector<8x8xbf16>
    %223 = arith.truncf %220 : vector<8x256xf32> to vector<8x256xbf16>
    %cst_73 = arith.constant dense<0.000000e+00> : vector<8x256xf32>
    %224 = tpu.matmul %222, %223, %cst_73 {dimension_numbers = #tpu.dot_dimension_numbers<[1], [0], [0], [1], [0, 0, 1, 1], [], []>} : vector<8x8xbf16>, vector<8x256xbf16>, vector<8x256xf32> -> vector<8x256xf32>
    %225 = arith.addf %217, %224 : vector<8x256xf32>
    %c239_i32_74 = arith.constant 239 : i32
    %226 = tpu.dynamic_rotate %161 by %c239_i32_74 dim 1 : vector<8x256xf32>, i32 -> vector<8x256xf32>
    %227 = vector.broadcast %7 : vector<1x256xf32> to vector<8x256xf32>
    %228 = arith.mulf %226, %227 : vector<8x256xf32>
    %229 = vector.extract_strided_slice %163 {offsets = [8, 0, 0], sizes = [1, 8, 8], strides = [1, 1, 1]} : vector<9x8x8xbf16> to vector<1x8x8xbf16>
    %230 = vector.shape_cast %229 : vector<1x8x8xbf16> to vector<8x8xbf16>
    %231 = arith.truncf %228 : vector<8x256xf32> to vector<8x256xbf16>
    %cst_75 = arith.constant dense<0.000000e+00> : vector<8x256xf32>
    %232 = tpu.matmul %230, %231, %cst_75 {dimension_numbers = #tpu.dot_dimension_numbers<[1], [0], [0], [1], [0, 0, 1, 1], [], []>} : vector<8x8xbf16>, vector<8x256xbf16>, vector<8x256xf32> -> vector<8x256xf32>
    %233 = arith.addf %225, %232 : vector<8x256xf32>
    %234 = vector.broadcast %165 : vector<8x1xf32> to vector<8x256xf32>
    %235 = arith.addf %233, %234 : vector<8x256xf32>
    %cst_76 = arith.constant 0.000000e+00 : f32
    %236 = vector.broadcast %cst_76 : f32 to vector<8x256xf32>
    %237 = arith.maximumf %235, %236 : vector<8x256xf32>
    %c3_77 = arith.constant 3 : index
    %c0_78 = arith.constant 0 : index
    %c0_79 = arith.constant 0 : index
    %c0_80 = arith.constant 0 : index
    %238 = vector.load %arg2[%c3_77, %c0_78, %c0_79, %c0_80] : memref<6x9x8x8xbf16, #tpu.memory_space<vmem>>, vector<1x9x8x8xbf16>
    %239 = vector.shape_cast %238 : vector<1x9x8x8xbf16> to vector<9x8x8xbf16>
    %c3_81 = arith.constant 3 : index
    %c0_82 = arith.constant 0 : index
    %c0_83 = arith.constant 0 : index
    %240 = vector.load %arg3[%c3_81, %c0_82, %c0_83] : memref<6x8x1xf32, #tpu.memory_space<vmem>>, vector<1x8x1xf32>
    %241 = vector.shape_cast %240 : vector<1x8x1xf32> to vector<8x1xf32>
    %c17_i32_84 = arith.constant 17 : i32
    %242 = tpu.dynamic_rotate %237 by %c17_i32_84 dim 1 : vector<8x256xf32>, i32 -> vector<8x256xf32>
    %243 = vector.broadcast %0 : vector<1x256xf32> to vector<8x256xf32>
    %244 = arith.mulf %242, %243 : vector<8x256xf32>
    %245 = vector.extract_strided_slice %239 {offsets = [0, 0, 0], sizes = [1, 8, 8], strides = [1, 1, 1]} : vector<9x8x8xbf16> to vector<1x8x8xbf16>
    %246 = vector.shape_cast %245 : vector<1x8x8xbf16> to vector<8x8xbf16>
    %247 = arith.truncf %244 : vector<8x256xf32> to vector<8x256xbf16>
    %cst_85 = arith.constant dense<0.000000e+00> : vector<8x256xf32>
    %248 = tpu.matmul %246, %247, %cst_85 {dimension_numbers = #tpu.dot_dimension_numbers<[1], [0], [0], [1], [0, 0, 1, 1], [], []>} : vector<8x8xbf16>, vector<8x256xbf16>, vector<8x256xf32> -> vector<8x256xf32>
    %c16_i32_86 = arith.constant 16 : i32
    %249 = tpu.dynamic_rotate %237 by %c16_i32_86 dim 1 : vector<8x256xf32>, i32 -> vector<8x256xf32>
    %250 = vector.broadcast %1 : vector<1x256xf32> to vector<8x256xf32>
    %251 = arith.mulf %249, %250 : vector<8x256xf32>
    %252 = vector.extract_strided_slice %239 {offsets = [1, 0, 0], sizes = [1, 8, 8], strides = [1, 1, 1]} : vector<9x8x8xbf16> to vector<1x8x8xbf16>
    %253 = vector.shape_cast %252 : vector<1x8x8xbf16> to vector<8x8xbf16>
    %254 = arith.truncf %251 : vector<8x256xf32> to vector<8x256xbf16>
    %cst_87 = arith.constant dense<0.000000e+00> : vector<8x256xf32>
    %255 = tpu.matmul %253, %254, %cst_87 {dimension_numbers = #tpu.dot_dimension_numbers<[1], [0], [0], [1], [0, 0, 1, 1], [], []>} : vector<8x8xbf16>, vector<8x256xbf16>, vector<8x256xf32> -> vector<8x256xf32>
    %256 = arith.addf %248, %255 : vector<8x256xf32>
    %c15_i32_88 = arith.constant 15 : i32
    %257 = tpu.dynamic_rotate %237 by %c15_i32_88 dim 1 : vector<8x256xf32>, i32 -> vector<8x256xf32>
    %258 = vector.broadcast %2 : vector<1x256xf32> to vector<8x256xf32>
    %259 = arith.mulf %257, %258 : vector<8x256xf32>
    %260 = vector.extract_strided_slice %239 {offsets = [2, 0, 0], sizes = [1, 8, 8], strides = [1, 1, 1]} : vector<9x8x8xbf16> to vector<1x8x8xbf16>
    %261 = vector.shape_cast %260 : vector<1x8x8xbf16> to vector<8x8xbf16>
    %262 = arith.truncf %259 : vector<8x256xf32> to vector<8x256xbf16>
    %cst_89 = arith.constant dense<0.000000e+00> : vector<8x256xf32>
    %263 = tpu.matmul %261, %262, %cst_89 {dimension_numbers = #tpu.dot_dimension_numbers<[1], [0], [0], [1], [0, 0, 1, 1], [], []>} : vector<8x8xbf16>, vector<8x256xbf16>, vector<8x256xf32> -> vector<8x256xf32>
    %264 = arith.addf %256, %263 : vector<8x256xf32>
    %c1_i32_90 = arith.constant 1 : i32
    %265 = tpu.dynamic_rotate %237 by %c1_i32_90 dim 1 : vector<8x256xf32>, i32 -> vector<8x256xf32>
    %266 = vector.broadcast %3 : vector<1x256xf32> to vector<8x256xf32>
    %267 = arith.mulf %265, %266 : vector<8x256xf32>
    %268 = vector.extract_strided_slice %239 {offsets = [3, 0, 0], sizes = [1, 8, 8], strides = [1, 1, 1]} : vector<9x8x8xbf16> to vector<1x8x8xbf16>
    %269 = vector.shape_cast %268 : vector<1x8x8xbf16> to vector<8x8xbf16>
    %270 = arith.truncf %267 : vector<8x256xf32> to vector<8x256xbf16>
    %cst_91 = arith.constant dense<0.000000e+00> : vector<8x256xf32>
    %271 = tpu.matmul %269, %270, %cst_91 {dimension_numbers = #tpu.dot_dimension_numbers<[1], [0], [0], [1], [0, 0, 1, 1], [], []>} : vector<8x8xbf16>, vector<8x256xbf16>, vector<8x256xf32> -> vector<8x256xf32>
    %272 = arith.addf %264, %271 : vector<8x256xf32>
    %273 = vector.extract_strided_slice %239 {offsets = [4, 0, 0], sizes = [1, 8, 8], strides = [1, 1, 1]} : vector<9x8x8xbf16> to vector<1x8x8xbf16>
    %274 = vector.shape_cast %273 : vector<1x8x8xbf16> to vector<8x8xbf16>
    %275 = arith.truncf %237 : vector<8x256xf32> to vector<8x256xbf16>
    %cst_92 = arith.constant dense<0.000000e+00> : vector<8x256xf32>
    %276 = tpu.matmul %274, %275, %cst_92 {dimension_numbers = #tpu.dot_dimension_numbers<[1], [0], [0], [1], [0, 0, 1, 1], [], []>} : vector<8x8xbf16>, vector<8x256xbf16>, vector<8x256xf32> -> vector<8x256xf32>
    %277 = arith.addf %272, %276 : vector<8x256xf32>
    %c255_i32_93 = arith.constant 255 : i32
    %278 = tpu.dynamic_rotate %237 by %c255_i32_93 dim 1 : vector<8x256xf32>, i32 -> vector<8x256xf32>
    %279 = vector.broadcast %4 : vector<1x256xf32> to vector<8x256xf32>
    %280 = arith.mulf %278, %279 : vector<8x256xf32>
    %281 = vector.extract_strided_slice %239 {offsets = [5, 0, 0], sizes = [1, 8, 8], strides = [1, 1, 1]} : vector<9x8x8xbf16> to vector<1x8x8xbf16>
    %282 = vector.shape_cast %281 : vector<1x8x8xbf16> to vector<8x8xbf16>
    %283 = arith.truncf %280 : vector<8x256xf32> to vector<8x256xbf16>
    %cst_94 = arith.constant dense<0.000000e+00> : vector<8x256xf32>
    %284 = tpu.matmul %282, %283, %cst_94 {dimension_numbers = #tpu.dot_dimension_numbers<[1], [0], [0], [1], [0, 0, 1, 1], [], []>} : vector<8x8xbf16>, vector<8x256xbf16>, vector<8x256xf32> -> vector<8x256xf32>
    %285 = arith.addf %277, %284 : vector<8x256xf32>
    %c241_i32_95 = arith.constant 241 : i32
    %286 = tpu.dynamic_rotate %237 by %c241_i32_95 dim 1 : vector<8x256xf32>, i32 -> vector<8x256xf32>
    %287 = vector.broadcast %5 : vector<1x256xf32> to vector<8x256xf32>
    %288 = arith.mulf %286, %287 : vector<8x256xf32>
    %289 = vector.extract_strided_slice %239 {offsets = [6, 0, 0], sizes = [1, 8, 8], strides = [1, 1, 1]} : vector<9x8x8xbf16> to vector<1x8x8xbf16>
    %290 = vector.shape_cast %289 : vector<1x8x8xbf16> to vector<8x8xbf16>
    %291 = arith.truncf %288 : vector<8x256xf32> to vector<8x256xbf16>
    %cst_96 = arith.constant dense<0.000000e+00> : vector<8x256xf32>
    %292 = tpu.matmul %290, %291, %cst_96 {dimension_numbers = #tpu.dot_dimension_numbers<[1], [0], [0], [1], [0, 0, 1, 1], [], []>} : vector<8x8xbf16>, vector<8x256xbf16>, vector<8x256xf32> -> vector<8x256xf32>
    %293 = arith.addf %285, %292 : vector<8x256xf32>
    %c240_i32_97 = arith.constant 240 : i32
    %294 = tpu.dynamic_rotate %237 by %c240_i32_97 dim 1 : vector<8x256xf32>, i32 -> vector<8x256xf32>
    %295 = vector.broadcast %6 : vector<1x256xf32> to vector<8x256xf32>
    %296 = arith.mulf %294, %295 : vector<8x256xf32>
    %297 = vector.extract_strided_slice %239 {offsets = [7, 0, 0], sizes = [1, 8, 8], strides = [1, 1, 1]} : vector<9x8x8xbf16> to vector<1x8x8xbf16>
    %298 = vector.shape_cast %297 : vector<1x8x8xbf16> to vector<8x8xbf16>
    %299 = arith.truncf %296 : vector<8x256xf32> to vector<8x256xbf16>
    %cst_98 = arith.constant dense<0.000000e+00> : vector<8x256xf32>
    %300 = tpu.matmul %298, %299, %cst_98 {dimension_numbers = #tpu.dot_dimension_numbers<[1], [0], [0], [1], [0, 0, 1, 1], [], []>} : vector<8x8xbf16>, vector<8x256xbf16>, vector<8x256xf32> -> vector<8x256xf32>
    %301 = arith.addf %293, %300 : vector<8x256xf32>
    %c239_i32_99 = arith.constant 239 : i32
    %302 = tpu.dynamic_rotate %237 by %c239_i32_99 dim 1 : vector<8x256xf32>, i32 -> vector<8x256xf32>
    %303 = vector.broadcast %7 : vector<1x256xf32> to vector<8x256xf32>
    %304 = arith.mulf %302, %303 : vector<8x256xf32>
    %305 = vector.extract_strided_slice %239 {offsets = [8, 0, 0], sizes = [1, 8, 8], strides = [1, 1, 1]} : vector<9x8x8xbf16> to vector<1x8x8xbf16>
    %306 = vector.shape_cast %305 : vector<1x8x8xbf16> to vector<8x8xbf16>
    %307 = arith.truncf %304 : vector<8x256xf32> to vector<8x256xbf16>
    %cst_100 = arith.constant dense<0.000000e+00> : vector<8x256xf32>
    %308 = tpu.matmul %306, %307, %cst_100 {dimension_numbers = #tpu.dot_dimension_numbers<[1], [0], [0], [1], [0, 0, 1, 1], [], []>} : vector<8x8xbf16>, vector<8x256xbf16>, vector<8x256xf32> -> vector<8x256xf32>
    %309 = arith.addf %301, %308 : vector<8x256xf32>
    %310 = vector.broadcast %241 : vector<8x1xf32> to vector<8x256xf32>
    %311 = arith.addf %309, %310 : vector<8x256xf32>
    %cst_101 = arith.constant 0.000000e+00 : f32
    %312 = vector.broadcast %cst_101 : f32 to vector<8x256xf32>
    %313 = arith.maximumf %311, %312 : vector<8x256xf32>
    %c4 = arith.constant 4 : index
    %c0_102 = arith.constant 0 : index
    %c0_103 = arith.constant 0 : index
    %c0_104 = arith.constant 0 : index
    %314 = vector.load %arg2[%c4, %c0_102, %c0_103, %c0_104] : memref<6x9x8x8xbf16, #tpu.memory_space<vmem>>, vector<1x9x8x8xbf16>
    %315 = vector.shape_cast %314 : vector<1x9x8x8xbf16> to vector<9x8x8xbf16>
    %c4_105 = arith.constant 4 : index
    %c0_106 = arith.constant 0 : index
    %c0_107 = arith.constant 0 : index
    %316 = vector.load %arg3[%c4_105, %c0_106, %c0_107] : memref<6x8x1xf32, #tpu.memory_space<vmem>>, vector<1x8x1xf32>
    %317 = vector.shape_cast %316 : vector<1x8x1xf32> to vector<8x1xf32>
    %c17_i32_108 = arith.constant 17 : i32
    %318 = tpu.dynamic_rotate %313 by %c17_i32_108 dim 1 : vector<8x256xf32>, i32 -> vector<8x256xf32>
    %319 = vector.broadcast %0 : vector<1x256xf32> to vector<8x256xf32>
    %320 = arith.mulf %318, %319 : vector<8x256xf32>
    %321 = vector.extract_strided_slice %315 {offsets = [0, 0, 0], sizes = [1, 8, 8], strides = [1, 1, 1]} : vector<9x8x8xbf16> to vector<1x8x8xbf16>
    %322 = vector.shape_cast %321 : vector<1x8x8xbf16> to vector<8x8xbf16>
    %323 = arith.truncf %320 : vector<8x256xf32> to vector<8x256xbf16>
    %cst_109 = arith.constant dense<0.000000e+00> : vector<8x256xf32>
    %324 = tpu.matmul %322, %323, %cst_109 {dimension_numbers = #tpu.dot_dimension_numbers<[1], [0], [0], [1], [0, 0, 1, 1], [], []>} : vector<8x8xbf16>, vector<8x256xbf16>, vector<8x256xf32> -> vector<8x256xf32>
    %c16_i32_110 = arith.constant 16 : i32
    %325 = tpu.dynamic_rotate %313 by %c16_i32_110 dim 1 : vector<8x256xf32>, i32 -> vector<8x256xf32>
    %326 = vector.broadcast %1 : vector<1x256xf32> to vector<8x256xf32>
    %327 = arith.mulf %325, %326 : vector<8x256xf32>
    %328 = vector.extract_strided_slice %315 {offsets = [1, 0, 0], sizes = [1, 8, 8], strides = [1, 1, 1]} : vector<9x8x8xbf16> to vector<1x8x8xbf16>
    %329 = vector.shape_cast %328 : vector<1x8x8xbf16> to vector<8x8xbf16>
    %330 = arith.truncf %327 : vector<8x256xf32> to vector<8x256xbf16>
    %cst_111 = arith.constant dense<0.000000e+00> : vector<8x256xf32>
    %331 = tpu.matmul %329, %330, %cst_111 {dimension_numbers = #tpu.dot_dimension_numbers<[1], [0], [0], [1], [0, 0, 1, 1], [], []>} : vector<8x8xbf16>, vector<8x256xbf16>, vector<8x256xf32> -> vector<8x256xf32>
    %332 = arith.addf %324, %331 : vector<8x256xf32>
    %c15_i32_112 = arith.constant 15 : i32
    %333 = tpu.dynamic_rotate %313 by %c15_i32_112 dim 1 : vector<8x256xf32>, i32 -> vector<8x256xf32>
    %334 = vector.broadcast %2 : vector<1x256xf32> to vector<8x256xf32>
    %335 = arith.mulf %333, %334 : vector<8x256xf32>
    %336 = vector.extract_strided_slice %315 {offsets = [2, 0, 0], sizes = [1, 8, 8], strides = [1, 1, 1]} : vector<9x8x8xbf16> to vector<1x8x8xbf16>
    %337 = vector.shape_cast %336 : vector<1x8x8xbf16> to vector<8x8xbf16>
    %338 = arith.truncf %335 : vector<8x256xf32> to vector<8x256xbf16>
    %cst_113 = arith.constant dense<0.000000e+00> : vector<8x256xf32>
    %339 = tpu.matmul %337, %338, %cst_113 {dimension_numbers = #tpu.dot_dimension_numbers<[1], [0], [0], [1], [0, 0, 1, 1], [], []>} : vector<8x8xbf16>, vector<8x256xbf16>, vector<8x256xf32> -> vector<8x256xf32>
    %340 = arith.addf %332, %339 : vector<8x256xf32>
    %c1_i32_114 = arith.constant 1 : i32
    %341 = tpu.dynamic_rotate %313 by %c1_i32_114 dim 1 : vector<8x256xf32>, i32 -> vector<8x256xf32>
    %342 = vector.broadcast %3 : vector<1x256xf32> to vector<8x256xf32>
    %343 = arith.mulf %341, %342 : vector<8x256xf32>
    %344 = vector.extract_strided_slice %315 {offsets = [3, 0, 0], sizes = [1, 8, 8], strides = [1, 1, 1]} : vector<9x8x8xbf16> to vector<1x8x8xbf16>
    %345 = vector.shape_cast %344 : vector<1x8x8xbf16> to vector<8x8xbf16>
    %346 = arith.truncf %343 : vector<8x256xf32> to vector<8x256xbf16>
    %cst_115 = arith.constant dense<0.000000e+00> : vector<8x256xf32>
    %347 = tpu.matmul %345, %346, %cst_115 {dimension_numbers = #tpu.dot_dimension_numbers<[1], [0], [0], [1], [0, 0, 1, 1], [], []>} : vector<8x8xbf16>, vector<8x256xbf16>, vector<8x256xf32> -> vector<8x256xf32>
    %348 = arith.addf %340, %347 : vector<8x256xf32>
    %349 = vector.extract_strided_slice %315 {offsets = [4, 0, 0], sizes = [1, 8, 8], strides = [1, 1, 1]} : vector<9x8x8xbf16> to vector<1x8x8xbf16>
    %350 = vector.shape_cast %349 : vector<1x8x8xbf16> to vector<8x8xbf16>
    %351 = arith.truncf %313 : vector<8x256xf32> to vector<8x256xbf16>
    %cst_116 = arith.constant dense<0.000000e+00> : vector<8x256xf32>
    %352 = tpu.matmul %350, %351, %cst_116 {dimension_numbers = #tpu.dot_dimension_numbers<[1], [0], [0], [1], [0, 0, 1, 1], [], []>} : vector<8x8xbf16>, vector<8x256xbf16>, vector<8x256xf32> -> vector<8x256xf32>
    %353 = arith.addf %348, %352 : vector<8x256xf32>
    %c255_i32_117 = arith.constant 255 : i32
    %354 = tpu.dynamic_rotate %313 by %c255_i32_117 dim 1 : vector<8x256xf32>, i32 -> vector<8x256xf32>
    %355 = vector.broadcast %4 : vector<1x256xf32> to vector<8x256xf32>
    %356 = arith.mulf %354, %355 : vector<8x256xf32>
    %357 = vector.extract_strided_slice %315 {offsets = [5, 0, 0], sizes = [1, 8, 8], strides = [1, 1, 1]} : vector<9x8x8xbf16> to vector<1x8x8xbf16>
    %358 = vector.shape_cast %357 : vector<1x8x8xbf16> to vector<8x8xbf16>
    %359 = arith.truncf %356 : vector<8x256xf32> to vector<8x256xbf16>
    %cst_118 = arith.constant dense<0.000000e+00> : vector<8x256xf32>
    %360 = tpu.matmul %358, %359, %cst_118 {dimension_numbers = #tpu.dot_dimension_numbers<[1], [0], [0], [1], [0, 0, 1, 1], [], []>} : vector<8x8xbf16>, vector<8x256xbf16>, vector<8x256xf32> -> vector<8x256xf32>
    %361 = arith.addf %353, %360 : vector<8x256xf32>
    %c241_i32_119 = arith.constant 241 : i32
    %362 = tpu.dynamic_rotate %313 by %c241_i32_119 dim 1 : vector<8x256xf32>, i32 -> vector<8x256xf32>
    %363 = vector.broadcast %5 : vector<1x256xf32> to vector<8x256xf32>
    %364 = arith.mulf %362, %363 : vector<8x256xf32>
    %365 = vector.extract_strided_slice %315 {offsets = [6, 0, 0], sizes = [1, 8, 8], strides = [1, 1, 1]} : vector<9x8x8xbf16> to vector<1x8x8xbf16>
    %366 = vector.shape_cast %365 : vector<1x8x8xbf16> to vector<8x8xbf16>
    %367 = arith.truncf %364 : vector<8x256xf32> to vector<8x256xbf16>
    %cst_120 = arith.constant dense<0.000000e+00> : vector<8x256xf32>
    %368 = tpu.matmul %366, %367, %cst_120 {dimension_numbers = #tpu.dot_dimension_numbers<[1], [0], [0], [1], [0, 0, 1, 1], [], []>} : vector<8x8xbf16>, vector<8x256xbf16>, vector<8x256xf32> -> vector<8x256xf32>
    %369 = arith.addf %361, %368 : vector<8x256xf32>
    %c240_i32_121 = arith.constant 240 : i32
    %370 = tpu.dynamic_rotate %313 by %c240_i32_121 dim 1 : vector<8x256xf32>, i32 -> vector<8x256xf32>
    %371 = vector.broadcast %6 : vector<1x256xf32> to vector<8x256xf32>
    %372 = arith.mulf %370, %371 : vector<8x256xf32>
    %373 = vector.extract_strided_slice %315 {offsets = [7, 0, 0], sizes = [1, 8, 8], strides = [1, 1, 1]} : vector<9x8x8xbf16> to vector<1x8x8xbf16>
    %374 = vector.shape_cast %373 : vector<1x8x8xbf16> to vector<8x8xbf16>
    %375 = arith.truncf %372 : vector<8x256xf32> to vector<8x256xbf16>
    %cst_122 = arith.constant dense<0.000000e+00> : vector<8x256xf32>
    %376 = tpu.matmul %374, %375, %cst_122 {dimension_numbers = #tpu.dot_dimension_numbers<[1], [0], [0], [1], [0, 0, 1, 1], [], []>} : vector<8x8xbf16>, vector<8x256xbf16>, vector<8x256xf32> -> vector<8x256xf32>
    %377 = arith.addf %369, %376 : vector<8x256xf32>
    %c239_i32_123 = arith.constant 239 : i32
    %378 = tpu.dynamic_rotate %313 by %c239_i32_123 dim 1 : vector<8x256xf32>, i32 -> vector<8x256xf32>
    %379 = vector.broadcast %7 : vector<1x256xf32> to vector<8x256xf32>
    %380 = arith.mulf %378, %379 : vector<8x256xf32>
    %381 = vector.extract_strided_slice %315 {offsets = [8, 0, 0], sizes = [1, 8, 8], strides = [1, 1, 1]} : vector<9x8x8xbf16> to vector<1x8x8xbf16>
    %382 = vector.shape_cast %381 : vector<1x8x8xbf16> to vector<8x8xbf16>
    %383 = arith.truncf %380 : vector<8x256xf32> to vector<8x256xbf16>
    %cst_124 = arith.constant dense<0.000000e+00> : vector<8x256xf32>
    %384 = tpu.matmul %382, %383, %cst_124 {dimension_numbers = #tpu.dot_dimension_numbers<[1], [0], [0], [1], [0, 0, 1, 1], [], []>} : vector<8x8xbf16>, vector<8x256xbf16>, vector<8x256xf32> -> vector<8x256xf32>
    %385 = arith.addf %377, %384 : vector<8x256xf32>
    %386 = vector.broadcast %317 : vector<8x1xf32> to vector<8x256xf32>
    %387 = arith.addf %385, %386 : vector<8x256xf32>
    %cst_125 = arith.constant 0.000000e+00 : f32
    %388 = vector.broadcast %cst_125 : f32 to vector<8x256xf32>
    %389 = arith.maximumf %387, %388 : vector<8x256xf32>
    %c5_126 = arith.constant 5 : index
    %c0_127 = arith.constant 0 : index
    %c0_128 = arith.constant 0 : index
    %c0_129 = arith.constant 0 : index
    %390 = vector.load %arg2[%c5_126, %c0_127, %c0_128, %c0_129] : memref<6x9x8x8xbf16, #tpu.memory_space<vmem>>, vector<1x9x8x8xbf16>
    %391 = vector.shape_cast %390 : vector<1x9x8x8xbf16> to vector<9x8x8xbf16>
    %c5_130 = arith.constant 5 : index
    %c0_131 = arith.constant 0 : index
    %c0_132 = arith.constant 0 : index
    %392 = vector.load %arg3[%c5_130, %c0_131, %c0_132] : memref<6x8x1xf32, #tpu.memory_space<vmem>>, vector<1x8x1xf32>
    %393 = vector.shape_cast %392 : vector<1x8x1xf32> to vector<8x1xf32>
    %c17_i32_133 = arith.constant 17 : i32
    %394 = tpu.dynamic_rotate %389 by %c17_i32_133 dim 1 : vector<8x256xf32>, i32 -> vector<8x256xf32>
    %395 = vector.broadcast %0 : vector<1x256xf32> to vector<8x256xf32>
    %396 = arith.mulf %394, %395 : vector<8x256xf32>
    %397 = vector.extract_strided_slice %391 {offsets = [0, 0, 0], sizes = [1, 8, 8], strides = [1, 1, 1]} : vector<9x8x8xbf16> to vector<1x8x8xbf16>
    %398 = vector.shape_cast %397 : vector<1x8x8xbf16> to vector<8x8xbf16>
    %399 = arith.truncf %396 : vector<8x256xf32> to vector<8x256xbf16>
    %cst_134 = arith.constant dense<0.000000e+00> : vector<8x256xf32>
    %400 = tpu.matmul %398, %399, %cst_134 {dimension_numbers = #tpu.dot_dimension_numbers<[1], [0], [0], [1], [0, 0, 1, 1], [], []>} : vector<8x8xbf16>, vector<8x256xbf16>, vector<8x256xf32> -> vector<8x256xf32>
    %c16_i32_135 = arith.constant 16 : i32
    %401 = tpu.dynamic_rotate %389 by %c16_i32_135 dim 1 : vector<8x256xf32>, i32 -> vector<8x256xf32>
    %402 = vector.broadcast %1 : vector<1x256xf32> to vector<8x256xf32>
    %403 = arith.mulf %401, %402 : vector<8x256xf32>
    %404 = vector.extract_strided_slice %391 {offsets = [1, 0, 0], sizes = [1, 8, 8], strides = [1, 1, 1]} : vector<9x8x8xbf16> to vector<1x8x8xbf16>
    %405 = vector.shape_cast %404 : vector<1x8x8xbf16> to vector<8x8xbf16>
    %406 = arith.truncf %403 : vector<8x256xf32> to vector<8x256xbf16>
    %cst_136 = arith.constant dense<0.000000e+00> : vector<8x256xf32>
    %407 = tpu.matmul %405, %406, %cst_136 {dimension_numbers = #tpu.dot_dimension_numbers<[1], [0], [0], [1], [0, 0, 1, 1], [], []>} : vector<8x8xbf16>, vector<8x256xbf16>, vector<8x256xf32> -> vector<8x256xf32>
    %408 = arith.addf %400, %407 : vector<8x256xf32>
    %c15_i32_137 = arith.constant 15 : i32
    %409 = tpu.dynamic_rotate %389 by %c15_i32_137 dim 1 : vector<8x256xf32>, i32 -> vector<8x256xf32>
    %410 = vector.broadcast %2 : vector<1x256xf32> to vector<8x256xf32>
    %411 = arith.mulf %409, %410 : vector<8x256xf32>
    %412 = vector.extract_strided_slice %391 {offsets = [2, 0, 0], sizes = [1, 8, 8], strides = [1, 1, 1]} : vector<9x8x8xbf16> to vector<1x8x8xbf16>
    %413 = vector.shape_cast %412 : vector<1x8x8xbf16> to vector<8x8xbf16>
    %414 = arith.truncf %411 : vector<8x256xf32> to vector<8x256xbf16>
    %cst_138 = arith.constant dense<0.000000e+00> : vector<8x256xf32>
    %415 = tpu.matmul %413, %414, %cst_138 {dimension_numbers = #tpu.dot_dimension_numbers<[1], [0], [0], [1], [0, 0, 1, 1], [], []>} : vector<8x8xbf16>, vector<8x256xbf16>, vector<8x256xf32> -> vector<8x256xf32>
    %416 = arith.addf %408, %415 : vector<8x256xf32>
    %c1_i32_139 = arith.constant 1 : i32
    %417 = tpu.dynamic_rotate %389 by %c1_i32_139 dim 1 : vector<8x256xf32>, i32 -> vector<8x256xf32>
    %418 = vector.broadcast %3 : vector<1x256xf32> to vector<8x256xf32>
    %419 = arith.mulf %417, %418 : vector<8x256xf32>
    %420 = vector.extract_strided_slice %391 {offsets = [3, 0, 0], sizes = [1, 8, 8], strides = [1, 1, 1]} : vector<9x8x8xbf16> to vector<1x8x8xbf16>
    %421 = vector.shape_cast %420 : vector<1x8x8xbf16> to vector<8x8xbf16>
    %422 = arith.truncf %419 : vector<8x256xf32> to vector<8x256xbf16>
    %cst_140 = arith.constant dense<0.000000e+00> : vector<8x256xf32>
    %423 = tpu.matmul %421, %422, %cst_140 {dimension_numbers = #tpu.dot_dimension_numbers<[1], [0], [0], [1], [0, 0, 1, 1], [], []>} : vector<8x8xbf16>, vector<8x256xbf16>, vector<8x256xf32> -> vector<8x256xf32>
    %424 = arith.addf %416, %423 : vector<8x256xf32>
    %425 = vector.extract_strided_slice %391 {offsets = [4, 0, 0], sizes = [1, 8, 8], strides = [1, 1, 1]} : vector<9x8x8xbf16> to vector<1x8x8xbf16>
    %426 = vector.shape_cast %425 : vector<1x8x8xbf16> to vector<8x8xbf16>
    %427 = arith.truncf %389 : vector<8x256xf32> to vector<8x256xbf16>
    %cst_141 = arith.constant dense<0.000000e+00> : vector<8x256xf32>
    %428 = tpu.matmul %426, %427, %cst_141 {dimension_numbers = #tpu.dot_dimension_numbers<[1], [0], [0], [1], [0, 0, 1, 1], [], []>} : vector<8x8xbf16>, vector<8x256xbf16>, vector<8x256xf32> -> vector<8x256xf32>
    %429 = arith.addf %424, %428 : vector<8x256xf32>
    %c255_i32_142 = arith.constant 255 : i32
    %430 = tpu.dynamic_rotate %389 by %c255_i32_142 dim 1 : vector<8x256xf32>, i32 -> vector<8x256xf32>
    %431 = vector.broadcast %4 : vector<1x256xf32> to vector<8x256xf32>
    %432 = arith.mulf %430, %431 : vector<8x256xf32>
    %433 = vector.extract_strided_slice %391 {offsets = [5, 0, 0], sizes = [1, 8, 8], strides = [1, 1, 1]} : vector<9x8x8xbf16> to vector<1x8x8xbf16>
    %434 = vector.shape_cast %433 : vector<1x8x8xbf16> to vector<8x8xbf16>
    %435 = arith.truncf %432 : vector<8x256xf32> to vector<8x256xbf16>
    %cst_143 = arith.constant dense<0.000000e+00> : vector<8x256xf32>
    %436 = tpu.matmul %434, %435, %cst_143 {dimension_numbers = #tpu.dot_dimension_numbers<[1], [0], [0], [1], [0, 0, 1, 1], [], []>} : vector<8x8xbf16>, vector<8x256xbf16>, vector<8x256xf32> -> vector<8x256xf32>
    %437 = arith.addf %429, %436 : vector<8x256xf32>
    %c241_i32_144 = arith.constant 241 : i32
    %438 = tpu.dynamic_rotate %389 by %c241_i32_144 dim 1 : vector<8x256xf32>, i32 -> vector<8x256xf32>
    %439 = vector.broadcast %5 : vector<1x256xf32> to vector<8x256xf32>
    %440 = arith.mulf %438, %439 : vector<8x256xf32>
    %441 = vector.extract_strided_slice %391 {offsets = [6, 0, 0], sizes = [1, 8, 8], strides = [1, 1, 1]} : vector<9x8x8xbf16> to vector<1x8x8xbf16>
    %442 = vector.shape_cast %441 : vector<1x8x8xbf16> to vector<8x8xbf16>
    %443 = arith.truncf %440 : vector<8x256xf32> to vector<8x256xbf16>
    %cst_145 = arith.constant dense<0.000000e+00> : vector<8x256xf32>
    %444 = tpu.matmul %442, %443, %cst_145 {dimension_numbers = #tpu.dot_dimension_numbers<[1], [0], [0], [1], [0, 0, 1, 1], [], []>} : vector<8x8xbf16>, vector<8x256xbf16>, vector<8x256xf32> -> vector<8x256xf32>
    %445 = arith.addf %437, %444 : vector<8x256xf32>
    %c240_i32_146 = arith.constant 240 : i32
    %446 = tpu.dynamic_rotate %389 by %c240_i32_146 dim 1 : vector<8x256xf32>, i32 -> vector<8x256xf32>
    %447 = vector.broadcast %6 : vector<1x256xf32> to vector<8x256xf32>
    %448 = arith.mulf %446, %447 : vector<8x256xf32>
    %449 = vector.extract_strided_slice %391 {offsets = [7, 0, 0], sizes = [1, 8, 8], strides = [1, 1, 1]} : vector<9x8x8xbf16> to vector<1x8x8xbf16>
    %450 = vector.shape_cast %449 : vector<1x8x8xbf16> to vector<8x8xbf16>
    %451 = arith.truncf %448 : vector<8x256xf32> to vector<8x256xbf16>
    %cst_147 = arith.constant dense<0.000000e+00> : vector<8x256xf32>
    %452 = tpu.matmul %450, %451, %cst_147 {dimension_numbers = #tpu.dot_dimension_numbers<[1], [0], [0], [1], [0, 0, 1, 1], [], []>} : vector<8x8xbf16>, vector<8x256xbf16>, vector<8x256xf32> -> vector<8x256xf32>
    %453 = arith.addf %445, %452 : vector<8x256xf32>
    %c239_i32_148 = arith.constant 239 : i32
    %454 = tpu.dynamic_rotate %389 by %c239_i32_148 dim 1 : vector<8x256xf32>, i32 -> vector<8x256xf32>
    %455 = vector.broadcast %7 : vector<1x256xf32> to vector<8x256xf32>
    %456 = arith.mulf %454, %455 : vector<8x256xf32>
    %457 = vector.extract_strided_slice %391 {offsets = [8, 0, 0], sizes = [1, 8, 8], strides = [1, 1, 1]} : vector<9x8x8xbf16> to vector<1x8x8xbf16>
    %458 = vector.shape_cast %457 : vector<1x8x8xbf16> to vector<8x8xbf16>
    %459 = arith.truncf %456 : vector<8x256xf32> to vector<8x256xbf16>
    %cst_149 = arith.constant dense<0.000000e+00> : vector<8x256xf32>
    %460 = tpu.matmul %458, %459, %cst_149 {dimension_numbers = #tpu.dot_dimension_numbers<[1], [0], [0], [1], [0, 0, 1, 1], [], []>} : vector<8x8xbf16>, vector<8x256xbf16>, vector<8x256xf32> -> vector<8x256xf32>
    %461 = arith.addf %453, %460 : vector<8x256xf32>
    %462 = vector.broadcast %393 : vector<8x1xf32> to vector<8x256xf32>
    %463 = arith.addf %461, %462 : vector<8x256xf32>
    %cst_150 = arith.constant 0.000000e+00 : f32
    %464 = vector.broadcast %cst_150 : f32 to vector<8x256xf32>
    %465 = arith.maximumf %463, %464 : vector<8x256xf32>
    %466 = tpu.concatenate %85, %161, %237, %313, %389, %465 in 0 : vector<8x256xf32>, vector<8x256xf32>, vector<8x256xf32>, vector<8x256xf32>, vector<8x256xf32>, vector<8x256xf32> -> vector<48x256xf32>
    %cst_151 = arith.constant dense<0.000000e+00> : vector<48xf32>
    %467 = vector.multi_reduction <add>, %466, %cst_151 [1] : vector<48x256xf32> to vector<48xf32>
    %468 = vector.shape_cast %467 : vector<48xf32> to vector<48x1xf32>
    %cst_152 = arith.constant 2.560000e+02 : f32
    %469 = vector.broadcast %cst_152 : f32 to vector<48x1xf32>
    %470 = arith.divf %468, %469 : vector<48x1xf32>
    %c0_153 = arith.constant 0 : index
    %c0_154 = arith.constant 0 : index
    %471 = vector.load %arg4[%c0_153, %c0_154] : memref<48x8xf32, #tpu.memory_space<vmem>>, vector<48x8xf32>
    %472 = vector.broadcast %470 : vector<48x1xf32> to vector<48x8xf32>
    %473 = arith.mulf %471, %472 : vector<48x8xf32>
    %cst_155 = arith.constant dense<0.000000e+00> : vector<8xf32>
    %474 = vector.multi_reduction <add>, %473, %cst_155 [0] : vector<48x8xf32> to vector<8xf32>
    %475 = vector.shape_cast %474 : vector<8xf32> to vector<1x8xf32>
    %c0_156 = arith.constant 0 : index
    %c0_157 = arith.constant 0 : index
    %476 = vector.load %arg5[%c0_156, %c0_157] : memref<1x8xf32, #tpu.memory_space<vmem>>, vector<1x8xf32>
    %477 = arith.addf %475, %476 : vector<1x8xf32>
    %cst_158 = arith.constant 0.000000e+00 : f32
    %478 = vector.broadcast %cst_158 : f32 to vector<1x8xf32>
    %479 = arith.maximumf %477, %478 : vector<1x8xf32>
    %c0_159 = arith.constant 0 : index
    %c0_160 = arith.constant 0 : index
    %480 = vector.load %arg6[%c0_159, %c0_160] : memref<48x8xf32, #tpu.memory_space<vmem>>, vector<48x8xf32>
    %481 = vector.broadcast %479 : vector<1x8xf32> to vector<48x8xf32>
    %482 = arith.mulf %480, %481 : vector<48x8xf32>
    %cst_161 = arith.constant dense<0.000000e+00> : vector<48xf32>
    %483 = vector.multi_reduction <add>, %482, %cst_161 [1] : vector<48x8xf32> to vector<48xf32>
    %484 = vector.shape_cast %483 : vector<48xf32> to vector<48x1xf32>
    %c0_162 = arith.constant 0 : index
    %c0_163 = arith.constant 0 : index
    %485 = vector.load %arg7[%c0_162, %c0_163] : memref<48x1xf32, #tpu.memory_space<vmem>>, vector<48x1xf32>
    %486 = arith.addf %484, %485 : vector<48x1xf32>
    %487 = arith.negf %486 : vector<48x1xf32>
    %488 = math.exp %487 : vector<48x1xf32>
    %cst_164 = arith.constant 1.000000e+00 : f32
    %489 = vector.broadcast %cst_164 : f32 to vector<48x1xf32>
    %490 = arith.addf %489, %488 : vector<48x1xf32>
    %491 = arith.divf %489, %490 : vector<48x1xf32>
    %c0_165 = arith.constant 0 : index
    %c0_166 = arith.constant 0 : index
    %492 = vector.load %arg8[%c0_165, %c0_166] : memref<24x48xbf16, #tpu.memory_space<vmem>>, vector<24x48xbf16>
    %493 = arith.truncf %466 : vector<48x256xf32> to vector<48x256xbf16>
    %cst_167 = arith.constant dense<0.000000e+00> : vector<24x256xf32>
    %494 = tpu.matmul %492, %493, %cst_167 {dimension_numbers = #tpu.dot_dimension_numbers<[1], [0], [0], [1], [0, 0, 1, 1], [], []>} : vector<24x48xbf16>, vector<48x256xbf16>, vector<24x256xf32> -> vector<24x256xf32>
    %c0_168 = arith.constant 0 : index
    %c0_169 = arith.constant 0 : index
    %495 = vector.load %arg9[%c0_168, %c0_169] : memref<24x1xf32, #tpu.memory_space<vmem>>, vector<24x1xf32>
    %496 = vector.broadcast %495 : vector<24x1xf32> to vector<24x256xf32>
    %497 = arith.addf %494, %496 : vector<24x256xf32>
    %cst_170 = arith.constant 0.000000e+00 : f32
    %498 = vector.broadcast %cst_170 : f32 to vector<24x256xf32>
    %499 = arith.maximumf %497, %498 : vector<24x256xf32>
    %c0_171 = arith.constant 0 : index
    %c0_172 = arith.constant 0 : index
    %500 = vector.load %arg10[%c0_171, %c0_172] : memref<16x48xbf16, #tpu.memory_space<vmem>>, vector<16x48xbf16>
    %501 = vector.broadcast %491 : vector<48x1xf32> to vector<48x256xf32>
    %502 = arith.mulf %466, %501 : vector<48x256xf32>
    %503 = arith.truncf %502 : vector<48x256xf32> to vector<48x256xbf16>
    %cst_173 = arith.constant dense<0.000000e+00> : vector<16x256xf32>
    %504 = tpu.matmul %500, %503, %cst_173 {dimension_numbers = #tpu.dot_dimension_numbers<[1], [0], [0], [1], [0, 0, 1, 1], [], []>} : vector<16x48xbf16>, vector<48x256xbf16>, vector<16x256xf32> -> vector<16x256xf32>
    %c0_174 = arith.constant 0 : index
    %c0_175 = arith.constant 0 : index
    %505 = vector.load %arg11[%c0_174, %c0_175] : memref<16x1xf32, #tpu.memory_space<vmem>>, vector<16x1xf32>
    %506 = vector.broadcast %505 : vector<16x1xf32> to vector<16x256xf32>
    %507 = arith.addf %504, %506 : vector<16x256xf32>
    %cst_176 = arith.constant 0.000000e+00 : f32
    %508 = vector.broadcast %cst_176 : f32 to vector<16x256xf32>
    %509 = arith.maximumf %507, %508 : vector<16x256xf32>
    %510 = tpu.concatenate %499, %509 in 0 : vector<24x256xf32>, vector<16x256xf32> -> vector<40x256xf32>
    %c0_177 = arith.constant 0 : index
    %c0_178 = arith.constant 0 : index
    %c0_179 = arith.constant 0 : index
    %511 = vector.load %arg12[%c0_177, %c0_178, %c0_179] : memref<9x22x40xbf16, #tpu.memory_space<vmem>>, vector<9x22x40xbf16>
    %c0_180 = arith.constant 0 : index
    %c0_181 = arith.constant 0 : index
    %512 = vector.load %arg13[%c0_180, %c0_181] : memref<22x1xf32, #tpu.memory_space<vmem>>, vector<22x1xf32>
    %c17_i32_182 = arith.constant 17 : i32
    %513 = tpu.dynamic_rotate %510 by %c17_i32_182 dim 1 : vector<40x256xf32>, i32 -> vector<40x256xf32>
    %514 = vector.broadcast %0 : vector<1x256xf32> to vector<40x256xf32>
    %515 = arith.mulf %513, %514 : vector<40x256xf32>
    %516 = vector.extract_strided_slice %511 {offsets = [0, 0, 0], sizes = [1, 22, 40], strides = [1, 1, 1]} : vector<9x22x40xbf16> to vector<1x22x40xbf16>
    %517 = vector.shape_cast %516 : vector<1x22x40xbf16> to vector<22x40xbf16>
    %518 = arith.truncf %515 : vector<40x256xf32> to vector<40x256xbf16>
    %cst_183 = arith.constant dense<0.000000e+00> : vector<22x256xf32>
    %519 = tpu.matmul %517, %518, %cst_183 {dimension_numbers = #tpu.dot_dimension_numbers<[1], [0], [0], [1], [0, 0, 1, 1], [], []>} : vector<22x40xbf16>, vector<40x256xbf16>, vector<22x256xf32> -> vector<22x256xf32>
    %c16_i32_184 = arith.constant 16 : i32
    %520 = tpu.dynamic_rotate %510 by %c16_i32_184 dim 1 : vector<40x256xf32>, i32 -> vector<40x256xf32>
    %521 = vector.broadcast %1 : vector<1x256xf32> to vector<40x256xf32>
    %522 = arith.mulf %520, %521 : vector<40x256xf32>
    %523 = vector.extract_strided_slice %511 {offsets = [1, 0, 0], sizes = [1, 22, 40], strides = [1, 1, 1]} : vector<9x22x40xbf16> to vector<1x22x40xbf16>
    %524 = vector.shape_cast %523 : vector<1x22x40xbf16> to vector<22x40xbf16>
    %525 = arith.truncf %522 : vector<40x256xf32> to vector<40x256xbf16>
    %cst_185 = arith.constant dense<0.000000e+00> : vector<22x256xf32>
    %526 = tpu.matmul %524, %525, %cst_185 {dimension_numbers = #tpu.dot_dimension_numbers<[1], [0], [0], [1], [0, 0, 1, 1], [], []>} : vector<22x40xbf16>, vector<40x256xbf16>, vector<22x256xf32> -> vector<22x256xf32>
    %527 = arith.addf %519, %526 : vector<22x256xf32>
    %c15_i32_186 = arith.constant 15 : i32
    %528 = tpu.dynamic_rotate %510 by %c15_i32_186 dim 1 : vector<40x256xf32>, i32 -> vector<40x256xf32>
    %529 = vector.broadcast %2 : vector<1x256xf32> to vector<40x256xf32>
    %530 = arith.mulf %528, %529 : vector<40x256xf32>
    %531 = vector.extract_strided_slice %511 {offsets = [2, 0, 0], sizes = [1, 22, 40], strides = [1, 1, 1]} : vector<9x22x40xbf16> to vector<1x22x40xbf16>
    %532 = vector.shape_cast %531 : vector<1x22x40xbf16> to vector<22x40xbf16>
    %533 = arith.truncf %530 : vector<40x256xf32> to vector<40x256xbf16>
    %cst_187 = arith.constant dense<0.000000e+00> : vector<22x256xf32>
    %534 = tpu.matmul %532, %533, %cst_187 {dimension_numbers = #tpu.dot_dimension_numbers<[1], [0], [0], [1], [0, 0, 1, 1], [], []>} : vector<22x40xbf16>, vector<40x256xbf16>, vector<22x256xf32> -> vector<22x256xf32>
    %535 = arith.addf %527, %534 : vector<22x256xf32>
    %c1_i32_188 = arith.constant 1 : i32
    %536 = tpu.dynamic_rotate %510 by %c1_i32_188 dim 1 : vector<40x256xf32>, i32 -> vector<40x256xf32>
    %537 = vector.broadcast %3 : vector<1x256xf32> to vector<40x256xf32>
    %538 = arith.mulf %536, %537 : vector<40x256xf32>
    %539 = vector.extract_strided_slice %511 {offsets = [3, 0, 0], sizes = [1, 22, 40], strides = [1, 1, 1]} : vector<9x22x40xbf16> to vector<1x22x40xbf16>
    %540 = vector.shape_cast %539 : vector<1x22x40xbf16> to vector<22x40xbf16>
    %541 = arith.truncf %538 : vector<40x256xf32> to vector<40x256xbf16>
    %cst_189 = arith.constant dense<0.000000e+00> : vector<22x256xf32>
    %542 = tpu.matmul %540, %541, %cst_189 {dimension_numbers = #tpu.dot_dimension_numbers<[1], [0], [0], [1], [0, 0, 1, 1], [], []>} : vector<22x40xbf16>, vector<40x256xbf16>, vector<22x256xf32> -> vector<22x256xf32>
    %543 = arith.addf %535, %542 : vector<22x256xf32>
    %544 = vector.extract_strided_slice %511 {offsets = [4, 0, 0], sizes = [1, 22, 40], strides = [1, 1, 1]} : vector<9x22x40xbf16> to vector<1x22x40xbf16>
    %545 = vector.shape_cast %544 : vector<1x22x40xbf16> to vector<22x40xbf16>
    %546 = arith.truncf %510 : vector<40x256xf32> to vector<40x256xbf16>
    %cst_190 = arith.constant dense<0.000000e+00> : vector<22x256xf32>
    %547 = tpu.matmul %545, %546, %cst_190 {dimension_numbers = #tpu.dot_dimension_numbers<[1], [0], [0], [1], [0, 0, 1, 1], [], []>} : vector<22x40xbf16>, vector<40x256xbf16>, vector<22x256xf32> -> vector<22x256xf32>
    %548 = arith.addf %543, %547 : vector<22x256xf32>
    %c255_i32_191 = arith.constant 255 : i32
    %549 = tpu.dynamic_rotate %510 by %c255_i32_191 dim 1 : vector<40x256xf32>, i32 -> vector<40x256xf32>
    %550 = vector.broadcast %4 : vector<1x256xf32> to vector<40x256xf32>
    %551 = arith.mulf %549, %550 : vector<40x256xf32>
    %552 = vector.extract_strided_slice %511 {offsets = [5, 0, 0], sizes = [1, 22, 40], strides = [1, 1, 1]} : vector<9x22x40xbf16> to vector<1x22x40xbf16>
    %553 = vector.shape_cast %552 : vector<1x22x40xbf16> to vector<22x40xbf16>
    %554 = arith.truncf %551 : vector<40x256xf32> to vector<40x256xbf16>
    %cst_192 = arith.constant dense<0.000000e+00> : vector<22x256xf32>
    %555 = tpu.matmul %553, %554, %cst_192 {dimension_numbers = #tpu.dot_dimension_numbers<[1], [0], [0], [1], [0, 0, 1, 1], [], []>} : vector<22x40xbf16>, vector<40x256xbf16>, vector<22x256xf32> -> vector<22x256xf32>
    %556 = arith.addf %548, %555 : vector<22x256xf32>
    %c241_i32_193 = arith.constant 241 : i32
    %557 = tpu.dynamic_rotate %510 by %c241_i32_193 dim 1 : vector<40x256xf32>, i32 -> vector<40x256xf32>
    %558 = vector.broadcast %5 : vector<1x256xf32> to vector<40x256xf32>
    %559 = arith.mulf %557, %558 : vector<40x256xf32>
    %560 = vector.extract_strided_slice %511 {offsets = [6, 0, 0], sizes = [1, 22, 40], strides = [1, 1, 1]} : vector<9x22x40xbf16> to vector<1x22x40xbf16>
    %561 = vector.shape_cast %560 : vector<1x22x40xbf16> to vector<22x40xbf16>
    %562 = arith.truncf %559 : vector<40x256xf32> to vector<40x256xbf16>
    %cst_194 = arith.constant dense<0.000000e+00> : vector<22x256xf32>
    %563 = tpu.matmul %561, %562, %cst_194 {dimension_numbers = #tpu.dot_dimension_numbers<[1], [0], [0], [1], [0, 0, 1, 1], [], []>} : vector<22x40xbf16>, vector<40x256xbf16>, vector<22x256xf32> -> vector<22x256xf32>
    %564 = arith.addf %556, %563 : vector<22x256xf32>
    %c240_i32_195 = arith.constant 240 : i32
    %565 = tpu.dynamic_rotate %510 by %c240_i32_195 dim 1 : vector<40x256xf32>, i32 -> vector<40x256xf32>
    %566 = vector.broadcast %6 : vector<1x256xf32> to vector<40x256xf32>
    %567 = arith.mulf %565, %566 : vector<40x256xf32>
    %568 = vector.extract_strided_slice %511 {offsets = [7, 0, 0], sizes = [1, 22, 40], strides = [1, 1, 1]} : vector<9x22x40xbf16> to vector<1x22x40xbf16>
    %569 = vector.shape_cast %568 : vector<1x22x40xbf16> to vector<22x40xbf16>
    %570 = arith.truncf %567 : vector<40x256xf32> to vector<40x256xbf16>
    %cst_196 = arith.constant dense<0.000000e+00> : vector<22x256xf32>
    %571 = tpu.matmul %569, %570, %cst_196 {dimension_numbers = #tpu.dot_dimension_numbers<[1], [0], [0], [1], [0, 0, 1, 1], [], []>} : vector<22x40xbf16>, vector<40x256xbf16>, vector<22x256xf32> -> vector<22x256xf32>
    %572 = arith.addf %564, %571 : vector<22x256xf32>
    %c239_i32_197 = arith.constant 239 : i32
    %573 = tpu.dynamic_rotate %510 by %c239_i32_197 dim 1 : vector<40x256xf32>, i32 -> vector<40x256xf32>
    %574 = vector.broadcast %7 : vector<1x256xf32> to vector<40x256xf32>
    %575 = arith.mulf %573, %574 : vector<40x256xf32>
    %576 = vector.extract_strided_slice %511 {offsets = [8, 0, 0], sizes = [1, 22, 40], strides = [1, 1, 1]} : vector<9x22x40xbf16> to vector<1x22x40xbf16>
    %577 = vector.shape_cast %576 : vector<1x22x40xbf16> to vector<22x40xbf16>
    %578 = arith.truncf %575 : vector<40x256xf32> to vector<40x256xbf16>
    %cst_198 = arith.constant dense<0.000000e+00> : vector<22x256xf32>
    %579 = tpu.matmul %577, %578, %cst_198 {dimension_numbers = #tpu.dot_dimension_numbers<[1], [0], [0], [1], [0, 0, 1, 1], [], []>} : vector<22x40xbf16>, vector<40x256xbf16>, vector<22x256xf32> -> vector<22x256xf32>
    %580 = arith.addf %572, %579 : vector<22x256xf32>
    %581 = vector.broadcast %512 : vector<22x1xf32> to vector<22x256xf32>
    %582 = arith.addf %580, %581 : vector<22x256xf32>
    %583 = vector.extract_strided_slice %582 {offsets = [0, 0], sizes = [8, 256], strides = [1, 1]} : vector<22x256xf32> to vector<8x256xf32>
    %584 = vector.extract_strided_slice %582 {offsets = [8, 0], sizes = [1, 256], strides = [1, 1]} : vector<22x256xf32> to vector<1x256xf32>
    %585 = vector.extract_strided_slice %582 {offsets = [9, 0], sizes = [1, 256], strides = [1, 1]} : vector<22x256xf32> to vector<1x256xf32>
    %586 = vector.extract_strided_slice %582 {offsets = [10, 0], sizes = [8, 256], strides = [1, 1]} : vector<22x256xf32> to vector<8x256xf32>
    %587 = vector.extract_strided_slice %582 {offsets = [18, 0], sizes = [4, 256], strides = [1, 1]} : vector<22x256xf32> to vector<4x256xf32>
    %588 = arith.negf %585 : vector<1x256xf32>
    %589 = math.exp %588 : vector<1x256xf32>
    %cst_199 = arith.constant 1.000000e+00 : f32
    %590 = vector.broadcast %cst_199 : f32 to vector<1x256xf32>
    %591 = arith.addf %590, %589 : vector<1x256xf32>
    %592 = arith.divf %590, %591 : vector<1x256xf32>
    %593 = arith.negf %586 : vector<8x256xf32>
    %594 = math.exp %593 : vector<8x256xf32>
    %cst_200 = arith.constant 1.000000e+00 : f32
    %595 = vector.broadcast %cst_200 : f32 to vector<8x256xf32>
    %596 = arith.addf %595, %594 : vector<8x256xf32>
    %597 = arith.divf %595, %596 : vector<8x256xf32>
    %598 = vector.broadcast %592 : vector<1x256xf32> to vector<8x256xf32>
    %599 = arith.mulf %597, %598 : vector<8x256xf32>
    %600 = math.sqrt %599 : vector<8x256xf32>
    %601 = arith.negf %584 : vector<1x256xf32>
    %602 = math.exp %601 : vector<1x256xf32>
    %cst_201 = arith.constant 1.000000e+00 : f32
    %603 = vector.broadcast %cst_201 : f32 to vector<1x256xf32>
    %604 = arith.addf %603, %602 : vector<1x256xf32>
    %605 = arith.divf %603, %604 : vector<1x256xf32>
    %c0_202 = arith.constant 0 : index
    %c0_203 = arith.constant 0 : index
    %606 = vector.load %arg15[%c0_202, %c0_203] : memref<2x256xf32, #tpu.memory_space<vmem>>, vector<1x256xf32>
    %c1_204 = arith.constant 1 : index
    %c0_205 = arith.constant 0 : index
    %607 = vector.load %arg15[%c1_204, %c0_205] : memref<2x256xf32, #tpu.memory_space<vmem>>, vector<1x256xf32>
    %608 = vector.extract_strided_slice %587 {offsets = [0, 0], sizes = [1, 256], strides = [1, 1]} : vector<4x256xf32> to vector<1x256xf32>
    %609 = arith.subf %606, %608 : vector<1x256xf32>
    %610 = vector.extract_strided_slice %587 {offsets = [1, 0], sizes = [1, 256], strides = [1, 1]} : vector<4x256xf32> to vector<1x256xf32>
    %611 = arith.subf %607, %610 : vector<1x256xf32>
    %612 = vector.extract_strided_slice %587 {offsets = [2, 0], sizes = [1, 256], strides = [1, 1]} : vector<4x256xf32> to vector<1x256xf32>
    %613 = arith.addf %606, %612 : vector<1x256xf32>
    %614 = vector.extract_strided_slice %587 {offsets = [3, 0], sizes = [1, 256], strides = [1, 1]} : vector<4x256xf32> to vector<1x256xf32>
    %615 = arith.addf %607, %614 : vector<1x256xf32>
    %c0_206 = arith.constant 0 : index
    %c0_207 = arith.constant 0 : index
    %616 = vector.load %arg16[%c0_206, %c0_207] : memref<16x256xf32, #tpu.memory_space<vmem>>, vector<16x256xf32>
    %c0_208 = arith.constant 0 : index
    %c0_209 = arith.constant 0 : index
    %617 = vector.load %arg17[%c0_208, %c0_209] : memref<256x16xf32, #tpu.memory_space<vmem>>, vector<256x16xf32>
    %618 = tpu.iota {dimensions = array<i32: 0>} : vector<16x256xi32>
    %619 = arith.sitofp %618 : vector<16x256xi32> to vector<16x256xf32>
    %620 = tpu.iota {dimensions = array<i32: 0>} : vector<16x256xi32>
    %621 = arith.sitofp %620 : vector<16x256xi32> to vector<16x256xf32>
    %622 = vector.extract_strided_slice %583 {offsets = [0, 0], sizes = [1, 256], strides = [1, 1]} : vector<8x256xf32> to vector<1x256xf32>
    %623 = arith.addf %606, %622 : vector<1x256xf32>
    %624 = vector.extract_strided_slice %583 {offsets = [1, 0], sizes = [1, 256], strides = [1, 1]} : vector<8x256xf32> to vector<1x256xf32>
    %625 = arith.addf %607, %624 : vector<1x256xf32>
    %626 = math.floor %623 : vector<1x256xf32>
    %627 = math.floor %625 : vector<1x256xf32>
    %628 = arith.subf %623, %626 : vector<1x256xf32>
    %629 = arith.subf %625, %627 : vector<1x256xf32>
    %630 = vector.broadcast %626 : vector<1x256xf32> to vector<16x256xf32>
    %631 = arith.cmpf oeq, %621, %630 : vector<16x256xf32>
    %632 = arith.extui %631 : vector<16x256xi1> to vector<16x256xi32>
    %633 = arith.sitofp %632 : vector<16x256xi32> to vector<16x256xf32>
    %cst_210 = arith.constant 1.000000e+00 : f32
    %634 = vector.broadcast %cst_210 : f32 to vector<1x256xf32>
    %635 = arith.subf %634, %628 : vector<1x256xf32>
    %636 = vector.broadcast %635 : vector<1x256xf32> to vector<16x256xf32>
    %637 = arith.mulf %633, %636 : vector<16x256xf32>
    %cst_211 = arith.constant 1.000000e+00 : f32
    %638 = vector.broadcast %cst_211 : f32 to vector<1x256xf32>
    %639 = arith.addf %626, %638 : vector<1x256xf32>
    %640 = vector.broadcast %639 : vector<1x256xf32> to vector<16x256xf32>
    %641 = arith.cmpf oeq, %621, %640 : vector<16x256xf32>
    %642 = arith.extui %641 : vector<16x256xi1> to vector<16x256xi32>
    %643 = arith.sitofp %642 : vector<16x256xi32> to vector<16x256xf32>
    %644 = vector.broadcast %628 : vector<1x256xf32> to vector<16x256xf32>
    %645 = arith.mulf %643, %644 : vector<16x256xf32>
    %646 = arith.addf %637, %645 : vector<16x256xf32>
    %647 = vector.broadcast %627 : vector<1x256xf32> to vector<16x256xf32>
    %648 = arith.cmpf oeq, %619, %647 : vector<16x256xf32>
    %649 = arith.extui %648 : vector<16x256xi1> to vector<16x256xi32>
    %650 = arith.sitofp %649 : vector<16x256xi32> to vector<16x256xf32>
    %cst_212 = arith.constant 1.000000e+00 : f32
    %651 = vector.broadcast %cst_212 : f32 to vector<1x256xf32>
    %652 = arith.subf %651, %629 : vector<1x256xf32>
    %653 = vector.broadcast %652 : vector<1x256xf32> to vector<16x256xf32>
    %654 = arith.mulf %650, %653 : vector<16x256xf32>
    %cst_213 = arith.constant 1.000000e+00 : f32
    %655 = vector.broadcast %cst_213 : f32 to vector<1x256xf32>
    %656 = arith.addf %627, %655 : vector<1x256xf32>
    %657 = vector.broadcast %656 : vector<1x256xf32> to vector<16x256xf32>
    %658 = arith.cmpf oeq, %619, %657 : vector<16x256xf32>
    %659 = arith.extui %658 : vector<16x256xi1> to vector<16x256xi32>
    %660 = arith.sitofp %659 : vector<16x256xi32> to vector<16x256xf32>
    %661 = vector.broadcast %629 : vector<1x256xf32> to vector<16x256xf32>
    %662 = arith.mulf %660, %661 : vector<16x256xf32>
    %663 = arith.addf %654, %662 : vector<16x256xf32>
    %664 = vector.broadcast %609 : vector<1x256xf32> to vector<16x256xf32>
    %665 = arith.mulf %616, %664 : vector<16x256xf32>
    %cst_214 = arith.constant dense<0.000000e+00> : vector<16x16xf32>
    %666 = tpu.matmul %665, %617, %cst_214 {dimension_numbers = #tpu.dot_dimension_numbers<[1], [0], [0], [1], [0, 0, 1, 1], [], []>} : vector<16x256xf32>, vector<256x16xf32>, vector<16x16xf32> -> vector<16x16xf32>
    %cst_215 = arith.constant dense<0.000000e+00> : vector<16x256xf32>
    %667 = tpu.matmul %666, %646, %cst_215 {dimension_numbers = #tpu.dot_dimension_numbers<[1], [0], [0], [1], [0, 0, 1, 1], [], []>} : vector<16x16xf32>, vector<16x256xf32>, vector<16x256xf32> -> vector<16x256xf32>
    %668 = arith.mulf %663, %667 : vector<16x256xf32>
    %cst_216 = arith.constant dense<0.000000e+00> : vector<256xf32>
    %669 = vector.multi_reduction <add>, %668, %cst_216 [0] : vector<16x256xf32> to vector<256xf32>
    %670 = vector.shape_cast %669 : vector<256xf32> to vector<1x256xf32>
    %671 = vector.extract_strided_slice %583 {offsets = [2, 0], sizes = [1, 256], strides = [1, 1]} : vector<8x256xf32> to vector<1x256xf32>
    %672 = arith.addf %606, %671 : vector<1x256xf32>
    %673 = vector.extract_strided_slice %583 {offsets = [3, 0], sizes = [1, 256], strides = [1, 1]} : vector<8x256xf32> to vector<1x256xf32>
    %674 = arith.addf %607, %673 : vector<1x256xf32>
    %675 = math.floor %672 : vector<1x256xf32>
    %676 = math.floor %674 : vector<1x256xf32>
    %677 = arith.subf %672, %675 : vector<1x256xf32>
    %678 = arith.subf %674, %676 : vector<1x256xf32>
    %679 = vector.broadcast %675 : vector<1x256xf32> to vector<16x256xf32>
    %680 = arith.cmpf oeq, %621, %679 : vector<16x256xf32>
    %681 = arith.extui %680 : vector<16x256xi1> to vector<16x256xi32>
    %682 = arith.sitofp %681 : vector<16x256xi32> to vector<16x256xf32>
    %cst_217 = arith.constant 1.000000e+00 : f32
    %683 = vector.broadcast %cst_217 : f32 to vector<1x256xf32>
    %684 = arith.subf %683, %677 : vector<1x256xf32>
    %685 = vector.broadcast %684 : vector<1x256xf32> to vector<16x256xf32>
    %686 = arith.mulf %682, %685 : vector<16x256xf32>
    %cst_218 = arith.constant 1.000000e+00 : f32
    %687 = vector.broadcast %cst_218 : f32 to vector<1x256xf32>
    %688 = arith.addf %675, %687 : vector<1x256xf32>
    %689 = vector.broadcast %688 : vector<1x256xf32> to vector<16x256xf32>
    %690 = arith.cmpf oeq, %621, %689 : vector<16x256xf32>
    %691 = arith.extui %690 : vector<16x256xi1> to vector<16x256xi32>
    %692 = arith.sitofp %691 : vector<16x256xi32> to vector<16x256xf32>
    %693 = vector.broadcast %677 : vector<1x256xf32> to vector<16x256xf32>
    %694 = arith.mulf %692, %693 : vector<16x256xf32>
    %695 = arith.addf %686, %694 : vector<16x256xf32>
    %696 = vector.broadcast %676 : vector<1x256xf32> to vector<16x256xf32>
    %697 = arith.cmpf oeq, %619, %696 : vector<16x256xf32>
    %698 = arith.extui %697 : vector<16x256xi1> to vector<16x256xi32>
    %699 = arith.sitofp %698 : vector<16x256xi32> to vector<16x256xf32>
    %cst_219 = arith.constant 1.000000e+00 : f32
    %700 = vector.broadcast %cst_219 : f32 to vector<1x256xf32>
    %701 = arith.subf %700, %678 : vector<1x256xf32>
    %702 = vector.broadcast %701 : vector<1x256xf32> to vector<16x256xf32>
    %703 = arith.mulf %699, %702 : vector<16x256xf32>
    %cst_220 = arith.constant 1.000000e+00 : f32
    %704 = vector.broadcast %cst_220 : f32 to vector<1x256xf32>
    %705 = arith.addf %676, %704 : vector<1x256xf32>
    %706 = vector.broadcast %705 : vector<1x256xf32> to vector<16x256xf32>
    %707 = arith.cmpf oeq, %619, %706 : vector<16x256xf32>
    %708 = arith.extui %707 : vector<16x256xi1> to vector<16x256xi32>
    %709 = arith.sitofp %708 : vector<16x256xi32> to vector<16x256xf32>
    %710 = vector.broadcast %678 : vector<1x256xf32> to vector<16x256xf32>
    %711 = arith.mulf %709, %710 : vector<16x256xf32>
    %712 = arith.addf %703, %711 : vector<16x256xf32>
    %713 = vector.broadcast %611 : vector<1x256xf32> to vector<16x256xf32>
    %714 = arith.mulf %616, %713 : vector<16x256xf32>
    %cst_221 = arith.constant dense<0.000000e+00> : vector<16x16xf32>
    %715 = tpu.matmul %714, %617, %cst_221 {dimension_numbers = #tpu.dot_dimension_numbers<[1], [0], [0], [1], [0, 0, 1, 1], [], []>} : vector<16x256xf32>, vector<256x16xf32>, vector<16x16xf32> -> vector<16x16xf32>
    %cst_222 = arith.constant dense<0.000000e+00> : vector<16x256xf32>
    %716 = tpu.matmul %715, %695, %cst_222 {dimension_numbers = #tpu.dot_dimension_numbers<[1], [0], [0], [1], [0, 0, 1, 1], [], []>} : vector<16x16xf32>, vector<16x256xf32>, vector<16x256xf32> -> vector<16x256xf32>
    %717 = arith.mulf %712, %716 : vector<16x256xf32>
    %cst_223 = arith.constant dense<0.000000e+00> : vector<256xf32>
    %718 = vector.multi_reduction <add>, %717, %cst_223 [0] : vector<16x256xf32> to vector<256xf32>
    %719 = vector.shape_cast %718 : vector<256xf32> to vector<1x256xf32>
    %720 = vector.extract_strided_slice %583 {offsets = [4, 0], sizes = [1, 256], strides = [1, 1]} : vector<8x256xf32> to vector<1x256xf32>
    %721 = arith.addf %606, %720 : vector<1x256xf32>
    %722 = vector.extract_strided_slice %583 {offsets = [5, 0], sizes = [1, 256], strides = [1, 1]} : vector<8x256xf32> to vector<1x256xf32>
    %723 = arith.addf %607, %722 : vector<1x256xf32>
    %724 = math.floor %721 : vector<1x256xf32>
    %725 = math.floor %723 : vector<1x256xf32>
    %726 = arith.subf %721, %724 : vector<1x256xf32>
    %727 = arith.subf %723, %725 : vector<1x256xf32>
    %728 = vector.broadcast %724 : vector<1x256xf32> to vector<16x256xf32>
    %729 = arith.cmpf oeq, %621, %728 : vector<16x256xf32>
    %730 = arith.extui %729 : vector<16x256xi1> to vector<16x256xi32>
    %731 = arith.sitofp %730 : vector<16x256xi32> to vector<16x256xf32>
    %cst_224 = arith.constant 1.000000e+00 : f32
    %732 = vector.broadcast %cst_224 : f32 to vector<1x256xf32>
    %733 = arith.subf %732, %726 : vector<1x256xf32>
    %734 = vector.broadcast %733 : vector<1x256xf32> to vector<16x256xf32>
    %735 = arith.mulf %731, %734 : vector<16x256xf32>
    %cst_225 = arith.constant 1.000000e+00 : f32
    %736 = vector.broadcast %cst_225 : f32 to vector<1x256xf32>
    %737 = arith.addf %724, %736 : vector<1x256xf32>
    %738 = vector.broadcast %737 : vector<1x256xf32> to vector<16x256xf32>
    %739 = arith.cmpf oeq, %621, %738 : vector<16x256xf32>
    %740 = arith.extui %739 : vector<16x256xi1> to vector<16x256xi32>
    %741 = arith.sitofp %740 : vector<16x256xi32> to vector<16x256xf32>
    %742 = vector.broadcast %726 : vector<1x256xf32> to vector<16x256xf32>
    %743 = arith.mulf %741, %742 : vector<16x256xf32>
    %744 = arith.addf %735, %743 : vector<16x256xf32>
    %745 = vector.broadcast %725 : vector<1x256xf32> to vector<16x256xf32>
    %746 = arith.cmpf oeq, %619, %745 : vector<16x256xf32>
    %747 = arith.extui %746 : vector<16x256xi1> to vector<16x256xi32>
    %748 = arith.sitofp %747 : vector<16x256xi32> to vector<16x256xf32>
    %cst_226 = arith.constant 1.000000e+00 : f32
    %749 = vector.broadcast %cst_226 : f32 to vector<1x256xf32>
    %750 = arith.subf %749, %727 : vector<1x256xf32>
    %751 = vector.broadcast %750 : vector<1x256xf32> to vector<16x256xf32>
    %752 = arith.mulf %748, %751 : vector<16x256xf32>
    %cst_227 = arith.constant 1.000000e+00 : f32
    %753 = vector.broadcast %cst_227 : f32 to vector<1x256xf32>
    %754 = arith.addf %725, %753 : vector<1x256xf32>
    %755 = vector.broadcast %754 : vector<1x256xf32> to vector<16x256xf32>
    %756 = arith.cmpf oeq, %619, %755 : vector<16x256xf32>
    %757 = arith.extui %756 : vector<16x256xi1> to vector<16x256xi32>
    %758 = arith.sitofp %757 : vector<16x256xi32> to vector<16x256xf32>
    %759 = vector.broadcast %727 : vector<1x256xf32> to vector<16x256xf32>
    %760 = arith.mulf %758, %759 : vector<16x256xf32>
    %761 = arith.addf %752, %760 : vector<16x256xf32>
    %762 = vector.broadcast %613 : vector<1x256xf32> to vector<16x256xf32>
    %763 = arith.mulf %616, %762 : vector<16x256xf32>
    %cst_228 = arith.constant dense<0.000000e+00> : vector<16x16xf32>
    %764 = tpu.matmul %763, %617, %cst_228 {dimension_numbers = #tpu.dot_dimension_numbers<[1], [0], [0], [1], [0, 0, 1, 1], [], []>} : vector<16x256xf32>, vector<256x16xf32>, vector<16x16xf32> -> vector<16x16xf32>
    %cst_229 = arith.constant dense<0.000000e+00> : vector<16x256xf32>
    %765 = tpu.matmul %764, %744, %cst_229 {dimension_numbers = #tpu.dot_dimension_numbers<[1], [0], [0], [1], [0, 0, 1, 1], [], []>} : vector<16x16xf32>, vector<16x256xf32>, vector<16x256xf32> -> vector<16x256xf32>
    %766 = arith.mulf %761, %765 : vector<16x256xf32>
    %cst_230 = arith.constant dense<0.000000e+00> : vector<256xf32>
    %767 = vector.multi_reduction <add>, %766, %cst_230 [0] : vector<16x256xf32> to vector<256xf32>
    %768 = vector.shape_cast %767 : vector<256xf32> to vector<1x256xf32>
    %769 = vector.extract_strided_slice %583 {offsets = [6, 0], sizes = [1, 256], strides = [1, 1]} : vector<8x256xf32> to vector<1x256xf32>
    %770 = arith.addf %606, %769 : vector<1x256xf32>
    %771 = vector.extract_strided_slice %583 {offsets = [7, 0], sizes = [1, 256], strides = [1, 1]} : vector<8x256xf32> to vector<1x256xf32>
    %772 = arith.addf %607, %771 : vector<1x256xf32>
    %773 = math.floor %770 : vector<1x256xf32>
    %774 = math.floor %772 : vector<1x256xf32>
    %775 = arith.subf %770, %773 : vector<1x256xf32>
    %776 = arith.subf %772, %774 : vector<1x256xf32>
    %777 = vector.broadcast %773 : vector<1x256xf32> to vector<16x256xf32>
    %778 = arith.cmpf oeq, %621, %777 : vector<16x256xf32>
    %779 = arith.extui %778 : vector<16x256xi1> to vector<16x256xi32>
    %780 = arith.sitofp %779 : vector<16x256xi32> to vector<16x256xf32>
    %cst_231 = arith.constant 1.000000e+00 : f32
    %781 = vector.broadcast %cst_231 : f32 to vector<1x256xf32>
    %782 = arith.subf %781, %775 : vector<1x256xf32>
    %783 = vector.broadcast %782 : vector<1x256xf32> to vector<16x256xf32>
    %784 = arith.mulf %780, %783 : vector<16x256xf32>
    %cst_232 = arith.constant 1.000000e+00 : f32
    %785 = vector.broadcast %cst_232 : f32 to vector<1x256xf32>
    %786 = arith.addf %773, %785 : vector<1x256xf32>
    %787 = vector.broadcast %786 : vector<1x256xf32> to vector<16x256xf32>
    %788 = arith.cmpf oeq, %621, %787 : vector<16x256xf32>
    %789 = arith.extui %788 : vector<16x256xi1> to vector<16x256xi32>
    %790 = arith.sitofp %789 : vector<16x256xi32> to vector<16x256xf32>
    %791 = vector.broadcast %775 : vector<1x256xf32> to vector<16x256xf32>
    %792 = arith.mulf %790, %791 : vector<16x256xf32>
    %793 = arith.addf %784, %792 : vector<16x256xf32>
    %794 = vector.broadcast %774 : vector<1x256xf32> to vector<16x256xf32>
    %795 = arith.cmpf oeq, %619, %794 : vector<16x256xf32>
    %796 = arith.extui %795 : vector<16x256xi1> to vector<16x256xi32>
    %797 = arith.sitofp %796 : vector<16x256xi32> to vector<16x256xf32>
    %cst_233 = arith.constant 1.000000e+00 : f32
    %798 = vector.broadcast %cst_233 : f32 to vector<1x256xf32>
    %799 = arith.subf %798, %776 : vector<1x256xf32>
    %800 = vector.broadcast %799 : vector<1x256xf32> to vector<16x256xf32>
    %801 = arith.mulf %797, %800 : vector<16x256xf32>
    %cst_234 = arith.constant 1.000000e+00 : f32
    %802 = vector.broadcast %cst_234 : f32 to vector<1x256xf32>
    %803 = arith.addf %774, %802 : vector<1x256xf32>
    %804 = vector.broadcast %803 : vector<1x256xf32> to vector<16x256xf32>
    %805 = arith.cmpf oeq, %619, %804 : vector<16x256xf32>
    %806 = arith.extui %805 : vector<16x256xi1> to vector<16x256xi32>
    %807 = arith.sitofp %806 : vector<16x256xi32> to vector<16x256xf32>
    %808 = vector.broadcast %776 : vector<1x256xf32> to vector<16x256xf32>
    %809 = arith.mulf %807, %808 : vector<16x256xf32>
    %810 = arith.addf %801, %809 : vector<16x256xf32>
    %811 = vector.broadcast %615 : vector<1x256xf32> to vector<16x256xf32>
    %812 = arith.mulf %616, %811 : vector<16x256xf32>
    %cst_235 = arith.constant dense<0.000000e+00> : vector<16x16xf32>
    %813 = tpu.matmul %812, %617, %cst_235 {dimension_numbers = #tpu.dot_dimension_numbers<[1], [0], [0], [1], [0, 0, 1, 1], [], []>} : vector<16x256xf32>, vector<256x16xf32>, vector<16x16xf32> -> vector<16x16xf32>
    %cst_236 = arith.constant dense<0.000000e+00> : vector<16x256xf32>
    %814 = tpu.matmul %813, %793, %cst_236 {dimension_numbers = #tpu.dot_dimension_numbers<[1], [0], [0], [1], [0, 0, 1, 1], [], []>} : vector<16x16xf32>, vector<16x256xf32>, vector<16x256xf32> -> vector<16x256xf32>
    %815 = arith.mulf %810, %814 : vector<16x256xf32>
    %cst_237 = arith.constant dense<0.000000e+00> : vector<256xf32>
    %816 = vector.multi_reduction <add>, %815, %cst_237 [0] : vector<16x256xf32> to vector<256xf32>
    %817 = vector.shape_cast %816 : vector<256xf32> to vector<1x256xf32>
    %818 = tpu.concatenate %670, %719, %768, %817, %605, %600 in 0 : vector<1x256xf32>, vector<1x256xf32>, vector<1x256xf32>, vector<1x256xf32>, vector<1x256xf32>, vector<8x256xf32> -> vector<13x256xf32>
    %c0_238 = arith.constant 0 : index
    %c0_239 = arith.constant 0 : index
    %c0_240 = arith.constant 0 : index
    %819 = vector.load %arg18[%c0_238, %c0_239, %c0_240] : memref<1x13x256xf32, #tpu.memory_space<vmem>>, vector<1x13x256xf32>
    %820 = vector.shape_cast %819 : vector<1x13x256xf32> to vector<13x256xf32>
    %821 = vector.shape_cast %818 : vector<13x256xf32> to vector<1x13x256xf32>
    tpu.vector_store %arg18[%c0_238, %c0_239, %c0_240], %821 {strides = array<i32>} : memref<1x13x256xf32, #tpu.memory_space<vmem>>, vector<1x13x256xf32>,
    return
  }
  func.func @transform_0(%arg0: i32) -> (i32, i32, i32) {
    %c0_i32 = arith.constant 0 : i32
    %c0_i32_0 = arith.constant 0 : i32
    %c0_i32_1 = arith.constant 0 : i32
    return %arg0, %c0_i32, %c0_i32_0 : i32, i32, i32
  }
  func.func @transform_1(%arg0: i32) -> (i32, i32, i32, i32) {
    %c0_i32 = arith.constant 0 : i32
    %c0_i32_0 = arith.constant 0 : i32
    %c0_i32_1 = arith.constant 0 : i32
    %c0_i32_2 = arith.constant 0 : i32
    %c0_i32_3 = arith.constant 0 : i32
    return %c0_i32, %c0_i32_0, %c0_i32_1, %c0_i32_2 : i32, i32, i32, i32
  }
  func.func @transform_2(%arg0: i32) -> (i32, i32, i32) {
    %c0_i32 = arith.constant 0 : i32
    %c0_i32_0 = arith.constant 0 : i32
    %c0_i32_1 = arith.constant 0 : i32
    %c0_i32_2 = arith.constant 0 : i32
    return %c0_i32, %c0_i32_0, %c0_i32_1 : i32, i32, i32
  }
  func.func @transform_3(%arg0: i32) -> (i32, i32) {
    %c0_i32 = arith.constant 0 : i32
    %c0_i32_0 = arith.constant 0 : i32
    %c0_i32_1 = arith.constant 0 : i32
    return %c0_i32, %c0_i32_0 : i32, i32
  }
  func.func @transform_4(%arg0: i32) -> (i32, i32) {
    %c0_i32 = arith.constant 0 : i32
    %c0_i32_0 = arith.constant 0 : i32
    %c0_i32_1 = arith.constant 0 : i32
    return %c0_i32, %c0_i32_0 : i32, i32
  }
  func.func @transform_5(%arg0: i32) -> (i32, i32) {
    %c0_i32 = arith.constant 0 : i32
    %c0_i32_0 = arith.constant 0 : i32
    %c0_i32_1 = arith.constant 0 : i32
    return %c0_i32, %c0_i32_0 : i32, i32
  }
  func.func @transform_6(%arg0: i32) -> (i32, i32) {
    %c0_i32 = arith.constant 0 : i32
    %c0_i32_0 = arith.constant 0 : i32
    %c0_i32_1 = arith.constant 0 : i32
    return %c0_i32, %c0_i32_0 : i32, i32
  }
  func.func @transform_7(%arg0: i32) -> (i32, i32) {
    %c0_i32 = arith.constant 0 : i32
    %c0_i32_0 = arith.constant 0 : i32
    %c0_i32_1 = arith.constant 0 : i32
    return %c0_i32, %c0_i32_0 : i32, i32
  }
  func.func @transform_8(%arg0: i32) -> (i32, i32) {
    %c0_i32 = arith.constant 0 : i32
    %c0_i32_0 = arith.constant 0 : i32
    %c0_i32_1 = arith.constant 0 : i32
    return %c0_i32, %c0_i32_0 : i32, i32
  }
  func.func @transform_9(%arg0: i32) -> (i32, i32) {
    %c0_i32 = arith.constant 0 : i32
    %c0_i32_0 = arith.constant 0 : i32
    %c0_i32_1 = arith.constant 0 : i32
    return %c0_i32, %c0_i32_0 : i32, i32
  }
  func.func @transform_10(%arg0: i32) -> (i32, i32) {
    %c0_i32 = arith.constant 0 : i32
    %c0_i32_0 = arith.constant 0 : i32
    %c0_i32_1 = arith.constant 0 : i32
    return %c0_i32, %c0_i32_0 : i32, i32
  }
  func.func @transform_11(%arg0: i32) -> (i32, i32, i32) {
    %c0_i32 = arith.constant 0 : i32
    %c0_i32_0 = arith.constant 0 : i32
    %c0_i32_1 = arith.constant 0 : i32
    %c0_i32_2 = arith.constant 0 : i32
    return %c0_i32, %c0_i32_0, %c0_i32_1 : i32, i32, i32
  }
  func.func @transform_12(%arg0: i32) -> (i32, i32) {
    %c0_i32 = arith.constant 0 : i32
    %c0_i32_0 = arith.constant 0 : i32
    %c0_i32_1 = arith.constant 0 : i32
    return %c0_i32, %c0_i32_0 : i32, i32
  }
  func.func @transform_13(%arg0: i32) -> (i32, i32) {
    %c0_i32 = arith.constant 0 : i32
    %c0_i32_0 = arith.constant 0 : i32
    %c0_i32_1 = arith.constant 0 : i32
    return %c0_i32, %c0_i32_0 : i32, i32
  }
  func.func @transform_14(%arg0: i32) -> (i32, i32) {
    %c0_i32 = arith.constant 0 : i32
    %c0_i32_0 = arith.constant 0 : i32
    %c0_i32_1 = arith.constant 0 : i32
    return %c0_i32, %c0_i32_0 : i32, i32
  }
  func.func @transform_15(%arg0: i32) -> (i32, i32) {
    %c0_i32 = arith.constant 0 : i32
    %c0_i32_0 = arith.constant 0 : i32
    %c0_i32_1 = arith.constant 0 : i32
    return %c0_i32, %c0_i32_0 : i32, i32
  }
  func.func @transform_16(%arg0: i32) -> (i32, i32) {
    %c0_i32 = arith.constant 0 : i32
    %c0_i32_0 = arith.constant 0 : i32
    %c0_i32_1 = arith.constant 0 : i32
    return %c0_i32, %c0_i32_0 : i32, i32
  }
  func.func @transform_17(%arg0: i32) -> (i32, i32, i32) {
    %c0_i32 = arith.constant 0 : i32
    %c0_i32_0 = arith.constant 0 : i32
    %c0_i32_1 = arith.constant 0 : i32
    return %arg0, %c0_i32, %c0_i32_0 : i32, i32, i32
  }
}

</mosaic_0001>

<bundles_post_ra>
// kernel: tood_forward.1
= control target key start
LH: loop header
LB: loop body
LE: loop exit
PB: predicated region body
PF: predicated region fallthrough
CT: control target
= control target key end

     0   :  { %s6489_s24 = smov 0   ;;  %s9342_s0 = inlined_call_operand.vmem [shape: f32[2,8,256], index: 0, kind: input, shape index: {}]   ;;  %s9343_s1 = inlined_call_operand.vmem [shape: bf16[6,9,8,8], index: 1, kind: input, shape index: {}]   ;;  %s9344_s2 = inlined_call_operand.vmem [shape: f32[6,8,1], index: 2, kind: input, shape index: {}]   ;;  %s9345_s3 = inlined_call_operand.vmem [shape: f32[48,8], index: 3, kind: input, shape index: {}]   ;;  %s9346_s4 = inlined_call_operand.vmem [shape: f32[1,8], index: 4, kind: input, shape index: {}]   ;;  %s9347_s5 = inlined_call_operand.vmem [shape: f32[48,8], index: 5, kind: input, shape index: {}]   ;;  %s9348_s6 = inlined_call_operand.vmem [shape: f32[48,1], index: 6, kind: input, shape index: {}]   ;;  %s9349_s7 = inlined_call_operand.vmem [shape: bf16[24,48], index: 7, kind: input, shape index: {}]   ;;  %s9350_s8 = inlined_call_operand.vmem [shape: f32[24,1], index: 8, kind: input, shape index: {}]   ;;  %s9351_s9 = inlined_call_operand.vmem [shape: bf16[16,48], index: 9, kind: input, shape index: {}]   ;;  %s9352_s10 = inlined_call_operand.vmem [shape: f32[16,1], index: 10, kind: input, shape index: {}]   ;;  %s9353_s11 = inlined_call_operand.vmem [shape: bf16[9,22,40], index: 11, kind: input, shape index: {}]   ;;  %s9354_s12 = inlined_call_operand.vmem [shape: f32[22,1], index: 12, kind: input, shape index: {}]   ;;  %s9355_s13 = inlined_call_operand.vmem [shape: f32[9,256], index: 13, kind: input, shape index: {}]   ;;  %s9356_s14 = inlined_call_operand.vmem [shape: f32[2,256], index: 14, kind: input, shape index: {}]   ;;  %s9357_s15 = inlined_call_operand.vmem [shape: f32[16,256], index: 15, kind: input, shape index: {}]   ;;  %s9358_s16 = inlined_call_operand.vmem [shape: f32[256,16], index: 16, kind: input, shape index: {}]   ;;  %s9359_s17 = inlined_call_operand.vmem [shape: f32[2,13,256], index: 17, kind: output, shape index: {}]  }
   0x1   :  { %9399 = sst [smem:[#allocation10_spill]] %s9342_s0 }
   0x2   :  { %9400 = sst [smem:[#allocation11_spill]] %s9343_s1 }
   0x3   :  { %9401 = sst [smem:[#allocation12_spill]] %s9344_s2 }
   0x4   :  { %9402 = sst [smem:[#allocation13_spill]] %s9355_s13 }
   0x5 LB: > { %9403 = sst [smem:[#allocation2_spill]] %s6386_s24  ;;  %s5909_s25 = sadd.s32 4294967295, %s6386_s24   ;;  %s6386_s24 = sphi %s6489_s24, %s27_s24  }
   0x6   : > { %p5913_p0 = scmp.ge.s32.totalorder %s6386_s24, 1  ;;  %p487_p1 = scmp.lt.s32.totalorder %s6386_s24, 3 }
   0x8   : > { %p488_p2 = pnand %p5913_p0, %p487_p1 }
   0xa   : > { %491 = sbr.rel (%p488_p2) target bundleno = 3461 (0xd85), region = 88 }
   0xf   : > { %p539_p3 = scmp.lt.s32.totalorder %s5909_s25, 1  ;;  %s9404_s29 = sld [smem:[#allocation10_spill]]  ;;  %v9385_v3 = vlaneseq  ;;  %vm9383_vm3 = vcmask 1043456   ;;  %vm611_vm5 = vcmask 64512   ;;  %vm3464_vm11 = vcmask 392192  }
  0x10   : > { %s9371_s30 = smov 17   ;;  %s9375_s18 = smov 16  }
  0x11   : > { %s9519_s25 = smov (!%p539_p3, %s5909_s25), 1  ;;  %s9373_s19 = smov 15   ;;  %v6540_v4 = vand.u32 127, %v9385_v3 }
  0x12   : > { %s6262_s26 = sshll.u32 %s9519_s25, 4  ;;  %s9369_s1 = smov 1  }
  0x13   : > { %s9365_s20 = smov 127   ;;  %s9367_s21 = smov 113   ;;  %vm687_vm0 = vcmp.lt.s32.totalorder %v6540_v4, 15  ;;  %vm599_vm1 = vcmp.lt.s32.totalorder %v6540_v4, 16  ;;  %vm583_vm2 = vcmp.lt.s32.totalorder %v6540_v4, 17  ;;  %vm9384_vm4 = vcmp.lt.s32.totalorder %v6540_v4, 1 }
  0x14   : > { %s9361_s22 = smov 112   ;;  %s9363_s23 = smov 111   ;;  %vm9382_vm6 = vcmp.lt.s32.totalorder %v6540_v4, 127  ;;  %vm9381_vm7 = vcmp.lt.s32.totalorder %v6540_v4, 113  ;;  %vm9379_vm8 = vcmp.lt.s32.totalorder %v6540_v4, 112  ;;  %vm9380_vm9 = vcmp.lt.s32.totalorder %v6540_v4, 111 }
  0x15   : > { %s543_s0 = scalar_lea.vmem %s9404_s29, %s6262_s26  ;;  %s9405_s13 = sld [smem:[#allocation13_spill]] }
  0x16   : > { %v6503_v0 = vld [vmem:[%s543_s0] sm:$0xff]  ;;  %v6511_v1 = vld [vmem:[%s543_s0 + $0x8] sm:$0xff]  ;;  %s9406_s26 = sld [smem:[#allocation11_spill]]  ;;  %s9414_s29 = smov 111  }
  0x17   : > { %577 = vrot.lane.b32.xlu1 %v6503_v0, %s9371_s30  ;;  %595 = vrot.lane.b32.xlu0 %v6503_v0, %s9375_s18  ;;  %v789_v42 = vpack.c.bf16 %v6503_v0, %v6503_v0  ;;  %v790_v43 = vpack.c.bf16 %v6511_v1, %v6511_v1  ;;  %s9413_s2 = sld [smem:[#allocation12_spill]]  ;;  %s9415_s0 = smov 112  }
  0x18   : > { %683 = vrot.lane.b32.xlu2 %v6503_v0, %s9373_s19  ;;  %s9416_s27 = smov 113   ;;  %s9417_s28 = smov 127  }
  0x19   : > { %v795_v55 = vsel %vm9383_vm3, %v789_v42, 0  ;;  %v798_v56 = vsel %vm9383_vm3, %v790_v43, 0 }
  0x1b   : > { %v5919_v5 = vld [vmem:[%s9405_s13 + $0x2] ss:$8 sm:$0x3]  ;;  %v5918_v13 = vld [vmem:[%s9405_s13 + $0x1] ss:$8 sm:$0x3] }
  0x1c   : > { %v6546_v9 = vperm.slane %v5919_v5, 0  ;;  %v6548_v10 = vperm.slane %v5919_v5, 1  ;;  %v550_v14 = vld [vmem:[%s9405_s13] ss:$8 sm:$0x3]  ;;  %v6563_v17 = vperm.slane %v5918_v13, 0 }
  0x1d   : > { %v6565_v18 = vperm.slane %v5918_v13, 1  ;;  %v6568_v19 = vperm.slane %v550_v14, 0  ;;  %v6570_v20 = vperm.slane %v550_v14, 1  ;;  %v5920_v25 = vld [vmem:[%s9405_s13 + $0x3] ss:$8 sm:$0x3] }
  0x1e   : > { %v6588_v34 = vperm.slane %v5920_v25, 0  ;;  %v6590_v35 = vperm.slane %v5920_v25, 1  ;;  %v568_v49 = vld [vmem:[%s9406_s26 + $0x4] sm:$0xf]  ;;  %v567_v50 = vld [vmem:[%s9406_s26] sm:$0xf] }
  0x1f   : > { %579 = vrot.lane.b32.xlu1 %v6511_v1, %s9371_s30  ;;  %597 = vrot.lane.b32.xlu0 %v6511_v1, %s9375_s18  ;;  %v5921_v59 = vld [vmem:[%s9405_s13 + $0x5] ss:$8 sm:$0x3]  ;;  %v5922_v60 = vld [vmem:[%s9405_s13 + $0x6] ss:$8 sm:$0x3] }
  0x20   : > { %685 = vrot.lane.b32.xlu2 %v6511_v1, %s9373_s19  ;;  %v6627_v63 = vperm.slane %v5921_v59, 0  ;;  %v6634_v5 = vperm.slane %v5922_v60, 0 }
  0x22   : > { %9407 = vst [vmem:[#allocation3_spill] sm:$0xff] %v6634_v5 }
  0x27   : > { %738 = vrot.lane.b32.xlu1 %v6511_v1, %s9369_s1  ;;  %736 = vrot.lane.b32.xlu0 %v6503_v0, %s9369_s1 }
  0x28   : > { %828 = vrot.lane.b32.xlu2 %v6503_v0, %s9365_s20 }
  0x2f   : > { %830 = vrot.lane.b32.xlu0 %v6511_v1, %s9365_s20  ;;  %881 = vrot.lane.b32.xlu1 %v6503_v0, %s9367_s21 }
  0x30   : > { %883 = vrot.lane.b32.xlu2 %v6511_v1, %s9367_s21 }
  0x37   : > { %936 = vrot.lane.b32.xlu1 %v6511_v1, %s9361_s22  ;;  %934 = vrot.lane.b32.xlu0 %v6503_v0, %s9361_s22 }
  0x38   : > { %987 = vrot.lane.b32.xlu2 %v6503_v0, %s9363_s23  ;;  %v6629_v0 = vperm.slane %v5921_v59, 1 }
  0x3f   : > { %989 = vrot.lane.b32.xlu0 %v6511_v1, %s9363_s23 }
  0x72   : > { %v684_v2 = vpop.permute.xlu2 %683 }
  0x7a   : > { %v686_v6 = vpop.permute.xlu2 %685 }
  0x7b   : > { %v688_v11 = vsel %vm687_vm0, %v684_v2, %v686_v6  ;;  %v689_v12 = vsel %vm687_vm0, %v686_v6, %v684_v2  ;;  %v6636_v6 = vperm.slane %v5922_v60, 1  ;;  %v571_v60 = vld [vmem:[%s9406_s26 + $0x10] sm:$0xf] }
  0x7c   : > { %v695_v15 = vmul.f32 %v6546_v9, %v689_v12  ;;  %v696_v16 = vmul.f32 %v6548_v10, %v688_v11 }
  0x7d   : > { %9408 = vst [vmem:[#allocation4_spill] sm:$0xff] %v6636_v6 }
  0x7e   : > { %v697_v23 = vpack.c.bf16 %v695_v15, %v695_v15  ;;  %v698_v24 = vpack.c.bf16 %v696_v16, %v696_v16 }
  0x80   : > { %v703_v40 = vsel %vm9383_vm3, %v697_v23, 0  ;;  %v706_v41 = vsel %vm9383_vm3, %v698_v24, 0  ;;  %v5923_v24 = vld [vmem:[%s9405_s13 + $0x7] ss:$8 sm:$0x3] }
  0x82   : > { %v829_v48 = vpop.permute.xlu2 %828 }
  0x89   : > { %v578_v7 = vpop.permute.xlu1 %577  ;;  %v596_v8 = vpop.permute.xlu0 %595 }
  0x91   : > { %v580_v21 = vpop.permute.xlu1 %579  ;;  %v598_v22 = vpop.permute.xlu0 %597 }
  0x92   : > { %v601_v26 = vsel %vm599_vm1, %v598_v22, %v596_v8  ;;  %v600_v27 = vsel %vm599_vm1, %v596_v8, %v598_v22  ;;  %v585_v28 = vsel %vm583_vm2, %v580_v21, %v578_v7  ;;  %v584_v29 = vsel %vm583_vm2, %v578_v7, %v580_v21  ;;  %v884_v7 = vpop.permute.xlu2 %883 }
  0x93   : > { %v607_v30 = vmul.f32 %v6563_v17, %v601_v26  ;;  %v608_v31 = vmul.f32 %v6565_v18, %v600_v27  ;;  %v591_v32 = vmul.f32 %v6568_v19, %v585_v28  ;;  %v592_v33 = vmul.f32 %v6570_v20, %v584_v29 }
  0x95   : > { %v609_v36 = vpack.c.bf16 %v607_v30, %v607_v30  ;;  %v610_v37 = vpack.c.bf16 %v608_v31, %v608_v31  ;;  %v593_v38 = vpack.c.bf16 %v591_v32, %v591_v32  ;;  %v594_v39 = vpack.c.bf16 %v592_v33, %v592_v33  ;;  %v569_v33 = vld [vmem:[%s9406_s26 + $0x8] sm:$0xf] }
  0x96   : > { %v6656_v31 = vperm.slane %v5923_v24, 0  ;;  %v6658_v32 = vperm.slane %v5923_v24, 1 }
  0x97   : > { %v617_v44 = vsel %vm9383_vm3, %v609_v36, 0  ;;  %v620_v45 = vsel %vm9383_vm3, %v610_v37, 0  ;;  %v652_v46 = vsel %vm9383_vm3, %v593_v38, 0  ;;  %v655_v47 = vsel %vm9383_vm3, %v594_v39, 0  ;;  %v570_v36 = vld [vmem:[%s9406_s26 + $0xc] sm:$0xf] }
  0x98   : > { %629 = vmatpush.bf16.msra.mxu0 %v617_v44  ;;  %642 = vmatpush.bf16.msra.mxu1 %v620_v45  ;;  %9409 = vst [vmem:[#allocation5_spill] sm:$0xff] %v6656_v31  ;;  %v5924_v45 = vld [vmem:[%s9405_s13 + $0x10] ss:$8 sm:$0x3] }
  0x99   : > { %664 = vmatpush.bf16.msra.mxu2 %v652_v46  ;;  %677 = vmatpush.bf16.msra.mxu3 %v655_v47  ;;  %v739_v51 = vpop.permute.xlu1 %738  ;;  %v737_v52 = vpop.permute.xlu0 %736  ;;  %9410 = vst [vmem:[#allocation6_spill] sm:$0xff] %v6658_v32 }
  0x9a   : > { %v741_v53 = vsel %vm9384_vm4, %v737_v52, %v739_v51  ;;  %v742_v54 = vsel %vm9384_vm4, %v739_v51, %v737_v52  ;;  %v6684_v51 = vperm.slane %v5924_v45, 0  ;;  %v6686_v52 = vperm.slane %v5924_v45, 1 }
  0x9b   : > { %5925 = vmatmul.msk.bf16.vlgmr.msra.gmra.mxu0 %vm611_vm5, %v568_v49  ;;  %5926 = vmatmul.msk.bf16.vlgmr.msra.gmra.mxu1 %vm611_vm5, %v568_v49  ;;  %v748_v57 = vmul.f32 %v6588_v34, %v742_v54  ;;  %v749_v58 = vmul.f32 %v6590_v35, %v741_v53 }
  0x9c   : > { %715 = vmatpush.bf16.msrb.mxu0 %v703_v40  ;;  %728 = vmatpush.bf16.msrb.mxu1 %v706_v41  ;;  %9411 = vst [vmem:[#allocation7_spill] sm:$0xff] %v6684_v51 }
  0x9d   : > { %5927 = vmatmul.msk.bf16.vlgmr.msra.gmra.mxu2 %vm611_vm5, %v567_v50  ;;  %5928 = vmatmul.msk.bf16.vlgmr.msra.gmra.mxu3 %vm611_vm5, %v567_v50  ;;  %v750_v61 = vpack.c.bf16 %v748_v57, %v748_v57  ;;  %v751_v62 = vpack.c.bf16 %v749_v58, %v749_v58  ;;  %v988_v50 = vpop.permute.xlu2 %987  ;;  %9412 = vst [vmem:[#allocation8_spill] sm:$0xff] %v6686_v52 }
  0x9f   : > { %v756_v1 = vsel %vm9383_vm3, %v750_v61, 0  ;;  %v759_v2 = vsel %vm9383_vm3, %v751_v62, 0  ;;  %v572_v61 = vld [vmem:[%s9406_s26 + $0x14] sm:$0xf] }
  0xa0   : > { %807 = vmatpush.bf16.msra.mxu0 %v795_v55  ;;  %820 = vmatpush.bf16.msra.mxu1 %v798_v56 }
  0xa1   : > { %768 = vmatpush.bf16.msrb.mxu2 %v756_v1  ;;  %781 = vmatpush.bf16.msrb.mxu3 %v759_v2  ;;  %v831_v8 = vpop.permute.xlu0 %830  ;;  %v882_v11 = vpop.permute.xlu1 %881  ;;  %v576_v2 = vld [vmem:[%s9413_s2] sm:$0xff] }
  0xa2   : > { %v833_v12 = vsel %vm9382_vm6, %v829_v48, %v831_v8  ;;  %v834_v13 = vsel %vm9382_vm6, %v831_v8, %v829_v48  ;;  %v886_v14 = vsel %vm9381_vm7, %v882_v11, %v884_v7  ;;  %v887_v15 = vsel %vm9381_vm7, %v884_v7, %v882_v11  ;;  %v573_v8 = vld [vmem:[%s9406_s26 + $0x18] sm:$0xf]  ;;  %v574_v11 = vld [vmem:[%s9406_s26 + $0x1c] sm:$0xf] }
  0xa3   : > { %v840_v16 = vmul.f32 %v6627_v63, %v833_v12  ;;  %v841_v21 = vmul.f32 %v6629_v0, %v834_v13  ;;  %v893_v22 = vmul.f32 %v6634_v5, %v886_v14  ;;  %v894_v23 = vmul.f32 %v6636_v6, %v887_v15  ;;  %v575_v12 = vld [vmem:[%s9406_s26 + $0x20] sm:$0xf] }
  0xa4   : > { %v6396_v7 = vmov 0  }
  0xa5   : > { %v842_v25 = vpack.c.bf16 %v840_v16, %v840_v16  ;;  %v843_v26 = vpack.c.bf16 %v841_v21, %v841_v21  ;;  %v895_v27 = vpack.c.bf16 %v893_v22, %v893_v22  ;;  %v896_v28 = vpack.c.bf16 %v894_v23, %v894_v23  ;;  %6294 = vset.pattern.permute.xlu1 %v6396_v7 }
  0xa6   : > { %6295 = vset.pattern.permute.xlu0 %v6396_v7  ;;  %1042 = vperm.xlu1 %6294, %v576_v2  }
  0xa7   : > { %v848_v29 = vsel %vm9383_vm3, %v842_v25, 0  ;;  %v851_v30 = vsel %vm9383_vm3, %v843_v26, 0  ;;  %v901_v41 = vsel %vm9383_vm3, %v895_v27, 0  ;;  %v904_v42 = vsel %vm9383_vm3, %v896_v28, 0  ;;  %6296 = vset.pattern.permute.xlu2 %v6396_v7 }
  0xa8   : > { %860 = vmatpush.bf16.msra.mxu2 %v848_v29  ;;  %873 = vmatpush.bf16.msra.mxu3 %v851_v30 }
  0xa9   : > { %v937_v37 = vpop.permute.xlu1 %936  ;;  %v935_v38 = vpop.permute.xlu0 %934 }
  0xaa   : > { %v939_v39 = vsel %vm9379_vm8, %v935_v38, %v937_v37  ;;  %v940_v40 = vsel %vm9379_vm8, %v937_v37, %v935_v38 }
  0xab   : > { %5929 = vmatmul.msk.bf16.vlgmr.msrb.gmra.mxu0 %vm611_vm5, %v569_v33  ;;  %5930 = vmatmul.msk.bf16.vlgmr.msrb.gmra.mxu1 %vm611_vm5, %v569_v33  ;;  %v946_v43 = vmul.f32 %v6656_v31, %v939_v39  ;;  %v947_v44 = vmul.f32 %v6658_v32, %v940_v40 }
  0xac   : > { %913 = vmatpush.bf16.msrb.mxu0 %v901_v41  ;;  %926 = vmatpush.bf16.msrb.mxu1 %v904_v42 }
  0xad   : > { %5931 = vmatmul.msk.bf16.vlgmr.msrb.gmra.mxu2 %vm611_vm5, %v570_v36  ;;  %5932 = vmatmul.msk.bf16.vlgmr.msrb.gmra.mxu3 %vm611_vm5, %v570_v36  ;;  %v948_v46 = vpack.c.bf16 %v946_v43, %v946_v43  ;;  %v949_v47 = vpack.c.bf16 %v947_v44, %v947_v44 }
  0xaf   : > { %v954_v48 = vsel %vm9383_vm3, %v948_v46, 0  ;;  %v957_v49 = vsel %vm9383_vm3, %v949_v47, 0 }
  0xb0   : > { %966 = vmatpush.bf16.msrb.mxu2 %v954_v48  ;;  %979 = vmatpush.bf16.msrb.mxu3 %v957_v49 }
  0xb1   : > { %v990_v53 = vpop.permute.xlu0 %989 }
  0xb2   : > { %v992_v54 = vsel %vm9380_vm9, %v988_v50, %v990_v53  ;;  %v993_v55 = vsel %vm9380_vm9, %v990_v53, %v988_v50 }
  0xb3   : > { %v999_v56 = vmul.f32 %v6684_v51, %v992_v54  ;;  %v1000_v57 = vmul.f32 %v6686_v52, %v993_v55 }
  0xb5   : > { %v1001_v58 = vpack.c.bf16 %v999_v56, %v999_v56  ;;  %v1002_v59 = vpack.c.bf16 %v1000_v57, %v1000_v57 }
  0xb7   : > { %v1007_v62 = vsel %vm9383_vm3, %v1001_v58, 0  ;;  %v1010_v1 = vsel %vm9383_vm3, %v1002_v59, 0 }
  0xbb   : > { %5933 = vmatmul.msk.bf16.vlgmr.msra.gmra.mxu0 %vm611_vm5, %v571_v60  ;;  %5934 = vmatmul.msk.bf16.vlgmr.msra.gmra.mxu1 %vm611_vm5, %v571_v60 }
  0xbc   : > { %1019 = vmatpush.bf16.msra.mxu0 %v1007_v62  ;;  %1032 = vmatpush.bf16.msra.mxu1 %v1010_v1 }
  0xbd   : > { %5935 = vmatmul.msk.bf16.vlgmr.msra.gmra.mxu2 %vm611_vm5, %v572_v61  ;;  %5936 = vmatmul.msk.bf16.vlgmr.msra.gmra.mxu3 %vm611_vm5, %v572_v61 }
  0xcb   : > { %5937 = vmatmul.msk.bf16.vlgmr.msrb.gmra.mxu0 %vm611_vm5, %v573_v8  ;;  %5938 = vmatmul.msk.bf16.vlgmr.msrb.gmra.mxu1 %vm611_vm5, %v573_v8 }
  0xcd   : > { %5939 = vmatmul.msk.bf16.vlgmr.msrb.gmra.mxu2 %vm611_vm5, %v574_v11  ;;  %5940 = vmatmul.msk.bf16.vlgmr.msrb.gmra.mxu3 %vm611_vm5, %v574_v11 }
  0xdb   : > { %5941 = vmatmul.msk.bf16.vlgmr.msra.gmra.mxu0 %vm611_vm5, %v575_v12  ;;  %5942 = vmatmul.msk.bf16.vlgmr.msra.gmra.mxu1 %vm611_vm5, %v575_v12 }
 0x118   : > { %v631_v13 = vpop.f32.mrf.mxu0  ;;  %v644_v14 = vpop.f32.mrf.mxu1 }
 0x119   : > { %v1043_v7 = vpop.permute.xlu1 %1042 }
 0x120   : > { %v666_v15 = vpop.f32.mrf.mxu2  ;;  %v679_v16 = vpop.f32.mrf.mxu3 }
 0x121   : > { %v633_v21 = vpop.f32.mrf.mxu0  ;;  %v646_v22 = vpop.f32.mrf.mxu1  ;;  %v667_v47 = vadd.f32 %v666_v15, %v631_v13  ;;  %v680_v48 = vadd.f32 %v679_v16, %v644_v14 }
 0x128   : > { %v668_v23 = vpop.f32.mrf.mxu2  ;;  %v681_v24 = vpop.f32.mrf.mxu3 }
 0x129   : > { %v717_v25 = vpop.f32.mrf.mxu0  ;;  %v730_v26 = vpop.f32.mrf.mxu1 }
 0x12a   : > { %v734_v49 = vadd.f32 %v717_v25, %v667_v47  ;;  %v735_v50 = vadd.f32 %v730_v26, %v680_v48 }
 0x130   : > { %v770_v27 = vpop.f32.mrf.mxu2  ;;  %v783_v28 = vpop.f32.mrf.mxu3 }
 0x131   : > { %v719_v29 = vpop.f32.mrf.mxu0  ;;  %v732_v30 = vpop.f32.mrf.mxu1  ;;  %v787_v53 = vadd.f32 %v770_v27, %v734_v49  ;;  %v788_v54 = vadd.f32 %v783_v28, %v735_v50 }
 0x138   : > { %v772_v33 = vpop.f32.mrf.mxu2  ;;  %v785_v36 = vpop.f32.mrf.mxu3 }
 0x139   : > { %v809_v37 = vpop.f32.mrf.mxu0  ;;  %v822_v38 = vpop.f32.mrf.mxu1 }
 0x13a   : > { %v826_v59 = vadd.f32 %v809_v37, %v787_v53  ;;  %v827_v60 = vadd.f32 %v822_v38, %v788_v54 }
 0x140   : > { %v862_v39 = vpop.f32.mrf.mxu2  ;;  %v875_v40 = vpop.f32.mrf.mxu3 }
 0x141   : > { %v811_v41 = vpop.f32.mrf.mxu0  ;;  %v824_v42 = vpop.f32.mrf.mxu1  ;;  %v879_v61 = vadd.f32 %v862_v39, %v826_v59  ;;  %v880_v62 = vadd.f32 %v875_v40, %v827_v60 }
 0x148   : > { %v864_v43 = vpop.f32.mrf.mxu2  ;;  %v877_v44 = vpop.f32.mrf.mxu3 }
 0x149   : > { %v915_v45 = vpop.f32.mrf.mxu0  ;;  %v928_v46 = vpop.f32.mrf.mxu1 }
 0x14a   : > { %v932_v1 = vadd.f32 %v915_v45, %v879_v61  ;;  %v933_v2 = vadd.f32 %v928_v46, %v880_v62 }
 0x150   : > { %v968_v55 = vpop.f32.mrf.mxu2  ;;  %v981_v56 = vpop.f32.mrf.mxu3 }
 0x151   : > { %v917_v57 = vpop.f32.mrf.mxu0  ;;  %v930_v58 = vpop.f32.mrf.mxu1  ;;  %v985_v8 = vadd.f32 %v968_v55, %v932_v1  ;;  %v986_v11 = vadd.f32 %v981_v56, %v933_v2 }
 0x152   : > { %v5944_v57 = vld [vmem:[%s9406_s26 + $0x28] sm:$0xf] }
 0x158   : > { %v983_v12 = vpop.f32.mrf.mxu3  ;;  %v970_v13 = vpop.f32.mrf.mxu2 }
 0x159   : > { %v1021_v14 = vpop.f32.mrf.mxu0  ;;  %v1034_v15 = vpop.f32.mrf.mxu1 }
 0x15a   : > { %v1038_v16 = vadd.f32 %v1021_v14, %v985_v8  ;;  %v1039_v21 = vadd.f32 %v1034_v15, %v986_v11  ;;  %v5943_v15 = vld [vmem:[%s9406_s26 + $0x24] sm:$0xf] }
 0x15c   : > { %v1045_v22 = vadd.f32 %v1043_v7, %v1038_v16  ;;  %v1046_v23 = vadd.f32 %v1043_v7, %v1039_v21 }
 0x15e   : > { %v6724_v24 = vmax.f32 %v1045_v22, 0.0  ;;  %v6726_v25 = vmax.f32 %v1046_v23, 0.0 }
 0x160   : > { %1073 = vrot.lane.b32.xlu0 %v6726_v25, %s9375_s18  ;;  %1151 = vrot.lane.b32.xlu1 %v6724_v24, %s9373_s19  ;;  %v1245_v49 = vpack.c.bf16 %v6724_v24, %v6724_v24  ;;  %v1246_v50 = vpack.c.bf16 %v6726_v25, %v6726_v25 }
 0x161   : > { %1071 = vrot.lane.b32.xlu2 %v6724_v24, %s9375_s18  ;;  %v1036_v26 = vpop.f32.mrf.mxu1  ;;  %v1023_v27 = vpop.f32.mrf.mxu0 }
 0x162   : > { %v1251_v2 = vsel %vm9383_vm3, %v1245_v49, 0  ;;  %v1254_v7 = vsel %vm9383_vm3, %v1246_v50, 0 }
 0x168   : > { %1061 = vrot.lane.b32.xlu0 %v6724_v24, %s9371_s30  ;;  %1063 = vrot.lane.b32.xlu1 %v6726_v25, %s9371_s30 }
 0x169   : > { %1153 = vrot.lane.b32.xlu2 %v6726_v25, %s9373_s19 }
 0x170   : > { %1200 = vrot.lane.b32.xlu0 %v6726_v25, %s9369_s1  ;;  %1331 = vrot.lane.b32.xlu1 %v6724_v24, %s9367_s21 }
 0x171   : > { %1198 = vrot.lane.b32.xlu2 %v6724_v24, %s9369_s1 }
 0x178   : > { %1284 = vrot.lane.b32.xlu0 %v6724_v24, %s9365_s20  ;;  %1286 = vrot.lane.b32.xlu1 %v6726_v25, %s9365_s20 }
 0x179   : > { %1333 = vrot.lane.b32.xlu2 %v6726_v25, %s9367_s21 }
 0x180   : > { %1427 = vrot.lane.b32.xlu0 %v6726_v25, %s9414_s29  ;;  %1378 = vrot.lane.b32.xlu1 %v6724_v24, %s9415_s0 }
 0x181   : > { %1425 = vrot.lane.b32.xlu2 %v6724_v24, %s9414_s29 }
 0x189   : > { %1380 = vrot.lane.b32.xlu2 %v6726_v25, %s9415_s0 }
 0x1bb   : > { %v1072_v28 = vpop.permute.xlu2 %1071 }
 0x1c3   : > { %v1154_v29 = vpop.permute.xlu2 %1153 }
 0x1cb   : > { %v1199_v36 = vpop.permute.xlu2 %1198 }
 0x1d2   : > { %v1074_v30 = vpop.permute.xlu0 %1073  ;;  %v1152_v33 = vpop.permute.xlu1 %1151 }
 0x1d3   : > { %v1075_v37 = vsel %vm599_vm1, %v1072_v28, %v1074_v30  ;;  %v1076_v38 = vsel %vm599_vm1, %v1074_v30, %v1072_v28  ;;  %v1155_v39 = vsel %vm687_vm0, %v1152_v33, %v1154_v29  ;;  %v1156_v40 = vsel %vm687_vm0, %v1154_v29, %v1152_v33  ;;  %v1334_v8 = vpop.permute.xlu2 %1333 }
 0x1d4   : > { %v1077_v41 = vmul.f32 %v1076_v38, %v6563_v17  ;;  %v1078_v42 = vmul.f32 %v1075_v37, %v6565_v18  ;;  %v1157_v43 = vmul.f32 %v1156_v40, %v6546_v9  ;;  %v1158_v44 = vmul.f32 %v1155_v39, %v6548_v10 }
 0x1d6   : > { %v1079_v45 = vpack.c.bf16 %v1077_v41, %v1077_v41  ;;  %v1080_v46 = vpack.c.bf16 %v1078_v42, %v1078_v42  ;;  %v1159_v47 = vpack.c.bf16 %v1157_v43, %v1157_v43  ;;  %v1160_v48 = vpack.c.bf16 %v1158_v44, %v1158_v44  ;;  %v5945_v43 = vld [vmem:[%s9406_s26 + $0x2c] sm:$0xf] }
 0x1d8   : > { %v1085_v53 = vsel %vm9383_vm3, %v1079_v45, 0  ;;  %v1088_v54 = vsel %vm9383_vm3, %v1080_v46, 0  ;;  %v1165_v55 = vsel %vm9383_vm3, %v1159_v47, 0  ;;  %v1168_v56 = vsel %vm9383_vm3, %v1160_v48, 0 }
 0x1d9   : > { %1097 = vmatpush.bf16.msra.mxu2 %v1085_v53  ;;  %1110 = vmatpush.bf16.msra.mxu3 %v1088_v54 }
 0x1da   : > { %v1062_v58 = vpop.permute.xlu0 %1061  ;;  %v1064_v59 = vpop.permute.xlu1 %1063 }
 0x1db   : > { %v1065_v60 = vsel %vm583_vm2, %v1062_v58, %v1064_v59  ;;  %v1066_v61 = vsel %vm583_vm2, %v1064_v59, %v1062_v58  ;;  %v1426_v38 = vpop.permute.xlu2 %1425  ;;  %v5946_v59 = vld [vmem:[%s9406_s26 + $0x30] sm:$0xf] }
 0x1dc   : > { %v1067_v62 = vmul.f32 %v1066_v61, %v6568_v19  ;;  %v1068_v1 = vmul.f32 %v1065_v60, %v6570_v20  ;;  %5953 = vmatmul.msk.bf16.vlgmr.msra.gmra.mxu2 %vm611_vm5, %v5944_v57  ;;  %5954 = vmatmul.msk.bf16.vlgmr.msra.gmra.mxu3 %vm611_vm5, %v5944_v57 }
 0x1dd   : > { %1177 = vmatpush.bf16.msrb.mxu2 %v1165_v55  ;;  %1190 = vmatpush.bf16.msrb.mxu3 %v1168_v56 }
 0x1de   : > { %v1069_v11 = vpack.c.bf16 %v1067_v62, %v1067_v62  ;;  %v1070_v12 = vpack.c.bf16 %v1068_v1, %v1068_v1 }
 0x1e0   : > { %v1120_v13 = vsel %vm9383_vm3, %v1069_v11, 0  ;;  %v1123_v14 = vsel %vm9383_vm3, %v1070_v12, 0 }
 0x1e1   : > { %1263 = vmatpush.bf16.msra.mxu2 %v1251_v2  ;;  %1276 = vmatpush.bf16.msra.mxu3 %v1254_v7 }
 0x1e2   : > { %1132 = vmatpush.bf16.msrb.mxu0 %v1120_v13  ;;  %1145 = vmatpush.bf16.msrb.mxu1 %v1123_v14  ;;  %v1201_v16 = vpop.permute.xlu0 %1200  ;;  %v1332_v21 = vpop.permute.xlu1 %1331 }
 0x1e3   : > { %v1202_v22 = vsel %vm9384_vm4, %v1199_v36, %v1201_v16  ;;  %v1203_v23 = vsel %vm9384_vm4, %v1201_v16, %v1199_v36  ;;  %v1335_v26 = vsel %vm9381_vm7, %v1332_v21, %v1334_v8  ;;  %v1336_v27 = vsel %vm9381_vm7, %v1334_v8, %v1332_v21  ;;  %v1381_v58 = vpop.permute.xlu2 %1380 }
 0x1e4   : > { %v1204_v28 = vmul.f32 %v1203_v23, %v6588_v34  ;;  %v1205_v29 = vmul.f32 %v1202_v22, %v6590_v35  ;;  %v1337_v30 = vmul.f32 %v1335_v26, %v6634_v5  ;;  %v1338_v33 = vmul.f32 %v1336_v27, %v6636_v6  ;;  %v5947_v26 = vld [vmem:[%s9406_s26 + $0x34] sm:$0xf] }
 0x1e5   : > { %5955 = vmatmul.msk.bf16.vlgmr.msrb.gmra.mxu0 %vm611_vm5, %v5943_v15  ;;  %5956 = vmatmul.msk.bf16.vlgmr.msrb.gmra.mxu1 %vm611_vm5, %v5943_v15 }
 0x1e6   : > { %v1206_v37 = vpack.c.bf16 %v1204_v28, %v1204_v28  ;;  %v1207_v36 = vpack.c.bf16 %v1205_v29, %v1205_v29  ;;  %v1339_v39 = vpack.c.bf16 %v1337_v30, %v1337_v30  ;;  %v1340_v40 = vpack.c.bf16 %v1338_v33, %v1338_v33  ;;  %v5952_v29 = vld [vmem:[%s9413_s2 + $0x8] sm:$0xff]  ;;  %v5948_v30 = vld [vmem:[%s9406_s26 + $0x38] sm:$0xf]  ;;  %v5949_v33 = vld [vmem:[%s9406_s26 + $0x3c] sm:$0xf] }
 0x1e7   : > { %1474 = vperm.xlu0 %6295, %v5952_v29  }
 0x1e8   : > { %v1212_v41 = vsel %vm9383_vm3, %v1206_v37, 0  ;;  %v1215_v42 = vsel %vm9383_vm3, %v1207_v36, 0  ;;  %v1345_v50 = vsel %vm9383_vm3, %v1339_v39, 0  ;;  %v1348_v53 = vsel %vm9383_vm3, %v1340_v40, 0  ;;  %v5950_v37 = vld [vmem:[%s9406_s26 + $0x40] sm:$0xf] }
 0x1e9   : > { %1224 = vmatpush.bf16.msra.mxu0 %v1212_v41  ;;  %1237 = vmatpush.bf16.msra.mxu1 %v1215_v42  ;;  %v5951_v36 = vld [vmem:[%s9406_s26 + $0x44] sm:$0xf] }
 0x1ea   : > { %v1285_v44 = vpop.permute.xlu0 %1284  ;;  %v1287_v45 = vpop.permute.xlu1 %1286 }
 0x1eb   : > { %v1288_v46 = vsel %vm9382_vm6, %v1285_v44, %v1287_v45  ;;  %v1289_v47 = vsel %vm9382_vm6, %v1287_v45, %v1285_v44 }
 0x1ec   : > { %v1290_v48 = vmul.f32 %v1288_v46, %v6627_v63  ;;  %v1291_v49 = vmul.f32 %v1289_v47, %v6629_v0  ;;  %5957 = vmatmul.msk.bf16.vlgmr.msrb.gmra.mxu2 %vm611_vm5, %v5945_v43  ;;  %5958 = vmatmul.msk.bf16.vlgmr.msrb.gmra.mxu3 %vm611_vm5, %v5945_v43 }
 0x1ed   : > { %1357 = vmatpush.bf16.msrb.mxu2 %v1345_v50  ;;  %1370 = vmatpush.bf16.msrb.mxu3 %v1348_v53 }
 0x1ee   : > { %v1292_v54 = vpack.c.bf16 %v1290_v48, %v1290_v48  ;;  %v1293_v55 = vpack.c.bf16 %v1291_v49, %v1291_v49 }
 0x1f0   : > { %v1298_v56 = vsel %vm9383_vm3, %v1292_v54, 0  ;;  %v1301_v57 = vsel %vm9383_vm3, %v1293_v55, 0 }
 0x1f1   : > { %1310 = vmatpush.bf16.msrb.mxu0 %v1298_v56  ;;  %1323 = vmatpush.bf16.msrb.mxu1 %v1301_v57 }
 0x1f2   : > { %v1428_v60 = vpop.permute.xlu0 %1427  ;;  %v1379_v61 = vpop.permute.xlu1 %1378 }
 0x1f3   : > { %v1429_v62 = vsel %vm9380_vm9, %v1426_v38, %v1428_v60  ;;  %v1430_v1 = vsel %vm9380_vm9, %v1428_v60, %v1426_v38  ;;  %v1382_v2 = vsel %vm9379_vm8, %v1379_v61, %v1381_v58  ;;  %v1383_v7 = vsel %vm9379_vm8, %v1381_v58, %v1379_v61 }
 0x1f4   : > { %v1431_v8 = vmul.f32 %v1429_v62, %v6684_v51  ;;  %v1432_v11 = vmul.f32 %v1430_v1, %v6686_v52  ;;  %v1384_v12 = vmul.f32 %v1382_v2, %v6656_v31  ;;  %v1385_v13 = vmul.f32 %v1383_v7, %v6658_v32 }
 0x1f5   : > { %5959 = vmatmul.msk.bf16.vlgmr.msra.gmra.mxu0 %vm611_vm5, %v5946_v59  ;;  %5960 = vmatmul.msk.bf16.vlgmr.msra.gmra.mxu1 %vm611_vm5, %v5946_v59 }
 0x1f6   : > { %v1386_v14 = vpack.c.bf16 %v1384_v12, %v1384_v12  ;;  %v1387_v15 = vpack.c.bf16 %v1385_v13, %v1385_v13  ;;  %v1433_v16 = vpack.c.bf16 %v1431_v8, %v1431_v8  ;;  %v1434_v21 = vpack.c.bf16 %v1432_v11, %v1432_v11 }
 0x1f8   : > { %v1392_v22 = vsel %vm9383_vm3, %v1386_v14, 0  ;;  %v1395_v23 = vsel %vm9383_vm3, %v1387_v15, 0  ;;  %v1439_v27 = vsel %vm9383_vm3, %v1433_v16, 0  ;;  %v1442_v28 = vsel %vm9383_vm3, %v1434_v21, 0 }
 0x1f9   : > { %1404 = vmatpush.bf16.msra.mxu0 %v1392_v22  ;;  %1417 = vmatpush.bf16.msra.mxu1 %v1395_v23 }
 0x1fc   : > { %5961 = vmatmul.msk.bf16.vlgmr.msra.gmra.mxu2 %vm611_vm5, %v5947_v26  ;;  %5962 = vmatmul.msk.bf16.vlgmr.msra.gmra.mxu3 %vm611_vm5, %v5947_v26 }
 0x1fd   : > { %1451 = vmatpush.bf16.msra.mxu2 %v1439_v27  ;;  %1464 = vmatpush.bf16.msra.mxu3 %v1442_v28 }
 0x205   : > { %5963 = vmatmul.msk.bf16.vlgmr.msrb.gmra.mxu0 %vm611_vm5, %v5948_v30  ;;  %5964 = vmatmul.msk.bf16.vlgmr.msrb.gmra.mxu1 %vm611_vm5, %v5948_v30 }
 0x20c   : > { %5965 = vmatmul.msk.bf16.vlgmr.msrb.gmra.mxu2 %vm611_vm5, %v5949_v33  ;;  %5966 = vmatmul.msk.bf16.vlgmr.msrb.gmra.mxu3 %vm611_vm5, %v5949_v33 }
 0x215   : > { %5967 = vmatmul.msk.bf16.vlgmr.msra.gmra.mxu0 %vm611_vm5, %v5950_v37  ;;  %5968 = vmatmul.msk.bf16.vlgmr.msra.gmra.mxu1 %vm611_vm5, %v5950_v37 }
 0x21c   : > { %5969 = vmatmul.msk.bf16.vlgmr.msra.gmra.mxu2 %vm611_vm5, %v5951_v36  ;;  %5970 = vmatmul.msk.bf16.vlgmr.msra.gmra.mxu3 %vm611_vm5, %v5951_v36 }
 0x25f   : > { %v1099_v38 = vpop.f32.mrf.mxu2  ;;  %v1112_v39 = vpop.f32.mrf.mxu3 }
 0x262   : > { %v1134_v40 = vpop.f32.mrf.mxu0  ;;  %v1147_v41 = vpop.f32.mrf.mxu1 }
 0x263   : > { %v1148_v1 = vadd.f32 %v1147_v41, %v1112_v39  ;;  %v1135_v7 = vadd.f32 %v1134_v40, %v1099_v38  ;;  %v1475_v40 = vpop.permute.xlu0 %1474 }
 0x267   : > { %v1101_v42 = vpop.f32.mrf.mxu2  ;;  %v1114_v43 = vpop.f32.mrf.mxu3 }
 0x26a   : > { %v1136_v44 = vpop.f32.mrf.mxu0  ;;  %v1149_v45 = vpop.f32.mrf.mxu1 }
 0x26f   : > { %v1179_v46 = vpop.f32.mrf.mxu2  ;;  %v1192_v47 = vpop.f32.mrf.mxu3 }
 0x270   : > { %v1196_v8 = vadd.f32 %v1179_v46, %v1135_v7  ;;  %v1197_v11 = vadd.f32 %v1192_v47, %v1148_v1 }
 0x272   : > { %v1226_v48 = vpop.f32.mrf.mxu0  ;;  %v1239_v49 = vpop.f32.mrf.mxu1 }
 0x273   : > { %v1243_v15 = vadd.f32 %v1226_v48, %v1196_v8  ;;  %v1244_v16 = vadd.f32 %v1239_v49, %v1197_v11 }
 0x277   : > { %v1181_v50 = vpop.f32.mrf.mxu2  ;;  %v1194_v53 = vpop.f32.mrf.mxu3 }
 0x278   : > { %v5980_v53 = vld [vmem:[%s9413_s2 + $0x10] sm:$0xff] }
 0x27a   : > { %v1228_v54 = vpop.f32.mrf.mxu0  ;;  %v1241_v55 = vpop.f32.mrf.mxu1 }
 0x27f   : > { %v1265_v56 = vpop.f32.mrf.mxu2  ;;  %v1278_v57 = vpop.f32.mrf.mxu3 }
 0x280   : > { %v1282_v22 = vadd.f32 %v1265_v56, %v1243_v15  ;;  %v1283_v23 = vadd.f32 %v1278_v57, %v1244_v16 }
 0x282   : > { %v1312_v58 = vpop.f32.mrf.mxu0  ;;  %v1325_v59 = vpop.f32.mrf.mxu1 }
 0x283   : > { %v1329_v28 = vadd.f32 %v1312_v58, %v1282_v22  ;;  %v1330_v29 = vadd.f32 %v1325_v59, %v1283_v23 }
 0x287   : > { %v1267_v60 = vpop.f32.mrf.mxu2  ;;  %v1280_v61 = vpop.f32.mrf.mxu3 }
 0x28a   : > { %v1314_v62 = vpop.f32.mrf.mxu0  ;;  %v1327_v2 = vpop.f32.mrf.mxu1 }
 0x28f   : > { %v1359_v12 = vpop.f32.mrf.mxu2  ;;  %v1372_v13 = vpop.f32.mrf.mxu3 }
 0x290   : > { %v1376_v33 = vadd.f32 %v1359_v12, %v1329_v28  ;;  %v1377_v37 = vadd.f32 %v1372_v13, %v1330_v29  ;;  %v5972_v12 = vld [vmem:[%s9406_s26 + $0x4c] sm:$0xf] }
 0x292   : > { %v1406_v14 = vpop.f32.mrf.mxu0  ;;  %v1419_v21 = vpop.f32.mrf.mxu1 }
 0x293   : > { %v1423_v39 = vadd.f32 %v1406_v14, %v1376_v33  ;;  %v1424_v38 = vadd.f32 %v1419_v21, %v1377_v37 }
 0x297   : > { %v1361_v26 = vpop.f32.mrf.mxu2  ;;  %v1374_v27 = vpop.f32.mrf.mxu3 }
 0x29a   : > { %v1408_v30 = vpop.f32.mrf.mxu0  ;;  %v1421_v36 = vpop.f32.mrf.mxu1 }
 0x29f   : > { %v1453_v41 = vpop.f32.mrf.mxu2  ;;  %v1466_v42 = vpop.f32.mrf.mxu3 }
 0x2a0   : > { %v1470_v43 = vadd.f32 %v1453_v41, %v1423_v39  ;;  %v1471_v44 = vadd.f32 %v1466_v42, %v1424_v38  ;;  %v5971_v42 = vld [vmem:[%s9406_s26 + $0x48] sm:$0xf] }
 0x2a2   : > { %v1477_v45 = vadd.f32 %v1475_v40, %v1470_v43  ;;  %v1478_v46 = vadd.f32 %v1475_v40, %v1471_v44 }
 0x2a4   : > { %v6878_v47 = vmax.f32 %v1477_v45, 0.0  ;;  %v6880_v48 = vmax.f32 %v1478_v46, 0.0 }
 0x2a6   : > { %1505 = vrot.lane.b32.xlu2 %v6880_v48, %s9375_s18  ;;  %1583 = vrot.lane.b32.xlu0 %v6878_v47, %s9373_s19 }
 0x2a7   : > { %1503 = vrot.lane.b32.xlu1 %v6878_v47, %s9375_s18  ;;  %v1455_v49 = vpop.f32.mrf.mxu2  ;;  %v1468_v50 = vpop.f32.mrf.mxu3 }
 0x2a8   : > { %v1678_v50 = vpack.c.bf16 %v6880_v48, %v6880_v48 }
 0x2ae   : > { %1495 = vrot.lane.b32.xlu2 %v6880_v48, %s9371_s30  ;;  %1632 = vrot.lane.b32.xlu0 %v6880_v48, %s9369_s1 }
 0x2af   : > { %1493 = vrot.lane.b32.xlu1 %v6878_v47, %s9371_s30  ;;  %s9418_s30 = smov 17  }
 0x2b6   : > { %1630 = vrot.lane.b32.xlu2 %v6878_v47, %s9369_s1  ;;  %1763 = vrot.lane.b32.xlu0 %v6878_v47, %s9416_s27  ;;  %s9419_s1 = smov 1  }
 0x2b7   : > { %1585 = vrot.lane.b32.xlu1 %v6880_v48, %s9373_s19 }
 0x2be   : > { %1718 = vrot.lane.b32.xlu2 %v6880_v48, %s9417_s28  ;;  %1812 = vrot.lane.b32.xlu0 %v6880_v48, %s9415_s0 }
 0x2bf   : > { %1716 = vrot.lane.b32.xlu1 %v6878_v47, %s9417_s28 }
 0x2c6   : > { %1810 = vrot.lane.b32.xlu2 %v6878_v47, %s9415_s0  ;;  %1906 = vperm.xlu0 %6295, %v5980_v53   ;;  %v1677_v53 = vpack.c.bf16 %v6878_v47, %v6878_v47 }
 0x2c7   : > { %1765 = vrot.lane.b32.xlu1 %v6880_v48, %s9416_s27 }
 0x2ce   : > { %1859 = vrot.lane.b32.xlu2 %v6880_v48, %s9414_s29 }
 0x2cf   : > { %1857 = vrot.lane.b32.xlu1 %v6878_v47, %s9414_s29 }
 0x300   : > { %v1506_v54 = vpop.permute.xlu2 %1505 }
 0x308   : > { %v1496_v55 = vpop.permute.xlu2 %1495 }
 0x310   : > { %v1631_v62 = vpop.permute.xlu2 %1630 }
 0x318   : > { %v1584_v56 = vpop.permute.xlu0 %1583  ;;  %v1719_v37 = vpop.permute.xlu2 %1718 }
 0x319   : > { %v1504_v57 = vpop.permute.xlu1 %1503 }
 0x31a   : > { %v1507_v58 = vsel %vm599_vm1, %v1504_v57, %v1506_v54  ;;  %v1508_v59 = vsel %vm599_vm1, %v1506_v54, %v1504_v57 }
 0x31b   : > { %v1509_v60 = vmul.f32 %v1508_v59, %v6563_v17  ;;  %v1510_v61 = vmul.f32 %v1507_v58, %v6565_v18 }
 0x31d   : > { %v1511_v1 = vpack.c.bf16 %v1509_v60, %v1509_v60  ;;  %v1512_v2 = vpack.c.bf16 %v1510_v61, %v1510_v61  ;;  %v1686_v60 = vsel %vm9383_vm3, %v1678_v50, 0  ;;  %v1683_v61 = vsel %vm9383_vm3, %v1677_v53, 0 }
 0x31f   : > { %v1517_v7 = vsel %vm9383_vm3, %v1511_v1, 0  ;;  %v1520_v8 = vsel %vm9383_vm3, %v1512_v2, 0 }
 0x320   : > { %1529 = vmatpush.bf16.msrb.mxu0 %v1517_v7  ;;  %1542 = vmatpush.bf16.msrb.mxu1 %v1520_v8  ;;  %v1633_v11 = vpop.permute.xlu0 %1632  ;;  %v1811_v58 = vpop.permute.xlu2 %1810 }
 0x321   : > { %v1634_v13 = vsel %vm9384_vm4, %v1631_v62, %v1633_v11  ;;  %v1635_v14 = vsel %vm9384_vm4, %v1633_v11, %v1631_v62  ;;  %v1494_v15 = vpop.permute.xlu1 %1493  ;;  %v5973_v62 = vld [vmem:[%s9406_s26 + $0x50] sm:$0xf] }
 0x322   : > { %v1636_v16 = vmul.f32 %v1635_v14, %v6588_v34  ;;  %v1637_v21 = vmul.f32 %v1634_v13, %v6590_v35  ;;  %v1497_v22 = vsel %vm583_vm2, %v1494_v15, %v1496_v55  ;;  %v1498_v23 = vsel %vm583_vm2, %v1496_v55, %v1494_v15 }
 0x323   : > { %v1499_v26 = vmul.f32 %v1498_v23, %v6568_v19  ;;  %v1500_v27 = vmul.f32 %v1497_v22, %v6570_v20  ;;  %5981 = vmatmul.msk.bf16.vlgmr.msrb.gmra.mxu0 %vm611_vm5, %v5972_v12  ;;  %5982 = vmatmul.msk.bf16.vlgmr.msrb.gmra.mxu1 %vm611_vm5, %v5972_v12 }
 0x324   : > { %v1638_v28 = vpack.c.bf16 %v1636_v16, %v1636_v16  ;;  %v1639_v29 = vpack.c.bf16 %v1637_v21, %v1637_v21 }
 0x325   : > { %v1501_v30 = vpack.c.bf16 %v1499_v26, %v1499_v26  ;;  %v1502_v33 = vpack.c.bf16 %v1500_v27, %v1500_v27 }
 0x326   : > { %v1644_v36 = vsel %vm9383_vm3, %v1638_v28, 0  ;;  %v1647_v39 = vsel %vm9383_vm3, %v1639_v29, 0  ;;  %v5974_v28 = vld [vmem:[%s9406_s26 + $0x54] sm:$0xf] }
 0x327   : > { %v1552_v38 = vsel %vm9383_vm3, %v1501_v30, 0  ;;  %v1555_v40 = vsel %vm9383_vm3, %v1502_v33, 0 }
 0x328   : > { %1564 = vmatpush.bf16.msrb.mxu2 %v1552_v38  ;;  %1577 = vmatpush.bf16.msrb.mxu3 %v1555_v40  ;;  %v1764_v41 = vpop.permute.xlu0 %1763 }
 0x329   : > { %v1586_v43 = vpop.permute.xlu1 %1585 }
 0x32a   : > { %v1587_v44 = vsel %vm687_vm0, %v1584_v56, %v1586_v43  ;;  %v1588_v45 = vsel %vm687_vm0, %v1586_v43, %v1584_v56 }
 0x32b   : > { %v1589_v46 = vmul.f32 %v1588_v45, %v6546_v9  ;;  %v1590_v49 = vmul.f32 %v1587_v44, %v6548_v10  ;;  %5983 = vmatmul.msk.bf16.vlgmr.msrb.gmra.mxu2 %vm611_vm5, %v5971_v42  ;;  %5984 = vmatmul.msk.bf16.vlgmr.msrb.gmra.mxu3 %vm611_vm5, %v5971_v42  ;;  %v5975_v44 = vld [vmem:[%s9406_s26 + $0x58] sm:$0xf]  ;;  %v1860_v45 = vpop.permute.xlu2 %1859 }
 0x32c   : > { %1656 = vmatpush.bf16.msra.mxu2 %v1644_v36  ;;  %1669 = vmatpush.bf16.msra.mxu3 %v1647_v39 }
 0x32d   : > { %v1591_v54 = vpack.c.bf16 %v1589_v46, %v1589_v46  ;;  %v1592_v55 = vpack.c.bf16 %v1590_v49, %v1590_v49 }
 0x32f   : > { %v1597_v57 = vsel %vm9383_vm3, %v1591_v54, 0  ;;  %v1600_v56 = vsel %vm9383_vm3, %v1592_v55, 0 }
 0x330   : > { %1609 = vmatpush.bf16.msra.mxu0 %v1597_v57  ;;  %1622 = vmatpush.bf16.msra.mxu1 %v1600_v56  ;;  %v1813_v59 = vpop.permute.xlu0 %1812 }
 0x331   : > { %v1814_v1 = vsel %vm9379_vm8, %v1811_v58, %v1813_v59  ;;  %v1815_v2 = vsel %vm9379_vm8, %v1813_v59, %v1811_v58  ;;  %v1717_v7 = vpop.permute.xlu1 %1716  ;;  %v5976_v59 = vld [vmem:[%s9406_s26 + $0x5c] sm:$0xf] }
 0x332   : > { %v1816_v8 = vmul.f32 %v1814_v1, %v6656_v31  ;;  %v1720_v11 = vsel %vm9382_vm6, %v1717_v7, %v1719_v37  ;;  %v1721_v12 = vsel %vm9382_vm6, %v1719_v37, %v1717_v7  ;;  %v1817_v13 = vmul.f32 %v1815_v2, %v6658_v32 }
 0x333   : > { %v1722_v14 = vmul.f32 %v1720_v11, %v6627_v63  ;;  %v1723_v15 = vmul.f32 %v1721_v12, %v6629_v0  ;;  %5985 = vmatmul.msk.bf16.vlgmr.msra.gmra.mxu0 %vm611_vm5, %v5973_v62  ;;  %5986 = vmatmul.msk.bf16.vlgmr.msra.gmra.mxu1 %vm611_vm5, %v5973_v62  ;;  %v5979_v62 = vld [vmem:[%s9406_s26 + $0x68] sm:$0xf] }
 0x334   : > { %1708 = vmatpush.bf16.msrb.mxu1 %v1686_v60  ;;  %1695 = vmatpush.bf16.msrb.mxu0 %v1683_v61  ;;  %v1818_v22 = vpack.c.bf16 %v1816_v8, %v1816_v8  ;;  %v1819_v23 = vpack.c.bf16 %v1817_v13, %v1817_v13  ;;  %v5977_v60 = vld [vmem:[%s9406_s26 + $0x60] sm:$0xf]  ;;  %v5978_v61 = vld [vmem:[%s9406_s26 + $0x64] sm:$0xf] }
 0x335   : > { %v1724_v16 = vpack.c.bf16 %v1722_v14, %v1722_v14  ;;  %v1725_v21 = vpack.c.bf16 %v1723_v15, %v1723_v15 }
 0x336   : > { %v1824_v39 = vsel %vm9383_vm3, %v1818_v22, 0  ;;  %v1827_v38 = vsel %vm9383_vm3, %v1819_v23, 0 }
 0x337   : > { %v1730_v26 = vsel %vm9383_vm3, %v1724_v16, 0  ;;  %v1733_v27 = vsel %vm9383_vm3, %v1725_v21, 0 }
 0x338   : > { %1742 = vmatpush.bf16.msrb.mxu2 %v1730_v26  ;;  %1755 = vmatpush.bf16.msrb.mxu3 %v1733_v27 }
 0x339   : > { %v1766_v29 = vpop.permute.xlu1 %1765 }
 0x33a   : > { %v1767_v30 = vsel %vm9381_vm7, %v1764_v41, %v1766_v29  ;;  %v1768_v33 = vsel %vm9381_vm7, %v1766_v29, %v1764_v41 }
 0x33b   : > { %v1769_v37 = vmul.f32 %v1767_v30, %v6634_v5  ;;  %v1770_v36 = vmul.f32 %v1768_v33, %v6636_v6  ;;  %5987 = vmatmul.msk.bf16.vlgmr.msra.gmra.mxu2 %vm611_vm5, %v5974_v28  ;;  %5988 = vmatmul.msk.bf16.vlgmr.msra.gmra.mxu3 %vm611_vm5, %v5974_v28 }
 0x33c   : > { %1836 = vmatpush.bf16.msra.mxu2 %v1824_v39  ;;  %1849 = vmatpush.bf16.msra.mxu3 %v1827_v38 }
 0x33d   : > { %v1771_v40 = vpack.c.bf16 %v1769_v37, %v1769_v37  ;;  %v1772_v42 = vpack.c.bf16 %v1770_v36, %v1770_v36 }
 0x33f   : > { %v1777_v43 = vsel %vm9383_vm3, %v1771_v40, 0  ;;  %v1780_v41 = vsel %vm9383_vm3, %v1772_v42, 0 }
 0x340   : > { %1789 = vmatpush.bf16.msra.mxu0 %v1777_v43  ;;  %1802 = vmatpush.bf16.msra.mxu1 %v1780_v41 }
 0x341   : > { %v1858_v46 = vpop.permute.xlu1 %1857 }
 0x342   : > { %v1861_v49 = vsel %vm9380_vm9, %v1858_v46, %v1860_v45  ;;  %v1862_v50 = vsel %vm9380_vm9, %v1860_v45, %v1858_v46 }
 0x343   : > { %v1863_v53 = vmul.f32 %v1861_v49, %v6684_v51  ;;  %v1864_v54 = vmul.f32 %v1862_v50, %v6686_v52  ;;  %5989 = vmatmul.msk.bf16.vlgmr.msrb.gmra.mxu0 %vm611_vm5, %v5975_v44  ;;  %5990 = vmatmul.msk.bf16.vlgmr.msrb.gmra.mxu1 %vm611_vm5, %v5975_v44 }
 0x345   : > { %v1865_v55 = vpack.c.bf16 %v1863_v53, %v1863_v53  ;;  %v1866_v57 = vpack.c.bf16 %v1864_v54, %v1864_v54 }
 0x347   : > { %v1871_v56 = vsel %vm9383_vm3, %v1865_v55, 0  ;;  %v1874_v58 = vsel %vm9383_vm3, %v1866_v57, 0 }
 0x348   : > { %1883 = vmatpush.bf16.msrb.mxu0 %v1871_v56  ;;  %1896 = vmatpush.bf16.msrb.mxu1 %v1874_v58 }
 0x34b   : > { %5991 = vmatmul.msk.bf16.vlgmr.msrb.gmra.mxu2 %vm611_vm5, %v5976_v59  ;;  %5992 = vmatmul.msk.bf16.vlgmr.msrb.gmra.mxu3 %vm611_vm5, %v5976_v59 }
 0x353   : > { %5993 = vmatmul.msk.bf16.vlgmr.msra.gmra.mxu0 %vm611_vm5, %v5977_v60  ;;  %5994 = vmatmul.msk.bf16.vlgmr.msra.gmra.mxu1 %vm611_vm5, %v5977_v60 }
 0x35b   : > { %5995 = vmatmul.msk.bf16.vlgmr.msra.gmra.mxu2 %vm611_vm5, %v5978_v61  ;;  %5996 = vmatmul.msk.bf16.vlgmr.msra.gmra.mxu3 %vm611_vm5, %v5978_v61 }
 0x363   : > { %5997 = vmatmul.msk.bf16.vlgmr.msrb.gmra.mxu0 %vm611_vm5, %v5979_v62  ;;  %5998 = vmatmul.msk.bf16.vlgmr.msrb.gmra.mxu1 %vm611_vm5, %v5979_v62 }
 0x3a0   : > { %v1531_v1 = vpop.f32.mrf.mxu0  ;;  %v1544_v2 = vpop.f32.mrf.mxu1 }
 0x3a8   : > { %v1533_v7 = vpop.f32.mrf.mxu0  ;;  %v1546_v8 = vpop.f32.mrf.mxu1 }
 0x3ae   : > { %v1566_v11 = vpop.f32.mrf.mxu2  ;;  %v1579_v12 = vpop.f32.mrf.mxu3 }
 0x3af   : > { %v1567_v36 = vadd.f32 %v1566_v11, %v1531_v1  ;;  %v1580_v39 = vadd.f32 %v1579_v12, %v1544_v2 }
 0x3b0   : > { %v1611_v13 = vpop.f32.mrf.mxu0  ;;  %v1624_v14 = vpop.f32.mrf.mxu1 }
 0x3b1   : > { %v1628_v41 = vadd.f32 %v1611_v13, %v1567_v36  ;;  %v1629_v44 = vadd.f32 %v1624_v14, %v1580_v39  ;;  %v1907_v13 = vpop.permute.xlu0 %1906 }
 0x3b6   : > { %v1568_v15 = vpop.f32.mrf.mxu2  ;;  %v1581_v16 = vpop.f32.mrf.mxu3 }
 0x3b8   : > { %v1613_v21 = vpop.f32.mrf.mxu0  ;;  %v1626_v22 = vpop.f32.mrf.mxu1 }
 0x3be   : > { %v1658_v23 = vpop.f32.mrf.mxu2  ;;  %v1671_v26 = vpop.f32.mrf.mxu3 }
 0x3bf   : > { %v1675_v45 = vadd.f32 %v1658_v23, %v1628_v41  ;;  %v1676_v46 = vadd.f32 %v1671_v26, %v1629_v44 }
 0x3c0   : > { %v1697_v27 = vpop.f32.mrf.mxu0  ;;  %v1710_v28 = vpop.f32.mrf.mxu1 }
 0x3c1   : > { %v1714_v53 = vadd.f32 %v1697_v27, %v1675_v45  ;;  %v1715_v54 = vadd.f32 %v1710_v28, %v1676_v46  ;;  %v6000_v45 = vld [vmem:[%s9406_s26 + $0x70] sm:$0xf] }
 0x3c6   : > { %v1660_v29 = vpop.f32.mrf.mxu2  ;;  %v1673_v30 = vpop.f32.mrf.mxu3 }
 0x3c8   : > { %v1699_v33 = vpop.f32.mrf.mxu0  ;;  %v1712_v37 = vpop.f32.mrf.mxu1 }
 0x3ce   : > { %v1744_v38 = vpop.f32.mrf.mxu2  ;;  %v1757_v40 = vpop.f32.mrf.mxu3 }
 0x3cf   : > { %v1761_v56 = vadd.f32 %v1744_v38, %v1714_v53  ;;  %v1762_v58 = vadd.f32 %v1757_v40, %v1715_v54 }
 0x3d0   : > { %v1791_v42 = vpop.f32.mrf.mxu0  ;;  %v1804_v43 = vpop.f32.mrf.mxu1 }
 0x3d1   : > { %v1808_v59 = vadd.f32 %v1791_v42, %v1761_v56  ;;  %v1809_v60 = vadd.f32 %v1804_v43, %v1762_v58 }
 0x3d6   : > { %v1746_v49 = vpop.f32.mrf.mxu2  ;;  %v1759_v50 = vpop.f32.mrf.mxu3 }
 0x3d8   : > { %v1793_v55 = vpop.f32.mrf.mxu0  ;;  %v1806_v57 = vpop.f32.mrf.mxu1 }
 0x3de   : > { %v1838_v61 = vpop.f32.mrf.mxu2  ;;  %v1851_v62 = vpop.f32.mrf.mxu3 }
 0x3df   : > { %v1855_v1 = vadd.f32 %v1838_v61, %v1808_v59  ;;  %v1856_v2 = vadd.f32 %v1851_v62, %v1809_v60 }
 0x3e0   : > { %v1885_v7 = vpop.f32.mrf.mxu0  ;;  %v1898_v8 = vpop.f32.mrf.mxu1 }
 0x3e1   : > { %v1902_v11 = vadd.f32 %v1885_v7, %v1855_v1  ;;  %v1903_v12 = vadd.f32 %v1898_v8, %v1856_v2 }
 0x3e3   : > { %v1909_v14 = vadd.f32 %v1907_v13, %v1902_v11  ;;  %v1910_v15 = vadd.f32 %v1907_v13, %v1903_v12 }
 0x3e5   : > { %v7032_v16 = vmax.f32 %v1909_v14, 0.0  ;;  %v7034_v21 = vmax.f32 %v1910_v15, 0.0  ;;  %v5999_v14 = vld [vmem:[%s9406_s26 + $0x6c] sm:$0xf] }
 0x3e6   : > { %v1840_v22 = vpop.f32.mrf.mxu2  ;;  %v1853_v23 = vpop.f32.mrf.mxu3 }
 0x3e7   : > { %1937 = vrot.lane.b32.xlu2 %v7034_v21, %s9375_s18  ;;  %2015 = vrot.lane.b32.xlu0 %v7032_v16, %s9373_s19  ;;  %v2110_v61 = vpack.c.bf16 %v7034_v21, %v7034_v21  ;;  %v2109_v62 = vpack.c.bf16 %v7032_v16, %v7032_v16 }
 0x3e8   : > { %1935 = vrot.lane.b32.xlu1 %v7032_v16, %s9375_s18  ;;  %v1887_v26 = vpop.f32.mrf.mxu0  ;;  %v1900_v27 = vpop.f32.mrf.mxu1  ;;  %s9420_s18 = smov 16  }
 0x3e9   : > { %v2118_v22 = vsel %vm9383_vm3, %v2110_v61, 0  ;;  %v2115_v23 = vsel %vm9383_vm3, %v2109_v62, 0 }
 0x3ef   : > { %1925 = vrot.lane.b32.xlu2 %v7032_v16, %s9418_s30  ;;  %1927 = vrot.lane.b32.xlu0 %v7034_v21, %s9418_s30 }
 0x3f0   : > { %2017 = vrot.lane.b32.xlu1 %v7034_v21, %s9373_s19  ;;  %s9421_s19 = smov 15  }
 0x3f7   : > { %2064 = vrot.lane.b32.xlu2 %v7034_v21, %s9419_s1  ;;  %2195 = vrot.lane.b32.xlu0 %v7032_v16, %s9416_s27 }
 0x3f8   : > { %2062 = vrot.lane.b32.xlu1 %v7032_v16, %s9419_s1 }
 0x3ff   : > { %2148 = vrot.lane.b32.xlu2 %v7032_v16, %s9417_s28  ;;  %2150 = vrot.lane.b32.xlu0 %v7034_v21, %s9417_s28 }
 0x400   : > { %2197 = vrot.lane.b32.xlu1 %v7034_v21, %s9416_s27 }
 0x407   : > { %2291 = vrot.lane.b32.xlu2 %v7034_v21, %s9414_s29  ;;  %2242 = vrot.lane.b32.xlu0 %v7032_v16, %s9415_s0 }
 0x408   : > { %2289 = vrot.lane.b32.xlu1 %v7032_v16, %s9414_s29 }
 0x410   : > { %2244 = vrot.lane.b32.xlu1 %v7034_v21, %s9415_s0 }
 0x441   : > { %v1938_v28 = vpop.permute.xlu2 %1937 }
 0x449   : > { %v1926_v36 = vpop.permute.xlu2 %1925 }
 0x451   : > { %v2065_v1 = vpop.permute.xlu2 %2064 }
 0x459   : > { %v2016_v29 = vpop.permute.xlu0 %2015 }
 0x45a   : > { %v1936_v30 = vpop.permute.xlu1 %1935 }
 0x45b   : > { %v1939_v33 = vsel %vm599_vm1, %v1936_v30, %v1938_v28  ;;  %v1940_v37 = vsel %vm599_vm1, %v1938_v28, %v1936_v30 }
 0x45c   : > { %v1941_v39 = vmul.f32 %v1940_v37, %v6563_v17  ;;  %v1942_v38 = vmul.f32 %v1939_v33, %v6565_v18 }
 0x45e   : > { %v1943_v40 = vpack.c.bf16 %v1941_v39, %v1941_v39  ;;  %v1944_v42 = vpack.c.bf16 %v1942_v38, %v1942_v38 }
 0x460   : > { %v1949_v43 = vsel %vm9383_vm3, %v1943_v40, 0  ;;  %v1952_v41 = vsel %vm9383_vm3, %v1944_v42, 0  ;;  %v6001_v42 = vld [vmem:[%s9406_s26 + $0x74] sm:$0xf] }
 0x461   : > { %1961 = vmatpush.bf16.msrb.mxu2 %v1949_v43  ;;  %1974 = vmatpush.bf16.msrb.mxu3 %v1952_v41  ;;  %v1928_v44 = vpop.permute.xlu0 %1927 }
 0x462   : > { %v1929_v46 = vsel %vm583_vm2, %v1926_v36, %v1928_v44  ;;  %v1930_v49 = vsel %vm583_vm2, %v1928_v44, %v1926_v36  ;;  %v2018_v50 = vpop.permute.xlu1 %2017  ;;  %v2149_v36 = vpop.permute.xlu2 %2148 }
 0x463   : > { %v1931_v53 = vmul.f32 %v1930_v49, %v6568_v19  ;;  %v1932_v54 = vmul.f32 %v1929_v46, %v6570_v20  ;;  %v2019_v55 = vsel %vm687_vm0, %v2016_v29, %v2018_v50  ;;  %v2020_v57 = vsel %vm687_vm0, %v2018_v50, %v2016_v29 }
 0x464   : > { %v2021_v56 = vmul.f32 %v2020_v57, %v6546_v9  ;;  %v2022_v58 = vmul.f32 %v2019_v55, %v6548_v10  ;;  %6009 = vmatmul.msk.bf16.vlgmr.msrb.gmra.mxu2 %vm611_vm5, %v6000_v45  ;;  %6010 = vmatmul.msk.bf16.vlgmr.msrb.gmra.mxu3 %vm611_vm5, %v6000_v45 }
 0x465   : > { %v1933_v59 = vpack.c.bf16 %v1931_v53, %v1931_v53  ;;  %v1934_v60 = vpack.c.bf16 %v1932_v54, %v1932_v54 }
 0x466   : > { %v2023_v2 = vpack.c.bf16 %v2021_v56, %v2021_v56  ;;  %v2024_v7 = vpack.c.bf16 %v2022_v58, %v2022_v58 }
 0x467   : > { %v1984_v8 = vsel %vm9383_vm3, %v1933_v59, 0  ;;  %v1987_v11 = vsel %vm9383_vm3, %v1934_v60, 0 }
 0x468   : > { %1996 = vmatpush.bf16.msra.mxu0 %v1984_v8  ;;  %2009 = vmatpush.bf16.msra.mxu1 %v1987_v11  ;;  %v2029_v12 = vsel %vm9383_vm3, %v2023_v2, 0  ;;  %v2032_v13 = vsel %vm9383_vm3, %v2024_v7, 0 }
 0x469   : > { %2041 = vmatpush.bf16.msra.mxu2 %v2029_v12  ;;  %2054 = vmatpush.bf16.msra.mxu3 %v2032_v13  ;;  %v2196_v15 = vpop.permute.xlu0 %2195 }
 0x46a   : > { %v2063_v26 = vpop.permute.xlu1 %2062  ;;  %v2292_v2 = vpop.permute.xlu2 %2291 }
 0x46b   : > { %v2066_v27 = vsel %vm9384_vm4, %v2063_v26, %v2065_v1  ;;  %v2067_v28 = vsel %vm9384_vm4, %v2065_v1, %v2063_v26  ;;  %6011 = vmatmul.msk.bf16.vlgmr.msra.gmra.mxu0 %vm611_vm5, %v5999_v14  ;;  %6012 = vmatmul.msk.bf16.vlgmr.msra.gmra.mxu1 %vm611_vm5, %v5999_v14  ;;  %v6002_v1 = vld [vmem:[%s9406_s26 + $0x78] sm:$0xf] }
 0x46c   : > { %v2068_v29 = vmul.f32 %v2067_v28, %v6588_v34  ;;  %v2069_v30 = vmul.f32 %v2066_v27, %v6590_v35 }
 0x46d   : > { %2140 = vmatpush.bf16.msrb.mxu3 %v2118_v22  ;;  %2127 = vmatpush.bf16.msrb.mxu2 %v2115_v23  ;;  %v6003_v22 = vld [vmem:[%s9406_s26 + $0x7c] sm:$0xf] }
 0x46e   : > { %v2070_v33 = vpack.c.bf16 %v2068_v29, %v2068_v29  ;;  %v2071_v37 = vpack.c.bf16 %v2069_v30, %v2069_v30 }
 0x470   : > { %v2076_v39 = vsel %vm9383_vm3, %v2070_v33, 0  ;;  %v2079_v38 = vsel %vm9383_vm3, %v2071_v37, 0 }
 0x471   : > { %2088 = vmatpush.bf16.msrb.mxu0 %v2076_v39  ;;  %2101 = vmatpush.bf16.msrb.mxu1 %v2079_v38  ;;  %v2151_v40 = vpop.permute.xlu0 %2150 }
 0x472   : > { %v2152_v43 = vsel %vm9382_vm6, %v2149_v36, %v2151_v40  ;;  %v2153_v41 = vsel %vm9382_vm6, %v2151_v40, %v2149_v36  ;;  %v2198_v44 = vpop.permute.xlu1 %2197  ;;  %v6008_v36 = vld [vmem:[%s9413_s2 + $0x18] sm:$0xff] }
 0x473   : > { %v2154_v45 = vmul.f32 %v2152_v43, %v6627_v63  ;;  %v2155_v46 = vmul.f32 %v2153_v41, %v6629_v0  ;;  %v2199_v49 = vsel %vm9381_vm7, %v2196_v15, %v2198_v44  ;;  %v2200_v50 = vsel %vm9381_vm7, %v2198_v44, %v2196_v15  ;;  %2338 = vperm.xlu2 %6296, %v6008_v36   ;;  %v6004_v43 = vld [vmem:[%s9406_s26 + $0x80] sm:$0xf]  ;;  %v6005_v41 = vld [vmem:[%s9406_s26 + $0x84] sm:$0xf]  ;;  %v6006_v44 = vld [vmem:[%s9406_s26 + $0x88] sm:$0xf] }
 0x474   : > { %v2201_v53 = vmul.f32 %v2199_v49, %v6634_v5  ;;  %v2202_v54 = vmul.f32 %v2200_v50, %v6636_v6  ;;  %6013 = vmatmul.msk.bf16.vlgmr.msra.gmra.mxu2 %vm611_vm5, %v6001_v42  ;;  %6014 = vmatmul.msk.bf16.vlgmr.msra.gmra.mxu3 %vm611_vm5, %v6001_v42 }
 0x475   : > { %v2156_v55 = vpack.c.bf16 %v2154_v45, %v2154_v45  ;;  %v2157_v57 = vpack.c.bf16 %v2155_v46, %v2155_v46  ;;  %v6007_v45 = vld [vmem:[%s9406_s26 + $0x8c] sm:$0xf] }
 0x476   : > { %v2203_v56 = vpack.c.bf16 %v2201_v53, %v2201_v53  ;;  %v2204_v58 = vpack.c.bf16 %v2202_v54, %v2202_v54 }
 0x477   : > { %v2162_v59 = vsel %vm9383_vm3, %v2156_v55, 0  ;;  %v2165_v60 = vsel %vm9383_vm3, %v2157_v57, 0 }
 0x478   : > { %2174 = vmatpush.bf16.msra.mxu0 %v2162_v59  ;;  %2187 = vmatpush.bf16.msra.mxu1 %v2165_v60  ;;  %v2209_v61 = vsel %vm9383_vm3, %v2203_v56, 0  ;;  %v2212_v62 = vsel %vm9383_vm3, %v2204_v58, 0 }
 0x479   : > { %2221 = vmatpush.bf16.msra.mxu2 %v2209_v61  ;;  %2234 = vmatpush.bf16.msra.mxu3 %v2212_v62  ;;  %v2243_v23 = vpop.permute.xlu0 %2242 }
 0x47a   : > { %v2290_v7 = vpop.permute.xlu1 %2289 }
 0x47b   : > { %v2293_v8 = vsel %vm9380_vm9, %v2290_v7, %v2292_v2  ;;  %v2294_v11 = vsel %vm9380_vm9, %v2292_v2, %v2290_v7  ;;  %6015 = vmatmul.msk.bf16.vlgmr.msrb.gmra.mxu0 %vm611_vm5, %v6002_v1  ;;  %6016 = vmatmul.msk.bf16.vlgmr.msrb.gmra.mxu1 %vm611_vm5, %v6002_v1 }
 0x47c   : > { %v2295_v12 = vmul.f32 %v2293_v8, %v6684_v51  ;;  %v2296_v13 = vmul.f32 %v2294_v11, %v6686_v52 }
 0x47e   : > { %v2297_v14 = vpack.c.bf16 %v2295_v12, %v2295_v12  ;;  %v2298_v15 = vpack.c.bf16 %v2296_v13, %v2296_v13 }
 0x480   : > { %v2303_v33 = vsel %vm9383_vm3, %v2297_v14, 0  ;;  %v2306_v37 = vsel %vm9383_vm3, %v2298_v15, 0 }
 0x482   : > { %v2245_v26 = vpop.permute.xlu1 %2244 }
 0x483   : > { %v2246_v27 = vsel %vm9379_vm8, %v2243_v23, %v2245_v26  ;;  %v2247_v28 = vsel %vm9379_vm8, %v2245_v26, %v2243_v23 }
 0x484   : > { %v2248_v29 = vmul.f32 %v2246_v27, %v6656_v31  ;;  %v2249_v30 = vmul.f32 %v2247_v28, %v6658_v32  ;;  %6017 = vmatmul.msk.bf16.vlgmr.msrb.gmra.mxu2 %vm611_vm5, %v6003_v22  ;;  %6018 = vmatmul.msk.bf16.vlgmr.msrb.gmra.mxu3 %vm611_vm5, %v6003_v22 }
 0x485   : > { %2315 = vmatpush.bf16.msrb.mxu2 %v2303_v33  ;;  %2328 = vmatpush.bf16.msrb.mxu3 %v2306_v37 }
 0x486   : > { %v2250_v39 = vpack.c.bf16 %v2248_v29, %v2248_v29  ;;  %v2251_v38 = vpack.c.bf16 %v2249_v30, %v2249_v30 }
 0x488   : > { %v2256_v40 = vsel %vm9383_vm3, %v2250_v39, 0  ;;  %v2259_v42 = vsel %vm9383_vm3, %v2251_v38, 0 }
 0x489   : > { %2268 = vmatpush.bf16.msrb.mxu0 %v2256_v40  ;;  %2281 = vmatpush.bf16.msrb.mxu1 %v2259_v42 }
 0x48b   : > { %6019 = vmatmul.msk.bf16.vlgmr.msra.gmra.mxu0 %vm611_vm5, %v6004_v43  ;;  %6020 = vmatmul.msk.bf16.vlgmr.msra.gmra.mxu1 %vm611_vm5, %v6004_v43 }
 0x494   : > { %6021 = vmatmul.msk.bf16.vlgmr.msra.gmra.mxu2 %vm611_vm5, %v6005_v41  ;;  %6022 = vmatmul.msk.bf16.vlgmr.msra.gmra.mxu3 %vm611_vm5, %v6005_v41 }
 0x49b   : > { %6023 = vmatmul.msk.bf16.vlgmr.msrb.gmra.mxu0 %vm611_vm5, %v6006_v44  ;;  %6024 = vmatmul.msk.bf16.vlgmr.msrb.gmra.mxu1 %vm611_vm5, %v6006_v44 }
 0x4a4   : > { %6025 = vmatmul.msk.bf16.vlgmr.msrb.gmra.mxu2 %vm611_vm5, %v6007_v45  ;;  %6026 = vmatmul.msk.bf16.vlgmr.msrb.gmra.mxu3 %vm611_vm5, %v6007_v45 }
 0x4e7   : > { %v1963_v46 = vpop.f32.mrf.mxu2  ;;  %v1976_v49 = vpop.f32.mrf.mxu3 }
 0x4e8   : > { %v1998_v50 = vpop.f32.mrf.mxu0  ;;  %v2011_v53 = vpop.f32.mrf.mxu1 }
 0x4e9   : > { %v1999_v26 = vadd.f32 %v1998_v50, %v1963_v46  ;;  %v2012_v27 = vadd.f32 %v2011_v53, %v1976_v49  ;;  %v2339_v50 = vpop.permute.xlu2 %2338 }
 0x4ef   : > { %v1965_v54 = vpop.f32.mrf.mxu2  ;;  %v1978_v55 = vpop.f32.mrf.mxu3 }
 0x4f0   : > { %v2000_v57 = vpop.f32.mrf.mxu0  ;;  %v2013_v56 = vpop.f32.mrf.mxu1 }
 0x4f7   : > { %v2043_v58 = vpop.f32.mrf.mxu2  ;;  %v2056_v59 = vpop.f32.mrf.mxu3 }
 0x4f8   : > { %v2090_v60 = vpop.f32.mrf.mxu0  ;;  %v2103_v61 = vpop.f32.mrf.mxu1  ;;  %v2060_v28 = vadd.f32 %v2043_v58, %v1999_v26  ;;  %v2061_v29 = vadd.f32 %v2056_v59, %v2012_v27 }
 0x4fa   : > { %v2107_v39 = vadd.f32 %v2090_v60, %v2060_v28  ;;  %v2108_v38 = vadd.f32 %v2103_v61, %v2061_v29 }
 0x4ff   : > { %v2045_v62 = vpop.f32.mrf.mxu2  ;;  %v2058_v1 = vpop.f32.mrf.mxu3 }
 0x500   : > { %v2092_v2 = vpop.f32.mrf.mxu0  ;;  %v2105_v7 = vpop.f32.mrf.mxu1 }
 0x507   : > { %v2129_v8 = vpop.f32.mrf.mxu2  ;;  %v2142_v11 = vpop.f32.mrf.mxu3 }
 0x508   : > { %v2176_v12 = vpop.f32.mrf.mxu0  ;;  %v2189_v13 = vpop.f32.mrf.mxu1  ;;  %v2146_v40 = vadd.f32 %v2129_v8, %v2107_v39  ;;  %v2147_v42 = vadd.f32 %v2142_v11, %v2108_v38  ;;  %v6036_v11 = vld [vmem:[%s9413_s2 + $0x20] sm:$0xff] }
 0x50a   : > { %v2193_v44 = vadd.f32 %v2176_v12, %v2146_v40  ;;  %v2194_v45 = vadd.f32 %v2189_v13, %v2147_v42 }
 0x50f   : > { %v2131_v14 = vpop.f32.mrf.mxu2  ;;  %v2144_v15 = vpop.f32.mrf.mxu3 }
 0x510   : > { %v2178_v22 = vpop.f32.mrf.mxu0  ;;  %v2191_v23 = vpop.f32.mrf.mxu1 }
 0x517   : > { %v2223_v30 = vpop.f32.mrf.mxu2  ;;  %v2236_v33 = vpop.f32.mrf.mxu3 }
 0x518   : > { %v2270_v37 = vpop.f32.mrf.mxu0  ;;  %v2283_v36 = vpop.f32.mrf.mxu1  ;;  %v2240_v57 = vadd.f32 %v2223_v30, %v2193_v44  ;;  %v2241_v56 = vadd.f32 %v2236_v33, %v2194_v45 }
 0x51a   : > { %v2287_v46 = vadd.f32 %v2270_v37, %v2240_v57  ;;  %v2288_v49 = vadd.f32 %v2283_v36, %v2241_v56  ;;  %v6028_v36 = vld [vmem:[%s9406_s26 + $0x94] sm:$0xf] }
 0x51f   : > { %v2225_v43 = vpop.f32.mrf.mxu2  ;;  %v2238_v41 = vpop.f32.mrf.mxu3 }
 0x520   : > { %v2272_v54 = vpop.f32.mrf.mxu0  ;;  %v2285_v55 = vpop.f32.mrf.mxu1 }
 0x527   : > { %v2317_v53 = vpop.f32.mrf.mxu2  ;;  %v2330_v58 = vpop.f32.mrf.mxu3 }
 0x528   : > { %v2334_v59 = vadd.f32 %v2317_v53, %v2287_v46  ;;  %v2335_v62 = vadd.f32 %v2330_v58, %v2288_v49 }
 0x52a   : > { %v2341_v1 = vadd.f32 %v2339_v50, %v2334_v59  ;;  %v2342_v60 = vadd.f32 %v2339_v50, %v2335_v62 }
 0x52c   : > { %v7186_v61 = vmax.f32 %v2341_v1, 0.0  ;;  %v7188_v2 = vmax.f32 %v2342_v60, 0.0 }
 0x52e   : > { %2369 = vrot.lane.b32.xlu1 %v7188_v2, %s9420_s18  ;;  %2357 = vrot.lane.b32.xlu2 %v7186_v61, %s9418_s30  ;;  %v2542_v56 = vpack.c.bf16 %v7188_v2, %v7188_v2  ;;  %v2541_v46 = vpack.c.bf16 %v7186_v61, %v7186_v61 }
 0x52f   : > { %2367 = vrot.lane.b32.xlu0 %v7186_v61, %s9420_s18  ;;  %v2319_v7 = vpop.f32.mrf.mxu2  ;;  %v2332_v8 = vpop.f32.mrf.mxu3 }
 0x530   : > { %v2550_v7 = vsel %vm9383_vm3, %v2542_v56, 0  ;;  %v2547_v8 = vsel %vm9383_vm3, %v2541_v46, 0 }
 0x536   : > { %2447 = vrot.lane.b32.xlu1 %v7186_v61, %s9421_s19  ;;  %2449 = vrot.lane.b32.xlu2 %v7188_v2, %s9421_s19 }
 0x537   : > { %2359 = vrot.lane.b32.xlu0 %v7188_v2, %s9418_s30 }
 0x53e   : > { %2496 = vrot.lane.b32.xlu1 %v7188_v2, %s9419_s1  ;;  %2580 = vrot.lane.b32.xlu2 %v7186_v61, %s9417_s28 }
 0x53f   : > { %2494 = vrot.lane.b32.xlu0 %v7186_v61, %s9419_s1 }
 0x546   : > { %2627 = vrot.lane.b32.xlu1 %v7186_v61, %s9416_s27  ;;  %2629 = vrot.lane.b32.xlu2 %v7188_v2, %s9416_s27 }
 0x547   : > { %2582 = vrot.lane.b32.xlu0 %v7188_v2, %s9417_s28 }
 0x54e   : > { %2676 = vrot.lane.b32.xlu1 %v7188_v2, %s9415_s0  ;;  %2721 = vrot.lane.b32.xlu2 %v7186_v61, %s9414_s29 }
 0x54f   : > { %2674 = vrot.lane.b32.xlu0 %v7186_v61, %s9415_s0 }
 0x556   : > { %2770 = vperm.xlu1 %6294, %v6036_v11   ;;  %v6027_v11 = vld [vmem:[%s9406_s26 + $0x90] sm:$0xf] }
 0x557   : > { %2723 = vrot.lane.b32.xlu0 %v7188_v2, %s9414_s29 }
 0x588   : > { %v2358_v12 = vpop.permute.xlu2 %2357 }
 0x590   : > { %v2450_v27 = vpop.permute.xlu2 %2449 }
 0x598   : > { %v2581_v53 = vpop.permute.xlu2 %2580 }
 0x5a0   : > { %v2370_v13 = vpop.permute.xlu1 %2369 }
 0x5a1   : > { %v2368_v14 = vpop.permute.xlu0 %2367 }
 0x5a2   : > { %v2371_v15 = vsel %vm599_vm1, %v2368_v14, %v2370_v13  ;;  %v2372_v22 = vsel %vm599_vm1, %v2370_v13, %v2368_v14 }
 0x5a3   : > { %v2373_v23 = vmul.f32 %v2372_v22, %v6563_v17  ;;  %v2374_v26 = vmul.f32 %v2371_v15, %v6565_v18 }
 0x5a5   : > { %v2375_v28 = vpack.c.bf16 %v2373_v23, %v2373_v23  ;;  %v2376_v29 = vpack.c.bf16 %v2374_v26, %v2374_v26 }
 0x5a7   : > { %v2381_v30 = vsel %vm9383_vm3, %v2375_v28, 0  ;;  %v2384_v33 = vsel %vm9383_vm3, %v2376_v29, 0  ;;  %v2630_v29 = vpop.permute.xlu2 %2629 }
 0x5a8   : > { %2393 = vmatpush.bf16.msra.mxu0 %v2381_v30  ;;  %2406 = vmatpush.bf16.msra.mxu1 %v2384_v33  ;;  %v2448_v37 = vpop.permute.xlu1 %2447  ;;  %v6029_v33 = vld [vmem:[%s9406_s26 + $0x98] sm:$0xf] }
 0x5a9   : > { %v2451_v39 = vsel %vm687_vm0, %v2448_v37, %v2450_v27  ;;  %v2452_v38 = vsel %vm687_vm0, %v2450_v27, %v2448_v37  ;;  %v2360_v40 = vpop.permute.xlu0 %2359 }
 0x5aa   : > { %v2453_v42 = vmul.f32 %v2452_v38, %v6546_v9  ;;  %v2454_v43 = vmul.f32 %v2451_v39, %v6548_v10  ;;  %v2361_v41 = vsel %vm583_vm2, %v2358_v12, %v2360_v40  ;;  %v2362_v44 = vsel %vm583_vm2, %v2360_v40, %v2358_v12 }
 0x5ab   : > { %v2363_v45 = vmul.f32 %v2362_v44, %v6568_v19  ;;  %v2364_v54 = vmul.f32 %v2361_v41, %v6570_v20  ;;  %6037 = vmatmul.msk.bf16.vlgmr.msra.gmra.mxu0 %vm611_vm5, %v6028_v36  ;;  %6038 = vmatmul.msk.bf16.vlgmr.msra.gmra.mxu1 %vm611_vm5, %v6028_v36 }
 0x5ac   : > { %v2455_v55 = vpack.c.bf16 %v2453_v42, %v2453_v42  ;;  %v2456_v57 = vpack.c.bf16 %v2454_v43, %v2454_v43 }
 0x5ad   : > { %v2365_v49 = vpack.c.bf16 %v2363_v45, %v2363_v45  ;;  %v2366_v50 = vpack.c.bf16 %v2364_v54, %v2364_v54 }
 0x5ae   : > { %v2461_v58 = vsel %vm9383_vm3, %v2455_v55, 0  ;;  %v2464_v59 = vsel %vm9383_vm3, %v2456_v57, 0 }
 0x5af   : > { %v2416_v62 = vsel %vm9383_vm3, %v2365_v49, 0  ;;  %v2419_v1 = vsel %vm9383_vm3, %v2366_v50, 0  ;;  %2473 = vmatpush.bf16.msrb.mxu0 %v2461_v58  ;;  %2486 = vmatpush.bf16.msrb.mxu1 %v2464_v59  ;;  %v6030_v58 = vld [vmem:[%s9406_s26 + $0x9c] sm:$0xf] }
 0x5b0   : > { %2428 = vmatpush.bf16.msra.mxu2 %v2416_v62  ;;  %2441 = vmatpush.bf16.msra.mxu3 %v2419_v1  ;;  %v2497_v60 = vpop.permute.xlu1 %2496 }
 0x5b1   : > { %v2495_v12 = vpop.permute.xlu0 %2494 }
 0x5b2   : > { %v2498_v13 = vsel %vm9384_vm4, %v2495_v12, %v2497_v60  ;;  %v2499_v14 = vsel %vm9384_vm4, %v2497_v60, %v2495_v12 }
 0x5b3   : > { %2572 = vmatpush.bf16.msra.mxu1 %v2550_v7  ;;  %2559 = vmatpush.bf16.msra.mxu0 %v2547_v8  ;;  %v2500_v15 = vmul.f32 %v2499_v14, %v6588_v34  ;;  %v2501_v22 = vmul.f32 %v2498_v13, %v6590_v35  ;;  %v6031_v14 = vld [vmem:[%s9406_s26 + $0xa0] sm:$0xf] }
 0x5b4   : > { %6039 = vmatmul.msk.bf16.vlgmr.msra.gmra.mxu2 %vm611_vm5, %v6027_v11  ;;  %6040 = vmatmul.msk.bf16.vlgmr.msra.gmra.mxu3 %vm611_vm5, %v6027_v11 }
 0x5b5   : > { %v2502_v23 = vpack.c.bf16 %v2500_v15, %v2500_v15  ;;  %v2503_v26 = vpack.c.bf16 %v2501_v22, %v2501_v22  ;;  %v2722_v15 = vpop.permute.xlu2 %2721 }
 0x5b7   : > { %v2508_v27 = vsel %vm9383_vm3, %v2502_v23, 0  ;;  %v2511_v28 = vsel %vm9383_vm3, %v2503_v26, 0 }
 0x5b8   : > { %2520 = vmatpush.bf16.msrb.mxu2 %v2508_v27  ;;  %2533 = vmatpush.bf16.msrb.mxu3 %v2511_v28  ;;  %v2628_v30 = vpop.permute.xlu1 %2627 }
 0x5b9   : > { %v2631_v37 = vsel %vm9381_vm7, %v2628_v30, %v2630_v29  ;;  %v2632_v36 = vsel %vm9381_vm7, %v2630_v29, %v2628_v30  ;;  %v2583_v39 = vpop.permute.xlu0 %2582 }
 0x5ba   : > { %v2633_v38 = vmul.f32 %v2631_v37, %v6634_v5  ;;  %v2634_v40 = vmul.f32 %v2632_v36, %v6636_v6  ;;  %v2584_v42 = vsel %vm9382_vm6, %v2581_v53, %v2583_v39  ;;  %v2585_v43 = vsel %vm9382_vm6, %v2583_v39, %v2581_v53  ;;  %v6032_v36 = vld [vmem:[%s9406_s26 + $0xa4] sm:$0xf]  ;;  %v6033_v39 = vld [vmem:[%s9406_s26 + $0xa8] sm:$0xf] }
 0x5bb   : > { %v2586_v41 = vmul.f32 %v2584_v42, %v6627_v63  ;;  %v2587_v44 = vmul.f32 %v2585_v43, %v6629_v0  ;;  %6041 = vmatmul.msk.bf16.vlgmr.msrb.gmra.mxu0 %vm611_vm5, %v6029_v33  ;;  %6042 = vmatmul.msk.bf16.vlgmr.msrb.gmra.mxu1 %vm611_vm5, %v6029_v33 }
 0x5bc   : > { %v2635_v45 = vpack.c.bf16 %v2633_v38, %v2633_v38  ;;  %v2636_v54 = vpack.c.bf16 %v2634_v40, %v2634_v40  ;;  %v6034_v38 = vld [vmem:[%s9406_s26 + $0xac] sm:$0xf]  ;;  %v6035_v40 = vld [vmem:[%s9406_s26 + $0xb0] sm:$0xf] }
 0x5bd   : > { %v2588_v55 = vpack.c.bf16 %v2586_v41, %v2586_v41  ;;  %v2589_v57 = vpack.c.bf16 %v2587_v44, %v2587_v44 }
 0x5be   : > { %v2641_v56 = vsel %vm9383_vm3, %v2635_v45, 0  ;;  %v2644_v46 = vsel %vm9383_vm3, %v2636_v54, 0 }
 0x5bf   : > { %v2594_v49 = vsel %vm9383_vm3, %v2588_v55, 0  ;;  %v2597_v50 = vsel %vm9383_vm3, %v2589_v57, 0  ;;  %2653 = vmatpush.bf16.msrb.mxu0 %v2641_v56  ;;  %2666 = vmatpush.bf16.msrb.mxu1 %v2644_v46 }
 0x5c0   : > { %2606 = vmatpush.bf16.msra.mxu2 %v2594_v49  ;;  %2619 = vmatpush.bf16.msra.mxu3 %v2597_v50  ;;  %v2677_v53 = vpop.permute.xlu1 %2676 }
 0x5c1   : > { %v2675_v59 = vpop.permute.xlu0 %2674 }
 0x5c2   : > { %v2678_v62 = vsel %vm9379_vm8, %v2675_v59, %v2677_v53  ;;  %v2679_v1 = vsel %vm9379_vm8, %v2677_v53, %v2675_v59 }
 0x5c3   : > { %v2680_v60 = vmul.f32 %v2678_v62, %v6656_v31  ;;  %v2681_v7 = vmul.f32 %v2679_v1, %v6658_v32 }
 0x5c4   : > { %6043 = vmatmul.msk.bf16.vlgmr.msrb.gmra.mxu2 %vm611_vm5, %v6030_v58  ;;  %6044 = vmatmul.msk.bf16.vlgmr.msrb.gmra.mxu3 %vm611_vm5, %v6030_v58 }
 0x5c5   : > { %v2682_v8 = vpack.c.bf16 %v2680_v60, %v2680_v60  ;;  %v2683_v11 = vpack.c.bf16 %v2681_v7, %v2681_v7 }
 0x5c7   : > { %v2688_v12 = vsel %vm9383_vm3, %v2682_v8, 0  ;;  %v2691_v13 = vsel %vm9383_vm3, %v2683_v11, 0 }
 0x5c8   : > { %2700 = vmatpush.bf16.msrb.mxu2 %v2688_v12  ;;  %2713 = vmatpush.bf16.msrb.mxu3 %v2691_v13 }
 0x5c9   : > { %v2724_v22 = vpop.permute.xlu0 %2723 }
 0x5ca   : > { %v2725_v23 = vsel %vm9380_vm9, %v2722_v15, %v2724_v22  ;;  %v2726_v26 = vsel %vm9380_vm9, %v2724_v22, %v2722_v15 }
 0x5cb   : > { %v2727_v27 = vmul.f32 %v2725_v23, %v6684_v51  ;;  %v2728_v28 = vmul.f32 %v2726_v26, %v6686_v52  ;;  %6045 = vmatmul.msk.bf16.vlgmr.msra.gmra.mxu0 %vm611_vm5, %v6031_v14  ;;  %6046 = vmatmul.msk.bf16.vlgmr.msra.gmra.mxu1 %vm611_vm5, %v6031_v14 }
 0x5cd   : > { %v2729_v29 = vpack.c.bf16 %v2727_v27, %v2727_v27  ;;  %v2730_v30 = vpack.c.bf16 %v2728_v28, %v2728_v28 }
 0x5cf   : > { %v2735_v33 = vsel %vm9383_vm3, %v2729_v29, 0  ;;  %v2738_v37 = vsel %vm9383_vm3, %v2730_v30, 0 }
 0x5d0   : > { %2747 = vmatpush.bf16.msra.mxu0 %v2735_v33  ;;  %2760 = vmatpush.bf16.msra.mxu1 %v2738_v37 }
 0x5d4   : > { %6047 = vmatmul.msk.bf16.vlgmr.msra.gmra.mxu2 %vm611_vm5, %v6032_v36  ;;  %6048 = vmatmul.msk.bf16.vlgmr.msra.gmra.mxu3 %vm611_vm5, %v6032_v36 }
 0x5db   : > { %6049 = vmatmul.msk.bf16.vlgmr.msrb.gmra.mxu0 %vm611_vm5, %v6033_v39  ;;  %6050 = vmatmul.msk.bf16.vlgmr.msrb.gmra.mxu1 %vm611_vm5, %v6033_v39 }
 0x5e4   : > { %6051 = vmatmul.msk.bf16.vlgmr.msrb.gmra.mxu2 %vm611_vm5, %v6034_v38  ;;  %6052 = vmatmul.msk.bf16.vlgmr.msrb.gmra.mxu3 %vm611_vm5, %v6034_v38 }
 0x5eb   : > { %6053 = vmatmul.msk.bf16.vlgmr.msra.gmra.mxu0 %vm611_vm5, %v6035_v40  ;;  %6054 = vmatmul.msk.bf16.vlgmr.msra.gmra.mxu1 %vm611_vm5, %v6035_v40 }
 0x628   : > { %v2395_v42 = vpop.f32.mrf.mxu0  ;;  %v2408_v43 = vpop.f32.mrf.mxu1 }
 0x630   : > { %v2397_v41 = vpop.f32.mrf.mxu0  ;;  %v2410_v44 = vpop.f32.mrf.mxu1 }
 0x637   : > { %v2430_v45 = vpop.f32.mrf.mxu2  ;;  %v2443_v54 = vpop.f32.mrf.mxu3 }
 0x638   : > { %v2475_v55 = vpop.f32.mrf.mxu0  ;;  %v2488_v57 = vpop.f32.mrf.mxu1  ;;  %v2431_v11 = vadd.f32 %v2430_v45, %v2395_v42  ;;  %v2444_v12 = vadd.f32 %v2443_v54, %v2408_v43 }
 0x63a   : > { %v2492_v23 = vadd.f32 %v2475_v55, %v2431_v11  ;;  %v2493_v26 = vadd.f32 %v2488_v57, %v2444_v12  ;;  %v3209_v11 = vadd.f32 %v6726_v25, %v6724_v24  ;;  %v3212_v12 = vadd.f32 %v6880_v48, %v6878_v47 }
 0x63f   : > { %v2432_v56 = vpop.f32.mrf.mxu2  ;;  %v2445_v46 = vpop.f32.mrf.mxu3 }
 0x640   : > { %v2477_v49 = vpop.f32.mrf.mxu0  ;;  %v2490_v50 = vpop.f32.mrf.mxu1 }
 0x641   : > { %v2771_v49 = vpop.permute.xlu1 %2770 }
 0x647   : > { %v2522_v53 = vpop.f32.mrf.mxu2  ;;  %v2535_v58 = vpop.f32.mrf.mxu3 }
 0x648   : > { %v2561_v59 = vpop.f32.mrf.mxu0  ;;  %v2574_v62 = vpop.f32.mrf.mxu1  ;;  %v2539_v27 = vadd.f32 %v2522_v53, %v2492_v23  ;;  %v2540_v28 = vadd.f32 %v2535_v58, %v2493_v26 }
 0x64a   : > { %v2578_v33 = vadd.f32 %v2561_v59, %v2539_v27  ;;  %v2579_v37 = vadd.f32 %v2574_v62, %v2540_v28 }
 0x64f   : > { %v2524_v1 = vpop.f32.mrf.mxu2  ;;  %v2537_v60 = vpop.f32.mrf.mxu3 }
 0x650   : > { %v2563_v7 = vpop.f32.mrf.mxu0  ;;  %v2576_v8 = vpop.f32.mrf.mxu1 }
 0x651   : > { %v6064_v8 = vld [vmem:[%s9413_s2 + $0x28] sm:$0xff] }
 0x657   : > { %v2608_v13 = vpop.f32.mrf.mxu2  ;;  %v2621_v14 = vpop.f32.mrf.mxu3 }
 0x658   : > { %v2655_v15 = vpop.f32.mrf.mxu0  ;;  %v2668_v22 = vpop.f32.mrf.mxu1  ;;  %v2625_v38 = vadd.f32 %v2608_v13, %v2578_v33  ;;  %v2626_v40 = vadd.f32 %v2621_v14, %v2579_v37  ;;  %v3215_v13 = vadd.f32 %v7034_v21, %v7032_v16 }
 0x65a   : > { %v2672_v41 = vadd.f32 %v2655_v15, %v2625_v38  ;;  %v2673_v44 = vadd.f32 %v2668_v22, %v2626_v40  ;;  %v3218_v15 = vadd.f32 %v7188_v2, %v7186_v61 }
 0x65f   : > { %v2610_v29 = vpop.f32.mrf.mxu2  ;;  %v2623_v30 = vpop.f32.mrf.mxu3 }
 0x660   : > { %v2657_v36 = vpop.f32.mrf.mxu0  ;;  %v2670_v39 = vpop.f32.mrf.mxu1 }
 0x667   : > { %v2702_v42 = vpop.f32.mrf.mxu2  ;;  %v2715_v43 = vpop.f32.mrf.mxu3 }
 0x668   : > { %v2719_v45 = vadd.f32 %v2702_v42, %v2672_v41  ;;  %v2720_v54 = vadd.f32 %v2715_v43, %v2673_v44  ;;  %v2749_v56 = vpop.f32.mrf.mxu0  ;;  %v2762_v46 = vpop.f32.mrf.mxu1 }
 0x66a   : > { %v2766_v55 = vadd.f32 %v2749_v56, %v2719_v45  ;;  %v2767_v57 = vadd.f32 %v2762_v46, %v2720_v54 }
 0x66c   : > { %v2773_v50 = vadd.f32 %v2771_v49, %v2766_v55  ;;  %v2774_v53 = vadd.f32 %v2771_v49, %v2767_v57  ;;  %v6056_v49 = vld [vmem:[%s9406_s26 + $0xb8] sm:$0xf] }
 0x66e   : > { %v7340_v58 = vmax.f32 %v2773_v50, 0.0  ;;  %v7342_v59 = vmax.f32 %v2774_v53, 0.0 }
 0x66f   : > { %v2717_v62 = vpop.f32.mrf.mxu3  ;;  %v2704_v1 = vpop.f32.mrf.mxu2 }
 0x670   : > { %2801 = vrot.lane.b32.xlu0 %v7342_v59, %s9420_s18  ;;  %2879 = vrot.lane.b32.xlu1 %v7340_v58, %s9421_s19  ;;  %v2764_v60 = vpop.f32.mrf.mxu1  ;;  %v2751_v7 = vpop.f32.mrf.mxu0  ;;  %v3221_v14 = vadd.f32 %v7342_v59, %v7340_v58  ;;  %v2973_v45 = vpack.c.bf16 %v7340_v58, %v7340_v58  ;;  %v2974_v54 = vpack.c.bf16 %v7342_v59, %v7342_v59 }
 0x671   : > { %2799 = vrot.lane.b32.xlu2 %v7340_v58, %s9420_s18 }
 0x678   : > { %2789 = vrot.lane.b32.xlu0 %v7340_v58, %s9418_s30  ;;  %2791 = vrot.lane.b32.xlu1 %v7342_v59, %s9418_s30 }
 0x679   : > { %2881 = vrot.lane.b32.xlu2 %v7342_v59, %s9421_s19 }
 0x680   : > { %2928 = vrot.lane.b32.xlu0 %v7342_v59, %s9419_s1  ;;  %3059 = vrot.lane.b32.xlu1 %v7340_v58, %s9416_s27 }
 0x681   : > { %2926 = vrot.lane.b32.xlu2 %v7340_v58, %s9419_s1 }
 0x688   : > { %3012 = vrot.lane.b32.xlu0 %v7340_v58, %s9417_s28  ;;  %3014 = vrot.lane.b32.xlu1 %v7342_v59, %s9417_s28 }
 0x689   : > { %3061 = vrot.lane.b32.xlu2 %v7342_v59, %s9416_s27 }
 0x690   : > { %3155 = vrot.lane.b32.xlu0 %v7342_v59, %s9414_s29  ;;  %3106 = vrot.lane.b32.xlu1 %v7340_v58, %s9415_s0 }
 0x691   : > { %3153 = vrot.lane.b32.xlu2 %v7340_v58, %s9414_s29 }
 0x698   : > { %3202 = vperm.xlu0 %6295, %v6064_v8   ;;  %v2979_v8 = vsel %vm9383_vm3, %v2973_v45, 0 }
 0x699   : > { %3108 = vrot.lane.b32.xlu2 %v7342_v59, %s9415_s0 }
 0x6ba   : > { %3210 = vadd.xlane.f32.xlu1 %v3209_v11  ;;  %v2982_v11 = vsel %vm9383_vm3, %v2974_v54, 0 }
 0x6c2   : > { %3213 = vadd.xlane.f32.xlu2 %v3212_v12  ;;  %3216 = vadd.xlane.f32.xlu0 %v3215_v13 }
 0x6c3   : > { %3222 = vadd.xlane.f32.xlu1 %v3221_v14 }
 0x6ca   : > { %3219 = vadd.xlane.f32.xlu2 %v3218_v15 }
 0x6cb   : > { %v2800_v22 = vpop.permute.xlu2 %2799 }
 0x6d3   : > { %v2882_v23 = vpop.permute.xlu2 %2881 }
 0x6db   : > { %v2927_v28 = vpop.permute.xlu2 %2926 }
 0x6e2   : > { %v2802_v26 = vpop.permute.xlu0 %2801  ;;  %v2880_v27 = vpop.permute.xlu1 %2879 }
 0x6e3   : > { %v2803_v29 = vsel %vm599_vm1, %v2800_v22, %v2802_v26  ;;  %v2804_v30 = vsel %vm599_vm1, %v2802_v26, %v2800_v22  ;;  %v2883_v33 = vsel %vm687_vm0, %v2880_v27, %v2882_v23  ;;  %v2884_v37 = vsel %vm687_vm0, %v2882_v23, %v2880_v27  ;;  %v3062_v12 = vpop.permute.xlu2 %3061  ;;  %v6055_v23 = vld [vmem:[%s9406_s26 + $0xb4] sm:$0xf] }
 0x6e4   : > { %v2805_v36 = vmul.f32 %v2804_v30, %v6563_v17  ;;  %v2806_v39 = vmul.f32 %v2803_v29, %v6565_v18  ;;  %v2885_v38 = vmul.f32 %v2884_v37, %v6546_v9  ;;  %v2886_v40 = vmul.f32 %v2883_v33, %v6548_v10 }
 0x6e6   : > { %v2807_v41 = vpack.c.bf16 %v2805_v36, %v2805_v36  ;;  %v2808_v44 = vpack.c.bf16 %v2806_v39, %v2806_v39  ;;  %v2887_v42 = vpack.c.bf16 %v2885_v38, %v2885_v38  ;;  %v2888_v43 = vpack.c.bf16 %v2886_v40, %v2886_v40 }
 0x6e8   : > { %v2813_v56 = vsel %vm9383_vm3, %v2807_v41, 0  ;;  %v2816_v46 = vsel %vm9383_vm3, %v2808_v44, 0  ;;  %v2893_v55 = vsel %vm9383_vm3, %v2887_v42, 0  ;;  %v2896_v57 = vsel %vm9383_vm3, %v2888_v43, 0 }
 0x6e9   : > { %2825 = vmatpush.bf16.msra.mxu2 %v2813_v56  ;;  %2838 = vmatpush.bf16.msra.mxu3 %v2816_v46  ;;  %v6057_v56 = vld [vmem:[%s9406_s26 + $0xbc] sm:$0xf] }
 0x6ea   : > { %v2790_v50 = vpop.permute.xlu0 %2789  ;;  %v2792_v53 = vpop.permute.xlu1 %2791 }
 0x6eb   : > { %v2793_v62 = vsel %vm583_vm2, %v2790_v50, %v2792_v53  ;;  %v2794_v1 = vsel %vm583_vm2, %v2792_v53, %v2790_v50  ;;  %v3154_v44 = vpop.permute.xlu2 %3153 }
 0x6ec   : > { %v2795_v60 = vmul.f32 %v2794_v1, %v6568_v19  ;;  %v2796_v7 = vmul.f32 %v2793_v62, %v6570_v20  ;;  %6065 = vmatmul.msk.bf16.vlgmr.msra.gmra.mxu2 %vm611_vm5, %v6056_v49  ;;  %6066 = vmatmul.msk.bf16.vlgmr.msra.gmra.mxu3 %vm611_vm5, %v6056_v49 }
 0x6ed   : > { %2905 = vmatpush.bf16.msrb.mxu2 %v2893_v55  ;;  %2918 = vmatpush.bf16.msrb.mxu3 %v2896_v57 }
 0x6ee   : > { %v2797_v13 = vpack.c.bf16 %v2795_v60, %v2795_v60  ;;  %v2798_v14 = vpack.c.bf16 %v2796_v7, %v2796_v7 }
 0x6f0   : > { %v2848_v15 = vsel %vm9383_vm3, %v2797_v13, 0  ;;  %v2851_v22 = vsel %vm9383_vm3, %v2798_v14, 0  ;;  %v6058_v13 = vld [vmem:[%s9406_s26 + $0xc0] sm:$0xf] }
 0x6f1   : > { %2991 = vmatpush.bf16.msra.mxu2 %v2979_v8  ;;  %3004 = vmatpush.bf16.msra.mxu3 %v2982_v11 }
 0x6f2   : > { %2860 = vmatpush.bf16.msrb.mxu0 %v2848_v15  ;;  %2873 = vmatpush.bf16.msrb.mxu1 %v2851_v22  ;;  %v2929_v26 = vpop.permute.xlu0 %2928  ;;  %v3060_v27 = vpop.permute.xlu1 %3059 }
 0x6f3   : > { %v2930_v29 = vsel %vm9384_vm4, %v2927_v28, %v2929_v26  ;;  %v2931_v30 = vsel %vm9384_vm4, %v2929_v26, %v2927_v28  ;;  %v3063_v33 = vsel %vm9381_vm7, %v3060_v27, %v3062_v12  ;;  %v3064_v37 = vsel %vm9381_vm7, %v3062_v12, %v3060_v27  ;;  %v3109_v12 = vpop.permute.xlu2 %3108 }
 0x6f4   : > { %v2932_v36 = vmul.f32 %v2931_v30, %v6588_v34  ;;  %v2933_v39 = vmul.f32 %v2930_v29, %v6590_v35  ;;  %v3065_v38 = vmul.f32 %v3063_v33, %v6634_v5  ;;  %v3066_v40 = vmul.f32 %v3064_v37, %v6636_v6 }
 0x6f5   : > { %6067 = vmatmul.msk.bf16.vlgmr.msrb.gmra.mxu0 %vm611_vm5, %v6055_v23  ;;  %6068 = vmatmul.msk.bf16.vlgmr.msrb.gmra.mxu1 %vm611_vm5, %v6055_v23 }
 0x6f6   : > { %v2934_v41 = vpack.c.bf16 %v2932_v36, %v2932_v36  ;;  %v2935_v28 = vpack.c.bf16 %v2933_v39, %v2933_v39  ;;  %v3067_v42 = vpack.c.bf16 %v3065_v38, %v3065_v38  ;;  %v3068_v43 = vpack.c.bf16 %v3066_v40, %v3066_v40 }
 0x6f8   : > { %v2940_v45 = vsel %vm9383_vm3, %v2934_v41, 0  ;;  %v2943_v54 = vsel %vm9383_vm3, %v2935_v28, 0  ;;  %v3073_v62 = vsel %vm9383_vm3, %v3067_v42, 0  ;;  %v3076_v1 = vsel %vm9383_vm3, %v3068_v43, 0 }
 0x6f9   : > { %2952 = vmatpush.bf16.msra.mxu0 %v2940_v45  ;;  %2965 = vmatpush.bf16.msra.mxu1 %v2943_v54  ;;  %v6060_v45 = vld [vmem:[%s9406_s26 + $0xc8] sm:$0xf]  ;;  %v6061_v54 = vld [vmem:[%s9406_s26 + $0xcc] sm:$0xf] }
 0x6fa   : > { %v3013_v46 = vpop.permute.xlu0 %3012  ;;  %v3015_v55 = vpop.permute.xlu1 %3014 }
 0x6fb   : > { %v3016_v57 = vsel %vm9382_vm6, %v3013_v46, %v3015_v55  ;;  %v3017_v49 = vsel %vm9382_vm6, %v3015_v55, %v3013_v46  ;;  %v6063_v46 = vld [vmem:[%s9406_s26 + $0xd4] sm:$0xf] }
 0x6fc   : > { %v3018_v50 = vmul.f32 %v3016_v57, %v6627_v63  ;;  %v3019_v53 = vmul.f32 %v3017_v49, %v6629_v0  ;;  %6069 = vmatmul.msk.bf16.vlgmr.msrb.gmra.mxu2 %vm611_vm5, %v6057_v56  ;;  %6070 = vmatmul.msk.bf16.vlgmr.msrb.gmra.mxu3 %vm611_vm5, %v6057_v56  ;;  %v6062_v56 = vld [vmem:[%s9406_s26 + $0xd0] sm:$0xf] }
 0x6fd   : > { %3085 = vmatpush.bf16.msrb.mxu2 %v3073_v62  ;;  %3098 = vmatpush.bf16.msrb.mxu3 %v3076_v1 }
 0x6fe   : > { %v3020_v60 = vpack.c.bf16 %v3018_v50, %v3018_v50  ;;  %v3021_v7 = vpack.c.bf16 %v3019_v53, %v3019_v53 }
 0x700   : > { %v3026_v8 = vsel %vm9383_vm3, %v3020_v60, 0  ;;  %v3029_v11 = vsel %vm9383_vm3, %v3021_v7, 0 }
 0x701   : > { %3038 = vmatpush.bf16.msrb.mxu0 %v3026_v8  ;;  %3051 = vmatpush.bf16.msrb.mxu1 %v3029_v11 }
 0x702   : > { %v3156_v14 = vpop.permute.xlu0 %3155  ;;  %v3107_v15 = vpop.permute.xlu1 %3106 }
 0x703   : > { %v3157_v22 = vsel %vm9380_vm9, %v3154_v44, %v3156_v14  ;;  %v3158_v23 = vsel %vm9380_vm9, %v3156_v14, %v3154_v44  ;;  %v3110_v26 = vsel %vm9379_vm8, %v3107_v15, %v3109_v12  ;;  %v3111_v27 = vsel %vm9379_vm8, %v3109_v12, %v3107_v15  ;;  %v6059_v44 = vld [vmem:[%s9406_s26 + $0xc4] sm:$0xf] }
 0x704   : > { %v3159_v29 = vmul.f32 %v3157_v22, %v6684_v51  ;;  %v3160_v30 = vmul.f32 %v3158_v23, %v6686_v52  ;;  %v3112_v33 = vmul.f32 %v3110_v26, %v6656_v31  ;;  %v3113_v37 = vmul.f32 %v3111_v27, %v6658_v32 }
 0x705   : > { %6071 = vmatmul.msk.bf16.vlgmr.msra.gmra.mxu0 %vm611_vm5, %v6058_v13  ;;  %6072 = vmatmul.msk.bf16.vlgmr.msra.gmra.mxu1 %vm611_vm5, %v6058_v13 }
 0x706   : > { %v3114_v36 = vpack.c.bf16 %v3112_v33, %v3112_v33  ;;  %v3115_v39 = vpack.c.bf16 %v3113_v37, %v3113_v37  ;;  %v3161_v38 = vpack.c.bf16 %v3159_v29, %v3159_v29  ;;  %v3162_v40 = vpack.c.bf16 %v3160_v30, %v3160_v30 }
 0x708   : > { %v3120_v41 = vsel %vm9383_vm3, %v3114_v36, 0  ;;  %v3123_v28 = vsel %vm9383_vm3, %v3115_v39, 0  ;;  %v3167_v42 = vsel %vm9383_vm3, %v3161_v38, 0  ;;  %v3170_v43 = vsel %vm9383_vm3, %v3162_v40, 0 }
 0x709   : > { %3132 = vmatpush.bf16.msra.mxu0 %v3120_v41  ;;  %3145 = vmatpush.bf16.msra.mxu1 %v3123_v28 }
 0x70c   : > { %6073 = vmatmul.msk.bf16.vlgmr.msra.gmra.mxu2 %vm611_vm5, %v6059_v44  ;;  %6074 = vmatmul.msk.bf16.vlgmr.msra.gmra.mxu3 %vm611_vm5, %v6059_v44 }
 0x70d   : > { %3179 = vmatpush.bf16.msra.mxu2 %v3167_v42  ;;  %3192 = vmatpush.bf16.msra.mxu3 %v3170_v43 }
 0x715   : > { %6075 = vmatmul.msk.bf16.vlgmr.msrb.gmra.mxu0 %vm611_vm5, %v6060_v45  ;;  %6076 = vmatmul.msk.bf16.vlgmr.msrb.gmra.mxu1 %vm611_vm5, %v6060_v45 }
 0x71c   : > { %6077 = vmatmul.msk.bf16.vlgmr.msrb.gmra.mxu2 %vm611_vm5, %v6061_v54  ;;  %6078 = vmatmul.msk.bf16.vlgmr.msrb.gmra.mxu3 %vm611_vm5, %v6061_v54 }
 0x725   : > { %6079 = vmatmul.msk.bf16.vlgmr.msra.gmra.mxu0 %vm611_vm5, %v6062_v56  ;;  %6080 = vmatmul.msk.bf16.vlgmr.msra.gmra.mxu1 %vm611_vm5, %v6062_v56 }
 0x72c   : > { %6081 = vmatmul.msk.bf16.vlgmr.msra.gmra.mxu2 %vm611_vm5, %v6063_v46  ;;  %6082 = vmatmul.msk.bf16.vlgmr.msra.gmra.mxu3 %vm611_vm5, %v6063_v46 }
 0x76f   : > { %v2827_v55 = vpop.f32.mrf.mxu2  ;;  %v2840_v57 = vpop.f32.mrf.mxu3 }
 0x772   : > { %v2862_v49 = vpop.f32.mrf.mxu0  ;;  %v2875_v50 = vpop.f32.mrf.mxu1 }
 0x773   : > { %v2863_v39 = vadd.f32 %v2862_v49, %v2827_v55  ;;  %v2876_v38 = vadd.f32 %v2875_v50, %v2840_v57 }
 0x777   : > { %v2829_v53 = vpop.f32.mrf.mxu2  ;;  %v2842_v62 = vpop.f32.mrf.mxu3 }
 0x77a   : > { %v2864_v1 = vpop.f32.mrf.mxu0  ;;  %v2877_v60 = vpop.f32.mrf.mxu1 }
 0x77f   : > { %v2907_v7 = vpop.f32.mrf.mxu2  ;;  %v2920_v8 = vpop.f32.mrf.mxu3 }
 0x780   : > { %v2924_v40 = vadd.f32 %v2907_v7, %v2863_v39  ;;  %v2925_v41 = vadd.f32 %v2920_v8, %v2876_v38  ;;  %v3434_v39 = vpack.c.bf16 %v7186_v61, %v7032_v16  ;;  %v3435_v38 = vpack.c.bf16 %v7188_v2, %v7034_v21 }
 0x782   : > { %v2954_v11 = vpop.f32.mrf.mxu0  ;;  %v2967_v12 = vpop.f32.mrf.mxu1 }
 0x783   : > { %v2971_v43 = vadd.f32 %v2954_v11, %v2924_v40  ;;  %v2972_v45 = vadd.f32 %v2967_v12, %v2925_v41  ;;  %v3432_v40 = vpack.c.bf16 %v6878_v47, %v6724_v24  ;;  %v3433_v41 = vpack.c.bf16 %v6880_v48, %v6726_v25 }
 0x787   : > { %v2909_v13 = vpop.f32.mrf.mxu2  ;;  %v2922_v14 = vpop.f32.mrf.mxu3 }
 0x78a   : > { %v2956_v15 = vpop.f32.mrf.mxu0  ;;  %v2969_v22 = vpop.f32.mrf.mxu1 }
 0x78f   : > { %v2993_v23 = vpop.f32.mrf.mxu2  ;;  %v3006_v26 = vpop.f32.mrf.mxu3 }
 0x790   : > { %v3010_v56 = vadd.f32 %v2993_v23, %v2971_v43  ;;  %v3011_v46 = vadd.f32 %v3006_v26, %v2972_v45 }
 0x792   : > { %v3040_v27 = vpop.f32.mrf.mxu0  ;;  %v3053_v29 = vpop.f32.mrf.mxu1 }
 0x793   : > { %v3057_v1 = vadd.f32 %v3040_v27, %v3010_v56  ;;  %v3058_v60 = vadd.f32 %v3053_v29, %v3011_v46 }
 0x797   : > { %v2995_v30 = vpop.f32.mrf.mxu2  ;;  %v3008_v33 = vpop.f32.mrf.mxu3 }
 0x798   : > { %v3203_v30 = vpop.permute.xlu0 %3202 }
 0x79a   : > { %v3042_v37 = vpop.f32.mrf.mxu0  ;;  %v3055_v36 = vpop.f32.mrf.mxu1 }
 0x79f   : > { %v3087_v28 = vpop.f32.mrf.mxu2  ;;  %v3100_v44 = vpop.f32.mrf.mxu3 }
 0x7a0   : > { %v3104_v14 = vadd.f32 %v3087_v28, %v3057_v1  ;;  %v3105_v15 = vadd.f32 %v3100_v44, %v3058_v60  ;;  %v6397_v28 = vmov 256.0   ;;  %v3241_v1 = vld [vmem:[%s9345_s3 + $0x8] sm:$0xff]  ;;  %v3217_v60 = vpop.xlane.xlu0 %3216 }
 0x7a1   : > { %6297 = vrcp.f32 %v6397_v28  ;;  %v3245_v28 = vld [vmem:[%s9345_s3 + $0x28] sm:$0xff] }
 0x7a2   : > { %v3134_v42 = vpop.f32.mrf.mxu0  ;;  %v3147_v54 = vpop.f32.mrf.mxu1 }
 0x7a3   : > { %v3151_v55 = vadd.f32 %v3134_v42, %v3104_v14  ;;  %v3152_v57 = vadd.f32 %v3147_v54, %v3105_v15  ;;  %v3214_v54 = vpop.xlane.xlu2 %3213  ;;  %v3240_v14 = vld [vmem:[%s9345_s3] sm:$0xff] }
 0x7a7   : > { %v3089_v53 = vpop.f32.mrf.mxu2  ;;  %v3102_v62 = vpop.f32.mrf.mxu3 }
 0x7a8   : > { %v6298_v44 = vpop.eup %6297  ;;  %v3211_v53 = vpop.xlane.xlu1 %3210 }
 0x7a9   : > { %v3228_v42 = vmul.f32 256.0, %v6298_v44  ;;  %vm3232_vm10 = vweird.f32 %v6298_v44 }
 0x7aa   : > { %v3136_v13 = vpop.f32.mrf.mxu0  ;;  %v3149_v22 = vpop.f32.mrf.mxu1 }
 0x7ab   : > { %v3229_v43 = vsub.f32 1.0, %v3228_v42  ;;  %v3220_v15 = vpop.xlane.xlu2 %3219 }
 0x7ad   : > { %v3230_v45 = vmul.f32 %v6298_v44, %v3229_v43 }
 0x7af   : > { %v3181_v49 = vpop.f32.mrf.mxu2  ;;  %v3194_v50 = vpop.f32.mrf.mxu3  ;;  %v3231_v56 = vadd.f32 %v6298_v44, %v3230_v45 }
 0x7b0   : > { %v3198_v7 = vadd.f32 %v3181_v49, %v3151_v55  ;;  %v3199_v8 = vadd.f32 %v3194_v50, %v3152_v57  ;;  %v3242_v57 = vld [vmem:[%s9345_s3 + $0x10] sm:$0xff] }
 0x7b1   : > { %v3233_v46 = vsel %vm3232_vm10, %v6298_v44, %v3231_v56 }
 0x7b2   : > { %v3205_v11 = vadd.f32 %v3203_v30, %v3198_v7  ;;  %v3206_v12 = vadd.f32 %v3203_v30, %v3199_v8  ;;  %v3235_v62 = vmul.f32 %v3233_v46, %v3214_v54  ;;  %v3234_v13 = vmul.f32 %v3233_v46, %v3211_v53  ;;  %v3243_v7 = vld [vmem:[%s9345_s3 + $0x18] sm:$0xff] }
 0x7b3   : > { %v3236_v55 = vmul.f32 %v3233_v46, %v3217_v60  ;;  %v3237_v50 = vmul.f32 %v3233_v46, %v3220_v15  ;;  %v3269_v15 = vld [vmem:[%s9346_s4] sm:$0x1] }
 0x7b4   : > { %v7504_v33 = vmax.f32 %v3205_v11, 0.0  ;;  %v7506_v23 = vmax.f32 %v3206_v12, 0.0  ;;  %v3247_v22 = vmul.f32 %v3241_v1, %v3235_v62  ;;  %v3246_v49 = vmul.f32 %v3240_v14, %v3234_v13  ;;  %v3223_v11 = vpop.xlane.xlu1 %3222 }
 0x7b5   : > { %v3248_v30 = vmul.f32 %v3242_v57, %v3236_v55 }
 0x7b6   : > { %v3436_v26 = vpack.c.bf16 %v7504_v33, %v7340_v58  ;;  %v3437_v27 = vpack.c.bf16 %v7506_v23, %v7342_v59  ;;  %v3224_v29 = vadd.f32 %v7506_v23, %v7504_v33  ;;  %v3253_v8 = vsel %vm611_vm5, %v3247_v22, 0.0 }
 0x7b7   : > { %v3183_v37 = vpop.f32.mrf.mxu2  ;;  %v3196_v36 = vpop.f32.mrf.mxu3  ;;  %v3252_v12 = vsel %vm611_vm5, %v3246_v49, 0.0  ;;  %v3276_v49 = vld [vmem:[%s9347_s5 + $0x20] sm:$0xff] }
 0x7b8   : > { %3476 = vmatpush.bf16.msrb.mxu0 %v3436_v26  ;;  %3494 = vmatpush.bf16.msrb.mxu1 %v3437_v27  ;;  %v3249_v26 = vmul.f32 %v3243_v7, %v3237_v50  ;;  %v3254_v27 = vadd.f32 %v3253_v8, %v3252_v12  ;;  %v3238_v37 = vmul.f32 %v3233_v46, %v3223_v11  ;;  %v3244_v36 = vld [vmem:[%s9345_s3 + $0x20] sm:$0xff]  ;;  %v3274_v50 = vld [vmem:[%s9347_s5 + $0x10] sm:$0xff] }
 0x7b9   : > { %3225 = vadd.xlane.f32.xlu2 %v3224_v29  ;;  %v3255_v29 = vsel %vm611_vm5, %v3248_v30, 0.0 }
 0x7bc   : > { %3477 = vmatpush.bf16.msrb.mxu0 %v3434_v39  ;;  %3495 = vmatpush.bf16.msrb.mxu1 %v3435_v38  ;;  %v3257_v39 = vsel %vm611_vm5, %v3249_v26, 0.0  ;;  %v3256_v38 = vadd.f32 %v3255_v29, %v3254_v27  ;;  %v3275_v29 = vld [vmem:[%s9347_s5 + $0x18] sm:$0xff] }
 0x7c0   : > { %3478 = vmatpush.bf16.msrb.mxu0 %v3432_v40  ;;  %3496 = vmatpush.bf16.msrb.mxu1 %v3433_v41  ;;  %v3250_v40 = vmul.f32 %v3244_v36, %v3238_v37  ;;  %v3258_v41 = vadd.f32 %v3257_v39, %v3256_v38  ;;  %v3272_v37 = vld [vmem:[%s9347_s5] sm:$0xff]  ;;  %v3273_v36 = vld [vmem:[%s9347_s5 + $0x8] sm:$0xff] }
 0x7c2   : > { %v3259_v43 = vsel %vm611_vm5, %v3250_v40, 0.0 }
 0x7c3   : > { %v3260_v54 = vadd.f32 %v3259_v43, %v3258_v41  ;;  %v3308_v43 = vld [vmem:[%s9348_s6 + $0x28] sm:$0xff] }
 0x82c   : > { %v3226_v44 = vpop.xlane.xlu2 %3225 }
 0x82d   : > { %v3239_v42 = vmul.f32 %v3233_v46, %v3226_v44  ;;  %v3277_v46 = vld [vmem:[%s9347_s5 + $0x28] sm:$0xff] }
 0x82f   : > { %v3251_v45 = vmul.f32 %v3245_v28, %v3239_v42  ;;  %v6264_v42 = vld [vmem:[%s9349_s7] sm:$0xff] }
 0x830   : > { %6093 = vmatmul.msk.bf16.vlgmr.msrb.gmra.mxu0 %vm3464_vm11, %v6264_v42  ;;  %6095 = vmatmul.msk.bf16.vlgmr.msrb.gmra.mxu1 %vm3464_vm11, %v6264_v42 }
 0x831   : > { %v3261_v56 = vsel %vm611_vm5, %v3251_v45, 0.0  ;;  %v3307_v45 = vld [vmem:[%s9348_s6 + $0x20] sm:$0xff] }
 0x832   : > { %v3262_v53 = vadd.f32 %v3261_v56, %v3260_v54  ;;  %v3305_v54 = vld [vmem:[%s9348_s6 + $0x10] sm:$0xff] }
 0x834   : > { %v3263_v62 = vrot.slane %v3262_v53, 4 }
 0x836   : > { %v3264_v1 = vadd.f32 %v3263_v62, %v3262_v53 }
 0x838   : > { %v3265_v60 = vrot.slane %v3264_v1, 2 }
 0x83a   : > { %v3266_v13 = vadd.f32 %v3265_v60, %v3264_v1 }
 0x83c   : > { %v3267_v14 = vrot.slane %v3266_v13, 1 }
 0x83e   : > { %v3268_v22 = vadd.f32 %v3267_v14, %v3266_v13  ;;  %v3431_v13 = vld [vmem:[%s9349_s7 + $0x8] sm:$0xf] }
 0x840   : > { %v3270_v55 = vadd.f32 %v3269_v15, %v3268_v22  ;;  %v3461_v15 = vunpack.c.l.b16 %v3431_v13 }
 0x842   : > { %v3271_v57 = vmax.f32 %v3270_v55, 0.0 }
 0x844   : > { %v3278_v7 = vperm.slane %v3271_v57, 0 }
 0x846   : > { %v3284_v8 = vmul.f32 %v3278_v7, %v3277_v46  ;;  %v3283_v30 = vmul.f32 %v3278_v7, %v3276_v49  ;;  %v3281_v11 = vmul.f32 %v3278_v7, %v3274_v50  ;;  %v3282_v39 = vmul.f32 %v3278_v7, %v3275_v29  ;;  %v3306_v49 = vld [vmem:[%s9348_s6 + $0x18] sm:$0xff]  ;;  %v3304_v50 = vld [vmem:[%s9348_s6 + $0x8] sm:$0xff] }
 0x847   : > { %v3279_v38 = vmul.f32 %v3278_v7, %v3272_v37  ;;  %v3280_v40 = vmul.f32 %v3278_v7, %v3273_v36  ;;  %v3463_v46 = vpack.c.b16 %v3461_v15, %v3461_v15  ;;  %v3303_v7 = vld [vmem:[%s9348_s6] sm:$0xff] }
 0x848   : > { %v3300_v12 = vsel %vm611_vm5, %v3284_v8, 0.0  ;;  %v3297_v26 = vsel %vm611_vm5, %v3283_v30, 0.0  ;;  %v3291_v27 = vsel %vm611_vm5, %v3281_v11, 0.0  ;;  %v3294_v41 = vsel %vm611_vm5, %v3282_v39, 0.0 }
 0x849   : > { %3301 = vadd.xlane.f32.xlu1 %v3300_v12  ;;  %3298 = vadd.xlane.f32.xlu0 %v3297_v26  ;;  %v3285_v28 = vsel %vm611_vm5, %v3279_v38, 0.0  ;;  %v3288_v44 = vsel %vm611_vm5, %v3280_v40, 0.0 }
 0x84a   : > { %3292 = vadd.xlane.f32.xlu2 %v3291_v27  ;;  %6094 = vmatmul.msk.bf16.gmra.mxu0 %vm3464_vm11, %v3463_v46 }
 0x84b   : > { %6096 = vmatmul.msk.bf16.gmra.mxu1 %vm3464_vm11, %v3463_v46 }
 0x851   : > { %3295 = vadd.xlane.f32.xlu0 %v3294_v41  ;;  %3286 = vadd.xlane.f32.xlu1 %v3285_v28 }
 0x852   : > { %3289 = vadd.xlane.f32.xlu2 %v3288_v44 }
 0x8bc   : > { %v3302_v56 = vpop.xlane.xlu1 %3301  ;;  %v3299_v53 = vpop.xlane.xlu0 %3298 }
 0x8bd   : > { %v3314_v62 = vadd.f32 %v3308_v43, %v3302_v56  ;;  %v3313_v1 = vadd.f32 %v3307_v45, %v3299_v53  ;;  %v3293_v60 = vpop.xlane.xlu2 %3292 }
 0x8be   : > { %v3311_v14 = vadd.f32 %v3305_v54, %v3293_v60 }
 0x8bf   : > { %v6088_v22 = vmul.f32 -1.442695, %v3314_v62  ;;  %v6087_v55 = vmul.f32 -1.442695, %v3313_v1 }
 0x8c0   : > { %v6085_v57 = vmul.f32 -1.442695, %v3311_v14 }
 0x8c1   : > { %6299 = vpow2.f32 %v6088_v22 }
 0x8c2   : > { %6301 = vpow2.f32 %v6087_v55 }
 0x8c3   : > { %6303 = vpow2.f32 %v6085_v57 }
 0x8c4   : > { %v3296_v8 = vpop.xlane.xlu0 %3295  ;;  %v3287_v30 = vpop.xlane.xlu1 %3286 }
 0x8c5   : > { %v3312_v11 = vadd.f32 %v3306_v49, %v3296_v8  ;;  %v3290_v12 = vpop.xlane.xlu2 %3289  ;;  %v3309_v27 = vadd.f32 %v3303_v7, %v3287_v30 }
 0x8c6   : > { %v3310_v26 = vadd.f32 %v3304_v50, %v3290_v12 }
 0x8c7   : > { %v6300_v29 = vpop.eup %6299  ;;  %v6086_v37 = vmul.f32 -1.442695, %v3312_v11  ;;  %v6083_v44 = vmul.f32 -1.442695, %v3309_v27 }
 0x8c8   : > { %v6302_v36 = vpop.eup %6301  ;;  %v3338_v39 = vadd.f32 1.0, %v6300_v29  ;;  %v6084_v41 = vmul.f32 -1.442695, %v3310_v26 }
 0x8c9   : > { %v6304_v38 = vpop.eup %6303  ;;  %v3337_v40 = vadd.f32 1.0, %v6302_v36  ;;  %6305 = vpow2.f32 %v6086_v37 }
 0x8ca   : > { %6307 = vrcp.f32 %v3338_v39  ;;  %v3335_v28 = vadd.f32 1.0, %v6304_v38  ;;  %vm3419_vm12 = vweird.f32 %v3338_v39  ;;  %v3423_v1 = vand.u32 2147483647, %v3338_v39 }
 0x8cb   : > { %6309 = vrcp.f32 %v3337_v40  ;;  %vm3404_vm13 = vweird.f32 %v3337_v40  ;;  %v3408_v13 = vand.u32 2147483647, %v3337_v40  ;;  %v3410_v14 = vand.u32 2147483648, %v3337_v40 }
 0x8cc   : > { %6311 = vrcp.f32 %v3335_v28  ;;  %v3378_v49 = vand.u32 2147483647, %v3335_v28  ;;  %v3425_v50 = vand.u32 2147483648, %v3338_v39  ;;  %v3380_v12 = vand.u32 2147483648, %v3335_v28 }
 0x8cd   : > { %6313 = vpow2.f32 %v6084_v41  ;;  %v3411_v36 = vor.u32 1.1754944e-38, %v3410_v14  ;;  %vm3374_vm10 = vweird.f32 %v3335_v28  ;;  %vm3424_vm7 = vcmp.eq.f32.partialorder %v3423_v1, 8.507059e+37 }
 0x8ce   : > { %6315 = vpow2.f32 %v6083_v44  ;;  %v3426_v38 = vor.u32 1.1754944e-38, %v3425_v50  ;;  %vm3409_vm6 = vcmp.eq.f32.partialorder %v3408_v13, 8.507059e+37  ;;  %vm3379_vm4 = vcmp.eq.f32.partialorder %v3378_v49, 8.507059e+37 }
 0x8cf   : > { %v6306_v42 = vpop.eup %6305 }
 0x8d0   : > { %v6308_v43 = vpop.eup %6307  ;;  %v7601_v45 = vadd.f32 1.0, %v6306_v42 }
 0x8d1   : > { %v6310_v54 = vpop.eup %6309  ;;  %v3415_v56 = vmul.f32 %v6308_v43, %v3338_v39  ;;  %vm3420_vm14 = vweird.f32 %v6308_v43 }
 0x8d2   : > { %v6312_v53 = vpop.eup %6311  ;;  %6317 = vrcp.f32 %v7601_v45  ;;  %v3400_v62 = vmul.f32 %v6310_v54, %v3337_v40  ;;  %vm3405_vm15 = vweird.f32 %v6310_v54  ;;  %vm3421_vm8 = vmor %vm3419_vm12, %vm3420_vm14  ;;  %v3395_v14 = vand.u32 2147483648, %v7601_v45 }
 0x8d3   : > { %v6314_v60 = vpop.eup %6313  ;;  %v3370_v15 = vmul.f32 %v6312_v53, %v3335_v28  ;;  %v3416_v22 = vsub.f32 1.0, %v3415_v56  ;;  %vm3375_vm5 = vweird.f32 %v6312_v53  ;;  %vm3406_vm9 = vmor %vm3404_vm13, %vm3405_vm15 }
 0x8d4   : > { %v6316_v55 = vpop.eup %6315  ;;  %v7604_v57 = vadd.f32 1.0, %v6314_v60  ;;  %v3401_v46 = vsub.f32 1.0, %v3400_v62  ;;  %vm3376_vm3 = vmor %vm3374_vm10, %vm3375_vm5  ;;  %v3381_v62 = vor.u32 1.1754944e-38, %v3380_v12  ;;  %v3396_v49 = vor.u32 1.1754944e-38, %v3395_v14 }
 0x8d5   : > { %v7606_v7 = vadd.f32 1.0, %v6316_v55  ;;  %v3371_v8 = vsub.f32 1.0, %v3370_v15  ;;  %v3417_v30 = vmul.f32 %v6308_v43, %v3416_v22 }
 0x8d6   : > { %6319 = vrcp.f32 %v7604_v57  ;;  %v3402_v11 = vmul.f32 %v6310_v54, %v3401_v46  ;;  %vm3359_vm15 = vweird.f32 %v7604_v57 }
 0x8d7   : > { %6321 = vrcp.f32 %v7606_v7  ;;  %v3372_v26 = vmul.f32 %v6312_v53, %v3371_v8  ;;  %v3418_v27 = vadd.f32 %v6308_v43, %v3417_v30  ;;  %v3350_v30 = vand.u32 2147483648, %v7606_v7 }
 0x8d8   : > { %v6318_v29 = vpop.eup %6317  ;;  %v3403_v37 = vadd.f32 %v6310_v54, %v3402_v11 }
 0x8d9   : > { %v3373_v41 = vadd.f32 %v6312_v53, %v3372_v26  ;;  %v3422_v44 = vsel %vm3421_vm8, %v6308_v43, %v3418_v27  ;;  %v3385_v42 = vmul.f32 %v6318_v29, %v7601_v45  ;;  %vm3390_vm8 = vweird.f32 %v6318_v29  ;;  %v3564_v26 = vld [vmem:[%s9352_s10 + $0x8] sm:$0xff] }
 0x8da   : > { %v3407_v56 = vsel %vm3406_vm9, %v6310_v54, %v3403_v37  ;;  %v3427_v60 = vsel %vm3424_vm7, %v3426_v38, %v3422_v44  ;;  %v3393_v54 = vand.u32 2147483647, %v7601_v45  ;;  %v3348_v37 = vand.u32 2147483647, %v7606_v7 }
 0x8db   : > { %v3412_v15 = vsel %vm3409_vm6, %v3411_v36, %v3407_v56  ;;  %v3377_v22 = vsel %vm3376_vm3, %v6312_v53, %v3373_v41  ;;  %3542 = vperm.xlu1 %6294, %v3427_v60   ;;  %v3386_v39 = vsub.f32 1.0, %v3385_v42  ;;  %vm3389_vm3 = vweird.f32 %v7601_v45 }
 0x8dc   : > { %v6320_v28 = vpop.eup %6319  ;;  %3537 = vperm.xlu0 %6295, %v3412_v15   ;;  %v3382_v40 = vsel %vm3379_vm4, %v3381_v62, %v3377_v22  ;;  %vm3391_vm6 = vmor %vm3389_vm3, %vm3390_vm8  ;;  %vm3394_vm4 = vcmp.eq.f32.partialorder %v3393_v54, 8.507059e+37  ;;  %vm3344_vm9 = vweird.f32 %v7606_v7  ;;  %v3365_v38 = vand.u32 2147483648, %v7604_v57  ;;  %v3440_v15 = vld [vmem:[%s9350_s8 + $0x10] sm:$0xff]  ;;  %v3439_v22 = vld [vmem:[%s9350_s8 + $0x8] sm:$0xff] }
 0x8dd   : > { %v6322_v43 = vpop.eup %6321  ;;  %3527 = vperm.xlu2 %6296, %v3382_v40   ;;  %v3387_v1 = vmul.f32 %v6318_v29, %v3386_v39  ;;  %v3355_v13 = vmul.f32 %v6320_v28, %v7604_v57  ;;  %vm3360_vm12 = vweird.f32 %v6320_v28  ;;  %vm3349_vm14 = vcmp.eq.f32.partialorder %v3348_v37, 8.507059e+37  ;;  %v3480_v39 = vpop.f32.mrf.mxu0 }
 0x8de   : > { %v3340_v55 = vmul.f32 %v6322_v43, %v7606_v7  ;;  %vm3345_vm7 = vweird.f32 %v6322_v43  ;;  %v3363_v44 = vand.u32 2147483647, %v7604_v57  ;;  %vm3361_vm5 = vmor %vm3359_vm15, %vm3360_vm12  ;;  %v3366_v62 = vor.u32 1.1754944e-38, %v3365_v38  ;;  %v3438_v7 = vld [vmem:[%s9350_s8] sm:$0xff] }
 0x8df   : > { %v3388_v46 = vadd.f32 %v6318_v29, %v3387_v1  ;;  %v3356_v53 = vsub.f32 1.0, %v3355_v13  ;;  %vm3346_vm13 = vmor %vm3344_vm9, %vm3345_vm7  ;;  %v3563_v57 = vld [vmem:[%s9352_s10] sm:$0xff]  ;;  %vm3745_vm7 = vcmask 326656  }
 0x8e0   : > { %v3341_v50 = vsub.f32 1.0, %v3340_v55  ;;  %vm3364_vm10 = vcmp.eq.f32.partialorder %v3363_v44, 8.507059e+37 }
 0x8e1   : > { %v3392_v8 = vsel %vm3391_vm6, %v6318_v29, %v3388_v46  ;;  %v3357_v11 = vmul.f32 %v6320_v28, %v3356_v53  ;;  %v3351_v29 = vor.u32 1.1754944e-38, %v3350_v30 }
 0x8e2   : > { %v3397_v12 = vsel %vm3394_vm4, %v3396_v49, %v3392_v8  ;;  %v3342_v27 = vmul.f32 %v6322_v43, %v3341_v50 }
 0x8e3   : > { %v3358_v36 = vadd.f32 %v6320_v28, %v3357_v11 }
 0x8e4   : > { %3532 = vperm.xlu0 %6295, %v3397_v12   ;;  %v3343_v45 = vadd.f32 %v6322_v43, %v3342_v27 }
 0x8e5   : > { %3572 = vperm.xlu2 %6296, %v3564_v26   ;;  %v3362_v56 = vsel %vm3361_vm5, %v6320_v28, %v3358_v36  ;;  %v3498_v28 = vpop.f32.mrf.mxu1  ;;  %v3482_v40 = vpop.f32.mrf.mxu0 }
 0x8e6   : > { %v3347_v41 = vsel %vm3346_vm13, %v6322_v43, %v3343_v45  ;;  %v3367_v60 = vsel %vm3364_vm10, %v3366_v62, %v3362_v56 }
 0x8e7   : > { %v3352_v42 = vsel %vm3349_vm14, %v3351_v29, %v3347_v41 }
 0x8e8   : > { %3517 = vperm.xlu1 %6294, %v3352_v42  }
 0x8ec   : > { %3522 = vperm.xlu0 %6295, %v3367_v60  }
 0x8ed   : > { %3443 = vperm.xlu2 %6296, %v3438_v7   ;;  %v3500_v14 = vpop.f32.mrf.mxu1  ;;  %v3485_v54 = vpop.f32.mrf.mxu0 }
 0x8f0   : > { %3453 = vperm.xlu1 %6294, %v3440_v15  }
 0x8f4   : > { %3567 = vperm.xlu0 %6295, %v3563_v57  }
 0x8f5   : > { %v3503_v13 = vpop.f32.mrf.mxu1  ;;  %v3487_v46 = vpop.f32.mrf.mxu0 }
 0x8f8   : > { %3448 = vperm.xlu1 %6294, %v3439_v22  }
 0x8fd   : > { %v3505_v49 = vpop.f32.mrf.mxu1 }
 0x937   : > { %v3528_v43 = vpop.permute.xlu2 %3527 }
 0x938   : > { %v3549_v29 = vmul.f32 %v3528_v43, %v7032_v16  ;;  %v3550_v38 = vmul.f32 %v3528_v43, %v7034_v21 }
 0x93f   : > { %v7640_v1 = vpop.permute.xlu2 %3572 }
 0x947   : > { %v3444_v55 = vpop.permute.xlu2 %3443 }
 0x948   : > { %v3481_v53 = vadd.f32 %v3480_v39, %v3444_v55 }
 0x94a   : > { %v7642_v50 = vmax.f32 %v3481_v53, 0.0 }
 0x94c   : > { %3691 = vrot.lane.b32.xlu0 %v7642_v50, %s9420_s18 }
 0x94d   : > { %v3543_v8 = vpop.permute.xlu1 %3542 }
 0x94e   : > { %v3538_v30 = vpop.permute.xlu0 %3537  ;;  %v3555_v11 = vmul.f32 %v3543_v8, %v7504_v33  ;;  %v3556_v12 = vmul.f32 %v3543_v8, %v7506_v23 }
 0x94f   : > { %v3553_v26 = vmul.f32 %v3538_v30, %v7340_v58  ;;  %v3554_v27 = vmul.f32 %v3538_v30, %v7342_v59 }
 0x951   : > { %v3561_v37 = vpack.c.bf16 %v3555_v11, %v3553_v26  ;;  %v3562_v45 = vpack.c.bf16 %v3556_v12, %v3554_v27 }
 0x953   : > { %3588 = vmatpush.bf16.msrb.mxu2 %v3561_v37  ;;  %3602 = vmatpush.bf16.msrb.mxu3 %v3562_v45 }
 0x956   : > { %v3533_v36 = vpop.permute.xlu0 %3532 }
 0x957   : > { %v3551_v41 = vmul.f32 %v3533_v36, %v7186_v61  ;;  %v3552_v44 = vmul.f32 %v3533_v36, %v7188_v2  ;;  %v6265_v61 = vld [vmem:[%s9351_s9] sm:$0xff] }
 0x959   : > { %v3559_v33 = vpack.c.bf16 %v3551_v41, %v3549_v29  ;;  %v3560_v42 = vpack.c.bf16 %v3552_v44, %v3550_v38 }
 0x95a   : > { %v3518_v23 = vpop.permute.xlu1 %3517 }
 0x95b   : > { %3589 = vmatpush.bf16.msrb.mxu2 %v3559_v33  ;;  %3603 = vmatpush.bf16.msrb.mxu3 %v3560_v42  ;;  %v3545_v59 = vmul.f32 %v3518_v23, %v6724_v24  ;;  %v3546_v56 = vmul.f32 %v3518_v23, %v6726_v25  ;;  %v3499_v25 = vadd.f32 %v3498_v28, %v3444_v55 }
 0x95d   : > { %v7671_v39 = vmax.f32 %v3499_v25, 0.0 }
 0x95e   : > { %v3523_v58 = vpop.permute.xlu0 %3522 }
 0x95f   : > { %v3547_v62 = vmul.f32 %v3523_v58, %v6878_v47  ;;  %v3548_v16 = vmul.f32 %v3523_v58, %v6880_v48 }
 0x961   : > { %v3557_v7 = vpack.c.bf16 %v3547_v62, %v3545_v59  ;;  %v3558_v21 = vpack.c.bf16 %v3548_v16, %v3546_v56 }
 0x962   : > { %v3454_v60 = vpop.permute.xlu1 %3453 }
 0x963   : > { %v3486_v2 = vadd.f32 %v3485_v54, %v3454_v60  ;;  %v3504_v15 = vadd.f32 %v3503_v13, %v3454_v60  ;;  %3590 = vmatpush.bf16.msrb.mxu2 %v3557_v7  ;;  %3604 = vmatpush.bf16.msrb.mxu3 %v3558_v21 }
 0x965   : > { %v7661_v57 = vmax.f32 %v3486_v2, 0.0  ;;  %v7663_v24 = vmax.f32 %v3504_v15, 0.0 }
 0x966   : > { %6101 = vmatmul.msk.bf16.vlgmr.msrb.gmra.mxu2 %vm3464_vm11, %v6265_v61  ;;  %6102 = vmatmul.msk.bf16.vlgmr.msrb.gmra.mxu3 %vm3464_vm11, %v6265_v61  ;;  %v3568_v28 = vpop.permute.xlu0 %3567  ;;  %vm9422_vm11 = vcmp.lt.s32.totalorder %v6540_v4, 1 }
 0x967   : > { %3705 = vrot.lane.b32.xlu2 %v7663_v24, %s9420_s18  ;;  %3695 = vrot.lane.b32.xlu1 %v7661_v57, %s9420_s18  ;;  %vm9423_vm8 = vmmov %vm9422_vm11 }
 0x968   : > { %vm9427_vm6 = vmmov %vm9423_vm8 }
 0x969   : > { %vm9428_vm4 = vmmov %vm9427_vm6 }
 0x96a   : > { %v3449_v47 = vpop.permute.xlu1 %3448  ;;  %vm9433_vm12 = vmmov %vm9428_vm4 }
 0x96b   : > { %v3483_v48 = vadd.f32 %v3482_v40, %v3449_v47  ;;  %v3501_v22 = vadd.f32 %v3500_v14, %v3449_v47  ;;  %vm9434_vm13 = vmmov %vm9428_vm4 }
 0x96c   : > { %vm9437_vm15 = vmmov %vm9428_vm4 }
 0x96d   : > { %v7673_v43 = vmax.f32 %v3483_v48, 0.0  ;;  %v7675_v54 = vmax.f32 %v3501_v22, 0.0  ;;  %vm9438_vm5 = vmmov %vm9428_vm4 }
 0x96f   : > { %3701 = vrot.lane.b32.xlu1 %v7671_v39, %s9420_s18  ;;  %3703 = vrot.lane.b32.xlu0 %v7675_v54, %s9420_s18 }
 0x970   : > { %3693 = vrot.lane.b32.xlu2 %v7673_v43, %s9420_s18 }
 0x977   : > { %3854 = vrot.lane.b32.xlu1 %v7661_v57, %s9421_s19  ;;  %3649 = vrot.lane.b32.xlu0 %v7661_v57, %s9418_s30 }
 0x978   : > { %3864 = vrot.lane.b32.xlu2 %v7663_v24, %s9421_s19 }
 0x97f   : > { %3659 = vrot.lane.b32.xlu1 %v7663_v24, %s9418_s30  ;;  %3860 = vrot.lane.b32.xlu0 %v7671_v39, %s9421_s19 }
 0x980   : > { %3850 = vrot.lane.b32.xlu2 %v7642_v50, %s9421_s19 }
 0x987   : > { %3647 = vrot.lane.b32.xlu0 %v7673_v43, %s9418_s30  ;;  %3852 = vrot.lane.b32.xlu1 %v7673_v43, %s9421_s19 }
 0x988   : > { %3862 = vrot.lane.b32.xlu2 %v7675_v54, %s9421_s19 }
 0x98f   : > { %3645 = vrot.lane.b32.xlu1 %v7642_v50, %s9418_s30 }
 0x990   : > { %3655 = vrot.lane.b32.xlu2 %v7671_v39, %s9418_s30 }
 0x997   : > { %3657 = vrot.lane.b32.xlu1 %v7675_v54, %s9418_s30 }
 0x99f   : > { %3962 = vrot.lane.b32.xlu1 %v7661_v57, %s9419_s1 }
 0x9be   : > { %v3692_v14 = vpop.permute.xlu0 %3691 }
 0x9c1   : > { %v3706_v40 = vpop.permute.xlu2 %3705 }
 0x9ca   : > { %v3694_v53 = vpop.permute.xlu2 %3693 }
 0x9d2   : > { %v3865_v29 = vpop.permute.xlu2 %3864 }
 0x9d9   : > { %v3696_v13 = vpop.permute.xlu1 %3695 }
 0x9da   : > { %v7711_v55 = vsel %vm599_vm1, %v3696_v13, %v3706_v40  ;;  %v7715_v46 = vsel %vm599_vm1, %v3706_v40, %v3696_v13  ;;  %v3851_v21 = vpop.permute.xlu2 %3850 }
 0x9e1   : > { %v3704_v49 = vpop.permute.xlu0 %3703  ;;  %v3702_v8 = vpop.permute.xlu1 %3701 }
 0x9e2   : > { %v3712_v30 = vsel %vm599_vm1, %v3694_v53, %v3704_v49  ;;  %v3717_v11 = vsel %vm599_vm1, %v3704_v49, %v3694_v53  ;;  %v3711_v12 = vsel %vm599_vm1, %v3692_v14, %v3702_v8  ;;  %v3716_v26 = vsel %vm599_vm1, %v3702_v8, %v3692_v14  ;;  %v3863_v22 = vpop.permute.xlu2 %3862 }
 0x9e3   : > { %v7726_v27 = vmul.f32 %v3717_v11, %v6563_v17  ;;  %v7729_v37 = vmul.f32 %v3712_v30, %v6565_v18  ;;  %v7732_v45 = vmul.f32 %v3716_v26, %v6563_v17  ;;  %v7735_v36 = vmul.f32 %v3711_v12, %v6565_v18 }
 0x9e9   : > { %v3855_v44 = vpop.permute.xlu1 %3854  ;;  %v3592_v23 = vpop.f32.mrf.mxu2 }
 0x9ea   : > { %v7743_v33 = vsel %vm687_vm0, %v3855_v44, %v3865_v29  ;;  %v7747_v42 = vsel %vm687_vm0, %v3865_v29, %v3855_v44  ;;  %v3650_v58 = vpop.permute.xlu0 %3649  ;;  %v3593_v59 = vadd.f32 %v3592_v23, %v3568_v28  ;;  %v3606_v56 = vpop.f32.mrf.mxu3 }
 0x9eb   : > { %v3607_v62 = vadd.f32 %v3606_v56, %v3568_v28 }
 0x9ec   : > { %v7749_v16 = vmax.f32 %v3593_v59, 0.0  ;;  %v3656_v59 = vpop.permute.xlu2 %3655 }
 0x9ed   : > { %v7751_v7 = vmax.f32 %v3607_v62, 0.0 }
 0x9ee   : > { %3697 = vrot.lane.b32.xlu0 %v7749_v16, %s9420_s18  ;;  %3651 = vrot.lane.b32.xlu2 %v7749_v16, %s9418_s30 }
 0x9ef   : > { %3707 = vrot.lane.b32.xlu1 %v7751_v7, %s9420_s18 }
 0x9f1   : > { %v3660_v60 = vpop.permute.xlu1 %3659  ;;  %v3594_v29 = vpop.f32.mrf.mxu2 }
 0x9f2   : > { %v7761_v61 = vsel %vm583_vm2, %v3650_v58, %v3660_v60  ;;  %v7765_v2 = vsel %vm583_vm2, %v3660_v60, %v3650_v58  ;;  %v3861_v15 = vpop.permute.xlu0 %3860  ;;  %v3608_v25 = vpop.f32.mrf.mxu3  ;;  %v3595_v44 = vadd.f32 %v3594_v29, %v7640_v1 }
 0x9f3   : > { %v3870_v47 = vsel %vm687_vm0, %v3851_v21, %v3861_v15  ;;  %v3875_v48 = vsel %vm687_vm0, %v3861_v15, %v3851_v21  ;;  %v3609_v28 = vadd.f32 %v3608_v25, %v7640_v1  ;;  %v7935_v26 = vmul.f32 %v7765_v2, %v6568_v19 }
 0x9f4   : > { %v7783_v53 = vmul.f32 %v3875_v48, %v6546_v9  ;;  %v7786_v49 = vmul.f32 %v3870_v47, %v6548_v10  ;;  %v7807_v58 = vmax.f32 %v3595_v44, 0.0  ;;  %v7939_v12 = vmul.f32 %v7761_v61, %v6570_v20 }
 0x9f5   : > { %v7794_v11 = vmax.f32 %v3609_v28, 0.0 }
 0x9f6   : > { %3856 = vrot.lane.b32.xlu0 %v7749_v16, %s9421_s19  ;;  %3972 = vrot.lane.b32.xlu2 %v7663_v24, %s9419_s1 }
 0x9f7   : > { %3866 = vrot.lane.b32.xlu1 %v7751_v7, %s9421_s19 }
 0x9f9   : > { %v3853_v40 = vpop.permute.xlu1 %3852 }
 0x9fa   : > { %v3871_v14 = vsel %vm687_vm0, %v3853_v40, %v3863_v22  ;;  %v3876_v13 = vsel %vm687_vm0, %v3863_v22, %v3853_v40  ;;  %v3648_v1 = vpop.permute.xlu0 %3647 }
 0x9fb   : > { %v7789_v8 = vmul.f32 %v3876_v13, %v6546_v9  ;;  %v7792_v30 = vmul.f32 %v3871_v14, %v6548_v10 }
 0x9fe   : > { %3661 = vrot.lane.b32.xlu0 %v7751_v7, %s9418_s30  ;;  %3709 = vrot.lane.b32.xlu2 %v7794_v11, %s9420_s18 }
 0x9ff   : > { %3974 = vrot.lane.b32.xlu1 %v7751_v7, %s9419_s1 }
 0xa01   : > { %v3646_v23 = vpop.permute.xlu1 %3645 }
 0xa02   : > { %v3665_v56 = vsel %vm583_vm2, %v3646_v23, %v3656_v59  ;;  %v3670_v62 = vsel %vm583_vm2, %v3656_v59, %v3646_v23 }
 0xa03   : > { %v7824_v25 = vmul.f32 %v3670_v62, %v6568_v19  ;;  %v7827_v47 = vmul.f32 %v3665_v56, %v6570_v20 }
 0xa06   : > { %3699 = vrot.lane.b32.xlu0 %v7807_v58, %s9420_s18  ;;  %3960 = vrot.lane.b32.xlu2 %v7673_v43, %s9419_s1 }
 0xa07   : > { %3868 = vrot.lane.b32.xlu1 %v7794_v11, %s9421_s19 }
 0xa09   : > { %v3658_v21 = vpop.permute.xlu1 %3657 }
 0xa0a   : > { %v3666_v60 = vsel %vm583_vm2, %v3648_v1, %v3658_v21  ;;  %v3671_v15 = vsel %vm583_vm2, %v3658_v21, %v3648_v1 }
 0xa0b   : > { %v7830_v48 = vmul.f32 %v3671_v15, %v6568_v19  ;;  %v7833_v22 = vmul.f32 %v3666_v60, %v6570_v20 }
 0xa0e   : > { %3964 = vrot.lane.b32.xlu0 %v7749_v16, %s9419_s1  ;;  %3858 = vrot.lane.b32.xlu2 %v7807_v58, %s9421_s19 }
 0xa0f   : > { %3968 = vrot.lane.b32.xlu1 %v7671_v39, %s9419_s1 }
 0xa11   : > { %v3963_v13 = vpop.permute.xlu1 %3962 }
 0xa16   : > { %3958 = vrot.lane.b32.xlu0 %v7642_v50, %s9419_s1  ;;  %4256 = vrot.lane.b32.xlu2 %v7663_v24, %s9416_s27 }
 0xa17   : > { %4246 = vrot.lane.b32.xlu1 %v7661_v57, %s9416_s27 }
 0xa1e   : > { %3970 = vrot.lane.b32.xlu0 %v7675_v54, %s9419_s1  ;;  %3663 = vrot.lane.b32.xlu2 %v7794_v11, %s9418_s30 }
 0xa1f   : > { %4258 = vrot.lane.b32.xlu1 %v7751_v7, %s9416_s27 }
 0xa26   : > { %3653 = vrot.lane.b32.xlu0 %v7807_v58, %s9418_s30  ;;  %4140 = vrot.lane.b32.xlu2 %v7749_v16, %s9417_s28 }
 0xa27   : > { %4148 = vrot.lane.b32.xlu1 %v7663_v24, %s9417_s28 }
 0xa2e   : > { %4248 = vrot.lane.b32.xlu0 %v7749_v16, %s9416_s27  ;;  %4242 = vrot.lane.b32.xlu2 %v7642_v50, %s9416_s27 }
 0xa2f   : > { %4244 = vrot.lane.b32.xlu1 %v7673_v43, %s9416_s27 }
 0xa36   : > { %4138 = vrot.lane.b32.xlu0 %v7661_v57, %s9417_s28  ;;  %4254 = vrot.lane.b32.xlu2 %v7675_v54, %s9416_s27 }
 0xa37   : > { %4134 = vrot.lane.b32.xlu1 %v7642_v50, %s9417_s28 }
 0xa3e   : > { %4150 = vrot.lane.b32.xlu0 %v7751_v7, %s9417_s28  ;;  %3976 = vrot.lane.b32.xlu2 %v7794_v11, %s9419_s1 }
 0xa3f   : > { %4146 = vrot.lane.b32.xlu1 %v7675_v54, %s9417_s28 }
 0xa46   : > { %3966 = vrot.lane.b32.xlu0 %v7807_v58, %s9419_s1  ;;  %4144 = vrot.lane.b32.xlu2 %v7671_v39, %s9417_s28 }
 0xa47   : > { %4260 = vrot.lane.b32.xlu1 %v7794_v11, %s9416_s27 }
 0xa48   : > { %v3652_v14 = vpop.permute.xlu2 %3651 }
 0xa4e   : > { %4252 = vrot.lane.b32.xlu0 %v7671_v39, %s9416_s27  ;;  %4462 = vrot.lane.b32.xlu2 %v7661_v57, %s9414_s29 }
 0xa4f   : > { %4464 = vrot.lane.b32.xlu1 %v7749_v16, %s9414_s29 }
 0xa50   : > { %v3973_v29 = vpop.permute.xlu2 %3972 }
 0xa51   : > { %v7895_v44 = vsel %vm9422_vm11, %v3963_v13, %v3973_v29  ;;  %v7899_v23 = vsel %vm9423_vm8, %v3973_v29, %v3963_v13  ;;  %vm9447_vm8 = vcmp.lt.s32.totalorder %v6540_v4, 127 }
 0xa56   : > { %4136 = vrot.lane.b32.xlu0 %v7673_v43, %s9417_s28  ;;  %4250 = vrot.lane.b32.xlu2 %v7807_v58, %s9416_s27 }
 0xa57   : > { %4354 = vrot.lane.b32.xlu1 %v7661_v57, %s9415_s0 }
 0xa58   : > { %v3710_v59 = vpop.permute.xlu2 %3709 }
 0xa5e   : > { %4472 = vrot.lane.b32.xlu0 %v7663_v24, %s9414_s29  ;;  %4152 = vrot.lane.b32.xlu2 %v7794_v11, %s9417_s28 }
 0xa5f   : > { %4366 = vrot.lane.b32.xlu1 %v7751_v7, %s9415_s0 }
 0xa60   : > { %v3698_v56 = vpop.permute.xlu0 %3697  ;;  %v7913_v62 = vpop.permute.xlu2 %3960 }
 0xa61   : > { %v3708_v1 = vpop.permute.xlu1 %3707 }
 0xa62   : > { %v3714_v52 = vsel %vm599_vm1, %v3698_v56, %v3708_v1 }
 0xa66   : > { %4142 = vrot.lane.b32.xlu0 %v7807_v58, %s9417_s28  ;;  %4474 = vrot.lane.b32.xlu2 %v7751_v7, %s9414_s29 }
 0xa67   : > { %4358 = vrot.lane.b32.xlu1 %v7807_v58, %s9415_s0 }
 0xa68   : > { %v3857_v21 = vpop.permute.xlu0 %3856  ;;  %v3859_v60 = vpop.permute.xlu2 %3858 }
 0xa69   : > { %v3867_v15 = vpop.permute.xlu1 %3866 }
 0xa6e   : > { %4356 = vrot.lane.b32.xlu0 %v7749_v16, %s9415_s0  ;;  %4364 = vrot.lane.b32.xlu2 %v7663_v24, %s9415_s0 }
 0xa6f   : > { %4468 = vrot.lane.b32.xlu1 %v7671_v39, %s9414_s29 }
 0xa70   : > { %v3662_v13 = vpop.permute.xlu0 %3661  ;;  %v7927_v29 = vpop.permute.xlu2 %4256 }
 0xa71   : > { %9424 = vst [vmem:[#allocation9_spill] sm:$0xff] %v7927_v29  ;;  %v3668_v3 = vsel %vm583_vm2, %v3652_v14, %v3662_v13  ;;  %v3673_v40 = vsel %vm583_vm2, %v3662_v13, %v3652_v14  ;;  %v3975_v28 = vpop.permute.xlu1 %3974  ;;  %v3719_v14 = vsel %vm599_vm1, %v3708_v1, %v3698_v56  ;;  %v3725_v56 = vmul.f32 %v7715_v46, %v6563_v17 }
 0xa72   : > { %v7942_v41 = vmul.f32 %v3673_v40, %v6568_v19  ;;  %v7945_v38 = vmul.f32 %v3668_v3, %v6570_v20 }
 0xa76   : > { %4458 = vrot.lane.b32.xlu0 %v7642_v50, %s9414_s29  ;;  %4460 = vrot.lane.b32.xlu2 %v7673_v43, %s9414_s29 }
 0xa77   : > { %4352 = vrot.lane.b32.xlu1 %v7673_v43, %s9415_s0 }
 0xa78   : > { %v3700_v61 = vpop.permute.xlu0 %3699  ;;  %v7957_v2 = vpop.permute.xlu2 %3663 }
 0xa79   : > { %v3715_v3 = vsel %vm599_vm1, %v3700_v61, %v3710_v59  ;;  %v3720_v40 = vsel %vm599_vm1, %v3710_v59, %v3700_v61  ;;  %v3869_v13 = vpop.permute.xlu1 %3868  ;;  %v3644_v59 = vld [vmem:[%s9354_s12 + $0x10] sm:$0x3f]  ;;  %v3727_v61 = vmul.f32 %v3719_v14, %v6563_v17  ;;  %vm9425_vm1 = vcmask 1043456  }
 0xa7a   : > { %v3729_v32 = vmul.f32 %v3720_v40, %v6563_v17  ;;  %v3730_v31 = vmul.f32 %v3715_v3, %v6565_v18  ;;  %v3879_v6 = vsel %vm687_vm0, %v3869_v13, %v3859_v60  ;;  %v3874_v5 = vsel %vm687_vm0, %v3859_v60, %v3869_v13  ;;  %vm9426_vm3 = vmmov %vm9425_vm1 }
 0xa7b   : > { %v3728_v40 = vmul.f32 %v3714_v52, %v6565_v18  ;;  %v3888_v1 = vmul.f32 %v3879_v6, %v6546_v9  ;;  %v3726_v52 = vmul.f32 %v7711_v55, %v6565_v18  ;;  %v3889_v60 = vmul.f32 %v3874_v5, %v6548_v10 }
 0xa7c   : > { %v3735_v51 = vpack.c.bf16 %v3729_v32, %v3729_v32  ;;  %v3736_v29 = vpack.c.bf16 %v3730_v31, %v3730_v31  ;;  %v8002_v18 = vmul.f32 %v7895_v44, %v6590_v35  ;;  %v3878_v13 = vsel %vm687_vm0, %v3867_v15, %v3857_v21 }
 0xa7e   : > { %4466 = vrot.lane.b32.xlu0 %v7807_v58, %s9414_s29  ;;  %4476 = vrot.lane.b32.xlu2 %v7794_v11, %s9414_s29  ;;  %v3753_v31 = vsel %vm9425_vm1, %v3735_v51, 0  ;;  %v3756_v32 = vsel %vm9426_vm3, %v3736_v29, 0  ;;  %v7994_v51 = vmul.f32 %v7899_v23, %v6588_v34  ;;  %v3733_v29 = vpack.c.bf16 %v3727_v61, %v3725_v56 }
 0xa7f   : > { %4578 = vperm.xlu1 %6294, %v3644_v59   ;;  %3763 = vmatpush.bf16.msra.mxu2 %v3753_v31  ;;  %v3734_v23 = vpack.c.bf16 %v3728_v40, %v3726_v52  ;;  %v3894_v59 = vpack.c.bf16 %v3888_v1, %v3888_v1  ;;  %v3895_v61 = vpack.c.bf16 %v3889_v60, %v3889_v60 }
 0xa80   : > { %3781 = vmatpush.bf16.msra.mxu3 %v3756_v32  ;;  %v3965_v14 = vpop.permute.xlu0 %3964  ;;  %v7990_v3 = vpop.permute.xlu2 %4140  ;;  %v3886_v32 = vmul.f32 %v3878_v13, %v6546_v9  ;;  %v9429_v40 = vpack.c.bf16 %v7726_v27, %v7732_v45  ;;  %v3884_v1 = vmul.f32 %v7747_v42, %v6546_v9  ;;  %v9431_v52 = vpack.c.bf16 %v7729_v37, %v7735_v36 }
 0xa81   : > { %v3981_v17 = vsel %vm9427_vm6, %v3965_v14, %v3975_v28  ;;  %v3986_v6 = vsel %vm9428_vm4, %v3975_v28, %v3965_v14  ;;  %v3969_v46 = vpop.permute.xlu1 %3968  ;;  %v3873_v28 = vsel %vm687_vm0, %v3857_v21, %v3867_v15  ;;  %v6267_v21 = vld [vmem:[%s9353_s11 + $0xc] sm:$0xff]  ;;  %vm9430_vm0 = vmmov %vm9425_vm1  ;;  %v3885_v27 = vmul.f32 %v7743_v33, %v6548_v10 }
 0xa82   : > { %v8005_v5 = vmul.f32 %v3986_v6, %v6588_v34  ;;  %v8008_v55 = vmul.f32 %v3981_v17, %v6590_v35  ;;  %v3887_v15 = vmul.f32 %v3873_v28, %v6548_v10  ;;  %v3911_v56 = vsel %vm9430_vm0, %v3894_v59, 0  ;;  %vm9432_vm9 = vmmov %vm9430_vm0  ;;  %v3620_v10 = vld [vmem:[%s9353_s11 + $0x14] sm:$0x7] }
 0xa83   : > { %3764 = vmatpush.bf16.msra.mxu2 %v3733_v29  ;;  %v3914_v17 = vsel %vm9432_vm9, %v3895_v61, 0  ;;  %v3892_v6 = vpack.c.bf16 %v3886_v32, %v3884_v1  ;;  %v4070_v37 = vpack.c.bf16 %v7807_v58, %v7807_v58  ;;  %v4071_v36 = vpack.c.bf16 %v7794_v11, %v7794_v11  ;;  %vm9436_vm14 = vmmov %vm9430_vm0 }
 0xa84   : > { %3782 = vmatpush.bf16.msra.mxu3 %v3734_v23  ;;  %v4000_v44 = vpack.c.bf16 %v8005_v5, %v7994_v51  ;;  %v4001_v31 = vpack.c.bf16 %v8008_v55, %v8002_v18  ;;  %v3893_v9 = vpack.c.bf16 %v3887_v15, %v3885_v27  ;;  %vm9440_vm10 = vmmov %vm9430_vm0  ;;  %v3643_v15 = vld [vmem:[%s9354_s12 + $0x8] sm:$0xff]  ;;  %vm9451_vm4 = vcmp.lt.s32.totalorder %v6540_v4, 113  ;;  %v6270_v51 = vld [vmem:[%s9353_s11 + $0x30] sm:$0xff] }
 0xa85   : > { %v4087_v29 = vsel %vm9436_vm14, %v4070_v37, 0  ;;  %vm9442_vm11 = vmmov %vm9430_vm0  ;;  %v9444_v37 = vpack.c.bf16 %v7945_v38, %v7939_v12  ;;  %v3626_v5 = vld [vmem:[%s9353_s11 + $0x2c] sm:$0x7] }
 0xa86   : > { %4368 = vrot.lane.b32.xlu0 %v7794_v11, %s9415_s0  ;;  %4350 = vrot.lane.b32.xlu2 %v7642_v50, %s9415_s0  ;;  %v9435_v11 = vpack.c.bf16 %v7789_v8, %v7783_v53  ;;  %v4090_v53 = vsel %vm9440_vm10, %v4071_v36, 0  ;;  %v3742_v8 = vunpack.c.l.b16 %v3620_v10  ;;  %v6266_v10 = vld [vmem:[%s9353_s11] sm:$0xff]  ;;  %vm9448_vm1 = vmmov %vm9447_vm8 }
 0xa87   : > { %3765 = vmatpush.bf16.msra.mxu2 %v9429_v40  ;;  %vm9449_vm3 = vmmov %vm9448_vm1 }
 0xa88   : > { %3783 = vmatpush.bf16.msra.mxu3 %v9431_v52  ;;  %v3959_v60 = vpop.permute.xlu0 %3958  ;;  %v8036_v14 = vpop.permute.xlu2 %4242  ;;  %v3744_v1 = vpack.c.b16 %v3742_v8, %v3742_v8  ;;  %vm9450_vm6 = vmmov %vm9448_vm1 }
 0xa89   : > { %v8041_v45 = vpop.permute.xlu1 %4246  ;;  %v3978_v33 = vsel %vm9433_vm12, %v3959_v60, %v3969_v46  ;;  %v3983_v42 = vsel %vm9434_vm13, %v3969_v46, %v3959_v60  ;;  %v9439_v46 = vpack.c.bf16 %v7792_v30, %v7786_v49  ;;  %v4068_v49 = vpack.c.bf16 %v7749_v16, %v7661_v57  ;;  %vm9453_vm9 = vmmov %vm9438_vm5 }
 0xa8a   : > { %6107 = vmatmul.msk.bf16.vlgmr.msra.gmra.mxu2 %vm3745_vm7, %v6267_v21  ;;  %v8079_v61 = vmul.f32 %v3983_v42, %v6588_v34  ;;  %v8082_v32 = vmul.f32 %v3978_v33, %v6590_v35  ;;  %v4069_v30 = vpack.c.bf16 %v7751_v7, %v7663_v24  ;;  %v4066_v57 = vpack.c.bf16 %v7673_v43, %v7642_v50  ;;  %vm9454_vm12 = vmmov %vm9438_vm5 }
 0xa8b   : > { %3921 = vmatpush.bf16.msrb.mxu2 %v3911_v56  ;;  %6109 = vmatmul.msk.bf16.vlgmr.msra.gmra.mxu3 %vm3745_vm7, %v6267_v21  ;;  %v4067_v16 = vpack.c.bf16 %v7675_v54, %v7671_v39  ;;  %v9445_v33 = vpack.c.bf16 %v7830_v48, %v7824_v25  ;;  %v9446_v42 = vpack.c.bf16 %v7833_v22, %v7827_v47 }
 0xa8c   : > { %3939 = vmatpush.bf16.msrb.mxu3 %v3914_v17 }
 0xa8e   : > { %4470 = vrot.lane.b32.xlu0 %v7675_v54, %s9414_s29  ;;  %4362 = vrot.lane.b32.xlu2 %v7675_v54, %s9415_s0  ;;  %s6263_s29 = sshll.u32 %s9519_s25, 5 }
 0xa8f   : > { %3922 = vmatpush.bf16.msrb.mxu2 %v3892_v6  ;;  %s9050_s24 = scalar_lea.vmem %s9359_s17, %s6263_s29 }
 0xa90   : > { %3940 = vmatpush.bf16.msrb.mxu3 %v3893_v9  ;;  %v3971_v58 = vpop.permute.xlu0 %3970  ;;  %v8070_v59 = vpop.permute.xlu2 %4254  ;;  %v9443_v9 = vpack.c.bf16 %v7942_v41, %v7935_v26  ;;  %v6268_v41 = vld [vmem:[%s9353_s11 + $0x18] sm:$0xff]  ;;  %v3617_v26 = vld [vmem:[%s9353_s11 + $0x8] sm:$0x7] }
 0xa91   : > { %v3979_v23 = vsel %vm9437_vm15, %v7913_v62, %v3971_v58  ;;  %v3984_v13 = vsel %vm9438_vm5, %v3971_v58, %v7913_v62  ;;  %v8075_v28 = vpop.permute.xlu1 %4258  ;;  %v3623_v58 = vld [vmem:[%s9353_s11 + $0x20] sm:$0x7] }
 0xa92   : > { %v8085_v62 = vmul.f32 %v3984_v13, %v6588_v34  ;;  %v8088_v21 = vmul.f32 %v3979_v23, %v6590_v35  ;;  %v3799_v13 = vunpack.c.l.b16 %v3617_v26 }
 0xa93   : > { %3923 = vmatpush.bf16.msrb.mxu2 %v9435_v11 }
 0xa94   : > { %3941 = vmatpush.bf16.msrb.mxu3 %v9439_v46  ;;  %v3998_v40 = vpack.c.bf16 %v8085_v62, %v8079_v61  ;;  %v3999_v56 = vpack.c.bf16 %v8088_v21, %v8082_v32  ;;  %v4009_v32 = vunpack.c.l.b16 %v3626_v5 }
 0xa96   : > { %4360 = vrot.lane.b32.xlu0 %v7671_v39, %s9415_s0  ;;  %4573 = vperm.xlu2 %6296, %v3643_v15   ;;  %v3642_v39 = vld [vmem:[%s9354_s12] sm:$0xff]  ;;  %v4011_v21 = vpack.c.b16 %v4009_v32, %v4009_v32 }
 0xa97   : > { %4097 = vmatpush.bf16.msra.mxu2 %v4087_v29 }
 0xa98   : > { %4115 = vmatpush.bf16.msra.mxu3 %v4090_v53  ;;  %v3654_v24 = vpop.permute.xlu0 %3653  ;;  %v3977_v50 = vpop.permute.xlu2 %3976 }
 0xa99   : > { %v3669_v7 = vsel %vm583_vm2, %v3654_v24, %v7957_v2  ;;  %v3674_v52 = vsel %vm583_vm2, %v7957_v2, %v3654_v24  ;;  %v4149_v60 = vpop.permute.xlu1 %4148  ;;  %vm9441_vm2 = vmmov %vm9430_vm0 }
 0xa9a   : > { %v3683_v17 = vmul.f32 %v3674_v52, %v6568_v19  ;;  %v3684_v27 = vmul.f32 %v3669_v7, %v6570_v20  ;;  %6108 = vmatmul.msk.bf16.gmra.mxu2 %vm3745_vm7, %v3744_v1  ;;  %vm9452_vm0 = vmmov %vm9451_vm4 }
 0xa9b   : > { %4098 = vmatpush.bf16.msra.mxu2 %v4068_v49  ;;  %6110 = vmatmul.msk.bf16.gmra.mxu3 %vm3745_vm7, %v3744_v1  ;;  %v3801_v1 = vpack.c.b16 %v3799_v13, %v3799_v13  ;;  %vm9455_vm13 = vmmov %vm9452_vm0 }
 0xa9c   : > { %4116 = vmatpush.bf16.msra.mxu3 %v4069_v30  ;;  %v3689_v43 = vpack.c.bf16 %v3683_v17, %v3683_v17  ;;  %v3690_v54 = vpack.c.bf16 %v3684_v27, %v3684_v27  ;;  %v3901_v30 = vunpack.c.l.b16 %v3623_v58  ;;  %vm9456_vm14 = vmmov %vm9452_vm0 }
 0xa9d   : > { %vm9460_vm15 = vmmov %vm9452_vm0 }
 0xa9e   : > { %4568 = vperm.xlu0 %6295, %v3642_v39   ;;  %v3809_v2 = vsel %vm9441_vm2, %v3689_v43, 0  ;;  %v3812_v6 = vsel %vm9442_vm11, %v3690_v54, 0  ;;  %vm9461_vm5 = vmmov %vm9452_vm0 }
 0xa9f   : > { %4099 = vmatpush.bf16.msra.mxu2 %v4066_v57  ;;  %3819 = vmatpush.bf16.msra.mxu0 %v3809_v2  ;;  %v3903_v57 = vpack.c.b16 %v3901_v30, %v3901_v30  ;;  %vm9462_vm10 = vmmov %vm9452_vm0 }
 0xaa0   : > { %4117 = vmatpush.bf16.msra.mxu3 %v4067_v16  ;;  %3837 = vmatpush.bf16.msra.mxu1 %v3812_v6  ;;  %v4249_v19 = vpop.permute.xlu0 %4248  ;;  %v8128_v36 = vpop.permute.xlu2 %4144  ;;  %vm9463_vm2 = vmmov %vm9452_vm0 }
 0xaa1   : > { %v4245_v20 = vpop.permute.xlu1 %4244  ;;  %v4265_v16 = vsel %vm9451_vm4, %v4249_v19, %v8075_v28  ;;  %v4270_v7 = vsel %vm9452_vm0, %v8075_v28, %v4249_v19  ;;  %v9457_v28 = vld [vmem:[#allocation3_spill] sm:$0xff]  ;;  %v9458_v19 = vld [vmem:[#allocation4_spill] sm:$0xff]  ;;  %vm9468_vm4 = vmmov %vm9452_vm0 }
 0xaa2   : > { %v4263_v26 = vsel %vm9462_vm10, %v4245_v20, %v8070_v59 }
 0xaa3   : > { %3820 = vmatpush.bf16.msra.mxu0 %v9443_v9  ;;  %v4274_v30 = vmul.f32 %v4263_v26, %v9457_v28 }
 0xaa4   : > { %3838 = vmatpush.bf16.msra.mxu1 %v9444_v37 }
 0xaa7   : > { %3821 = vmatpush.bf16.msra.mxu0 %v9445_v33  ;;  %v4278_v33 = vmul.f32 %v4265_v16, %v9457_v28 }
 0xaa8   : > { %3839 = vmatpush.bf16.msra.mxu1 %v9446_v42  ;;  %v4139_v38 = vpop.permute.xlu0 %4138  ;;  %v8155_v48 = vpop.permute.xlu2 %4462  ;;  %v4279_v42 = vmul.f32 %v4270_v7, %v9458_v19 }
 0xaa9   : > { %v8142_v12 = vpop.permute.xlu1 %4134  ;;  %v4156_v25 = vsel %vm9447_vm8, %v4139_v38, %v4149_v60  ;;  %v4161_v47 = vsel %vm9448_vm1, %v4149_v60, %v4139_v38  ;;  %vm9464_vm8 = vmmov %vm9442_vm11 }
 0xaaa   : > { %6115 = vmatmul.msk.bf16.vlgmr.msra.gmra.mxu0 %vm3745_vm7, %v6266_v10  ;;  %6123 = vmatmul.msk.bf16.vlgmr.msrb.gmra.mxu2 %vm3745_vm7, %v6268_v41  ;;  %v8169_v46 = vmul.f32 %v4156_v25, %v6627_v63  ;;  %v8172_v53 = vmul.f32 %v4161_v47, %v6629_v0  ;;  %v4268_v25 = vsel %vm9463_vm2, %v8070_v59, %v4245_v20  ;;  %vm9465_vm1 = vmmov %vm9464_vm8  ;;  %vm9477_vm2 = vcmp.lt.s32.totalorder %v6540_v4, 111 }
 0xaab   : > { %6117 = vmatmul.msk.bf16.vlgmr.msra.gmra.mxu1 %vm3745_vm7, %v6266_v10  ;;  %6125 = vmatmul.msk.bf16.vlgmr.msrb.gmra.mxu3 %vm3745_vm7, %v6268_v41  ;;  %v4275_v59 = vmul.f32 %v4268_v25, %v9458_v19 }
 0xab0   : > { %v4151_v22 = vpop.permute.xlu0 %4150  ;;  %v4251_v52 = vpop.permute.xlu2 %4250 }
 0xab1   : > { %v4157_v11 = vsel %vm9449_vm3, %v7990_v3, %v4151_v22  ;;  %v4162_v29 = vsel %vm9450_vm6, %v4151_v22, %v7990_v3  ;;  %v8166_v23 = vpop.permute.xlu1 %4146  ;;  %vm9466_vm3 = vmmov %vm9465_vm1 }
 0xab2   : > { %v8175_v8 = vmul.f32 %v4157_v11, %v6627_v63  ;;  %v8178_v49 = vmul.f32 %v4162_v29, %v6629_v0  ;;  %vm9467_vm6 = vmmov %vm9452_vm0  ;;  %vm9469_vm0 = vcmp.lt.s32.totalorder %v6540_v4, 127 }
 0xab3   : > { %vm9476_vm10 = vmmov %vm9469_vm0 }
 0xab4   : > { %v4176_v15 = vpack.c.bf16 %v8175_v8, %v8169_v46  ;;  %v4177_v3 = vpack.c.bf16 %v8178_v49, %v8172_v53  ;;  %v3632_v53 = vld [vmem:[%s9353_s11 + $0x44] sm:$0x7] }
 0xab8   : > { %v3967_v24 = vpop.permute.xlu0 %3966 }
 0xab9   : > { %v3982_v60 = vsel %vm9453_vm9, %v3967_v24, %v3977_v50  ;;  %v3987_v17 = vsel %vm9454_vm12, %v3977_v50, %v3967_v24  ;;  %v4261_v27 = vpop.permute.xlu1 %4260  ;;  %v9459_v50 = vld [vmem:[#allocation9_spill] sm:$0xff]  ;;  %vm9470_vm9 = vmmov %vm9469_vm0 }
 0xaba   : > { %v3996_v39 = vmul.f32 %v3987_v17, %v6588_v34  ;;  %v3997_v43 = vmul.f32 %v3982_v60, %v6590_v35  ;;  %v4266_v54 = vsel %vm9455_vm13, %v4251_v52, %v4261_v27  ;;  %v4271_v2 = vsel %vm9456_vm14, %v4261_v27, %v4251_v52  ;;  %6116 = vmatmul.msk.bf16.gmra.mxu0 %vm3745_vm7, %v3801_v1  ;;  %v4153_v17 = vpop.permute.xlu2 %4152  ;;  %vm9471_vm12 = vmmov %vm9469_vm0 }
 0xabb   : > { %v4280_v6 = vmul.f32 %v4266_v54, %v9457_v28  ;;  %v4281_v9 = vmul.f32 %v4271_v2, %v9458_v19  ;;  %6118 = vmatmul.msk.bf16.gmra.mxu1 %vm3745_vm7, %v3801_v1  ;;  %6124 = vmatmul.msk.bf16.gmra.mxu2 %vm3745_vm7, %v3903_v57  ;;  %v4264_v34 = vsel %vm9460_vm15, %v8041_v45, %v9459_v50  ;;  %vm9472_vm13 = vmmov %vm9469_vm0 }
 0xabc   : > { %v4269_v35 = vsel %vm9461_vm5, %v9459_v50, %v8041_v45  ;;  %v4002_v37 = vpack.c.bf16 %v3996_v39, %v3996_v39  ;;  %v4003_v10 = vpack.c.bf16 %v3997_v43, %v3997_v43  ;;  %6126 = vmatmul.msk.bf16.gmra.mxu3 %vm3745_vm7, %v3903_v57  ;;  %v4276_v11 = vmul.f32 %v4264_v34, %v9457_v28  ;;  %vm9473_vm14 = vmmov %vm9465_vm1 }
 0xabd   : > { %v4286_v41 = vpack.c.bf16 %v4280_v6, %v4280_v6  ;;  %v4287_v38 = vpack.c.bf16 %v4281_v9, %v4281_v9  ;;  %v4277_v29 = vmul.f32 %v4269_v35, %v9458_v19  ;;  %vm9474_vm15 = vmmov %vm9465_vm1 }
 0xabe   : > { %v4019_v45 = vsel %vm9442_vm11, %v4002_v37, 0  ;;  %v4022_v47 = vsel %vm9464_vm8, %v4003_v10, 0  ;;  %v4284_v16 = vpack.c.bf16 %v4278_v33, %v4276_v11  ;;  %vm9475_vm5 = vmmov %vm9469_vm0  ;;  %v4159_v10 = vsel %vm9476_vm10, %v8128_v36, %v8142_v12 }
 0xabf   : > { %4029 = vmatpush.bf16.msrb.mxu0 %v4019_v45  ;;  %4047 = vmatpush.bf16.msrb.mxu1 %v4022_v47  ;;  %v4303_v22 = vsel %vm9465_vm1, %v4286_v41, 0  ;;  %v4306_v58 = vsel %vm9466_vm3, %v4287_v38, 0  ;;  %v4285_v7 = vpack.c.bf16 %v4279_v42, %v4277_v29  ;;  %v4154_v37 = vsel %vm9475_vm5, %v8142_v12, %v8128_v36  ;;  %v6271_v45 = vld [vmem:[%s9353_s11 + $0x3c] sm:$0xff]  ;;  %vm9478_vm11 = vmmov %vm9477_vm2  ;;  %v9481_v29 = vld [vmem:[#allocation8_spill] sm:$0xff] }
 0xac0   : > { %4313 = vmatpush.bf16.msrb.mxu2 %v4303_v22  ;;  %4331 = vmatpush.bf16.msrb.mxu3 %v4306_v58  ;;  %v4253_v13 = vpop.permute.xlu0 %4252  ;;  %v4164_v41 = vmul.f32 %v4154_v37, %v6627_v63  ;;  %v4165_v38 = vmul.f32 %v4159_v10, %v6629_v0  ;;  %vm9479_vm8 = vmmov %vm9477_vm2  ;;  %v9480_v58 = vld [vmem:[#allocation7_spill] sm:$0xff] }
 0xac1   : > { %v4262_v20 = vsel %vm9467_vm6, %v8036_v14, %v4253_v13  ;;  %v4267_v1 = vsel %vm9468_vm4, %v4253_v13, %v8036_v14  ;;  %v6269_v14 = vld [vmem:[%s9353_s11 + $0x24] sm:$0xff]  ;;  %v8270_v61 = vpop.permute.xlu1 %4464  ;;  %vm9482_vm1 = vmmov %vm9477_vm2 }
 0xac2   : > { %v4272_v57 = vmul.f32 %v4262_v20, %v9457_v28  ;;  %v4273_v24 = vmul.f32 %v4267_v1, %v9458_v19  ;;  %vm9483_vm3 = vmmov %vm9482_vm1 }
 0xac3   : > { %4030 = vmatpush.bf16.msrb.mxu0 %v4000_v44  ;;  %4048 = vmatpush.bf16.msrb.mxu1 %v4001_v31  ;;  %v3629_v44 = vld [vmem:[%s9353_s11 + $0x38] sm:$0x7]  ;;  %v8268_v31 = vpop.permute.xlu2 %4474  ;;  %vm9484_vm6 = vmmov %vm9482_vm1 }
 0xac4   : > { %4314 = vmatpush.bf16.msrb.mxu2 %v4284_v16  ;;  %4332 = vmatpush.bf16.msrb.mxu3 %v4285_v7  ;;  %v4282_v52 = vpack.c.bf16 %v4274_v30, %v4272_v57  ;;  %v4283_v60 = vpack.c.bf16 %v4275_v59, %v4273_v24  ;;  %v4077_v62 = vunpack.c.l.b16 %v3629_v44  ;;  %v4185_v30 = vunpack.c.l.b16 %v3632_v53  ;;  %vm9485_vm4 = vmmov %vm9473_vm14 }
 0xac5   : > { %v4481_v20 = vsel %vm9482_vm1, %v8270_v61, %v8268_v31  ;;  %v4486_v7 = vsel %vm9484_vm6, %v8268_v31, %v8270_v61 }
 0xac6   : > { %v4495_v5 = vmul.f32 %v4486_v7, %v9481_v29 }
 0xac7   : > { %4031 = vmatpush.bf16.msrb.mxu0 %v3998_v40  ;;  %4049 = vmatpush.bf16.msrb.mxu1 %v3999_v56  ;;  %v4079_v40 = vpack.c.b16 %v4077_v62, %v4077_v62 }
 0xac8   : > { %4315 = vmatpush.bf16.msrb.mxu2 %v4282_v52  ;;  %4333 = vmatpush.bf16.msrb.mxu3 %v4283_v60  ;;  %v4137_v18 = vpop.permute.xlu0 %4136 }
 0xac9   : > { %v8283_v28 = vpop.permute.xlu1 %4354  ;;  %v4155_v9 = vsel %vm9471_vm12, %v4137_v18, %v8166_v23  ;;  %v4160_v50 = vsel %vm9472_vm13, %v8166_v23, %v4137_v18 }
 0xaca   : > { %6131 = vmatmul.msk.bf16.vlgmr.msrb.gmra.mxu0 %vm3745_vm7, %v6269_v14  ;;  %v4166_v42 = vmul.f32 %v4155_v9, %v6627_v63  ;;  %v4167_v23 = vmul.f32 %v4160_v50, %v6629_v0 }
 0xacb   : > { %6133 = vmatmul.msk.bf16.vlgmr.msrb.gmra.mxu1 %vm3745_vm7, %v6269_v14  ;;  %6139 = vmatmul.msk.bf16.vlgmr.msra.gmra.mxu2 %vm3745_vm7, %v6270_v51  ;;  %v8279_v2 = vpop.permute.xlu2 %4364  ;;  %v4187_v14 = vpack.c.b16 %v4185_v30, %v4185_v30 }
 0xacc   : > { %6141 = vmatmul.msk.bf16.vlgmr.msra.gmra.mxu3 %vm3745_vm7, %v6270_v51  ;;  %v4174_v36 = vpack.c.bf16 %v4166_v42, %v4164_v41  ;;  %v4175_v12 = vpack.c.bf16 %v4167_v23, %v4165_v38 }
 0xad0   : > { %v8263_v55 = vpop.permute.xlu0 %4472 }
 0xad1   : > { %v4367_v25 = vpop.permute.xlu1 %4366  ;;  %v4480_v22 = vsel %vm9479_vm8, %v8155_v48, %v8263_v55  ;;  %v4485_v1 = vsel %vm9483_vm3, %v8263_v55, %v8155_v48  ;;  %vm9498_vm8 = vmmov %vm9482_vm1 }
 0xad2   : > { %v4492_v16 = vmul.f32 %v4480_v22, %v9480_v58  ;;  %v4493_v51 = vmul.f32 %v4485_v1, %v9481_v29  ;;  %vm9499_vm3 = vmmov %vm9482_vm1 }
 0xad3   : > { %v8312_v26 = vpop.permute.xlu2 %4460 }
 0xad8   : > { %v4143_v56 = vpop.permute.xlu0 %4142 }
 0xad9   : > { %v4158_v27 = vsel %vm9469_vm0, %v4143_v56, %v4153_v17  ;;  %v4163_v39 = vsel %vm9470_vm9, %v4153_v17, %v4143_v56  ;;  %v4359_v8 = vpop.permute.xlu1 %4358  ;;  %vm9486_vm0 = vmmov %vm9485_vm4  ;;  %v4494_v17 = vmul.f32 %v4481_v20, %v9480_v58  ;;  %vm9487_vm9 = vcmp.lt.s32.totalorder %v6540_v4, 112  ;;  %v6273_v4 = vld [vmem:[%s9353_s11 + $0x54] sm:$0xff] }
 0xada   : > { %v4172_v43 = vmul.f32 %v4158_v27, %v6627_v63  ;;  %v4173_v54 = vmul.f32 %v4163_v39, %v6629_v0  ;;  %6132 = vmatmul.msk.bf16.gmra.mxu0 %vm3745_vm7, %v4011_v21  ;;  %v6272_v63 = vld [vmem:[%s9353_s11 + $0x48] sm:$0xff]  ;;  %vm9488_vm12 = vmmov %vm9487_vm9  ;;  %v9492_v27 = vld [vmem:[#allocation6_spill] sm:$0xff] }
 0xadb   : > { %6134 = vmatmul.msk.bf16.gmra.mxu1 %vm3745_vm7, %v4011_v21  ;;  %6140 = vmatmul.msk.bf16.gmra.mxu2 %vm3745_vm7, %v4079_v40  ;;  %v4477_v46 = vpop.permute.xlu2 %4476  ;;  %v4500_v31 = vpack.c.bf16 %v4494_v17, %v4492_v16  ;;  %vm9489_vm13 = vmmov %vm9487_vm9 }
 0xadc   : > { %v4178_v6 = vpack.c.bf16 %v4172_v43, %v4172_v43  ;;  %v4179_v19 = vpack.c.bf16 %v4173_v54, %v4173_v54  ;;  %6142 = vmatmul.msk.bf16.gmra.mxu3 %vm3745_vm7, %v4079_v40  ;;  %v9491_v40 = vld [vmem:[#allocation5_spill] sm:$0xff]  ;;  %v4501_v54 = vpack.c.bf16 %v4495_v5, %v4493_v51  ;;  %vm9494_vm5 = vmmov %vm9487_vm9 }
 0xadd   : > { %vm9495_vm10 = vmmov %vm9486_vm0 }
 0xade   : > { %v4195_v34 = vsel %vm9473_vm14, %v4178_v6, 0  ;;  %v4198_v35 = vsel %vm9474_vm15, %v4179_v19, 0  ;;  %vm9490_vm14 = vmmov %vm9487_vm9  ;;  %v4377_v6 = vsel %vm9494_vm5, %v8279_v2, %v8283_v28 }
 0xadf   : > { %4205 = vmatpush.bf16.msra.mxu0 %v4195_v34  ;;  %4223 = vmatpush.bf16.msra.mxu1 %v4198_v35  ;;  %vm9493_vm15 = vmmov %vm9487_vm9 }
 0xae0   : > { %v4357_v33 = vpop.permute.xlu0 %4356  ;;  %v4372_v43 = vsel %vm9493_vm15, %v8283_v28, %v8279_v2  ;;  %vm9500_vm6 = vmmov %vm9494_vm5 }
 0xae1   : > { %v4373_v61 = vsel %vm9489_vm13, %v4357_v33, %v4367_v25  ;;  %v4378_v32 = vsel %vm9490_vm14, %v4367_v25, %v4357_v33  ;;  %v4469_v21 = vpop.permute.xlu1 %4468  ;;  %v4384_v35 = vmul.f32 %v4372_v43, %v9491_v40  ;;  %v4385_v33 = vmul.f32 %v4377_v6, %v9492_v27 }
 0xae2   : > { %v4386_v50 = vmul.f32 %v4373_v61, %v9491_v40  ;;  %v4387_v34 = vmul.f32 %v4378_v32, %v9492_v27 }
 0xae3   : > { %4206 = vmatpush.bf16.msra.mxu0 %v4176_v15  ;;  %4224 = vmatpush.bf16.msra.mxu1 %v4177_v3  ;;  %v3635_v15 = vld [vmem:[%s9353_s11 + $0x50] sm:$0x7]  ;;  %v4351_v62 = vpop.permute.xlu2 %4350 }
 0xae4   : > { %v4293_v59 = vunpack.c.l.b16 %v3635_v15  ;;  %v4392_v38 = vpack.c.bf16 %v4386_v50, %v4384_v35  ;;  %v6274_v15 = vld [vmem:[%s9353_s11 + $0x60] sm:$0xff] }
 0xae6   : > { %v4295_v48 = vpack.c.b16 %v4293_v59, %v4293_v59 }
 0xae7   : > { %4207 = vmatpush.bf16.msra.mxu0 %v4174_v36  ;;  %4225 = vmatpush.bf16.msra.mxu1 %v4175_v12  ;;  %v4393_v36 = vpack.c.bf16 %v4387_v34, %v4385_v33 }
 0xae8   : > { %v4459_v0 = vpop.permute.xlu0 %4458 }
 0xae9   : > { %v4483_v28 = vsel %vm9498_vm8, %v4469_v21, %v4459_v0 }
 0xaea   : > { %6147 = vmatmul.msk.bf16.vlgmr.msra.gmra.mxu0 %vm3745_vm7, %v6271_v45  ;;  %v4489_v25 = vmul.f32 %v4483_v28, %v9481_v29 }
 0xaeb   : > { %6149 = vmatmul.msk.bf16.vlgmr.msra.gmra.mxu1 %vm3745_vm7, %v6271_v45  ;;  %6155 = vmatmul.msk.bf16.vlgmr.msrb.gmra.mxu2 %vm3745_vm7, %v6272_v63 }
 0xaec   : > { %6157 = vmatmul.msk.bf16.vlgmr.msrb.gmra.mxu3 %vm3745_vm7, %v6272_v63 }
 0xaf0   : > { %v4467_v49 = vpop.permute.xlu0 %4466 }
 0xaf1   : > { %v4482_v3 = vsel %vm9477_vm2, %v4467_v49, %v4477_v46  ;;  %v4487_v47 = vsel %vm9478_vm11, %v4477_v46, %v4467_v49  ;;  %vm9496_vm2 = vmmov %vm9486_vm0  ;;  %v4353_v46 = vpop.permute.xlu1 %4352 }
 0xaf2   : > { %v4496_v11 = vmul.f32 %v4482_v3, %v9480_v58  ;;  %v4497_v13 = vmul.f32 %v4487_v47, %v9481_v29  ;;  %vm9497_vm11 = vmmov %vm9482_vm1 }
 0xaf3   : > { %v4478_v2 = vsel %vm9497_vm11, %v4459_v0, %v4469_v21  ;;  %v4363_v0 = vpop.permute.xlu2 %4362 }
 0xaf4   : > { %v4502_v57 = vpack.c.bf16 %v4496_v11, %v4496_v11  ;;  %v4503_v24 = vpack.c.bf16 %v4497_v13, %v4497_v13  ;;  %v4488_v12 = vmul.f32 %v4478_v2, %v9480_v58 }
 0xaf6   : > { %v4519_v52 = vsel %vm9485_vm4, %v4502_v57, 0  ;;  %v4522_v60 = vsel %vm9486_vm0, %v4503_v24, 0  ;;  %vm9501_vm4 = vmmov %vm9494_vm5  ;;  %v3641_v57 = vld [vmem:[%s9353_s11 + $0x68] sm:$0x7] }
 0xaf7   : > { %4529 = vmatpush.bf16.msra.mxu2 %v4519_v52  ;;  %4547 = vmatpush.bf16.msra.mxu3 %v4522_v60  ;;  %v4376_v49 = vsel %vm9501_vm4, %v4363_v0, %v4353_v46  ;;  %vm9502_vm0 = vmmov %vm9501_vm4  ;;  %v4509_v24 = vunpack.c.l.b16 %v3641_v57  ;;  %v3638_v52 = vld [vmem:[%s9353_s11 + $0x5c] sm:$0x7]  ;;  %v8482_v57 = vld [vmem:[%s9358_s16 + $0xf0] sm:$0xff] }
 0xaf8   : > { %v4369_v18 = vpop.permute.xlu0 %4368  ;;  %v4383_v11 = vmul.f32 %v4376_v49, %v9492_v27 }
 0xaf9   : > { %v4374_v55 = vsel %vm9487_vm9, %v4359_v8, %v4369_v18  ;;  %v4379_v44 = vsel %vm9488_vm12, %v4369_v18, %v4359_v8  ;;  %vm9503_vm9 = vmmov %vm9502_vm0  ;;  %v4511_v60 = vpack.c.b16 %v4509_v24, %v4509_v24  ;;  %v8487_v24 = vld [vmem:[%s9358_s16 + $0x68] sm:$0xff] }
 0xafa   : > { %v4388_v56 = vmul.f32 %v4374_v55, %v9491_v40  ;;  %v4389_v39 = vmul.f32 %v4379_v44, %v9492_v27  ;;  %6148 = vmatmul.msk.bf16.gmra.mxu0 %vm3745_vm7, %v4187_v14 }
 0xafb   : > { %6150 = vmatmul.msk.bf16.gmra.mxu1 %vm3745_vm7, %v4187_v14  ;;  %6156 = vmatmul.msk.bf16.gmra.mxu2 %vm3745_vm7, %v4295_v48  ;;  %v4401_v14 = vunpack.c.l.b16 %v3638_v52  ;;  %v8501_v52 = vld [vmem:[%s9358_s16 + $0x60] sm:$0xff] }
 0xafc   : > { %v4394_v19 = vpack.c.bf16 %v4388_v56, %v4388_v56  ;;  %v4395_v9 = vpack.c.bf16 %v4389_v39, %v4389_v39  ;;  %6158 = vmatmul.msk.bf16.gmra.mxu3 %vm3745_vm7, %v4295_v48  ;;  %4530 = vmatpush.bf16.msra.mxu2 %v4500_v31 }
 0xafd   : > { %4548 = vmatpush.bf16.msra.mxu3 %v4501_v54  ;;  %v4403_v51 = vpack.c.b16 %v4401_v14, %v4401_v14 }
 0xafe   : > { %v4411_v37 = vsel %vm9495_vm10, %v4394_v19, 0  ;;  %v4414_v10 = vsel %vm9496_vm2, %v4395_v9, 0 }
 0xaff   : > { %4421 = vmatpush.bf16.msrb.mxu0 %v4411_v37  ;;  %4439 = vmatpush.bf16.msrb.mxu1 %v4414_v10 }
 0xb00   : > { %v4471_v42 = vpop.permute.xlu0 %4470 }
 0xb01   : > { %v4479_v23 = vsel %vm9482_vm1, %v8312_v26, %v4471_v42  ;;  %v4484_v41 = vsel %vm9499_vm3, %v4471_v42, %v8312_v26  ;;  %v4371_v26 = vsel %vm9500_vm6, %v4353_v46, %v4363_v0 }
 0xb02   : > { %v4490_v45 = vmul.f32 %v4479_v23, %v9480_v58  ;;  %v4491_v63 = vmul.f32 %v4484_v41, %v9481_v29  ;;  %v4382_v58 = vmul.f32 %v4371_v26, %v9491_v40 }
 0xb03   : > { %4422 = vmatpush.bf16.msrb.mxu0 %v4392_v38  ;;  %4440 = vmatpush.bf16.msrb.mxu1 %v4393_v36 }
 0xb04   : > { %v4498_v53 = vpack.c.bf16 %v4490_v45, %v4488_v12  ;;  %v4499_v8 = vpack.c.bf16 %v4491_v63, %v4489_v25 }
 0xb06   : > { %4531 = vmatpush.bf16.msra.mxu2 %v4498_v53  ;;  %4549 = vmatpush.bf16.msra.mxu3 %v4499_v8 }
 0xb08   : > { %v4361_v3 = vpop.permute.xlu0 %4360 }
 0xb09   : > { %v4370_v47 = vsel %vm9502_vm0, %v4351_v62, %v4361_v3  ;;  %v4375_v22 = vsel %vm9503_vm9, %v4361_v3, %v4351_v62 }
 0xb0a   : > { %v4380_v29 = vmul.f32 %v4370_v47, %v9491_v40  ;;  %v4381_v13 = vmul.f32 %v4375_v22, %v9492_v27 }
 0xb0b   : > { %6171 = vmatmul.msk.bf16.vlgmr.msra.gmra.mxu2 %vm3745_vm7, %v6274_v15 }
 0xb0c   : > { %6173 = vmatmul.msk.bf16.vlgmr.msra.gmra.mxu3 %vm3745_vm7, %v6274_v15  ;;  %v4390_v30 = vpack.c.bf16 %v4382_v58, %v4380_v29  ;;  %v4391_v59 = vpack.c.bf16 %v4383_v11, %v4381_v13  ;;  %v8461_v29 = vld [vmem:[%s9358_s16 + $0x78] sm:$0xff] }
 0xb0d   : > { %v3767_v20 = vpop.f32.mrf.mxu2  ;;  %v8466_v13 = vld [vmem:[%s9358_s16 + $0xf8] sm:$0xff]  ;;  %5187 = vmatpush.msrb.mxu2 %v8461_v29 }
 0xb0e   : > { %v8420_v1 = vpop.f32.mrf.mxu3  ;;  %4423 = vmatpush.bf16.msrb.mxu0 %v4390_v30  ;;  %4441 = vmatpush.bf16.msrb.mxu1 %v4391_v59 }
 0xb0f   : > { %5210 = vmatpush.msrb.mxu3 %v8466_v13 }
 0xb11   : > { %6163 = vmatmul.msk.bf16.vlgmr.msrb.gmra.mxu0 %vm3745_vm7, %v6273_v4  ;;  %6165 = vmatmul.msk.bf16.vlgmr.msrb.gmra.mxu1 %vm3745_vm7, %v6273_v4  ;;  %v8477_v4 = vld [vmem:[%s9358_s16 + $0x70] sm:$0xff] }
 0xb12   : > { %4929 = vmatpush.msra.mxu0 %v8461_v29  ;;  %4952 = vmatpush.msra.mxu1 %v8466_v13 }
 0xb13   : > { %5188 = vmatpush.msrb.mxu2 %v8477_v4  ;;  %5211 = vmatpush.msrb.mxu3 %v8482_v57 }
 0xb14   : > { %4930 = vmatpush.msra.mxu0 %v8477_v4  ;;  %4953 = vmatpush.msra.mxu1 %v8482_v57 }
 0xb15   : > { %v3769_v16 = vpop.f32.mrf.mxu2  ;;  %5189 = vmatpush.msrb.mxu2 %v8487_v24 }
 0xb16   : > { %v3787_v7 = vpop.f32.mrf.mxu3  ;;  %4931 = vmatpush.msra.mxu0 %v8487_v24 }
 0xb17   : > { %5190 = vmatpush.msrb.mxu2 %v8501_v52 }
 0xb18   : > { %4932 = vmatpush.msra.mxu0 %v8501_v52 }
 0xb1b   : > { %6172 = vmatmul.msk.bf16.gmra.mxu2 %vm3745_vm7, %v4511_v60 }
 0xb1c   : > { %6174 = vmatmul.msk.bf16.gmra.mxu3 %vm3745_vm7, %v4511_v60  ;;  %v8506_v60 = vld [vmem:[%s9358_s16 + $0xe0] sm:$0xff] }
 0xb1d   : > { %v3772_v17 = vpop.f32.mrf.mxu2 }
 0xb1e   : > { %v3790_v48 = vpop.f32.mrf.mxu3 }
 0xb21   : > { %6164 = vmatmul.msk.bf16.gmra.mxu0 %vm3745_vm7, %v4403_v51  ;;  %6166 = vmatmul.msk.bf16.gmra.mxu1 %vm3745_vm7, %v4403_v51  ;;  %vm4790_vm7 = vcmask 1040384  }
 0xb25   : > { %v3774_v18 = vpop.f32.mrf.mxu2 }
 0xb26   : > { %v3792_v5 = vpop.f32.mrf.mxu3  ;;  %v8530_v18 = vld [vmem:[%s9358_s16 + $0xd8] sm:$0xff] }
 0xb27   : > { %v3823_v55 = vpop.f32.mrf.mxu0 }
 0xb28   : > { %v8434_v44 = vpop.f32.mrf.mxu1  ;;  %v3824_v35 = vadd.f32 %v3823_v55, %v3767_v20 }
 0xb2d   : > { %v3925_v31 = vpop.f32.mrf.mxu2 }
 0xb2e   : > { %v8436_v61 = vpop.f32.mrf.mxu3  ;;  %v3952_v37 = vadd.f32 %v3925_v31, %v3824_v35 }
 0xb2f   : > { %v3825_v32 = vpop.f32.mrf.mxu0 }
 0xb30   : > { %v3843_v62 = vpop.f32.mrf.mxu1  ;;  %v3826_v23 = vadd.f32 %v3825_v32, %v3769_v16  ;;  %v8539_v32 = vld [vmem:[%s9358_s16 + $0x50] sm:$0xff] }
 0xb31   : > { %v3844_v41 = vadd.f32 %v3843_v62, %v3787_v7  ;;  %v8496_v7 = vld [vmem:[%s9358_s16 + $0xe8] sm:$0xff]  ;;  %v8544_v62 = vld [vmem:[%s9358_s16 + $0xd0] sm:$0xff] }
 0xb32   : > { %4954 = vmatpush.msra.mxu1 %v8496_v7  ;;  %5212 = vmatpush.msrb.mxu3 %v8496_v7 }
 0xb34   : > { %4955 = vmatpush.msra.mxu1 %v8506_v60  ;;  %5213 = vmatpush.msrb.mxu3 %v8506_v60 }
 0xb35   : > { %v3927_v21 = vpop.f32.mrf.mxu2 }
 0xb36   : > { %v3945_v40 = vpop.f32.mrf.mxu3  ;;  %v3954_v38 = vadd.f32 %v3927_v21, %v3826_v23  ;;  %4956 = vmatpush.msra.mxu1 %v8530_v18  ;;  %5214 = vmatpush.msrb.mxu3 %v8530_v18  ;;  %v8549_v21 = vld [vmem:[%s9358_s16 + $0x48] sm:$0xff] }
 0xb37   : > { %v3828_v56 = vpop.f32.mrf.mxu0  ;;  %v3955_v12 = vadd.f32 %v3945_v40, %v3844_v41  ;;  %v8556_v40 = vld [vmem:[%s9358_s16 + $0xc8] sm:$0xff]  ;;  %v8607_v41 = vld [vmem:[%s9358_s16 + $0x30] sm:$0xff] }
 0xb38   : > { %v3829_v27 = vadd.f32 %v3828_v56, %v3772_v17  ;;  %v3846_v39 = vpop.f32.mrf.mxu1  ;;  %4957 = vmatpush.msra.mxu1 %v8544_v62  ;;  %v8561_v56 = vld [vmem:[%s9358_s16 + $0x40] sm:$0xff]  ;;  %5215 = vmatpush.msrb.mxu3 %v8544_v62 }
 0xb39   : > { %v3847_v43 = vadd.f32 %v3846_v39, %v3790_v48  ;;  %v8525_v48 = vld [vmem:[%s9358_s16 + $0x58] sm:$0xff] }
 0xb3a   : > { %4933 = vmatpush.msra.mxu0 %v8525_v48  ;;  %5191 = vmatpush.msrb.mxu2 %v8525_v48 }
 0xb3b   : > { %4958 = vmatpush.msra.mxu1 %v8556_v40  ;;  %5216 = vmatpush.msrb.mxu3 %v8556_v40 }
 0xb3c   : > { %4934 = vmatpush.msra.mxu0 %v8539_v32  ;;  %5192 = vmatpush.msrb.mxu2 %v8539_v32 }
 0xb3e   : > { %v3930_v54 = vpop.f32.mrf.mxu2  ;;  %4935 = vmatpush.msra.mxu0 %v8549_v21  ;;  %5193 = vmatpush.msrb.mxu2 %v8549_v21 }
 0xb3f   : > { %v8438_v6 = vadd.f32 %v3930_v54, %v3829_v27  ;;  %v3948_v19 = vpop.f32.mrf.mxu3  ;;  %v3830_v9 = vpop.f32.mrf.mxu0  ;;  %v8566_v27 = vld [vmem:[%s9358_s16 + $0xc0] sm:$0xff] }
 0xb40   : > { %v8440_v50 = vadd.f32 %v3948_v19, %v3847_v43  ;;  %v3848_v34 = vpop.f32.mrf.mxu1  ;;  %v8579_v9 = vld [vmem:[%s9358_s16 + $0x38] sm:$0xff]  ;;  %4936 = vmatpush.msra.mxu0 %v8561_v56  ;;  %4959 = vmatpush.msra.mxu1 %v8566_v27 }
 0xb41   : > { %v8584_v34 = vld [vmem:[%s9358_s16 + $0xb8] sm:$0xff]  ;;  %5194 = vmatpush.msrb.mxu2 %v8561_v56  ;;  %5217 = vmatpush.msrb.mxu3 %v8566_v27 }
 0xb42   : > { %4937 = vmatpush.msra.mxu0 %v8579_v9  ;;  %4960 = vmatpush.msra.mxu1 %v8584_v34 }
 0xb43   : > { %5195 = vmatpush.msrb.mxu2 %v8579_v9  ;;  %5218 = vmatpush.msrb.mxu3 %v8584_v34 }
 0xb44   : > { %4938 = vmatpush.msra.mxu0 %v8607_v41 }
 0xb45   : > { %5196 = vmatpush.msrb.mxu2 %v8607_v41 }
 0xb46   : > { %v3932_v10 = vpop.f32.mrf.mxu2 }
 0xb47   : > { %v3950_v33 = vpop.f32.mrf.mxu3  ;;  %v4033_v2 = vpop.f32.mrf.mxu0 }
 0xb48   : > { %v8442_v28 = vadd.f32 %v4033_v2, %v3952_v37  ;;  %v8444_v42 = vpop.f32.mrf.mxu1 }
 0xb4e   : > { %v8446_v36 = vpop.f32.mrf.mxu2 }
 0xb4f   : > { %v8448_v25 = vpop.f32.mrf.mxu3  ;;  %v4035_v45 = vpop.f32.mrf.mxu0 }
 0xb50   : > { %v4062_v63 = vadd.f32 %v4035_v45, %v3954_v38  ;;  %v4053_v0 = vpop.f32.mrf.mxu1  ;;  %v8612_v38 = vld [vmem:[%s9358_s16 + $0xb0] sm:$0xff]  ;;  %v8624_v45 = vld [vmem:[%s9358_s16 + $0xa8] sm:$0xff] }
 0xb51   : > { %v4063_v46 = vadd.f32 %v4053_v0, %v3955_v12  ;;  %4961 = vmatpush.msra.mxu1 %v8612_v38  ;;  %v8619_v12 = vld [vmem:[%s9358_s16 + $0x28] sm:$0xff]  ;;  %5219 = vmatpush.msrb.mxu3 %v8612_v38  ;;  %v8635_v0 = vld [vmem:[%s9358_s16 + $0x20] sm:$0xff] }
 0xb52   : > { %4939 = vmatpush.msra.mxu0 %v8619_v12  ;;  %5197 = vmatpush.msrb.mxu2 %v8619_v12 }
 0xb53   : > { %4962 = vmatpush.msra.mxu1 %v8624_v45  ;;  %5220 = vmatpush.msrb.mxu3 %v8624_v45 }
 0xb54   : > { %4940 = vmatpush.msra.mxu0 %v8635_v0  ;;  %5198 = vmatpush.msrb.mxu2 %v8635_v0 }
 0xb56   : > { %v4103_v53 = vpop.f32.mrf.mxu2 }
 0xb57   : > { %v4130_v8 = vadd.f32 %v4103_v53, %v4062_v63  ;;  %v4121_v26 = vpop.f32.mrf.mxu3  ;;  %v8450_v49 = vpop.f32.mrf.mxu0  ;;  %v3842_v63 = vadd.f32 %v8434_v44, %v8420_v1  ;;  %v8650_v53 = vld [vmem:[%s9358_s16 + $0x18] sm:$0xff] }
 0xb58   : > { %v4131_v15 = vadd.f32 %v4121_v26, %v4063_v46  ;;  %v8452_v3 = vpop.f32.mrf.mxu1  ;;  %v8640_v46 = vld [vmem:[%s9358_s16 + $0xa0] sm:$0xff]  ;;  %4941 = vmatpush.msra.mxu0 %v8650_v53  ;;  %5199 = vmatpush.msrb.mxu2 %v8650_v53 }
 0xb59   : > { %v3953_v1 = vadd.f32 %v8436_v61, %v3842_v63  ;;  %4963 = vmatpush.msra.mxu1 %v8640_v46  ;;  %5221 = vmatpush.msrb.mxu3 %v8640_v46 }
 0xb5b   : > { %v4061_v61 = vadd.f32 %v8444_v42, %v3953_v1  ;;  %v4128_v42 = vadd.f32 %v8446_v36, %v8442_v28  ;;  %v4569_v1 = vpop.permute.xlu0 %4568 }
 0xb5e   : > { %v8454_v47 = vpop.f32.mrf.mxu2 }
 0xb5f   : > { %v8456_v22 = vpop.f32.mrf.mxu3  ;;  %v4040_v58 = vpop.f32.mrf.mxu0 }
 0xb60   : > { %v4058_v11 = vpop.f32.mrf.mxu1  ;;  %v8670_v58 = vld [vmem:[%s9358_s16 + $0x90] sm:$0xff] }
 0xb61   : > { %v4129_v11 = vadd.f32 %v8448_v25, %v4061_v61  ;;  %v8698_v25 = vld [vmem:[%s9358_s16] sm:$0xff] }
 0xb66   : > { %v4108_v30 = vpop.f32.mrf.mxu2 }
 0xb67   : > { %v4126_v59 = vpop.f32.mrf.mxu3  ;;  %v8472_v20 = vpop.f32.mrf.mxu0  ;;  %v8682_v30 = vld [vmem:[%s9358_s16 + $0x8] sm:$0xff] }
 0xb68   : > { %v8489_v16 = vpop.f32.mrf.mxu1  ;;  %v8687_v59 = vld [vmem:[%s9358_s16 + $0x88] sm:$0xff]  ;;  %v4236_v28 = vadd.f32 %v8472_v20, %v4128_v42 }
 0xb69   : > { %v4237_v36 = vadd.f32 %v8489_v16, %v4129_v11 }
 0xb6e   : > { %v8518_v14 = vpop.f32.mrf.mxu2 }
 0xb6f   : > { %v8520_v17 = vpop.f32.mrf.mxu3  ;;  %v4211_v51 = vpop.f32.mrf.mxu0  ;;  %v4344_v20 = vadd.f32 %v8518_v14, %v4236_v28 }
 0xb70   : > { %v4238_v5 = vadd.f32 %v4211_v51, %v4130_v8  ;;  %v4229_v55 = vpop.f32.mrf.mxu1  ;;  %v8655_v8 = vld [vmem:[%s9358_s16 + $0x98] sm:$0xff]  ;;  %v8703_v51 = vld [vmem:[%s9358_s16 + $0x80] sm:$0xff]  ;;  %v4345_v16 = vadd.f32 %v8520_v17, %v4237_v36 }
 0xb71   : > { %v4239_v31 = vadd.f32 %v4229_v55, %v4131_v15  ;;  %4964 = vmatpush.msra.mxu1 %v8655_v8  ;;  %v8665_v15 = vld [vmem:[%s9358_s16 + $0x10] sm:$0xff]  ;;  %5222 = vmatpush.msrb.mxu3 %v8655_v8 }
 0xb72   : > { %4942 = vmatpush.msra.mxu0 %v8665_v15  ;;  %5200 = vmatpush.msrb.mxu2 %v8665_v15 }
 0xb73   : > { %4965 = vmatpush.msra.mxu1 %v8670_v58  ;;  %5223 = vmatpush.msrb.mxu3 %v8670_v58 }
 0xb74   : > { %4943 = vmatpush.msra.mxu0 %v8682_v30  ;;  %5201 = vmatpush.msrb.mxu2 %v8682_v30 }
 0xb75   : > { %4966 = vmatpush.msra.mxu1 %v8687_v59  ;;  %5224 = vmatpush.msrb.mxu3 %v8687_v59 }
 0xb76   : > { %v4319_v39 = vpop.f32.mrf.mxu2  ;;  %4944 = vmatpush.msra.mxu0 %v8698_v25  ;;  %5202 = vmatpush.msrb.mxu2 %v8698_v25 }
 0xb77   : > { %v8572_v43 = vadd.f32 %v4319_v39, %v4238_v5  ;;  %v4337_v54 = vpop.f32.mrf.mxu3  ;;  %v8574_v19 = vpop.f32.mrf.mxu0  ;;  %4967 = vmatpush.msra.mxu1 %v8703_v51  ;;  %5225 = vmatpush.msrb.mxu3 %v8703_v51 }
 0xb78   : > { %v8588_v35 = vadd.f32 %v4337_v54, %v4239_v31  ;;  %v8590_v37 = vpop.f32.mrf.mxu1  ;;  %5444 = vmatpush.msra.mxu2 %v8461_v29  ;;  %v4064_v29 = vadd.f32 %v8450_v49, %v8438_v6 }
 0xb79   : > { %5467 = vmatpush.msra.mxu3 %v8466_v13 }
 0xb7a   : > { %5445 = vmatpush.msra.mxu2 %v8477_v4  ;;  %v8729_v4 = vld [vmem:[%s9356_s14] ss:$2 sm:$0x3]  ;;  %v4132_v6 = vadd.f32 %v8454_v47, %v4064_v29 }
 0xb7b   : > { %5468 = vmatpush.msra.mxu3 %v8482_v57 }
 0xb7c   : > { %5446 = vmatpush.msra.mxu2 %v8487_v24 }
 0xb7d   : > { %5469 = vmatpush.msra.mxu3 %v8496_v7  ;;  %v4065_v7 = vadd.f32 %v8452_v3, %v8440_v50  ;;  %v4240_v3 = vadd.f32 %v8574_v19, %v4132_v6 }
 0xb7e   : > { %v8600_v10 = vpop.f32.mrf.mxu2  ;;  %5447 = vmatpush.msra.mxu2 %v8501_v52 }
 0xb7f   : > { %v8602_v33 = vpop.f32.mrf.mxu3  ;;  %v4216_v2 = vpop.f32.mrf.mxu0  ;;  %5470 = vmatpush.msra.mxu3 %v8506_v60  ;;  %v4133_v52 = vadd.f32 %v8456_v22, %v4065_v7 }
 0xb80   : > { %v4234_v23 = vpop.f32.mrf.mxu1  ;;  %5448 = vmatpush.msra.mxu2 %v8525_v48 }
 0xb81   : > { %v9504_v23 = vlaneseq  ;;  %5471 = vmatpush.msra.mxu3 %v8530_v18  ;;  %v4348_v18 = vadd.f32 %v8600_v10, %v4240_v3 }
 0xb82   : > { %5449 = vmatpush.msra.mxu2 %v8539_v32 }
 0xb83   : > { %v4783_v63 = vshrl.u32 %v9504_v23, 7  ;;  %5472 = vmatpush.msra.mxu3 %v8544_v62 }
 0xb84   : > { %5450 = vmatpush.msra.mxu2 %v8549_v21 }
 0xb85   : > { %v4784_v24 = vadd.s32 8, %v4783_v63  ;;  %5473 = vmatpush.msra.mxu3 %v8556_v40  ;;  %v8767_v21 = vcvt.s32.f32 %v4783_v63 }
 0xb86   : > { %v4324_v44 = vpop.f32.mrf.mxu2  ;;  %5451 = vmatpush.msra.mxu2 %v8561_v56  ;;  %v6398_v56 = vmov 0.0  }
 0xb87   : > { %v4342_v26 = vpop.f32.mrf.mxu3  ;;  %5474 = vmatpush.msra.mxu3 %v8566_v27 }
 0xb88   : > { %5452 = vmatpush.msra.mxu2 %v8579_v9  ;;  %v4579_v9 = vpop.permute.xlu1 %4578 }
 0xb89   : > { %5475 = vmatpush.msra.mxu3 %v8584_v34 }
 0xb8a   : > { %5453 = vmatpush.msra.mxu2 %v8607_v41 }
 0xb8b   : > { %5476 = vmatpush.msra.mxu3 %v8612_v38 }
 0xb8c   : > { %5454 = vmatpush.msra.mxu2 %v8619_v12 }
 0xb8d   : > { %5477 = vmatpush.msra.mxu3 %v8624_v45 }
 0xb8e   : > { %v4425_v5 = vpop.f32.mrf.mxu0  ;;  %v4443_v55 = vpop.f32.mrf.mxu1  ;;  %5455 = vmatpush.msra.mxu2 %v8635_v0 }
 0xb8f   : > { %v4452_v31 = vadd.f32 %v4425_v5, %v4344_v20  ;;  %v4453_v39 = vadd.f32 %v4443_v55, %v4345_v16  ;;  %v4533_v54 = vpop.f32.mrf.mxu2  ;;  %v4551_v2 = vpop.f32.mrf.mxu3  ;;  %v4241_v20 = vadd.f32 %v8590_v37, %v4133_v52  ;;  %5478 = vmatpush.msra.mxu3 %v8640_v46 }
 0xb90   : > { %5456 = vmatpush.msra.mxu2 %v8650_v53 }
 0xb91   : > { %v4560_v14 = vadd.f32 %v4533_v54, %v4452_v31  ;;  %v4561_v17 = vadd.f32 %v4551_v2, %v4453_v39  ;;  %v4349_v19 = vadd.f32 %v8602_v33, %v4241_v20  ;;  %5479 = vmatpush.msra.mxu3 %v8655_v8 }
 0xb92   : > { %5457 = vmatpush.msra.mxu2 %v8665_v15 }
 0xb93   : > { %v8718_v44 = vadd.f32 %v4569_v1, %v4561_v17  ;;  %v8724_v13 = vadd.f32 %v4569_v1, %v4560_v14  ;;  %5480 = vmatpush.msra.mxu3 %v8670_v58 }
 0xb94   : > { %5458 = vmatpush.msra.mxu2 %v8682_v30 }
 0xb95   : > { %v4789_v57 = vrot.slane %v8718_v44, 7  ;;  %5481 = vmatpush.msra.mxu3 %v8687_v59 }
 0xb96   : > { %v4427_v49 = vpop.f32.mrf.mxu0  ;;  %v4445_v61 = vpop.f32.mrf.mxu1  ;;  %5459 = vmatpush.msra.mxu2 %v8698_v25 }
 0xb97   : > { %v4454_v26 = vadd.f32 %v4427_v49, %v8572_v43  ;;  %v4455_v42 = vadd.f32 %v4445_v61, %v8588_v35  ;;  %v4535_v11 = vpop.f32.mrf.mxu2  ;;  %v4553_v28 = vpop.f32.mrf.mxu3  ;;  %v4791_v36 = vsel %vm4790_vm7, %v8724_v13, %v4789_v57  ;;  %v8748_v43 = vcvt.s32.f32 %v4784_v24  ;;  %5482 = vmatpush.msra.mxu3 %v8703_v51 }
 0xb98   : > { %v4793_v50 = vadd.f32 %v4791_v36, %v8729_v4  ;;  %v4574_v35 = vpop.permute.xlu2 %4573 }
 0xb99   : > { %v4562_v47 = vadd.f32 %v4535_v11, %v4454_v26  ;;  %v4563_v60 = vadd.f32 %v4553_v28, %v4455_v42 }
 0xb9a   : > { %v8751_v48 = vfloor.f32 %v4793_v50 }
 0xb9b   : > { %v4583_v22 = vadd.f32 %v4574_v35, %v4562_v47  ;;  %v4584_v16 = vadd.f32 %v4574_v35, %v4563_v60 }
 0xb9c   : > { %v8758_v32 = vsub.f32 %v4793_v50, %v8751_v48  ;;  %v4805_v62 = vperm.slane %v8751_v48, 0  ;;  %v8762_v5 = vadd.f32 1.0, %v8751_v48  ;;  %v4806_v10 = vperm.slane %v8751_v48, 1 }
 0xb9d   : > { %v6175_v37 = vmul.f32 -1.442695, %v4583_v22  ;;  %v6176_v55 = vmul.f32 -1.442695, %v4584_v16 }
 0xb9e   : > { %v4430_v40 = vpop.f32.mrf.mxu0  ;;  %v4448_v33 = vpop.f32.mrf.mxu1  ;;  %vm4811_vm12 = vcmp.eq.f32.partialorder %v8748_v43, %v4805_v62  ;;  %v4821_v31 = vsub.f32 1.0, %v8758_v32  ;;  %v4833_v39 = vperm.slane %v8762_v5, 0  ;;  %v4850_v23 = vperm.slane %v8758_v32, 0 }
 0xb9f   : > { %6323 = vpow2.f32 %v6175_v37  ;;  %v4456_v54 = vadd.f32 %v4430_v40, %v4348_v18  ;;  %v4457_v2 = vadd.f32 %v4448_v33, %v4349_v19  ;;  %v4538_v14 = vpop.f32.mrf.mxu2  ;;  %v4556_v17 = vpop.f32.mrf.mxu3  ;;  %v6182_v27 = vsel %vm4811_vm12, 1.0, %v6398_v56 }
 0xba0   : > { %6325 = vpow2.f32 %v6176_v55  ;;  %v4823_v63 = vperm.slane %v4821_v31, 0  ;;  %vm4839_vm13 = vcmp.eq.f32.partialorder %v8748_v43, %v4833_v39  ;;  %vm4812_vm14 = vcmp.eq.f32.partialorder %v8748_v43, %v4806_v10 }
 0xba1   : > { %v4564_v1 = vadd.f32 %v4538_v14, %v4456_v54  ;;  %v4565_v29 = vadd.f32 %v4556_v17, %v4457_v2  ;;  %v6186_v57 = vsel %vm4839_vm13, 1.0, %v6398_v56  ;;  %v4824_v7 = vperm.slane %v4821_v31, 1  ;;  %v8857_v2 = vld [vmem:[%s9357_s15 + $0x8] sm:$0xff] }
 0xba2   : > { %v4829_v34 = vmul.f32 %v6182_v27, %v4823_v63  ;;  %v4856_v24 = vmul.f32 %v6186_v57, %v4850_v23  ;;  %v4834_v6 = vperm.slane %v8762_v5, 1  ;;  %v6183_v42 = vsel %vm4812_vm14, 1.0, %v6398_v56 }
 0xba3   : > { %v8784_v49 = vadd.f32 %v4579_v9, %v4564_v1  ;;  %v8786_v61 = vadd.f32 %v4579_v9, %v4565_v29  ;;  %v4851_v41 = vperm.slane %v8758_v32, 1  ;;  %v4830_v28 = vmul.f32 %v6183_v42, %v4824_v7 }
 0xba4   : > { %v4860_v26 = vadd.f32 %v4856_v24, %v4829_v34  ;;  %vm4840_vm15 = vcmp.eq.f32.partialorder %v8748_v43, %v4834_v6  ;;  %vm8797_vm5 = vcmp.eq.f32.partialorder %v8767_v21, %v4805_v62  ;;  %vm4837_vm10 = vcmp.eq.f32.partialorder %v8767_v21, %v4833_v39  ;;  %v8851_v39 = vld [vmem:[%s9357_s15] sm:$0xff] }
 0xba5   : > { %v6324_v38 = vpop.eup %6323  ;;  %v6177_v11 = vmul.f32 -1.442695, %v8784_v49  ;;  %4722 = vst [vmem:[#allocation1] sm:$0xff] %v8784_v49  ;;  %v6187_v36 = vsel %vm4840_vm15, 1.0, %v6398_v56  ;;  %v6178_v50 = vmul.f32 -1.442695, %v8786_v61  ;;  %vm4810_vm2 = vcmp.eq.f32.partialorder %v8767_v21, %v4806_v10 }
 0xba6   : > { %v6326_v45 = vpop.eup %6325  ;;  %v8803_v52 = vadd.f32 1.0, %v6324_v38  ;;  %4723 = vst [vmem:[#allocation1 + $0x9] sm:$0xff] %v8786_v61  ;;  %4996 = vmatpush.msrb.mxu0 %v4860_v26  ;;  %v4857_v3 = vmul.f32 %v6187_v36, %v4851_v41  ;;  %v4432_v47 = vpop.f32.mrf.mxu0  ;;  %v6180_v46 = vsel %vm8797_vm5, 1.0, %v6398_v56  ;;  %v6184_v18 = vsel %vm4837_vm10, 1.0, %v6398_v56 }
 0xba7   : > { %v4450_v60 = vpop.f32.mrf.mxu1  ;;  %v8808_v35 = vadd.f32 1.0, %v6326_v45  ;;  %6327 = vpow2.f32 %v6177_v11  ;;  %v4540_v20 = vpop.f32.mrf.mxu2  ;;  %v4827_v22 = vmul.f32 %v6180_v46, %v4823_v63  ;;  %v4854_v53 = vmul.f32 %v6184_v18, %v4850_v23  ;;  %v8874_v24 = vld [vmem:[%s9356_s14 + $0x1] ss:$2 sm:$0x3] }
 0xba8   : > { %v4558_v0 = vpop.f32.mrf.mxu3  ;;  %6329 = vrcp.f32 %v8803_v52  ;;  %v4861_v16 = vadd.f32 %v4857_v3, %v4830_v28  ;;  %vm4838_vm11 = vcmp.eq.f32.partialorder %v8767_v21, %v4834_v6  ;;  %v6181_v15 = vsel %vm4810_vm2, 1.0, %v6398_v56  ;;  %v8906_v20 = vld [vmem:[%s9357_s15 + $0x10] sm:$0xff] }
 0xba9   : > { %6331 = vrcp.f32 %v8808_v35  ;;  %v4858_v32 = vadd.f32 %v4854_v53, %v4827_v22  ;;  %v6185_v58 = vsel %vm4838_vm11, 1.0, %v6398_v56  ;;  %v4828_v30 = vmul.f32 %v6181_v15, %v4824_v7  ;;  %v8911_v0 = vld [vmem:[%s9357_s15 + $0x18] sm:$0xff] }
 0xbaa   : > { %6333 = vpow2.f32 %v6178_v50  ;;  %5019 = vmatpush.msrb.mxu1 %v4861_v16  ;;  %v4855_v59 = vmul.f32 %v6185_v58, %v4851_v41  ;;  %v4604_v23 = vand.u32 2147483647, %v8803_v52  ;;  %v4606_v27 = vand.u32 2147483648, %v8803_v52 }
 0xbab   : > { %4997 = vmatpush.msrb.mxu0 %v4858_v32  ;;  %v4619_v1 = vand.u32 2147483647, %v8808_v35  ;;  %v4621_v29 = vand.u32 2147483648, %v8808_v35  ;;  %vm4600_vm1 = vweird.f32 %v8803_v52  ;;  %vm4615_vm6 = vweird.f32 %v8808_v35 }
 0xbac   : > { %v4859_v31 = vadd.f32 %v4855_v59, %v4828_v30  ;;  %vm8877_vm3 = vcmp.eq.f32.partialorder %v4604_v23, 8.507059e+37  ;;  %v4607_v42 = vor.u32 1.1754944e-38, %v4606_v27 }
 0xbad   : > { %v6328_v8 = vpop.eup %6327  ;;  %v4725_v19 = vld [vmem:[#allocation1 + $0x2] ss:$9 sm:$0xff]  ;;  %vm8890_vm9 = vcmp.eq.f32.partialorder %v4619_v1, 8.507059e+37 }
 0xbae   : > { %v8830_v48 = vpop.eup %6329  ;;  %v8832_v62 = vadd.f32 1.0, %v6328_v8  ;;  %4728 = vst [vmem:[#allocation1] sm:$0xff] %v8784_v49  ;;  %v8836_v5 = vsub.f32 %v8729_v4, %v4725_v19  ;;  %5020 = vmatpush.msrb.mxu1 %v4859_v31 }
 0xbaf   : > { %v8838_v37 = vpop.eup %6331  ;;  %v4596_v55 = vmul.f32 %v8830_v48, %v8803_v52  ;;  %4729 = vst [vmem:[#allocation1 + $0x9] sm:$0xff] %v8786_v61  ;;  %vm4601_vm8 = vweird.f32 %v8830_v48  ;;  %v4622_v52 = vor.u32 1.1754944e-38, %v4621_v29 }
 0xbb0   : > { %v6334_v25 = vpop.eup %6333  ;;  %v4611_v51 = vmul.f32 %v8838_v37, %v8808_v35  ;;  %6335 = vrcp.f32 %v8832_v62  ;;  %v4921_v54 = vperm.slane %v8836_v5, 0  ;;  %v4922_v14 = vperm.slane %v8836_v5, 1  ;;  %vm8884_vm4 = vmor %vm4600_vm1, %vm4601_vm8 }
 0xbb1   : > { %v4597_v10 = vsub.f32 1.0, %v4596_v55  ;;  %v8846_v40 = vadd.f32 1.0, %v6334_v25  ;;  %vm4616_vm0 = vweird.f32 %v8838_v37  ;;  %vm4638_vm12 = vweird.f32 %v8832_v62 }
 0xbb2   : > { %v4612_v33 = vsub.f32 1.0, %v4611_v51  ;;  %v4925_v9 = vmul.f32 %v4921_v54, %v8851_v39  ;;  %v4926_v34 = vmul.f32 %v4922_v14, %v8857_v2  ;;  %v4642_v3 = vand.u32 2147483647, %v8832_v62  ;;  %vm8917_vm13 = vmor %vm4615_vm6, %vm4616_vm0 }
 0xbb3   : > { %v4598_v17 = vmul.f32 %v8830_v48, %v4597_v10  ;;  %6337 = vrcp.f32 %v8846_v40  ;;  %v4644_v47 = vand.u32 2147483648, %v8832_v62  ;;  %v4659_v16 = vand.u32 2147483648, %v8846_v40 }
 0xbb4   : > { %v4613_v63 = vmul.f32 %v8838_v37, %v4612_v33  ;;  %4945 = vmatmul.f32.vlgmr.msra.gmra.mxu0 %v4925_v9  ;;  %4968 = vmatmul.f32.vlgmr.msra.gmra.mxu1 %v4926_v34  ;;  %v4927_v58 = vmul.f32 %v4921_v54, %v8906_v20  ;;  %v4657_v55 = vand.u32 2147483647, %v8846_v40  ;;  %vm4643_vm10 = vcmp.eq.f32.partialorder %v4642_v3, 8.507059e+37 }
 0xbb5   : > { %v4599_v57 = vadd.f32 %v8830_v48, %v4598_v17  ;;  %v4645_v59 = vor.u32 1.1754944e-38, %v4644_v47  ;;  %vm4653_vm2 = vweird.f32 %v8846_v40  ;;  %v4660_v54 = vor.u32 1.1754944e-38, %v4659_v16 }
 0xbb6   : > { %v6336_v7 = vpop.eup %6335  ;;  %v4731_v6 = vld [vmem:[#allocation1 + $0x3] ss:$9 sm:$0xff]  ;;  %v4614_v11 = vadd.f32 %v8838_v37, %v4613_v63  ;;  %vm4658_vm8 = vcmp.eq.f32.partialorder %v4657_v55, 8.507059e+37 }
 0xbb7   : > { %v4634_v41 = vmul.f32 %v6336_v7, %v8832_v62  ;;  %4734 = vst [vmem:[#allocation1] sm:$0xff] %v8784_v49  ;;  %v4733_v36 = vsub.f32 %v8874_v24, %v4731_v6  ;;  %v4603_v45 = vsel %vm8884_vm4, %v8830_v48, %v4599_v57  ;;  %vm4639_vm14 = vweird.f32 %v6336_v7 }
 0xbb8   : > { %4735 = vst [vmem:[#allocation1 + $0x9] sm:$0xff] %v8786_v61  ;;  %v8924_v8 = vsel %vm8877_vm3, %v4607_v42, %v4603_v45  ;;  %v4618_v19 = vsel %vm8917_vm13, %v8838_v37, %v4614_v11  ;;  %v4928_v48 = vmul.f32 %v4922_v14, %v8911_v0  ;;  %vm4640_vm15 = vmor %vm4638_vm12, %vm4639_vm14 }
 0xbb9   : > { %v6338_v12 = vpop.eup %6337  ;;  %v4635_v50 = vsub.f32 1.0, %v4634_v41  ;;  %v5179_v46 = vperm.slane %v4733_v36, 0  ;;  %v5180_v53 = vperm.slane %v4733_v36, 1  ;;  %v4663_v37 = vperm.slane %v8924_v8, 1 }
 0xbba   : > { %v4649_v60 = vmul.f32 %v6338_v12, %v8846_v40  ;;  %vm4654_vm5 = vweird.f32 %v6338_v12  ;;  %v8939_v25 = vsel %vm8890_vm9, %v4622_v52, %v4618_v19 }
 0xbbb   : > { %v4636_v22 = vmul.f32 %v6336_v7, %v4635_v50  ;;  %v5183_v35 = vmul.f32 %v5179_v46, %v8851_v39  ;;  %v5184_v30 = vmul.f32 %v5180_v53, %v8857_v2  ;;  %vm4655_vm11 = vmor %vm4653_vm2, %vm4654_vm5  ;;  %v4664_v14 = vperm.slane %v8939_v25, 1 }
 0xbbc   : > { %v4650_v32 = vsub.f32 1.0, %v4649_v60  ;;  %4948 = vmatmul.f32.gmra.mxu0 %v4927_v58  ;;  %4971 = vmatmul.f32.gmra.mxu1 %v4928_v48  ;;  %v5185_v63 = vmul.f32 %v5179_v46, %v8906_v20  ;;  %v8970_v38 = vmul.f32 %v4663_v37, %v8924_v8  ;;  %vm5827_vm2 = vcmask 1042432  }
 0xbbd   : > { %v4637_v15 = vadd.f32 %v6336_v7, %v4636_v22  ;;  %5203 = vmatmul.f32.vlgmr.msrb.gmra.mxu2 %v5183_v35  ;;  %5226 = vmatmul.f32.vlgmr.msrb.gmra.mxu3 %v5184_v30  ;;  %v8993_v18 = vmul.f32 %v4664_v14, %v8939_v25 }
 0xbbe   : > { %v4651_v5 = vmul.f32 %v6338_v12, %v4650_v32  ;;  %6339 = vrsqrt.f32 %v8970_v38 }
 0xbbf   : > { %v4641_v51 = vsel %vm4640_vm15, %v6336_v7, %v4637_v15  ;;  %v4737_v10 = vld [vmem:[#allocation1 + $0x4] ss:$9 sm:$0xff]  ;;  %vm4676_vm15 = vcmp.eq.f32.partialorder %v8970_v38, inf }
 0xbc0   : > { %v4646_v33 = vsel %vm4643_vm10, %v4645_v59, %v4641_v51  ;;  %v4652_v62 = vadd.f32 %v6338_v12, %v4651_v5  ;;  %4740 = vst [vmem:[#allocation1] sm:$0xff] %v8784_v49  ;;  %v4739_v40 = vadd.f32 %v4737_v10, %v8729_v4  ;;  %v5186_v49 = vmul.f32 %v5180_v53, %v8911_v0 }
 0xbc1   : > { %v8943_v31 = vmul.f32 %v4663_v37, %v4646_v33  ;;  %4741 = vst [vmem:[#allocation1 + $0x9] sm:$0xff] %v8786_v61  ;;  %vm4678_vm10 = vcmp.eq.f32.partialorder %v8970_v38, 0.0 }
 0xbc2   : > { %v4656_v17 = vsel %vm4655_vm11, %v6338_v12, %v4652_v62  ;;  %v5436_v29 = vperm.slane %v4739_v40, 0  ;;  %v5437_v57 = vperm.slane %v4739_v40, 1 }
 0xbc3   : > { %v4661_v23 = vsel %vm4658_vm8, %v4660_v54, %v4656_v17  ;;  %6341 = vrsqrt.f32 %v8943_v31  ;;  %vm4700_vm14 = vcmp.eq.f32.partialorder %v8943_v31, inf  ;;  %vm4702_vm5 = vcmp.eq.f32.partialorder %v8943_v31, 0.0 }
 0xbc4   : > { %v8948_v27 = vmul.f32 %v4664_v14, %v4661_v23  ;;  %v5440_v7 = vmul.f32 %v5436_v29, %v8851_v39  ;;  %v5441_v11 = vmul.f32 %v5437_v57, %v8857_v2  ;;  %v5443_v36 = vmul.f32 %v5437_v57, %v8911_v0  ;;  %v8981_v12 = vpop.eup %6339 }
 0xbc5   : > { %5206 = vmatmul.f32.gmra.mxu2 %v5185_v63  ;;  %5229 = vmatmul.f32.gmra.mxu3 %v5186_v49  ;;  %v4670_v50 = vmul.f32 %v8981_v12, %v8970_v38 }
 0xbc6   : > { %6343 = vrsqrt.f32 %v8948_v27 }
 0xbc7   : > { %v4671_v22 = vmul.f32 %v8981_v12, %v4670_v50  ;;  %6345 = vrsqrt.f32 %v8993_v18 }
 0xbc8   : > { %v4743_v1 = vld [vmem:[#allocation1 + $0x5] ss:$9 sm:$0xff] }
 0xbc9   : > { %4794 = vst [vmem:[#allocation1] sm:$0xff] %v8724_v13  ;;  %v4745_v61 = vadd.f32 %v8874_v24, %v4743_v1 }
 0xbca   : > { %4795 = vst [vmem:[#allocation1 + $0x9] sm:$0xff] %v8718_v44 }
 0xbcb   : > { %v5693_v9 = vperm.slane %v4745_v61, 0  ;;  %v5694_v34 = vperm.slane %v4745_v61, 1 }
 0xbcd   : > { %v8958_v6 = vmul.f32 %v5693_v9, %v8851_v39  ;;  %v8961_v26 = vmul.f32 %v5694_v34, %v8857_v2  ;;  %v8964_v42 = vmul.f32 %v5693_v9, %v8906_v20  ;;  %v8967_v41 = vmul.f32 %v5694_v34, %v8911_v0  ;;  %5460 = vmatmul.f32.vlgmr.msra.gmra.mxu2 %v5440_v7  ;;  %v8983_v2 = vpop.eup %6341 }
 0xbce   : > { %5483 = vmatmul.f32.vlgmr.msra.gmra.mxu3 %v5441_v11  ;;  %v5442_v39 = vmul.f32 %v5436_v29, %v8906_v20  ;;  %v4694_v3 = vmul.f32 %v8983_v2, %v8943_v31  ;;  %v6344_v62 = vpop.eup %6343  ;;  %v4672_v7 = vmul.f32 0.5, %v4671_v22 }
 0xbcf   : > { %v4706_v50 = vmul.f32 %v6344_v62, %v8948_v27 }
 0xbd0   : > { %v4695_v16 = vmul.f32 %v8983_v2, %v4694_v3  ;;  %v6346_v3 = vpop.eup %6345 }
 0xbd1   : > { %v8973_v28 = vld [vmem:[#allocation1 + $0x1] ss:$9 sm:$0xff] }
 0xbd2   : > { %5047 = vst [vmem:[#allocation1 + $0x9] sm:$0xff] %v8718_v44  ;;  %v4696_v61 = vmul.f32 0.5, %v4695_v16 }
 0xbd3   : > { %5046 = vst [vmem:[#allocation1] sm:$0xff] %v8724_v13 }
 0xbd5   : > { %5463 = vmatmul.f32.gmra.mxu2 %v5442_v39 }
 0xbd6   : > { %5486 = vmatmul.f32.gmra.mxu3 %v5443_v36  ;;  %v4697_v36 = vsub.f32 1.5, %v4696_v61 }
 0xbda   : > { %v5049_v45 = vld [vmem:[#allocation1 + $0x2] ss:$9 sm:$0xff] }
 0xbdb   : > { %v5051_v52 = vadd.f32 %v5049_v45, %v8729_v4  ;;  %5052 = vst [vmem:[#allocation1] sm:$0xff] %v8724_v13  ;;  %v4673_v45 = vsub.f32 1.5, %v4672_v7 }
 0xbdc   : > { %5053 = vst [vmem:[#allocation1 + $0x9] sm:$0xff] %v8718_v44 }
 0xbdd   : > { %v5058_v47 = vfloor.f32 %v5051_v52 }
 0xbdf   : > { %v5060_v60 = vsub.f32 %v5051_v52, %v5058_v47  ;;  %v5063_v20 = vperm.slane %v5058_v47, 0  ;;  %v5089_v0 = vadd.f32 1.0, %v5058_v47  ;;  %v5064_v46 = vperm.slane %v5058_v47, 1 }
 0xbe0   : > { %v4698_v52 = vmul.f32 %v8983_v2, %v4697_v36  ;;  %v4674_v47 = vmul.f32 %v8981_v12, %v4673_v45 }
 0xbe1   : > { %vm5069_vm1 = vcmp.eq.f32.partialorder %v8748_v43, %v5063_v20  ;;  %v5079_v53 = vsub.f32 1.0, %v5060_v60  ;;  %v5091_v19 = vperm.slane %v5089_v0, 0  ;;  %v5108_v32 = vperm.slane %v5060_v60, 0 }
 0xbe2   : > { %v6202_v35 = vsel %vm5069_vm1, 1.0, %v6398_v56  ;;  %vm5070_vm3 = vcmp.eq.f32.partialorder %v8748_v43, %v5064_v46  ;;  %v5092_v15 = vperm.slane %v5089_v0, 1  ;;  %v5109_v58 = vperm.slane %v5060_v60, 1 }
 0xbe3   : > { %v9001_v48 = vld [vmem:[#allocation1 + $0x3] ss:$9 sm:$0xff]  ;;  %v5081_v30 = vperm.slane %v5079_v53, 0  ;;  %vm5097_vm6 = vcmp.eq.f32.partialorder %v8748_v43, %v5091_v19  ;;  %v6203_v59 = vsel %vm5070_vm3, 1.0, %v6398_v56  ;;  %v5082_v5 = vperm.slane %v5079_v53, 1 }
 0xbe4   : > { %v6206_v55 = vsel %vm5097_vm6, 1.0, %v6398_v56  ;;  %5303 = vst [vmem:[#allocation1] sm:$0xff] %v8724_v13  ;;  %vm5098_vm4 = vcmp.eq.f32.partialorder %v8748_v43, %v5092_v15  ;;  %vm5067_vm0 = vcmp.eq.f32.partialorder %v8767_v21, %v5063_v20  ;;  %vm5095_vm9 = vcmp.eq.f32.partialorder %v8767_v21, %v5091_v19 }
 0xbe5   : > { %v5087_v37 = vmul.f32 %v6202_v35, %v5081_v30  ;;  %v5114_v51 = vmul.f32 %v6206_v55, %v5108_v32  ;;  %5304 = vst [vmem:[#allocation1 + $0x9] sm:$0xff] %v8718_v44  ;;  %v5088_v10 = vmul.f32 %v6203_v59, %v5082_v5  ;;  %v6207_v33 = vsel %vm5098_vm4, 1.0, %v6398_v56 }
 0xbe6   : > { %v5115_v54 = vmul.f32 %v6207_v33, %v5109_v58  ;;  %v6200_v14 = vsel %vm5067_vm0, 1.0, %v6398_v56  ;;  %v6204_v17 = vsel %vm5095_vm9, 1.0, %v6398_v56  ;;  %vm5068_vm12 = vcmp.eq.f32.partialorder %v8767_v21, %v5064_v46 }
 0xbe7   : > { %v5118_v23 = vadd.f32 %v5114_v51, %v5087_v37  ;;  %v5085_v63 = vmul.f32 %v6200_v14, %v5081_v30  ;;  %v5112_v40 = vmul.f32 %v6204_v17, %v5108_v32  ;;  %v6201_v49 = vsel %vm5068_vm12, 1.0, %v6398_v56 }
 0xbe8   : > { %v5119_v1 = vadd.f32 %v5115_v54, %v5088_v10  ;;  %v5086_v29 = vmul.f32 %v6201_v49, %v5082_v5  ;;  %vm5096_vm13 = vcmp.eq.f32.partialorder %v8767_v21, %v5092_v15  ;;  %v4682_v60 = vmul.f32 %v6346_v3, %v8993_v18 }
 0xbe9   : > { %5253 = vmatpush.msra.mxu0 %v5118_v23  ;;  %v5116_v57 = vadd.f32 %v5112_v40, %v5085_v63  ;;  %v6205_v9 = vsel %vm5096_vm13, 1.0, %v6398_v56  ;;  %v4699_v20 = vmul.f32 %v4698_v52, %v8943_v31  ;;  %v4707_v0 = vmul.f32 %v6344_v62, %v4706_v50 }
 0xbea   : > { %5276 = vmatpush.msra.mxu1 %v5119_v1  ;;  %v5113_v34 = vmul.f32 %v6205_v9, %v5109_v58  ;;  %v4675_v22 = vmul.f32 %v4674_v47, %v8970_v38  ;;  %v4683_v2 = vmul.f32 %v6346_v3, %v4682_v60  ;;  %v4703_v53 = vand.u32 2147483648, %v8943_v31 }
 0xbeb   : > { %5254 = vmatpush.msra.mxu0 %v5116_v57  ;;  %v4701_v16 = vsel %vm4700_vm14, %v8943_v31, %v4699_v20  ;;  %v4708_v12 = vmul.f32 0.5, %v4707_v0  ;;  %v4679_v32 = vand.u32 2147483648, %v8970_v38  ;;  %vm4712_vm12 = vcmp.eq.f32.partialorder %v8948_v27, inf }
 0xbec   : > { %v9019_v11 = vld [vmem:[#allocation1 + $0x4] ss:$9 sm:$0xff]  ;;  %v5117_v39 = vadd.f32 %v5113_v34, %v5086_v29  ;;  %v4677_v19 = vsel %vm4676_vm15, %v8970_v38, %v4675_v22  ;;  %v4704_v35 = vsel %vm4702_vm5, %v4703_v53, %v4701_v16  ;;  %v4684_v15 = vmul.f32 0.5, %v4683_v2 }
 0xbed   : > { %5309 = vst [vmem:[#allocation1] sm:$0xff] %v8724_v13  ;;  %v4709_v58 = vsub.f32 1.5, %v4708_v12  ;;  %v9042_v30 = vsel %vm4678_vm10, %v4679_v32, %v4677_v19  ;;  %v5830_v5 = vrot.slane %v4704_v35, 5  ;;  %vm4688_vm13 = vcmp.eq.f32.partialorder %v8993_v18, inf }
 0xbee   : > { %5310 = vst [vmem:[#allocation1 + $0x9] sm:$0xff] %v8718_v44  ;;  %5277 = vmatpush.msra.mxu1 %v5117_v39  ;;  %v4685_v31 = vsub.f32 1.5, %v4684_v15  ;;  %v5828_v37 = vrot.slane %v9042_v30, 5  ;;  %v4715_v35 = vand.u32 2147483648, %v8948_v27  ;;  %vm4714_vm14 = vcmp.eq.f32.partialorder %v8948_v27, 0.0 }
 0xbef   : > { %v4710_v38 = vmul.f32 %v6344_v62, %v4709_v58  ;;  %v4691_v58 = vand.u32 2147483648, %v8993_v18  ;;  %vm4690_vm15 = vcmp.eq.f32.partialorder %v8993_v18, 0.0 }
 0xbf0   : > { %v5831_v10 = vsel %vm5827_vm2, %v5828_v37, %v5830_v5 }
 0xbf1   : > { %5852 = vst [vmem:[%s9050_s24 + $0x10] sm:$0x1f] %v5831_v10  ;;  %v4711_v17 = vmul.f32 %v4710_v38, %v8948_v27 }
 0xbf3   : > { %v4713_v19 = vsel %vm4712_vm12, %v8948_v27, %v4711_v17 }
 0xbf5   : > { %v9028_v46 = vld [vmem:[#allocation1 + $0x5] ss:$9 sm:$0xff] }
 0xbf6   : > { %5560 = vst [vmem:[#allocation1] sm:$0xff] %v8724_v13 }
 0xbf7   : > { %5561 = vst [vmem:[#allocation1 + $0x9] sm:$0xff] %v8718_v44 }
 0xbfe   : > { %v5563_v59 = vld [vmem:[#allocation1 + $0x6] ss:$9 sm:$0xff] }
 0xbff   : > { %v5565_v55 = vadd.f32 %v5563_v59, %v8729_v4  ;;  %5566 = vst [vmem:[#allocation1] sm:$0xff] %v8724_v13  ;;  %v4716_v59 = vsel %vm4714_vm14, %v4715_v35, %v4713_v19 }
 0xc00   : > { %5567 = vst [vmem:[#allocation1 + $0x9] sm:$0xff] %v8718_v44  ;;  %v4686_v44 = vmul.f32 %v6346_v3, %v4685_v31 }
 0xc01   : > { %v5572_v51 = vfloor.f32 %v5565_v55 }
 0xc02   : > { %v4687_v12 = vmul.f32 %v4686_v44, %v8993_v18 }
 0xc03   : > { %v5574_v33 = vsub.f32 %v5565_v55, %v5572_v51  ;;  %v5577_v13 = vperm.slane %v5572_v51, 0  ;;  %v5603_v54 = vadd.f32 1.0, %v5572_v51  ;;  %v5578_v14 = vperm.slane %v5572_v51, 1 }
 0xc04   : > { %v4689_v15 = vsel %vm4688_vm13, %v8993_v18, %v4687_v12  ;;  %v5832_v55 = vrot.slane %v4716_v59, 5  ;;  %v5308_v51 = vadd.f32 %v9019_v11, %v8729_v4 }
 0xc05   : > { %vm5583_vm11 = vcmp.eq.f32.partialorder %v8748_v43, %v5577_v13  ;;  %v5593_v23 = vsub.f32 1.0, %v5574_v33  ;;  %v5605_v63 = vperm.slane %v5603_v54, 0  ;;  %v5622_v62 = vperm.slane %v5574_v33, 0 }
 0xc06   : > { %v6242_v40 = vsel %vm5583_vm11, 1.0, %v6398_v56  ;;  %vm5584_vm8 = vcmp.eq.f32.partialorder %v8748_v43, %v5578_v14  ;;  %v5606_v49 = vperm.slane %v5603_v54, 1  ;;  %v5623_v1 = vperm.slane %v5574_v33, 1 }
 0xc07   : > { %v5595_v29 = vperm.slane %v5593_v23, 0  ;;  %vm5611_vm1 = vcmp.eq.f32.partialorder %v8748_v43, %v5605_v63  ;;  %v6243_v61 = vsel %vm5584_vm8, 1.0, %v6398_v56  ;;  %v5596_v57 = vperm.slane %v5593_v23, 1 }
 0xc08   : > { %v6246_v9 = vsel %vm5611_vm1, 1.0, %v6398_v56  ;;  %vm5612_vm3 = vcmp.eq.f32.partialorder %v8748_v43, %v5606_v49  ;;  %vm5581_vm6 = vcmp.eq.f32.partialorder %v8767_v21, %v5577_v13  ;;  %vm5609_vm4 = vcmp.eq.f32.partialorder %v8767_v21, %v5605_v63 }
 0xc09   : > { %v5601_v34 = vmul.f32 %v6242_v40, %v5595_v29  ;;  %v5628_v7 = vmul.f32 %v6246_v9, %v5622_v62  ;;  %v5602_v39 = vmul.f32 %v6243_v61, %v5596_v57  ;;  %v6247_v36 = vsel %vm5612_vm3, 1.0, %v6398_v56 }
 0xc0a   : > { %v5629_v45 = vmul.f32 %v6247_v36, %v5623_v1  ;;  %v6240_v52 = vsel %vm5581_vm6, 1.0, %v6398_v56  ;;  %v6244_v50 = vsel %vm5609_vm4, 1.0, %v6398_v56  ;;  %vm5582_vm0 = vcmp.eq.f32.partialorder %v8767_v21, %v5578_v14 }
 0xc0b   : > { %v5632_v3 = vadd.f32 %v5628_v7, %v5601_v34  ;;  %v5599_v47 = vmul.f32 %v6240_v52, %v5595_v29  ;;  %v5626_v60 = vmul.f32 %v6244_v50, %v5622_v62  ;;  %v6241_v20 = vsel %vm5582_vm0, 1.0, %v6398_v56 }
 0xc0c   : > { %v5633_v0 = vadd.f32 %v5629_v45, %v5602_v39  ;;  %v5600_v22 = vmul.f32 %v6241_v20, %v5596_v57  ;;  %vm5610_vm9 = vcmp.eq.f32.partialorder %v8767_v21, %v5606_v49  ;;  %v9083_v5 = vsel %vm4690_vm15, %v4691_v58, %v4689_v15  ;;  %v6347_v15 = vld [vmem:[%s9358_s16 + $0x78] sm:$0xff] }
 0xc0d   : > { %5767 = vmatpush.msrb.mxu2 %v5632_v3  ;;  %v5630_v2 = vadd.f32 %v5626_v60, %v5599_v47  ;;  %v6245_v16 = vsel %vm5610_vm9, 1.0, %v6398_v56  ;;  %v5829_v31 = vrot.slane %v9083_v5, 5  ;;  %v5315_v27 = vfloor.f32 %v5308_v51  ;;  %v6348_v58 = vld [vmem:[%s9358_s16 + $0xf8] sm:$0xff] }
 0xc0e   : > { %5790 = vmatpush.msrb.mxu3 %v5633_v0  ;;  %v5627_v53 = vmul.f32 %v6245_v16, %v5623_v1  ;;  %vm4975_vm0 = vcmask 130048  }
 0xc0f   : > { %5768 = vmatpush.msrb.mxu2 %v5630_v2  ;;  %v5833_v38 = vsel %vm5827_vm2, %v5829_v31, %v5832_v55  ;;  %v5346_v10 = vadd.f32 1.0, %v5315_v27  ;;  %v5317_v33 = vsub.f32 %v5308_v51, %v5315_v27  ;;  %v5320_v14 = vperm.slane %v5315_v27, 0  ;;  %v6349_v55 = vld [vmem:[%s9358_s16 + $0x70] sm:$0xff] }
 0xc10   : > { %v5631_v32 = vadd.f32 %v5627_v53, %v5600_v22  ;;  %5853 = vst [vmem:[%s9050_s24 + $0x18] sm:$0x1f] %v5833_v38  ;;  %v5321_v44 = vperm.slane %v5315_v27, 1  ;;  %v6350_v38 = vld [vmem:[%s9358_s16 + $0xf0] sm:$0xff]  ;;  %v6351_v27 = vld [vmem:[%s9358_s16 + $0x68] sm:$0xff] }
 0xc11   : > { %v5348_v13 = vperm.slane %v5346_v10, 0  ;;  %v5349_v54 = vperm.slane %v5346_v10, 1  ;;  %v5336_v18 = vsub.f32 1.0, %v5317_v33  ;;  %vm5326_vm11 = vcmp.eq.f32.partialorder %v8748_v43, %v5320_v14  ;;  %v6352_v10 = vld [vmem:[%s9358_s16 + $0xe8] sm:$0xff] }
 0xc12   : > { %5791 = vmatpush.msrb.mxu3 %v5631_v32  ;;  %vm5327_vm8 = vcmp.eq.f32.partialorder %v8748_v43, %v5321_v44  ;;  %vm5324_vm6 = vcmp.eq.f32.partialorder %v8767_v21, %v5320_v14  ;;  %v6222_v63 = vsel %vm5326_vm11, 1.0, %v6398_v56  ;;  %v5365_v62 = vperm.slane %v5317_v33, 0  ;;  %v6355_v14 = vld [vmem:[%s9358_s16 + $0x58] sm:$0xff] }
 0xc13   : > { %vm5354_vm5 = vcmp.eq.f32.partialorder %v8748_v43, %v5348_v13  ;;  %vm5355_vm10 = vcmp.eq.f32.partialorder %v8748_v43, %v5349_v54  ;;  %v5338_v17 = vperm.slane %v5336_v18, 0  ;;  %v5339_v23 = vperm.slane %v5336_v18, 1  ;;  %v6356_v18 = vld [vmem:[%s9358_s16 + $0xd8] sm:$0xff] }
 0xc14   : > { %vm5352_vm1 = vcmp.eq.f32.partialorder %v8767_v21, %v5348_v13  ;;  %vm5353_vm3 = vcmp.eq.f32.partialorder %v8767_v21, %v5349_v54  ;;  %v6226_v4 = vsel %vm5354_vm5, 1.0, %v6398_v56  ;;  %v6227_v11 = vsel %vm5355_vm10, 1.0, %v6398_v56  ;;  %v6353_v13 = vld [vmem:[%s9358_s16 + $0x60] sm:$0xff] }
 0xc15   : > { %v5366_v40 = vperm.slane %v5317_v33, 1  ;;  %vm5325_vm4 = vcmp.eq.f32.partialorder %v8767_v21, %v5321_v44  ;;  %v5344_v49 = vmul.f32 %v6222_v63, %v5338_v17  ;;  %v6223_v1 = vsel %vm5327_vm8, 1.0, %v6398_v56  ;;  %v6354_v54 = vld [vmem:[%s9358_s16 + $0xe0] sm:$0xff]  ;;  %v6360_v63 = vld [vmem:[%s9358_s16 + $0xc8] sm:$0xff] }
 0xc16   : > { %v6224_v29 = vsel %vm5352_vm1, 1.0, %v6398_v56  ;;  %v6225_v61 = vsel %vm5353_vm3, 1.0, %v6398_v56  ;;  %v5371_v57 = vmul.f32 %v6226_v4, %v5365_v62  ;;  %v5345_v9 = vmul.f32 %v6223_v1, %v5339_v23  ;;  %v6363_v1 = vld [vmem:[%s9358_s16 + $0x38] sm:$0xff] }
 0xc17   : > { %v5372_v34 = vmul.f32 %v6227_v11, %v5366_v40  ;;  %v6220_v7 = vsel %vm5324_vm6, 1.0, %v6398_v56  ;;  %v6221_v36 = vsel %vm5325_vm4, 1.0, %v6398_v56  ;;  %v5369_v50 = vmul.f32 %v6224_v29, %v5365_v62  ;;  %v6359_v11 = vld [vmem:[%s9358_s16 + $0x48] sm:$0xff]  ;;  %v6364_v29 = vld [vmem:[%s9358_s16 + $0xb8] sm:$0xff] }
 0xc18   : > { %v5342_v39 = vmul.f32 %v6220_v7, %v5338_v17  ;;  %v5343_v3 = vmul.f32 %v6221_v36, %v5339_v23  ;;  %v5370_v47 = vmul.f32 %v6225_v61, %v5366_v40  ;;  %v5375_v20 = vadd.f32 %v5371_v57, %v5344_v49  ;;  %v6357_v17 = vld [vmem:[%s9358_s16 + $0x50] sm:$0xff]  ;;  %v6361_v40 = vld [vmem:[%s9358_s16 + $0x40] sm:$0xff]  ;;  %v6367_v7 = vld [vmem:[%s9358_s16 + $0x28] sm:$0xff] }
 0xc19   : > { %v5376_v0 = vadd.f32 %v5372_v34, %v5345_v9  ;;  %v6358_v23 = vld [vmem:[%s9358_s16 + $0xd0] sm:$0xff]  ;;  %v6362_v49 = vld [vmem:[%s9358_s16 + $0xc0] sm:$0xff] }
 0xc1a   : > { %v5373_v22 = vadd.f32 %v5369_v50, %v5342_v39  ;;  %v5374_v2 = vadd.f32 %v5370_v47, %v5343_v3  ;;  %v6365_v57 = vld [vmem:[%s9358_s16 + $0x30] sm:$0xff]  ;;  %v6368_v39 = vld [vmem:[%s9358_s16 + $0xa8] sm:$0xff]  ;;  %v6371_v50 = vld [vmem:[%s9358_s16 + $0x18] sm:$0xff] }
 0xc1b   : > { %v6366_v9 = vld [vmem:[%s9358_s16 + $0xb0] sm:$0xff]  ;;  %v6372_v3 = vld [vmem:[%s9358_s16 + $0x98] sm:$0xff] }
 0xc1c   : > { %v6373_v47 = vld [vmem:[%s9358_s16 + $0x10] sm:$0xff] }
 0xc31   : > { %v4946_v45 = vpop.f32.mrf.mxu0  ;;  %v4969_v52 = vpop.f32.mrf.mxu1 }
 0xc32   : > { %v4970_v60 = vadd.f32 %v4969_v52, %v4946_v45  ;;  %v6369_v45 = vld [vmem:[%s9358_s16 + $0x20] sm:$0xff] }
 0xc33   : > { %v6370_v52 = vld [vmem:[%s9358_s16 + $0xa0] sm:$0xff] }
 0xc34   : > { %6196 = vmatmul.msk.f32.vlgmr.msrb.gmra.mxu0 %vm4975_vm0, %v4970_v60  ;;  %6198 = vmatmul.msk.f32.vlgmr.msrb.gmra.mxu1 %vm4975_vm0, %v4970_v60  ;;  %v6374_v60 = vld [vmem:[%s9358_s16 + $0x90] sm:$0xff] }
 0xc35   : > { %5510 = vmatpush.msrb.mxu0 %v5375_v20  ;;  %5533 = vmatpush.msrb.mxu1 %v5376_v0  ;;  %v6375_v20 = vld [vmem:[%s9358_s16 + $0x8] sm:$0xff] }
 0xc36   : > { %v6376_v0 = vld [vmem:[%s9358_s16 + $0x88] sm:$0xff] }
 0xc37   : > { %5511 = vmatpush.msrb.mxu0 %v5373_v22  ;;  %5534 = vmatpush.msrb.mxu1 %v5374_v2  ;;  %v6377_v22 = vld [vmem:[%s9358_s16] sm:$0xff] }
 0xc38   : > { %v6378_v2 = vld [vmem:[%s9358_s16 + $0x80] sm:$0xff] }
 0xc39   : > { %v4949_v16 = vpop.f32.mrf.mxu0  ;;  %v4972_v12 = vpop.f32.mrf.mxu1 }
 0xc3a   : > { %v4973_v53 = vadd.f32 %v4972_v12, %v4949_v16  ;;  %v4799_v16 = vadd.f32 %v8874_v24, %v8973_v28 }
 0xc3c   : > { %6197 = vmatmul.msk.f32.gmra.mxu0 %vm4975_vm0, %v4973_v53  ;;  %6199 = vmatmul.msk.f32.gmra.mxu1 %vm4975_vm0, %v4973_v53  ;;  %v4801_v12 = vfloor.f32 %v4799_v16 }
 0xc3e   : > { %v4889_v53 = vadd.f32 1.0, %v4801_v12 }
 0xc40   : > { %v5204_v19 = vpop.f32.mrf.mxu2  ;;  %v5227_v32 = vpop.f32.mrf.mxu3 }
 0xc41   : > { %v5228_v35 = vadd.f32 %v5227_v32, %v5204_v19  ;;  %v4803_v19 = vsub.f32 %v4799_v16, %v4801_v12  ;;  %v4891_v32 = vperm.slane %v4889_v53, 0 }
 0xc43   : > { %vm4895_vm9 = vcmp.eq.f32.partialorder %v8767_v21, %v4891_v32  ;;  %vm4897_vm15 = vcmp.eq.f32.partialorder %v8748_v43, %v4891_v32 }
 0xc44   : > { %6216 = vmatmul.msk.f32.vlgmr.msra.gmra.mxu0 %vm4975_vm0, %v5228_v35  ;;  %6218 = vmatmul.msk.f32.vlgmr.msra.gmra.mxu1 %vm4975_vm0, %v5228_v35  ;;  %v4892_v35 = vperm.slane %v4889_v53, 1 }
 0xc45   : > { %5701 = vmatpush.msra.mxu0 %v6347_v15  ;;  %5724 = vmatpush.msra.mxu1 %v6348_v58  ;;  %v4863_v15 = vperm.slane %v4801_v12, 0  ;;  %v4879_v58 = vsub.f32 1.0, %v4803_v19 }
 0xc46   : > { %vm4896_vm12 = vcmp.eq.f32.partialorder %v8767_v21, %v4892_v35  ;;  %vm4898_vm10 = vcmp.eq.f32.partialorder %v8748_v43, %v4892_v35 }
 0xc47   : > { %5702 = vmatpush.msra.mxu0 %v6349_v55  ;;  %5725 = vmatpush.msra.mxu1 %v6350_v38  ;;  %vm4867_vm13 = vcmp.eq.f32.partialorder %v8767_v21, %v4863_v15  ;;  %v6193_v28 = vsel %vm4896_vm12, 1.0, %v6398_v56  ;;  %v4908_v38 = vperm.slane %v4803_v19, 0  ;;  %vm4869_vm5 = vcmp.eq.f32.partialorder %v8748_v43, %v4863_v15 }
 0xc48   : > { %v5207_v59 = vpop.f32.mrf.mxu2  ;;  %v5230_v51 = vpop.f32.mrf.mxu3 }
 0xc49   : > { %5703 = vmatpush.msra.mxu0 %v6351_v27  ;;  %5726 = vmatpush.msra.mxu1 %v6352_v10  ;;  %v5231_v33 = vadd.f32 %v5230_v51, %v5207_v59  ;;  %v4864_v59 = vperm.slane %v4801_v12, 1  ;;  %v4909_v51 = vperm.slane %v4803_v19, 1 }
 0xc4b   : > { %5704 = vmatpush.msra.mxu0 %v6353_v13  ;;  %5727 = vmatpush.msra.mxu1 %v6354_v54  ;;  %vm4868_vm14 = vcmp.eq.f32.partialorder %v8767_v21, %v4864_v59  ;;  %v4913_v54 = vmul.f32 %v6193_v28, %v4909_v51  ;;  %vm4870_vm11 = vcmp.eq.f32.partialorder %v8748_v43, %v4864_v59 }
 0xc4c   : > { %6217 = vmatmul.msk.f32.gmra.mxu0 %vm4975_vm0, %v5231_v33  ;;  %6219 = vmatmul.msk.f32.gmra.mxu1 %vm4975_vm0, %v5231_v33  ;;  %v6189_v27 = vsel %vm4868_vm14, 1.0, %v6398_v56 }
 0xc4d   : > { %5705 = vmatpush.msra.mxu0 %v6355_v14  ;;  %5728 = vmatpush.msra.mxu1 %v6356_v18 }
 0xc4f   : > { %5706 = vmatpush.msra.mxu0 %v6357_v17  ;;  %5729 = vmatpush.msra.mxu1 %v6358_v23  ;;  %v6194_v23 = vsel %vm4897_vm15, 1.0, %v6398_v56 }
 0xc50   : > { %v5461_v44 = vpop.f32.mrf.mxu2 }
 0xc51   : > { %v5484_v4 = vpop.f32.mrf.mxu3  ;;  %5707 = vmatpush.msra.mxu0 %v6359_v11  ;;  %5730 = vmatpush.msra.mxu1 %v6360_v63  ;;  %v6190_v63 = vsel %vm4869_vm5, 1.0, %v6398_v56 }
 0xc52   : > { %v5485_v62 = vadd.f32 %v5484_v4, %v5461_v44 }
 0xc53   : > { %5708 = vmatpush.msra.mxu0 %v6361_v40  ;;  %5731 = vmatpush.msra.mxu1 %v6362_v49 }
 0xc54   : > { %6236 = vmatmul.msk.f32.vlgmr.msrb.gmra.mxu0 %vm4975_vm0, %v5485_v62  ;;  %6238 = vmatmul.msk.f32.vlgmr.msrb.gmra.mxu1 %vm4975_vm0, %v5485_v62  ;;  %v6195_v62 = vsel %vm4898_vm10, 1.0, %v6398_v56 }
 0xc55   : > { %5709 = vmatpush.msra.mxu0 %v6363_v1  ;;  %5732 = vmatpush.msra.mxu1 %v6364_v29 }
 0xc57   : > { %5710 = vmatpush.msra.mxu0 %v6365_v57  ;;  %5733 = vmatpush.msra.mxu1 %v6366_v9  ;;  %v4914_v57 = vmul.f32 %v6194_v23, %v4908_v38  ;;  %v6191_v9 = vsel %vm4870_vm11, 1.0, %v6398_v56 }
 0xc58   : > { %v5464_v61 = vpop.f32.mrf.mxu2 }
 0xc59   : > { %v5487_v34 = vpop.f32.mrf.mxu3  ;;  %5711 = vmatpush.msra.mxu0 %v6367_v7  ;;  %5734 = vmatpush.msra.mxu1 %v6368_v39 }
 0xc5a   : > { %v5488_v36 = vadd.f32 %v5487_v34, %v5464_v61 }
 0xc5b   : > { %5712 = vmatpush.msra.mxu0 %v6369_v45  ;;  %5735 = vmatpush.msra.mxu1 %v6370_v52  ;;  %v5314_v52 = vadd.f32 %v8874_v24, %v9028_v46 }
 0xc5c   : > { %6237 = vmatmul.msk.f32.gmra.mxu0 %vm4975_vm0, %v5488_v36  ;;  %6239 = vmatmul.msk.f32.gmra.mxu1 %vm4975_vm0, %v5488_v36  ;;  %v4915_v36 = vmul.f32 %v6195_v62, %v4909_v51 }
 0xc5d   : > { %5713 = vmatpush.msra.mxu0 %v6371_v50  ;;  %5736 = vmatpush.msra.mxu1 %v6372_v3  ;;  %v9258_v12 = vfloor.f32 %v5314_v52 }
 0xc5f   : > { %5714 = vmatpush.msra.mxu0 %v6373_v47  ;;  %5737 = vmatpush.msra.mxu1 %v6374_v60  ;;  %v5379_v23 = vperm.slane %v9258_v12, 1 }
 0xc61   : > { %5715 = vmatpush.msra.mxu0 %v6375_v20  ;;  %5738 = vmatpush.msra.mxu1 %v6376_v0  ;;  %vm5383_vm10 = vcmp.eq.f32.partialorder %v8767_v21, %v5379_v23 }
 0xc63   : > { %5716 = vmatpush.msra.mxu0 %v6377_v22  ;;  %5739 = vmatpush.msra.mxu1 %v6378_v2 }
 0xc64   : > { %5717 = vmatmul.f32.vlgmr.msra.gmra.mxu0 %v8958_v6  ;;  %5740 = vmatmul.f32.vlgmr.msra.gmra.mxu1 %v8961_v26  ;;  %v5057_v6 = vadd.f32 %v8874_v24, %v9001_v48  ;;  %v4881_v26 = vperm.slane %v4879_v58, 0  ;;  %v6188_v48 = vsel %vm4867_vm13, 1.0, %v6398_v56 }
 0xc66   : > { %v9230_v55 = vfloor.f32 %v5057_v6  ;;  %v4885_v10 = vmul.f32 %v6188_v48, %v4881_v26  ;;  %v4887_v29 = vmul.f32 %v6190_v63, %v4881_v26 }
 0xc68   : > { %v5147_v14 = vadd.f32 1.0, %v9230_v55  ;;  %v9239_v18 = vsub.f32 %v5057_v6, %v9230_v55  ;;  %v5121_v34 = vperm.slane %v9230_v55, 0  ;;  %v5122_v45 = vperm.slane %v9230_v55, 1 }
 0xc69   : > { %v4918_v50 = vadd.f32 %v4914_v57, %v4887_v29 }
 0xc6a   : > { %v5149_v40 = vperm.slane %v5147_v14, 0  ;;  %v5150_v61 = vperm.slane %v5147_v14, 1  ;;  %v5137_v7 = vsub.f32 1.0, %v9239_v18  ;;  %vm5125_vm3 = vcmp.eq.f32.partialorder %v8767_v21, %v5121_v34 }
 0xc6b   : > { %vm5126_vm6 = vcmp.eq.f32.partialorder %v8767_v21, %v5122_v45  ;;  %v5166_v2 = vperm.slane %v9239_v18, 0  ;;  %v6208_v53 = vsel %vm5125_vm3, 1.0, %v6398_v56  ;;  %v5167_v19 = vperm.slane %v9239_v18, 1 }
 0xc6c   : > { %5720 = vmatmul.f32.gmra.mxu0 %v8964_v42  ;;  %5743 = vmatmul.f32.gmra.mxu1 %v8967_v41  ;;  %v4882_v42 = vperm.slane %v4879_v58, 1  ;;  %v6192_v41 = vsel %vm4895_vm9, 1.0, %v6398_v56  ;;  %vm5153_vm8 = vcmp.eq.f32.partialorder %v8767_v21, %v5149_v40  ;;  %vm5154_vm1 = vcmp.eq.f32.partialorder %v8767_v21, %v5150_v61 }
 0xc6d   : > { %v4912_v33 = vmul.f32 %v6192_v41, %v4908_v38  ;;  %v5139_v3 = vperm.slane %v5137_v7, 0  ;;  %v6212_v60 = vsel %vm5153_vm8, 1.0, %v6398_v56  ;;  %v5140_v20 = vperm.slane %v5137_v7, 1 }
 0xc6e   : > { %v4886_v13 = vmul.f32 %v6189_v27, %v4882_v42  ;;  %v4888_v39 = vmul.f32 %v6191_v9, %v4882_v42  ;;  %v6213_v16 = vsel %vm5154_vm1, 1.0, %v6398_v56  ;;  %v5170_v35 = vmul.f32 %v6212_v60, %v5166_v2 }
 0xc6f   : > { %v4916_v44 = vadd.f32 %v4912_v33, %v4885_v10  ;;  %v5143_v32 = vmul.f32 %v6208_v53, %v5139_v3  ;;  %v6209_v15 = vsel %vm5126_vm6, 1.0, %v6398_v56  ;;  %v5171_v26 = vmul.f32 %v6213_v16, %v5167_v19 }
 0xc70   : > { %v4917_v17 = vadd.f32 %v4913_v54, %v4886_v13  ;;  %v4919_v47 = vadd.f32 %v4915_v36, %v4888_v39  ;;  %v5144_v6 = vmul.f32 %v6209_v15, %v5140_v20  ;;  %vm5127_vm4 = vcmp.eq.f32.partialorder %v8748_v43, %v5121_v34 }
 0xc71   : > { %vm5155_vm9 = vcmp.eq.f32.partialorder %v8748_v43, %v5149_v40  ;;  %vm5156_vm12 = vcmp.eq.f32.partialorder %v8748_v43, %v5150_v61  ;;  %v5404_v42 = vadd.f32 1.0, %v9258_v12  ;;  %vm5128_vm13 = vcmp.eq.f32.partialorder %v8748_v43, %v5122_v45 }
 0xc72   : > { %v9269_v41 = vsub.f32 %v5314_v52, %v9258_v12  ;;  %v5174_v28 = vadd.f32 %v5170_v35, %v5143_v32  ;;  %v5175_v55 = vadd.f32 %v5171_v26, %v5144_v6  ;;  %v6210_v38 = vsel %vm5127_vm4, 1.0, %v6398_v56 }
 0xc73   : > { %v6214_v51 = vsel %vm5155_vm9, 1.0, %v6398_v56  ;;  %v6215_v48 = vsel %vm5156_vm12, 1.0, %v6398_v56  ;;  %v6211_v33 = vsel %vm5128_vm13, 1.0, %v6398_v56  ;;  %v5378_v13 = vperm.slane %v9258_v12, 0 }
 0xc74   : > { %v5406_v54 = vperm.slane %v5404_v42, 0  ;;  %v5407_v14 = vperm.slane %v5404_v42, 1  ;;  %v5146_v63 = vmul.f32 %v6211_v33, %v5140_v20  ;;  %v5173_v62 = vmul.f32 %v6215_v48, %v5167_v19 }
 0xc75   : > { %vm5382_vm5 = vcmp.eq.f32.partialorder %v8767_v21, %v5378_v13  ;;  %vm5384_vm1 = vcmp.eq.f32.partialorder %v8748_v43, %v5378_v13  ;;  %vm5385_vm3 = vcmp.eq.f32.partialorder %v8748_v43, %v5379_v23 }
 0xc76   : > { %vm5410_vm14 = vcmp.eq.f32.partialorder %v8767_v21, %v5406_v54  ;;  %vm5411_vm15 = vcmp.eq.f32.partialorder %v8767_v21, %v5407_v14  ;;  %v5177_v61 = vadd.f32 %v5173_v62, %v5146_v63  ;;  %v6228_v52 = vsel %vm5382_vm5, 1.0, %v6398_v56 }
 0xc77   : > { %v6232_v7 = vsel %vm5410_vm14, 1.0, %v6398_v56  ;;  %v6233_v39 = vsel %vm5411_vm15, 1.0, %v6398_v56  ;;  %vm5412_vm11 = vcmp.eq.f32.partialorder %v8748_v43, %v5406_v54  ;;  %vm5413_vm8 = vcmp.eq.f32.partialorder %v8748_v43, %v5407_v14 }
 0xc78   : > { %vm5847_vm5 = vcmask 1044480  }
 0xcb1   : > { %v4999_v4 = vpop.f32.mrf.mxu0  ;;  %v5022_v11 = vpop.f32.mrf.mxu1 }
 0xcb2   : > { %v5028_v49 = vmul.f32 %v4999_v4, %v4916_v44  ;;  %v5029_v1 = vmul.f32 %v5022_v11, %v4917_v17  ;;  %v5394_v17 = vsub.f32 1.0, %v9269_v41  ;;  %v5145_v4 = vmul.f32 %v6210_v38, %v5139_v3 }
 0xcb3   : > { %v5172_v11 = vmul.f32 %v6214_v51, %v5166_v2  ;;  %v6229_v3 = vsel %vm5383_vm10, 1.0, %v6398_v56  ;;  %v6230_v38 = vsel %vm5384_vm1, 1.0, %v6398_v56  ;;  %v6231_v51 = vsel %vm5385_vm3, 1.0, %v6398_v56 }
 0xcb4   : > { %v5397_v57 = vperm.slane %v5394_v17, 1  ;;  %vm9515_vm10 = vcmask 1043456  }
 0xcb5   : > { %v5176_v29 = vadd.f32 %v5172_v11, %v5145_v4 }
 0xcb6   : > { %v5401_v2 = vmul.f32 %v6229_v3, %v5397_v57  ;;  %v5403_v14 = vmul.f32 %v6231_v51, %v5397_v57 }
 0xcb9   : > { %v5002_v0 = vpop.f32.mrf.mxu0  ;;  %v5025_v22 = vpop.f32.mrf.mxu1 }
 0xcba   : > { %v5030_v24 = vmul.f32 %v5002_v0, %v4918_v50  ;;  %v5031_v46 = vmul.f32 %v5025_v22, %v4919_v47  ;;  %v5423_v50 = vperm.slane %v9269_v41, 0  ;;  %v5424_v47 = vperm.slane %v9269_v41, 1 }
 0xcbc   : > { %v5032_v58 = vadd.f32 %v5030_v24, %v5028_v49  ;;  %v5039_v59 = vadd.f32 %v5031_v46, %v5029_v1  ;;  %v5396_v1 = vperm.slane %v5394_v17, 0  ;;  %v5427_v22 = vmul.f32 %v6232_v7, %v5423_v50 }
 0xcbd   : > { %v5428_v16 = vmul.f32 %v6233_v39, %v5424_v47 }
 0xcbe   : > { %v5033_v40 = vrot.slane %v5032_v58, 4  ;;  %v5040_v49 = vrot.slane %v5039_v59, 4  ;;  %v5400_v0 = vmul.f32 %v6228_v52, %v5396_v1  ;;  %v5402_v13 = vmul.f32 %v6230_v38, %v5396_v1 }
 0xcbf   : > { %v5432_v15 = vadd.f32 %v5428_v16, %v5401_v2 }
 0xcc0   : > { %v5034_v9 = vadd.f32 %v5033_v40, %v5032_v58  ;;  %v5041_v34 = vadd.f32 %v5040_v49, %v5039_v59  ;;  %v5431_v35 = vadd.f32 %v5427_v22, %v5400_v0  ;;  %v6234_v58 = vsel %vm5412_vm11, 1.0, %v6398_v56  ;;  %vm9516_vm11 = vmmov %vm9515_vm10 }
 0xcc1   : > { %v5256_v27 = vpop.f32.mrf.mxu0  ;;  %v5279_v10 = vpop.f32.mrf.mxu1  ;;  %v6235_v59 = vsel %vm5413_vm8, 1.0, %v6398_v56  ;;  %v5429_v54 = vmul.f32 %v6234_v58, %v5423_v50 }
 0xcc2   : > { %v5285_v18 = vmul.f32 %v5256_v27, %v5174_v28  ;;  %v5286_v44 = vmul.f32 %v5279_v10, %v5175_v55  ;;  %v5035_v12 = vrot.slane %v5034_v9, 2  ;;  %v5042_v24 = vrot.slane %v5041_v34, 2 }
 0xcc3   : > { %v5433_v62 = vadd.f32 %v5429_v54, %v5402_v13 }
 0xcc4   : > { %v5036_v6 = vadd.f32 %v5035_v12, %v5034_v9  ;;  %v5043_v26 = vadd.f32 %v5042_v24, %v5041_v34 }
 0xcc6   : > { %v5044_v17 = vrot.slane %v5043_v26, 1 }
 0xcc9   : > { %v5259_v36 = vpop.f32.mrf.mxu0  ;;  %v5282_v45 = vpop.f32.mrf.mxu1 }
 0xcca   : > { %v5287_v60 = vmul.f32 %v5259_v36, %v5176_v29  ;;  %v5288_v20 = vmul.f32 %v5282_v45, %v5177_v61  ;;  %v5045_v29 = vadd.f32 %v5044_v17, %v5043_v26  ;;  %v5569_v26 = vld [vmem:[#allocation1 + $0x7] ss:$9 sm:$0xff] }
 0xccc   : > { %v5289_v46 = vadd.f32 %v5287_v60, %v5285_v18  ;;  %v5296_v53 = vadd.f32 %v5288_v20, %v5286_v44  ;;  %v5430_v18 = vmul.f32 %v6235_v59, %v5424_v47  ;;  %v5037_v44 = vrot.slane %v5036_v6, 1 }
 0xcce   : > { %v5290_v19 = vrot.slane %v5289_v46, 4  ;;  %v5297_v32 = vrot.slane %v5296_v53, 4  ;;  %v5434_v40 = vadd.f32 %v5430_v18, %v5403_v14  ;;  %v5038_v49 = vadd.f32 %v5037_v44, %v5036_v6 }
 0xcd0   : > { %v5291_v42 = vadd.f32 %v5290_v19, %v5289_v46  ;;  %v5298_v41 = vadd.f32 %v5297_v32, %v5296_v53 }
 0xcd1   : > { %v5513_v28 = vpop.f32.mrf.mxu0  ;;  %v5536_v55 = vpop.f32.mrf.mxu1 }
 0xcd2   : > { %v5292_v48 = vrot.slane %v5291_v42, 2  ;;  %v5299_v27 = vrot.slane %v5298_v41, 2  ;;  %v5542_v10 = vmul.f32 %v5513_v28, %v5431_v35  ;;  %v5543_v33 = vmul.f32 %v5536_v55, %v5432_v15 }
 0xcd4   : > { %v5293_v23 = vadd.f32 %v5292_v48, %v5291_v42  ;;  %v5300_v4 = vadd.f32 %v5299_v27, %v5298_v41  ;;  %v6379_v42 = vld [vmem:[%s9356_s14 + $0x1] ss:$2 sm:$0x3] }
 0xcd5   : > { %v5571_v41 = vadd.f32 %v6379_v42, %v5569_v26  ;;  %v5819_v42 = vrot.slane %v8924_v8, 4 }
 0xcd6   : > { %v5294_v11 = vrot.slane %v5293_v23, 1  ;;  %v5301_v63 = vrot.slane %v5300_v4, 1 }
 0xcd7   : > { %v5573_v28 = vfloor.f32 %v5571_v41 }
 0xcd8   : > { %v5295_v61 = vadd.f32 %v5294_v11, %v5293_v23  ;;  %v5302_v9 = vadd.f32 %v5301_v63, %v5300_v4 }
 0xcd9   : > { %v5516_v34 = vpop.f32.mrf.mxu0  ;;  %v5539_v7 = vpop.f32.mrf.mxu1  ;;  %v5661_v55 = vadd.f32 1.0, %v5573_v28  ;;  %v5575_v38 = vsub.f32 %v5571_v41, %v5573_v28  ;;  %v5635_v27 = vperm.slane %v5573_v28, 0  ;;  %v5820_v41 = vrot.slane %v8939_v25, 4 }
 0xcda   : > { %v5838_v39 = vsel %vm4790_vm7, %v5038_v49, %v5295_v61  ;;  %v5839_v1 = vsel %vm4790_vm7, %v5045_v29, %v5302_v9  ;;  %v5544_v57 = vmul.f32 %v5516_v34, %v5433_v62  ;;  %v5545_v36 = vmul.f32 %v5539_v7, %v5434_v40 }
 0xcdb   : > { %vm5840_vm7 = vcmask 1041408   ;;  %v5663_v51 = vperm.slane %v5661_v55, 0  ;;  %v5664_v48 = vperm.slane %v5661_v55, 1  ;;  %v5680_v18 = vperm.slane %v5575_v38, 0 }
 0xcdc   : > { %v5546_v45 = vadd.f32 %v5544_v57, %v5542_v10  ;;  %v5553_v52 = vadd.f32 %v5545_v36, %v5543_v33  ;;  %v5651_v10 = vsub.f32 1.0, %v5575_v38  ;;  %v5636_v33 = vperm.slane %v5573_v28, 1 }
 0xcdd   : > { %vm5667_vm6 = vcmp.eq.f32.partialorder %v8767_v21, %v5663_v51  ;;  %vm5668_vm4 = vcmp.eq.f32.partialorder %v8767_v21, %v5664_v48  ;;  %vm5669_vm9 = vcmp.eq.f32.partialorder %v8748_v43, %v5663_v51  ;;  %vm5670_vm12 = vcmp.eq.f32.partialorder %v8748_v43, %v5664_v48 }
 0xcde   : > { %v5547_v50 = vrot.slane %v5546_v45, 4  ;;  %v5554_v3 = vrot.slane %v5553_v52, 4  ;;  %v5653_v13 = vperm.slane %v5651_v10, 0  ;;  %v6252_v54 = vsel %vm5667_vm6, 1.0, %v6398_v56 }
 0xcdf   : > { %vm5640_vm13 = vcmp.eq.f32.partialorder %v8767_v21, %v5636_v33  ;;  %v5654_v14 = vperm.slane %v5651_v10, 1  ;;  %v6253_v44 = vsel %vm5668_vm4, 1.0, %v6398_v56  ;;  %vm5641_vm14 = vcmp.eq.f32.partialorder %v8748_v43, %v5635_v27 }
 0xce0   : > { %v5548_v47 = vadd.f32 %v5547_v50, %v5546_v45  ;;  %v5555_v60 = vadd.f32 %v5554_v3, %v5553_v52  ;;  %vm5642_vm15 = vcmp.eq.f32.partialorder %v8748_v43, %v5636_v33  ;;  %v5681_v4 = vperm.slane %v5575_v38, 1 }
 0xce1   : > { %v5718_v20 = vpop.f32.mrf.mxu0  ;;  %v5741_v0 = vpop.f32.mrf.mxu1  ;;  %v6254_v63 = vsel %vm5669_vm9, 1.0, %v6398_v56  ;;  %v6255_v62 = vsel %vm5670_vm12, 1.0, %v6398_v56  ;;  %v5684_v49 = vmul.f32 %v6252_v54, %v5680_v18  ;;  %v6250_v9 = vsel %vm5641_vm14, 1.0, %v6398_v56 }
 0xce2   : > { %v5549_v22 = vrot.slane %v5548_v47, 2  ;;  %v5556_v2 = vrot.slane %v5555_v60, 2  ;;  %v5742_v16 = vadd.f32 %v5741_v0, %v5718_v20  ;;  %v5685_v61 = vmul.f32 %v6253_v44, %v5681_v4 }
 0xce3   : > { %v6251_v34 = vsel %vm5642_vm15, 1.0, %v6398_v56  ;;  %v5659_v43 = vmul.f32 %v6250_v9, %v5653_v13  ;;  %v5686_v7 = vmul.f32 %v6254_v63, %v5680_v18 }
 0xce4   : > { %v5550_v12 = vadd.f32 %v5549_v22, %v5548_v47  ;;  %v5557_v24 = vadd.f32 %v5556_v2, %v5555_v60  ;;  %6256 = vmatmul.msk.f32.vlgmr.msrb.gmra.mxu2 %vm4975_vm0, %v5742_v16  ;;  %6258 = vmatmul.msk.f32.vlgmr.msrb.gmra.mxu3 %vm4975_vm0, %v5742_v16 }
 0xce5   : > { %v5690_v45 = vadd.f32 %v5686_v7, %v5659_v43 }
 0xce6   : > { %v5551_v46 = vrot.slane %v5550_v12, 1  ;;  %v5558_v53 = vrot.slane %v5557_v24, 1 }
 0xce8   : > { %v5552_v19 = vadd.f32 %v5551_v46, %v5550_v12  ;;  %v5559_v32 = vadd.f32 %v5558_v53, %v5557_v24 }
 0xce9   : > { %v5721_v35 = vpop.f32.mrf.mxu0  ;;  %v5744_v15 = vpop.f32.mrf.mxu1 }
 0xcea   : > { %v9300_v58 = vsel %vm5840_vm7, %v5838_v39, %v5552_v19  ;;  %v9302_v59 = vsel %vm5840_vm7, %v5839_v1, %v5559_v32  ;;  %v5745_v6 = vadd.f32 %v5744_v15, %v5721_v35  ;;  %v5660_v39 = vmul.f32 %v6251_v34, %v5654_v14 }
 0xceb   : > { %v5687_v1 = vmul.f32 %v6255_v62, %v5681_v4 }
 0xcec   : > { %6257 = vmatmul.msk.f32.gmra.mxu2 %vm4975_vm0, %v5745_v6  ;;  %6259 = vmatmul.msk.f32.gmra.mxu3 %vm4975_vm0, %v5745_v6  ;;  %vm5639_vm0 = vcmp.eq.f32.partialorder %v8767_v21, %v5635_v27  ;;  %v6249_v21 = vsel %vm5640_vm13, 1.0, %v6398_v56 }
 0xced   : > { %v6248_v17 = vsel %vm5639_vm0, 1.0, %v6398_v56  ;;  %v5658_v29 = vmul.f32 %v6249_v21, %v5654_v14  ;;  %v5691_v52 = vadd.f32 %v5687_v1, %v5660_v39 }
 0xcee   : > { %v5657_v40 = vmul.f32 %v6248_v17, %v5653_v13 }
 0xcef   : > { %v5689_v36 = vadd.f32 %v5685_v61, %v5658_v29 }
 0xcf0   : > { %v5688_v57 = vadd.f32 %v5684_v49, %v5657_v40 }
 0xd67   : > { %v5770_v23 = vpop.f32.mrf.mxu2  ;;  %v5793_v11 = vpop.f32.mrf.mxu3 }
 0xd68   : > { %v5799_v47 = vmul.f32 %v5770_v23, %v5688_v57  ;;  %v5800_v60 = vmul.f32 %v5793_v11, %v5689_v36 }
 0xd6f   : > { %v5773_v50 = vpop.f32.mrf.mxu2  ;;  %v5796_v3 = vpop.f32.mrf.mxu3 }
 0xd70   : > { %v5801_v20 = vmul.f32 %v5773_v50, %v5690_v45  ;;  %v5802_v0 = vmul.f32 %v5796_v3, %v5691_v52 }
 0xd72   : > { %v5803_v22 = vadd.f32 %v5801_v20, %v5799_v47  ;;  %v5810_v2 = vadd.f32 %v5802_v0, %v5800_v60 }
 0xd74   : > { %v5804_v16 = vrot.slane %v5803_v22, 4  ;;  %v5811_v12 = vrot.slane %v5810_v2, 4 }
 0xd76   : > { %v5805_v24 = vadd.f32 %v5804_v16, %v5803_v22  ;;  %v5812_v56 = vadd.f32 %v5811_v12, %v5810_v2 }
 0xd78   : > { %v5806_v46 = vrot.slane %v5805_v24, 2  ;;  %v5813_v53 = vrot.slane %v5812_v56, 2 }
 0xd7a   : > { %v5807_v19 = vadd.f32 %v5806_v46, %v5805_v24  ;;  %v5814_v32 = vadd.f32 %v5813_v53, %v5812_v56 }
 0xd7c   : > { %v5808_v35 = vrot.slane %v5807_v19, 1  ;;  %v5815_v15 = vrot.slane %v5814_v32, 1 }
 0xd7e   : > { %v5809_v6 = vadd.f32 %v5808_v35, %v5807_v19  ;;  %v5816_v26 = vadd.f32 %v5815_v15, %v5814_v32 }
 0xd80   : > { %v5843_v28 = vsel %vm5827_vm2, %v9300_v58, %v5809_v6  ;;  %v5844_v55 = vsel %vm5827_vm2, %v9302_v59, %v5816_v26 }
 0xd81   : > { %v5845_v38 = vsel %vm9515_vm10, %v5843_v28, %v5819_v42  ;;  %v5846_v51 = vsel %vm9516_vm11, %v5844_v55, %v5820_v41 }
 0xd82   : > { %v5848_v48 = vsel %vm5847_vm5, %v5845_v38, %v5828_v37  ;;  %v5849_v27 = vsel %vm5847_vm5, %v5846_v51, %v5829_v31 }
 0xd83   : > { %5850 = vst [vmem:[%s9050_s24] sm:$0xff] %v5848_v48 }
 0xd84   : > { %5851 = vst [vmem:[%s9050_s24 + $0x8] sm:$0xff] %v5849_v27 }
 0xd85 PF: > { %s9517_s21 = sld [smem:[#allocation2_spill]] }
 0xd8b   : > { %s27_s24 = sadd.s32 1, %s9517_s21  }
 0xd8c   : > { %p24_p4 = scmp.ge.s32.totalorder %s27_s24, 4  }
 0xd8e   :  { %26 = sbr.rel (!%p24_p4) target bundleno = 5 (0x5), region = 147 }

</bundles_post_ra>
